<compile_context>
chip_gen: v7x
topology: tpu7x:2x2x1
jax: 0.10.0
libtpu: 0.0.40
codegen_flags: <defaults>
</compile_context>

<pallas_src>
import functools

import jax
import jax.numpy as jnp
import numpy as np
from jax import lax
from jax.experimental import pallas as pl
from jax.experimental.pallas import tpu as pltpu


def _round_up(v, m):
    return (v + m - 1) // m * m


def _pick_batch_fold(n, hw, lane_target=512):
    """Images folded onto lanes per grid step: the smallest divisor of n whose
    folded lane width reaches lane_target (else the whole batch).  For
    n*hw >= 2*lane_target this leaves >= 2 parallel grid steps (v7x)."""
    for d in range(1, n + 1):
        if n % d == 0 and d * hw >= lane_target:
            return d
    return n


def _initial_stage_kernel(W, x_ref, mb_ref, wt_ref, bt_ref, wf1_ref, bf1_ref,
                          w2_ref, b2_ref, out_ref, xcol_ref, h_ref):
    # x_ref:    (NB, C, HW)     f32   NB images of this grid step
    # mb_ref:   (1, NB*HW)      i32   4-bit border bitmask per folded pixel
    # wt_ref:   (3, C, 9C)      bf16  fused trunk weights (tap-major K axis)
    # bt_ref:   (3, C, 1)       f32   trunk biases
    # wf1_ref:  (2*HID, C)      bf16  fused [heatmap ; paf] first 1x1 convs
    # bf1_ref:  (2*HID, 1)      f32
    # w2_ref:   (ROWS, 2*HID)   bf16  block-diagonal fused second 1x1 convs
    # b2_ref:   (ROWS, 1)       f32
    # out_ref:  (NB, ROWS, HW)  f32   fused [heatmaps ; pafs] output
    # xcol_ref: (9C, NB*HW)     bf16  im2col scratch
    # h_ref:    (2*HID, NB*HW)  bf16  hidden-activation scratch
    NB, C, HW = x_ref.shape
    NBHW = NB * HW
    HID2 = wf1_ref.shape[0]

    # ---- fold this step's NB images onto the lane axis: (C, NB*HW) ----------
    if NB == 1:
        x0 = x_ref[0]
    else:
        x0 = jnp.concatenate([x_ref[i] for i in range(NB)], axis=-1)

    # ---- expand the 3x3 zero-padding masks from the packed bitmask ----------
    bits = mb_ref[...]                                     # (1, NBHW) int32

    def base(bit):
        return ((bits >> bit) & 1).astype(jnp.float32)     # 0/1, (1, NBHW)

    top, bot, lft, rgt = base(0), base(1), base(2), base(3)
    row_m = {-1: top, 0: None, 1: bot}
    col_m = {-1: lft, 0: None, 1: rgt}
    tap_mask = []
    for ti in range(9):
        dy, dx = ti // 3 - 1, ti % 3 - 1
        m = None
        for part in (row_m[dy], col_m[dx]):
            if part is not None:
                m = part if m is None else m * part
        tap_mask.append(m)                                 # (1, NBHW) or None

    # ---- trunk: 3x (3x3 conv + ReLU), one fused (C,9C)@(9C,NBHW) per layer --
    def conv3x3_relu(feat, layer):
        # 9 shifted copies of `feat` written into the im2col scratch.  Zero
        # padding is realised by 0/1 masks: every lane-roll wraparound (incl.
        # crossing a folded image boundary) lands only on masked positions.
        for ti in range(9):
            dy, dx = ti // 3 - 1, ti % 3 - 1
            shift = (-(dy * W + dx)) % NBHW
            tap = feat if shift == 0 else pltpu.roll(feat, shift=shift, axis=1)
            if tap_mask[ti] is not None:
                tap = tap * tap_mask[ti]
            xcol_ref[ti * C:(ti + 1) * C, :] = tap.astype(jnp.bfloat16)
        acc = jnp.dot(wt_ref[layer], xcol_ref[...],
                      preferred_element_type=jnp.float32)
        return jnp.maximum(acc + bt_ref[layer], 0.0)       # (C, NBHW) f32

    feat = x0
    for layer in range(3):
        feat = conv3x3_relu(feat, layer)
    feat_bf = feat.astype(jnp.bfloat16)                    # shared trunk feats

    # ---- heads, stage 1: (2*HID, C) @ (C, NBHW) into the bf16 scratch -------
    # Row-chunked only to bound each f32 intermediate to ~128 KB (no vreg
    # spills); head-2 below still contracts the FULL K = 2*HID depth.
    rc_target = max(8, (128 * 1024) // (NBHW * 4))
    rc, d = 8, 8
    while d <= min(HID2, rc_target):
        if HID2 % d == 0:
            rc = d
        d *= 2
    for r0 in range(0, HID2, rc):
        r1 = min(r0 + rc, HID2)
        fc = jnp.dot(wf1_ref[r0:r1, :], feat_bf,
                     preferred_element_type=jnp.float32)
        fc = jnp.maximum(fc + bf1_ref[r0:r1, :], 0.0)
        h_ref[r0:r1, :] = fc.astype(jnp.bfloat16)

    # ---- heads, stage 2: single block-diagonal K = 2*HID MXU matmul ---------
    heads = jnp.dot(w2_ref[...], h_ref[...],
                    preferred_element_type=jnp.float32) + b2_ref[...]
    for i in range(NB):                                    # lane-dense stores
        out_ref[i] = heads[:, i * HW:(i + 1) * HW]


def pack_params(params):
    """One-time packing of the PyTorch-layout parameters into the kernel's
    fused / padded / bf16 layout.  Called once, outside the per-call jit."""
    C = params["wt"].shape[3]
    HID = params["wh1"].shape[0]
    NH = params["wh2"].shape[0]
    NP = params["wp2"].shape[0]
    NHp, NPp = _round_up(NH, 16), _round_up(NP, 16)

    # trunk: (l, ky, kx, ci, co) -> (l, co, (ky,kx,ci)) for (C,9C)@(9C,HW)
    wt = jnp.transpose(params["wt"], (0, 4, 1, 2, 3)).reshape(3, C, 9 * C)
    bt = params["bt"].reshape(3, C, 1)

    # fused head-1: [heatmap-hidden ; paf-hidden]
    wf1 = jnp.concatenate([params["wh1"], params["wp1"]], axis=0)
    bf1 = jnp.concatenate([params["bh1"], params["bp1"]], axis=0).reshape(-1, 1)

    # fused block-diagonal head-2, rows padded to multiples of 16
    w2 = jnp.zeros((NHp + NPp, 2 * HID), jnp.float32)
    w2 = w2.at[:NH, :HID].set(params["wh2"])
    w2 = w2.at[NHp:NHp + NP, HID:].set(params["wp2"])
    b2 = jnp.zeros((NHp + NPp,), jnp.float32)
    b2 = b2.at[:NH].set(params["bh2"])
    b2 = b2.at[NHp:NHp + NP].set(params["bp2"])

    return {
        "wt": wt.astype(jnp.bfloat16),
        "bt": bt.astype(jnp.float32),
        "wf1": wf1.astype(jnp.bfloat16),
        "bf1": bf1.astype(jnp.float32),
        "w2": w2.astype(jnp.bfloat16),
        "b2": b2.reshape(-1, 1).astype(jnp.float32),
    }


@functools.partial(jax.jit, static_argnames=("num_heatmaps", "num_pafs"))
def initial_stage_forward(x_nchw, packed, *, num_heatmaps, num_pafs):
    """Fused InitialStage forward. Input / outputs are NCHW like PyTorch."""
    x = x_nchw.astype(jnp.float32)
    N, C, H, W = x.shape
    HW = H * W
    HID2 = packed["wf1"].shape[0]
    NH, NP = num_heatmaps, num_pafs
    NHp, NPp = _round_up(NH, 16), _round_up(NP, 16)
    ROWS = NHp + NPp

    NB = _pick_batch_fold(N, HW)          # images folded onto lanes per step
    NBHW = NB * HW
    num_tiles = N // NB
    # Note: at very small N*HW (like this test) the full lane fold leaves one
    # v7x TensorCore idle; once N*HW >= 1024 the grid keeps >= 2 parallel steps.

    # NCHW -> (N, C, H*W): free contiguous reshape (no transpose anywhere).
    x_flat = x.reshape(N, C, HW)

    # 4-bit border bitmask per folded pixel (compile-time constant):
    # bit0: h>=1, bit1: h<=H-2, bit2: w>=1, bit3: w<=W-2.
    hh = np.arange(HW) // W
    ww = np.arange(HW) % W
    bits_img = (((hh >= 1).astype(np.int32) << 0)
                | ((hh <= H - 2).astype(np.int32) << 1)
                | ((ww >= 1).astype(np.int32) << 2)
                | ((ww <= W - 2).astype(np.int32) << 3))
    maskbits = jnp.asarray(np.tile(bits_img, NB).reshape(1, NBHW))

    def const_spec(shape):
        nd = len(shape)
        return pl.BlockSpec(shape, lambda i, _nd=nd: (0,) * _nd)

    out = pl.pallas_call(
        functools.partial(_initial_stage_kernel, W),
        out_shape=jax.ShapeDtypeStruct((N, ROWS, HW), jnp.float32),
        grid=(num_tiles,),
        in_specs=[
            pl.BlockSpec((NB, C, HW), lambda i: (i, 0, 0)),   # activations
            const_spec((1, NBHW)),                            # border bitmask
            const_spec((3, C, 9 * C)),                        # trunk weights
            const_spec((3, C, 1)),                            # trunk biases
            const_spec((HID2, C)),                            # fused head-1 W
            const_spec((HID2, 1)),                            # fused head-1 b
            const_spec((ROWS, HID2)),                         # fused head-2 W
            const_spec((ROWS, 1)),                            # fused head-2 b
        ],
        out_specs=pl.BlockSpec((NB, ROWS, HW), lambda i: (i, 0, 0)),
        scratch_shapes=[
            pltpu.VMEM((9 * C, NBHW), jnp.bfloat16),          # im2col
            pltpu.VMEM((HID2, NBHW), jnp.bfloat16),           # hidden acts
        ],
        compiler_params=pltpu.CompilerParams(
            dimension_semantics=("parallel",),
            vmem_limit_bytes=32 * 1024 * 1024),
    )(x_flat, maskbits, packed["wt"], packed["bt"], packed["wf1"],
      packed["bf1"], packed["w2"], packed["b2"])

    # (N, ROWS, H*W) -> two NCHW outputs: slice fused rows, free reshapes.
    hm = out[:, :NH, :].reshape(N, NH, H, W)
    paf = out[:, NHp:NHp + NP, :].reshape(N, NP, H, W)
    return [hm, paf]


def make_params(key, num_channels, num_heatmaps, num_pafs, hidden=512):
    ks = jax.random.split(key, 10)
    s = 0.1
    C = num_channels
    return {
        # trunk conv weights, HWIO per layer: (3 layers, ky, kx, Cin, Cout)
        "wt": jax.random.normal(ks[0], (3, 3, 3, C, C), jnp.float32) * s,
        "bt": jax.random.normal(ks[1], (3, C), jnp.float32) * s,
        # 1x1 conv weights stored PyTorch-style (out_channels, in_channels)
        "wh1": jax.random.normal(ks[2], (hidden, C), jnp.float32) * s,
        "bh1": jax.random.normal(ks[3], (hidden,), jnp.float32) * s,
        "wh2": jax.random.normal(ks[4], (num_heatmaps, hidden), jnp.float32) * s,
        "bh2": jax.random.normal(ks[5], (num_heatmaps,), jnp.float32) * s,
        "wp1": jax.random.normal(ks[6], (hidden, C), jnp.float32) * s,
        "bp1": jax.random.normal(ks[7], (hidden,), jnp.float32) * s,
        "wp2": jax.random.normal(ks[8], (num_pafs, hidden), jnp.float32) * s,
        "bp2": jax.random.normal(ks[9], (num_pafs,), jnp.float32) * s,
    }


def reference_forward(x_nchw, params):
    """Pure-JAX reference with matching bf16-in / f32-accumulate numerics."""
    bf16 = jnp.bfloat16
    t = jnp.transpose(x_nchw, (0, 2, 3, 1)).astype(jnp.float32)   # NHWC
    for l in range(3):
        out = lax.conv_general_dilated(
            t.astype(bf16), params["wt"][l].astype(bf16),
            window_strides=(1, 1), padding=((1, 1), (1, 1)),
            dimension_numbers=("NHWC", "HWIO", "NHWC"),
            preferred_element_type=jnp.float32)
        t = jax.nn.relu(out + params["bt"][l].reshape(1, 1, 1, -1))

    def head(w1, b1, w2, b2):
        h = jnp.einsum("nhwc,dc->nhwd", t.astype(bf16), w1.astype(bf16),
                       preferred_element_type=jnp.float32) + b1.reshape(1, 1, 1, -1)
        h = jax.nn.relu(h)
        return (jnp.einsum("nhwd,ed->nhwe", h.astype(bf16), w2.astype(bf16),
                           preferred_element_type=jnp.float32)
                + b2.reshape(1, 1, 1, -1))

    hm = head(params["wh1"], params["bh1"], params["wh2"], params["bh2"])
    pf = head(params["wp1"], params["bp1"], params["wp2"], params["bp2"])
    return [jnp.transpose(hm, (0, 3, 1, 2)), jnp.transpose(pf, (0, 3, 1, 2))]


if __name__ == "__main__":
    # Small, InitialStage-consistent shapes: batch=2, num_channels=32,
    # spatial 16x16, num_heatmaps=19, num_pafs=38 (OpenPose defaults).
    N, C, H, W = 2, 32, 16, 16
    NUM_HEATMAPS, NUM_PAFS = 19, 38

    key = jax.random.PRNGKey(0)
    k_x, k_p = jax.random.split(key)
    x = jax.random.normal(k_x, (N, C, H, W), jnp.float32)
    params = make_params(k_p, C, NUM_HEATMAPS, NUM_PAFS)

    packed = pack_params(params)          # one-time weight packing
    heatmaps, pafs = initial_stage_forward(
        x, packed, num_heatmaps=NUM_HEATMAPS, num_pafs=NUM_PAFS)
    jax.block_until_ready(heatmaps)
    jax.block_until_ready(pafs)

    hm_ref, pf_ref = reference_forward(x, params)
    assert heatmaps.shape == (N, NUM_HEATMAPS, H, W)
    assert pafs.shape == (N, NUM_PAFS, H, W)
    # Both paths use bf16-operand / f32-accumulate matmuls with identical bf16
    # cast points; residual differences come only from accumulation order.
    assert jnp.allclose(heatmaps, hm_ref, atol=1e-2, rtol=1e-2), \
        float(jnp.max(jnp.abs(heatmaps - hm_ref)))
    assert jnp.allclose(pafs, pf_ref, atol=1e-2, rtol=1e-2), \
        float(jnp.max(jnp.abs(pafs - pf_ref)))

    print("KERNEL_OK")
</pallas_src>

<mosaic_0001>
module attributes {stable_mosaic.version = 11 : i64} {
  func.func @_initial_stage_kernel(%arg0: i32, %arg1: memref<2x32x256xf32, #tpu.memory_space<vmem>>, %arg2: memref<1x512xi32, #tpu.memory_space<vmem>>, %arg3: memref<3x32x288xbf16, #tpu.memory_space<vmem>>, %arg4: memref<3x32x1xf32, #tpu.memory_space<vmem>>, %arg5: memref<1024x32xbf16, #tpu.memory_space<vmem>>, %arg6: memref<1024x1xf32, #tpu.memory_space<vmem>>, %arg7: memref<80x1024xbf16, #tpu.memory_space<vmem>>, %arg8: memref<80x1xf32, #tpu.memory_space<vmem>>, %arg9: memref<2x80x256xf32, #tpu.memory_space<vmem>>, %arg10: memref<288x512xbf16, #tpu.memory_space<vmem>>, %arg11: memref<1024x512xbf16, #tpu.memory_space<vmem>>) attributes {dimension_semantics = [#tpu.dimension_semantics<parallel>], iteration_bounds = array<i64: 1>, scalar_prefetch = 0 : i64, scratch_operands = 2 : i64, tpu.core_type = #tpu.core_type<tc>, window_params = [{transform_indices = @transform_0, window_bounds = array<i64: 2, 32, 256>}, {pipeline_mode = #tpu.pipeline_mode<synchronous>, transform_indices = @transform_1, window_bounds = array<i64: 1, 512>}, {pipeline_mode = #tpu.pipeline_mode<synchronous>, transform_indices = @transform_2, window_bounds = array<i64: 3, 32, 288>}, {pipeline_mode = #tpu.pipeline_mode<synchronous>, transform_indices = @transform_3, window_bounds = array<i64: 3, 32, 1>}, {pipeline_mode = #tpu.pipeline_mode<synchronous>, transform_indices = @transform_4, window_bounds = array<i64: 1024, 32>}, {pipeline_mode = #tpu.pipeline_mode<synchronous>, transform_indices = @transform_5, window_bounds = array<i64: 1024, 1>}, {pipeline_mode = #tpu.pipeline_mode<synchronous>, transform_indices = @transform_6, window_bounds = array<i64: 80, 1024>}, {pipeline_mode = #tpu.pipeline_mode<synchronous>, transform_indices = @transform_7, window_bounds = array<i64: 80, 1>}, {transform_indices = @transform_8, window_bounds = array<i64: 2, 80, 256>}]} {
    %c0 = arith.constant 0 : index
    %c0_0 = arith.constant 0 : index
    %c0_1 = arith.constant 0 : index
    %0 = vector.load %arg1[%c0, %c0_0, %c0_1] : memref<2x32x256xf32, #tpu.memory_space<vmem>>, vector<1x32x256xf32>
    %1 = vector.shape_cast %0 : vector<1x32x256xf32> to vector<32x256xf32>
    %c1 = arith.constant 1 : index
    %c0_2 = arith.constant 0 : index
    %c0_3 = arith.constant 0 : index
    %2 = vector.load %arg1[%c1, %c0_2, %c0_3] : memref<2x32x256xf32, #tpu.memory_space<vmem>>, vector<1x32x256xf32>
    %3 = vector.shape_cast %2 : vector<1x32x256xf32> to vector<32x256xf32>
    %4 = tpu.concatenate %1, %3 in 1 : vector<32x256xf32>, vector<32x256xf32> -> vector<32x512xf32>
    %c0_4 = arith.constant 0 : index
    %c0_5 = arith.constant 0 : index
    %5 = vector.load %arg2[%c0_4, %c0_5] : memref<1x512xi32, #tpu.memory_space<vmem>>, vector<1x512xi32>
    %c0_i32 = arith.constant 0 : i32
    %6 = vector.broadcast %c0_i32 : i32 to vector<1x512xi32>
    %7 = arith.shrsi %5, %6 : vector<1x512xi32>
    %c1_i32 = arith.constant 1 : i32
    %8 = vector.broadcast %c1_i32 : i32 to vector<1x512xi32>
    %9 = arith.andi %7, %8 : vector<1x512xi32>
    %10 = arith.sitofp %9 : vector<1x512xi32> to vector<1x512xf32>
    %c1_i32_6 = arith.constant 1 : i32
    %11 = vector.broadcast %c1_i32_6 : i32 to vector<1x512xi32>
    %12 = arith.shrsi %5, %11 : vector<1x512xi32>
    %c1_i32_7 = arith.constant 1 : i32
    %13 = vector.broadcast %c1_i32_7 : i32 to vector<1x512xi32>
    %14 = arith.andi %12, %13 : vector<1x512xi32>
    %15 = arith.sitofp %14 : vector<1x512xi32> to vector<1x512xf32>
    %c2_i32 = arith.constant 2 : i32
    %16 = vector.broadcast %c2_i32 : i32 to vector<1x512xi32>
    %17 = arith.shrsi %5, %16 : vector<1x512xi32>
    %c1_i32_8 = arith.constant 1 : i32
    %18 = vector.broadcast %c1_i32_8 : i32 to vector<1x512xi32>
    %19 = arith.andi %17, %18 : vector<1x512xi32>
    %20 = arith.sitofp %19 : vector<1x512xi32> to vector<1x512xf32>
    %c3_i32 = arith.constant 3 : i32
    %21 = vector.broadcast %c3_i32 : i32 to vector<1x512xi32>
    %22 = arith.shrsi %5, %21 : vector<1x512xi32>
    %c1_i32_9 = arith.constant 1 : i32
    %23 = vector.broadcast %c1_i32_9 : i32 to vector<1x512xi32>
    %24 = arith.andi %22, %23 : vector<1x512xi32>
    %25 = arith.sitofp %24 : vector<1x512xi32> to vector<1x512xf32>
    %26 = arith.mulf %10, %20 : vector<1x512xf32>
    %27 = arith.mulf %10, %25 : vector<1x512xf32>
    %28 = arith.mulf %15, %20 : vector<1x512xf32>
    %29 = arith.mulf %15, %25 : vector<1x512xf32>
    %c17_i32 = arith.constant 17 : i32
    %30 = tpu.dynamic_rotate %4 by %c17_i32 dim 1 : vector<32x512xf32>, i32 -> vector<32x512xf32>
    %31 = vector.broadcast %26 : vector<1x512xf32> to vector<32x512xf32>
    %32 = arith.mulf %30, %31 : vector<32x512xf32>
    %33 = arith.truncf %32 : vector<32x512xf32> to vector<32x512xbf16>
    %c0_10 = arith.constant 0 : index
    %c0_11 = arith.constant 0 : index
    %34 = vector.load %arg10[%c0_10, %c0_11] : memref<288x512xbf16, #tpu.memory_space<vmem>>, vector<32x512xbf16>
    tpu.vector_store %arg10[%c0_10, %c0_11], %33 {strides = array<i32>} : memref<288x512xbf16, #tpu.memory_space<vmem>>, vector<32x512xbf16>,
    %c16_i32 = arith.constant 16 : i32
    %35 = tpu.dynamic_rotate %4 by %c16_i32 dim 1 : vector<32x512xf32>, i32 -> vector<32x512xf32>
    %36 = vector.broadcast %10 : vector<1x512xf32> to vector<32x512xf32>
    %37 = arith.mulf %35, %36 : vector<32x512xf32>
    %38 = arith.truncf %37 : vector<32x512xf32> to vector<32x512xbf16>
    %c32 = arith.constant 32 : index
    %c0_12 = arith.constant 0 : index
    %39 = vector.load %arg10[%c32, %c0_12] : memref<288x512xbf16, #tpu.memory_space<vmem>>, vector<32x512xbf16>
    tpu.vector_store %arg10[%c32, %c0_12], %38 {strides = array<i32>} : memref<288x512xbf16, #tpu.memory_space<vmem>>, vector<32x512xbf16>,
    %c15_i32 = arith.constant 15 : i32
    %40 = tpu.dynamic_rotate %4 by %c15_i32 dim 1 : vector<32x512xf32>, i32 -> vector<32x512xf32>
    %41 = vector.broadcast %27 : vector<1x512xf32> to vector<32x512xf32>
    %42 = arith.mulf %40, %41 : vector<32x512xf32>
    %43 = arith.truncf %42 : vector<32x512xf32> to vector<32x512xbf16>
    %c64 = arith.constant 64 : index
    %c0_13 = arith.constant 0 : index
    %44 = vector.load %arg10[%c64, %c0_13] : memref<288x512xbf16, #tpu.memory_space<vmem>>, vector<32x512xbf16>
    tpu.vector_store %arg10[%c64, %c0_13], %43 {strides = array<i32>} : memref<288x512xbf16, #tpu.memory_space<vmem>>, vector<32x512xbf16>,
    %c1_i32_14 = arith.constant 1 : i32
    %45 = tpu.dynamic_rotate %4 by %c1_i32_14 dim 1 : vector<32x512xf32>, i32 -> vector<32x512xf32>
    %46 = vector.broadcast %20 : vector<1x512xf32> to vector<32x512xf32>
    %47 = arith.mulf %45, %46 : vector<32x512xf32>
    %48 = arith.truncf %47 : vector<32x512xf32> to vector<32x512xbf16>
    %c96 = arith.constant 96 : index
    %c0_15 = arith.constant 0 : index
    %49 = vector.load %arg10[%c96, %c0_15] : memref<288x512xbf16, #tpu.memory_space<vmem>>, vector<32x512xbf16>
    tpu.vector_store %arg10[%c96, %c0_15], %48 {strides = array<i32>} : memref<288x512xbf16, #tpu.memory_space<vmem>>, vector<32x512xbf16>,
    %50 = arith.truncf %4 : vector<32x512xf32> to vector<32x512xbf16>
    %c128 = arith.constant 128 : index
    %c0_16 = arith.constant 0 : index
    %51 = vector.load %arg10[%c128, %c0_16] : memref<288x512xbf16, #tpu.memory_space<vmem>>, vector<32x512xbf16>
    tpu.vector_store %arg10[%c128, %c0_16], %50 {strides = array<i32>} : memref<288x512xbf16, #tpu.memory_space<vmem>>, vector<32x512xbf16>,
    %c511_i32 = arith.constant 511 : i32
    %52 = tpu.dynamic_rotate %4 by %c511_i32 dim 1 : vector<32x512xf32>, i32 -> vector<32x512xf32>
    %53 = vector.broadcast %25 : vector<1x512xf32> to vector<32x512xf32>
    %54 = arith.mulf %52, %53 : vector<32x512xf32>
    %55 = arith.truncf %54 : vector<32x512xf32> to vector<32x512xbf16>
    %c160 = arith.constant 160 : index
    %c0_17 = arith.constant 0 : index
    %56 = vector.load %arg10[%c160, %c0_17] : memref<288x512xbf16, #tpu.memory_space<vmem>>, vector<32x512xbf16>
    tpu.vector_store %arg10[%c160, %c0_17], %55 {strides = array<i32>} : memref<288x512xbf16, #tpu.memory_space<vmem>>, vector<32x512xbf16>,
    %c497_i32 = arith.constant 497 : i32
    %57 = tpu.dynamic_rotate %4 by %c497_i32 dim 1 : vector<32x512xf32>, i32 -> vector<32x512xf32>
    %58 = vector.broadcast %28 : vector<1x512xf32> to vector<32x512xf32>
    %59 = arith.mulf %57, %58 : vector<32x512xf32>
    %60 = arith.truncf %59 : vector<32x512xf32> to vector<32x512xbf16>
    %c192 = arith.constant 192 : index
    %c0_18 = arith.constant 0 : index
    %61 = vector.load %arg10[%c192, %c0_18] : memref<288x512xbf16, #tpu.memory_space<vmem>>, vector<32x512xbf16>
    tpu.vector_store %arg10[%c192, %c0_18], %60 {strides = array<i32>} : memref<288x512xbf16, #tpu.memory_space<vmem>>, vector<32x512xbf16>,
    %c496_i32 = arith.constant 496 : i32
    %62 = tpu.dynamic_rotate %4 by %c496_i32 dim 1 : vector<32x512xf32>, i32 -> vector<32x512xf32>
    %63 = vector.broadcast %15 : vector<1x512xf32> to vector<32x512xf32>
    %64 = arith.mulf %62, %63 : vector<32x512xf32>
    %65 = arith.truncf %64 : vector<32x512xf32> to vector<32x512xbf16>
    %c224 = arith.constant 224 : index
    %c0_19 = arith.constant 0 : index
    %66 = vector.load %arg10[%c224, %c0_19] : memref<288x512xbf16, #tpu.memory_space<vmem>>, vector<32x512xbf16>
    tpu.vector_store %arg10[%c224, %c0_19], %65 {strides = array<i32>} : memref<288x512xbf16, #tpu.memory_space<vmem>>, vector<32x512xbf16>,
    %c495_i32 = arith.constant 495 : i32
    %67 = tpu.dynamic_rotate %4 by %c495_i32 dim 1 : vector<32x512xf32>, i32 -> vector<32x512xf32>
    %68 = vector.broadcast %29 : vector<1x512xf32> to vector<32x512xf32>
    %69 = arith.mulf %67, %68 : vector<32x512xf32>
    %70 = arith.truncf %69 : vector<32x512xf32> to vector<32x512xbf16>
    %c256 = arith.constant 256 : index
    %c0_20 = arith.constant 0 : index
    %71 = vector.load %arg10[%c256, %c0_20] : memref<288x512xbf16, #tpu.memory_space<vmem>>, vector<32x512xbf16>
    tpu.vector_store %arg10[%c256, %c0_20], %70 {strides = array<i32>} : memref<288x512xbf16, #tpu.memory_space<vmem>>, vector<32x512xbf16>,
    %c0_21 = arith.constant 0 : index
    %c0_22 = arith.constant 0 : index
    %c0_23 = arith.constant 0 : index
    %72 = vector.load %arg3[%c0_21, %c0_22, %c0_23] : memref<3x32x288xbf16, #tpu.memory_space<vmem>>, vector<1x32x288xbf16>
    %73 = vector.shape_cast %72 : vector<1x32x288xbf16> to vector<32x288xbf16>
    %c0_24 = arith.constant 0 : index
    %c0_25 = arith.constant 0 : index
    %74 = vector.load %arg10[%c0_24, %c0_25] : memref<288x512xbf16, #tpu.memory_space<vmem>>, vector<288x512xbf16>
    %cst = arith.constant dense<0.000000e+00> : vector<32x512xf32>
    %75 = tpu.matmul %73, %74, %cst {dimension_numbers = #tpu.dot_dimension_numbers<[1], [0], [0], [1], [0, 0, 1, 1], [], []>} : vector<32x288xbf16>, vector<288x512xbf16>, vector<32x512xf32> -> vector<32x512xf32>
    %c0_26 = arith.constant 0 : index
    %c0_27 = arith.constant 0 : index
    %c0_28 = arith.constant 0 : index
    %76 = vector.load %arg4[%c0_26, %c0_27, %c0_28] : memref<3x32x1xf32, #tpu.memory_space<vmem>>, vector<1x32x1xf32>
    %77 = vector.shape_cast %76 : vector<1x32x1xf32> to vector<32x1xf32>
    %78 = vector.broadcast %77 : vector<32x1xf32> to vector<32x512xf32>
    %79 = arith.addf %75, %78 : vector<32x512xf32>
    %cst_29 = arith.constant 0.000000e+00 : f32
    %80 = vector.broadcast %cst_29 : f32 to vector<32x512xf32>
    %81 = arith.maximumf %79, %80 : vector<32x512xf32>
    %c17_i32_30 = arith.constant 17 : i32
    %82 = tpu.dynamic_rotate %81 by %c17_i32_30 dim 1 : vector<32x512xf32>, i32 -> vector<32x512xf32>
    %83 = vector.broadcast %26 : vector<1x512xf32> to vector<32x512xf32>
    %84 = arith.mulf %82, %83 : vector<32x512xf32>
    %85 = arith.truncf %84 : vector<32x512xf32> to vector<32x512xbf16>
    %c0_31 = arith.constant 0 : index
    %c0_32 = arith.constant 0 : index
    %86 = vector.load %arg10[%c0_31, %c0_32] : memref<288x512xbf16, #tpu.memory_space<vmem>>, vector<32x512xbf16>
    tpu.vector_store %arg10[%c0_31, %c0_32], %85 {strides = array<i32>} : memref<288x512xbf16, #tpu.memory_space<vmem>>, vector<32x512xbf16>,
    %c16_i32_33 = arith.constant 16 : i32
    %87 = tpu.dynamic_rotate %81 by %c16_i32_33 dim 1 : vector<32x512xf32>, i32 -> vector<32x512xf32>
    %88 = vector.broadcast %10 : vector<1x512xf32> to vector<32x512xf32>
    %89 = arith.mulf %87, %88 : vector<32x512xf32>
    %90 = arith.truncf %89 : vector<32x512xf32> to vector<32x512xbf16>
    %c32_34 = arith.constant 32 : index
    %c0_35 = arith.constant 0 : index
    %91 = vector.load %arg10[%c32_34, %c0_35] : memref<288x512xbf16, #tpu.memory_space<vmem>>, vector<32x512xbf16>
    tpu.vector_store %arg10[%c32_34, %c0_35], %90 {strides = array<i32>} : memref<288x512xbf16, #tpu.memory_space<vmem>>, vector<32x512xbf16>,
    %c15_i32_36 = arith.constant 15 : i32
    %92 = tpu.dynamic_rotate %81 by %c15_i32_36 dim 1 : vector<32x512xf32>, i32 -> vector<32x512xf32>
    %93 = vector.broadcast %27 : vector<1x512xf32> to vector<32x512xf32>
    %94 = arith.mulf %92, %93 : vector<32x512xf32>
    %95 = arith.truncf %94 : vector<32x512xf32> to vector<32x512xbf16>
    %c64_37 = arith.constant 64 : index
    %c0_38 = arith.constant 0 : index
    %96 = vector.load %arg10[%c64_37, %c0_38] : memref<288x512xbf16, #tpu.memory_space<vmem>>, vector<32x512xbf16>
    tpu.vector_store %arg10[%c64_37, %c0_38], %95 {strides = array<i32>} : memref<288x512xbf16, #tpu.memory_space<vmem>>, vector<32x512xbf16>,
    %c1_i32_39 = arith.constant 1 : i32
    %97 = tpu.dynamic_rotate %81 by %c1_i32_39 dim 1 : vector<32x512xf32>, i32 -> vector<32x512xf32>
    %98 = vector.broadcast %20 : vector<1x512xf32> to vector<32x512xf32>
    %99 = arith.mulf %97, %98 : vector<32x512xf32>
    %100 = arith.truncf %99 : vector<32x512xf32> to vector<32x512xbf16>
    %c96_40 = arith.constant 96 : index
    %c0_41 = arith.constant 0 : index
    %101 = vector.load %arg10[%c96_40, %c0_41] : memref<288x512xbf16, #tpu.memory_space<vmem>>, vector<32x512xbf16>
    tpu.vector_store %arg10[%c96_40, %c0_41], %100 {strides = array<i32>} : memref<288x512xbf16, #tpu.memory_space<vmem>>, vector<32x512xbf16>,
    %102 = arith.truncf %81 : vector<32x512xf32> to vector<32x512xbf16>
    %c128_42 = arith.constant 128 : index
    %c0_43 = arith.constant 0 : index
    %103 = vector.load %arg10[%c128_42, %c0_43] : memref<288x512xbf16, #tpu.memory_space<vmem>>, vector<32x512xbf16>
    tpu.vector_store %arg10[%c128_42, %c0_43], %102 {strides = array<i32>} : memref<288x512xbf16, #tpu.memory_space<vmem>>, vector<32x512xbf16>,
    %c511_i32_44 = arith.constant 511 : i32
    %104 = tpu.dynamic_rotate %81 by %c511_i32_44 dim 1 : vector<32x512xf32>, i32 -> vector<32x512xf32>
    %105 = vector.broadcast %25 : vector<1x512xf32> to vector<32x512xf32>
    %106 = arith.mulf %104, %105 : vector<32x512xf32>
    %107 = arith.truncf %106 : vector<32x512xf32> to vector<32x512xbf16>
    %c160_45 = arith.constant 160 : index
    %c0_46 = arith.constant 0 : index
    %108 = vector.load %arg10[%c160_45, %c0_46] : memref<288x512xbf16, #tpu.memory_space<vmem>>, vector<32x512xbf16>
    tpu.vector_store %arg10[%c160_45, %c0_46], %107 {strides = array<i32>} : memref<288x512xbf16, #tpu.memory_space<vmem>>, vector<32x512xbf16>,
    %c497_i32_47 = arith.constant 497 : i32
    %109 = tpu.dynamic_rotate %81 by %c497_i32_47 dim 1 : vector<32x512xf32>, i32 -> vector<32x512xf32>
    %110 = vector.broadcast %28 : vector<1x512xf32> to vector<32x512xf32>
    %111 = arith.mulf %109, %110 : vector<32x512xf32>
    %112 = arith.truncf %111 : vector<32x512xf32> to vector<32x512xbf16>
    %c192_48 = arith.constant 192 : index
    %c0_49 = arith.constant 0 : index
    %113 = vector.load %arg10[%c192_48, %c0_49] : memref<288x512xbf16, #tpu.memory_space<vmem>>, vector<32x512xbf16>
    tpu.vector_store %arg10[%c192_48, %c0_49], %112 {strides = array<i32>} : memref<288x512xbf16, #tpu.memory_space<vmem>>, vector<32x512xbf16>,
    %c496_i32_50 = arith.constant 496 : i32
    %114 = tpu.dynamic_rotate %81 by %c496_i32_50 dim 1 : vector<32x512xf32>, i32 -> vector<32x512xf32>
    %115 = vector.broadcast %15 : vector<1x512xf32> to vector<32x512xf32>
    %116 = arith.mulf %114, %115 : vector<32x512xf32>
    %117 = arith.truncf %116 : vector<32x512xf32> to vector<32x512xbf16>
    %c224_51 = arith.constant 224 : index
    %c0_52 = arith.constant 0 : index
    %118 = vector.load %arg10[%c224_51, %c0_52] : memref<288x512xbf16, #tpu.memory_space<vmem>>, vector<32x512xbf16>
    tpu.vector_store %arg10[%c224_51, %c0_52], %117 {strides = array<i32>} : memref<288x512xbf16, #tpu.memory_space<vmem>>, vector<32x512xbf16>,
    %c495_i32_53 = arith.constant 495 : i32
    %119 = tpu.dynamic_rotate %81 by %c495_i32_53 dim 1 : vector<32x512xf32>, i32 -> vector<32x512xf32>
    %120 = vector.broadcast %29 : vector<1x512xf32> to vector<32x512xf32>
    %121 = arith.mulf %119, %120 : vector<32x512xf32>
    %122 = arith.truncf %121 : vector<32x512xf32> to vector<32x512xbf16>
    %c256_54 = arith.constant 256 : index
    %c0_55 = arith.constant 0 : index
    %123 = vector.load %arg10[%c256_54, %c0_55] : memref<288x512xbf16, #tpu.memory_space<vmem>>, vector<32x512xbf16>
    tpu.vector_store %arg10[%c256_54, %c0_55], %122 {strides = array<i32>} : memref<288x512xbf16, #tpu.memory_space<vmem>>, vector<32x512xbf16>,
    %c1_56 = arith.constant 1 : index
    %c0_57 = arith.constant 0 : index
    %c0_58 = arith.constant 0 : index
    %124 = vector.load %arg3[%c1_56, %c0_57, %c0_58] : memref<3x32x288xbf16, #tpu.memory_space<vmem>>, vector<1x32x288xbf16>
    %125 = vector.shape_cast %124 : vector<1x32x288xbf16> to vector<32x288xbf16>
    %c0_59 = arith.constant 0 : index
    %c0_60 = arith.constant 0 : index
    %126 = vector.load %arg10[%c0_59, %c0_60] : memref<288x512xbf16, #tpu.memory_space<vmem>>, vector<288x512xbf16>
    %cst_61 = arith.constant dense<0.000000e+00> : vector<32x512xf32>
    %127 = tpu.matmul %125, %126, %cst_61 {dimension_numbers = #tpu.dot_dimension_numbers<[1], [0], [0], [1], [0, 0, 1, 1], [], []>} : vector<32x288xbf16>, vector<288x512xbf16>, vector<32x512xf32> -> vector<32x512xf32>
    %c1_62 = arith.constant 1 : index
    %c0_63 = arith.constant 0 : index
    %c0_64 = arith.constant 0 : index
    %128 = vector.load %arg4[%c1_62, %c0_63, %c0_64] : memref<3x32x1xf32, #tpu.memory_space<vmem>>, vector<1x32x1xf32>
    %129 = vector.shape_cast %128 : vector<1x32x1xf32> to vector<32x1xf32>
    %130 = vector.broadcast %129 : vector<32x1xf32> to vector<32x512xf32>
    %131 = arith.addf %127, %130 : vector<32x512xf32>
    %cst_65 = arith.constant 0.000000e+00 : f32
    %132 = vector.broadcast %cst_65 : f32 to vector<32x512xf32>
    %133 = arith.maximumf %131, %132 : vector<32x512xf32>
    %c17_i32_66 = arith.constant 17 : i32
    %134 = tpu.dynamic_rotate %133 by %c17_i32_66 dim 1 : vector<32x512xf32>, i32 -> vector<32x512xf32>
    %135 = vector.broadcast %26 : vector<1x512xf32> to vector<32x512xf32>
    %136 = arith.mulf %134, %135 : vector<32x512xf32>
    %137 = arith.truncf %136 : vector<32x512xf32> to vector<32x512xbf16>
    %c0_67 = arith.constant 0 : index
    %c0_68 = arith.constant 0 : index
    %138 = vector.load %arg10[%c0_67, %c0_68] : memref<288x512xbf16, #tpu.memory_space<vmem>>, vector<32x512xbf16>
    tpu.vector_store %arg10[%c0_67, %c0_68], %137 {strides = array<i32>} : memref<288x512xbf16, #tpu.memory_space<vmem>>, vector<32x512xbf16>,
    %c16_i32_69 = arith.constant 16 : i32
    %139 = tpu.dynamic_rotate %133 by %c16_i32_69 dim 1 : vector<32x512xf32>, i32 -> vector<32x512xf32>
    %140 = vector.broadcast %10 : vector<1x512xf32> to vector<32x512xf32>
    %141 = arith.mulf %139, %140 : vector<32x512xf32>
    %142 = arith.truncf %141 : vector<32x512xf32> to vector<32x512xbf16>
    %c32_70 = arith.constant 32 : index
    %c0_71 = arith.constant 0 : index
    %143 = vector.load %arg10[%c32_70, %c0_71] : memref<288x512xbf16, #tpu.memory_space<vmem>>, vector<32x512xbf16>
    tpu.vector_store %arg10[%c32_70, %c0_71], %142 {strides = array<i32>} : memref<288x512xbf16, #tpu.memory_space<vmem>>, vector<32x512xbf16>,
    %c15_i32_72 = arith.constant 15 : i32
    %144 = tpu.dynamic_rotate %133 by %c15_i32_72 dim 1 : vector<32x512xf32>, i32 -> vector<32x512xf32>
    %145 = vector.broadcast %27 : vector<1x512xf32> to vector<32x512xf32>
    %146 = arith.mulf %144, %145 : vector<32x512xf32>
    %147 = arith.truncf %146 : vector<32x512xf32> to vector<32x512xbf16>
    %c64_73 = arith.constant 64 : index
    %c0_74 = arith.constant 0 : index
    %148 = vector.load %arg10[%c64_73, %c0_74] : memref<288x512xbf16, #tpu.memory_space<vmem>>, vector<32x512xbf16>
    tpu.vector_store %arg10[%c64_73, %c0_74], %147 {strides = array<i32>} : memref<288x512xbf16, #tpu.memory_space<vmem>>, vector<32x512xbf16>,
    %c1_i32_75 = arith.constant 1 : i32
    %149 = tpu.dynamic_rotate %133 by %c1_i32_75 dim 1 : vector<32x512xf32>, i32 -> vector<32x512xf32>
    %150 = vector.broadcast %20 : vector<1x512xf32> to vector<32x512xf32>
    %151 = arith.mulf %149, %150 : vector<32x512xf32>
    %152 = arith.truncf %151 : vector<32x512xf32> to vector<32x512xbf16>
    %c96_76 = arith.constant 96 : index
    %c0_77 = arith.constant 0 : index
    %153 = vector.load %arg10[%c96_76, %c0_77] : memref<288x512xbf16, #tpu.memory_space<vmem>>, vector<32x512xbf16>
    tpu.vector_store %arg10[%c96_76, %c0_77], %152 {strides = array<i32>} : memref<288x512xbf16, #tpu.memory_space<vmem>>, vector<32x512xbf16>,
    %154 = arith.truncf %133 : vector<32x512xf32> to vector<32x512xbf16>
    %c128_78 = arith.constant 128 : index
    %c0_79 = arith.constant 0 : index
    %155 = vector.load %arg10[%c128_78, %c0_79] : memref<288x512xbf16, #tpu.memory_space<vmem>>, vector<32x512xbf16>
    tpu.vector_store %arg10[%c128_78, %c0_79], %154 {strides = array<i32>} : memref<288x512xbf16, #tpu.memory_space<vmem>>, vector<32x512xbf16>,
    %c511_i32_80 = arith.constant 511 : i32
    %156 = tpu.dynamic_rotate %133 by %c511_i32_80 dim 1 : vector<32x512xf32>, i32 -> vector<32x512xf32>
    %157 = vector.broadcast %25 : vector<1x512xf32> to vector<32x512xf32>
    %158 = arith.mulf %156, %157 : vector<32x512xf32>
    %159 = arith.truncf %158 : vector<32x512xf32> to vector<32x512xbf16>
    %c160_81 = arith.constant 160 : index
    %c0_82 = arith.constant 0 : index
    %160 = vector.load %arg10[%c160_81, %c0_82] : memref<288x512xbf16, #tpu.memory_space<vmem>>, vector<32x512xbf16>
    tpu.vector_store %arg10[%c160_81, %c0_82], %159 {strides = array<i32>} : memref<288x512xbf16, #tpu.memory_space<vmem>>, vector<32x512xbf16>,
    %c497_i32_83 = arith.constant 497 : i32
    %161 = tpu.dynamic_rotate %133 by %c497_i32_83 dim 1 : vector<32x512xf32>, i32 -> vector<32x512xf32>
    %162 = vector.broadcast %28 : vector<1x512xf32> to vector<32x512xf32>
    %163 = arith.mulf %161, %162 : vector<32x512xf32>
    %164 = arith.truncf %163 : vector<32x512xf32> to vector<32x512xbf16>
    %c192_84 = arith.constant 192 : index
    %c0_85 = arith.constant 0 : index
    %165 = vector.load %arg10[%c192_84, %c0_85] : memref<288x512xbf16, #tpu.memory_space<vmem>>, vector<32x512xbf16>
    tpu.vector_store %arg10[%c192_84, %c0_85], %164 {strides = array<i32>} : memref<288x512xbf16, #tpu.memory_space<vmem>>, vector<32x512xbf16>,
    %c496_i32_86 = arith.constant 496 : i32
    %166 = tpu.dynamic_rotate %133 by %c496_i32_86 dim 1 : vector<32x512xf32>, i32 -> vector<32x512xf32>
    %167 = vector.broadcast %15 : vector<1x512xf32> to vector<32x512xf32>
    %168 = arith.mulf %166, %167 : vector<32x512xf32>
    %169 = arith.truncf %168 : vector<32x512xf32> to vector<32x512xbf16>
    %c224_87 = arith.constant 224 : index
    %c0_88 = arith.constant 0 : index
    %170 = vector.load %arg10[%c224_87, %c0_88] : memref<288x512xbf16, #tpu.memory_space<vmem>>, vector<32x512xbf16>
    tpu.vector_store %arg10[%c224_87, %c0_88], %169 {strides = array<i32>} : memref<288x512xbf16, #tpu.memory_space<vmem>>, vector<32x512xbf16>,
    %c495_i32_89 = arith.constant 495 : i32
    %171 = tpu.dynamic_rotate %133 by %c495_i32_89 dim 1 : vector<32x512xf32>, i32 -> vector<32x512xf32>
    %172 = vector.broadcast %29 : vector<1x512xf32> to vector<32x512xf32>
    %173 = arith.mulf %171, %172 : vector<32x512xf32>
    %174 = arith.truncf %173 : vector<32x512xf32> to vector<32x512xbf16>
    %c256_90 = arith.constant 256 : index
    %c0_91 = arith.constant 0 : index
    %175 = vector.load %arg10[%c256_90, %c0_91] : memref<288x512xbf16, #tpu.memory_space<vmem>>, vector<32x512xbf16>
    tpu.vector_store %arg10[%c256_90, %c0_91], %174 {strides = array<i32>} : memref<288x512xbf16, #tpu.memory_space<vmem>>, vector<32x512xbf16>,
    %c2 = arith.constant 2 : index
    %c0_92 = arith.constant 0 : index
    %c0_93 = arith.constant 0 : index
    %176 = vector.load %arg3[%c2, %c0_92, %c0_93] : memref<3x32x288xbf16, #tpu.memory_space<vmem>>, vector<1x32x288xbf16>
    %177 = vector.shape_cast %176 : vector<1x32x288xbf16> to vector<32x288xbf16>
    %c0_94 = arith.constant 0 : index
    %c0_95 = arith.constant 0 : index
    %178 = vector.load %arg10[%c0_94, %c0_95] : memref<288x512xbf16, #tpu.memory_space<vmem>>, vector<288x512xbf16>
    %cst_96 = arith.constant dense<0.000000e+00> : vector<32x512xf32>
    %179 = tpu.matmul %177, %178, %cst_96 {dimension_numbers = #tpu.dot_dimension_numbers<[1], [0], [0], [1], [0, 0, 1, 1], [], []>} : vector<32x288xbf16>, vector<288x512xbf16>, vector<32x512xf32> -> vector<32x512xf32>
    %c2_97 = arith.constant 2 : index
    %c0_98 = arith.constant 0 : index
    %c0_99 = arith.constant 0 : index
    %180 = vector.load %arg4[%c2_97, %c0_98, %c0_99] : memref<3x32x1xf32, #tpu.memory_space<vmem>>, vector<1x32x1xf32>
    %181 = vector.shape_cast %180 : vector<1x32x1xf32> to vector<32x1xf32>
    %182 = vector.broadcast %181 : vector<32x1xf32> to vector<32x512xf32>
    %183 = arith.addf %179, %182 : vector<32x512xf32>
    %cst_100 = arith.constant 0.000000e+00 : f32
    %184 = vector.broadcast %cst_100 : f32 to vector<32x512xf32>
    %185 = arith.maximumf %183, %184 : vector<32x512xf32>
    %186 = arith.truncf %185 : vector<32x512xf32> to vector<32x512xbf16>
    %c0_101 = arith.constant 0 : index
    %c0_102 = arith.constant 0 : index
    %187 = vector.load %arg5[%c0_101, %c0_102] : memref<1024x32xbf16, #tpu.memory_space<vmem>>, vector<64x32xbf16>
    %cst_103 = arith.constant dense<0.000000e+00> : vector<64x512xf32>
    %188 = tpu.matmul %187, %186, %cst_103 {dimension_numbers = #tpu.dot_dimension_numbers<[1], [0], [0], [1], [0, 0, 1, 1], [], []>} : vector<64x32xbf16>, vector<32x512xbf16>, vector<64x512xf32> -> vector<64x512xf32>
    %c0_104 = arith.constant 0 : index
    %c0_105 = arith.constant 0 : index
    %189 = vector.load %arg6[%c0_104, %c0_105] : memref<1024x1xf32, #tpu.memory_space<vmem>>, vector<64x1xf32>
    %190 = vector.broadcast %189 : vector<64x1xf32> to vector<64x512xf32>
    %191 = arith.addf %188, %190 : vector<64x512xf32>
    %cst_106 = arith.constant 0.000000e+00 : f32
    %192 = vector.broadcast %cst_106 : f32 to vector<64x512xf32>
    %193 = arith.maximumf %191, %192 : vector<64x512xf32>
    %194 = arith.truncf %193 : vector<64x512xf32> to vector<64x512xbf16>
    %c0_107 = arith.constant 0 : index
    %c0_108 = arith.constant 0 : index
    %195 = vector.load %arg11[%c0_107, %c0_108] : memref<1024x512xbf16, #tpu.memory_space<vmem>>, vector<64x512xbf16>
    tpu.vector_store %arg11[%c0_107, %c0_108], %194 {strides = array<i32>} : memref<1024x512xbf16, #tpu.memory_space<vmem>>, vector<64x512xbf16>,
    %c64_109 = arith.constant 64 : index
    %c0_110 = arith.constant 0 : index
    %196 = vector.load %arg5[%c64_109, %c0_110] : memref<1024x32xbf16, #tpu.memory_space<vmem>>, vector<64x32xbf16>
    %cst_111 = arith.constant dense<0.000000e+00> : vector<64x512xf32>
    %197 = tpu.matmul %196, %186, %cst_111 {dimension_numbers = #tpu.dot_dimension_numbers<[1], [0], [0], [1], [0, 0, 1, 1], [], []>} : vector<64x32xbf16>, vector<32x512xbf16>, vector<64x512xf32> -> vector<64x512xf32>
    %c64_112 = arith.constant 64 : index
    %c0_113 = arith.constant 0 : index
    %198 = vector.load %arg6[%c64_112, %c0_113] : memref<1024x1xf32, #tpu.memory_space<vmem>>, vector<64x1xf32>
    %199 = vector.broadcast %198 : vector<64x1xf32> to vector<64x512xf32>
    %200 = arith.addf %197, %199 : vector<64x512xf32>
    %cst_114 = arith.constant 0.000000e+00 : f32
    %201 = vector.broadcast %cst_114 : f32 to vector<64x512xf32>
    %202 = arith.maximumf %200, %201 : vector<64x512xf32>
    %203 = arith.truncf %202 : vector<64x512xf32> to vector<64x512xbf16>
    %c64_115 = arith.constant 64 : index
    %c0_116 = arith.constant 0 : index
    %204 = vector.load %arg11[%c64_115, %c0_116] : memref<1024x512xbf16, #tpu.memory_space<vmem>>, vector<64x512xbf16>
    tpu.vector_store %arg11[%c64_115, %c0_116], %203 {strides = array<i32>} : memref<1024x512xbf16, #tpu.memory_space<vmem>>, vector<64x512xbf16>,
    %c128_117 = arith.constant 128 : index
    %c0_118 = arith.constant 0 : index
    %205 = vector.load %arg5[%c128_117, %c0_118] : memref<1024x32xbf16, #tpu.memory_space<vmem>>, vector<64x32xbf16>
    %cst_119 = arith.constant dense<0.000000e+00> : vector<64x512xf32>
    %206 = tpu.matmul %205, %186, %cst_119 {dimension_numbers = #tpu.dot_dimension_numbers<[1], [0], [0], [1], [0, 0, 1, 1], [], []>} : vector<64x32xbf16>, vector<32x512xbf16>, vector<64x512xf32> -> vector<64x512xf32>
    %c128_120 = arith.constant 128 : index
    %c0_121 = arith.constant 0 : index
    %207 = vector.load %arg6[%c128_120, %c0_121] : memref<1024x1xf32, #tpu.memory_space<vmem>>, vector<64x1xf32>
    %208 = vector.broadcast %207 : vector<64x1xf32> to vector<64x512xf32>
    %209 = arith.addf %206, %208 : vector<64x512xf32>
    %cst_122 = arith.constant 0.000000e+00 : f32
    %210 = vector.broadcast %cst_122 : f32 to vector<64x512xf32>
    %211 = arith.maximumf %209, %210 : vector<64x512xf32>
    %212 = arith.truncf %211 : vector<64x512xf32> to vector<64x512xbf16>
    %c128_123 = arith.constant 128 : index
    %c0_124 = arith.constant 0 : index
    %213 = vector.load %arg11[%c128_123, %c0_124] : memref<1024x512xbf16, #tpu.memory_space<vmem>>, vector<64x512xbf16>
    tpu.vector_store %arg11[%c128_123, %c0_124], %212 {strides = array<i32>} : memref<1024x512xbf16, #tpu.memory_space<vmem>>, vector<64x512xbf16>,
    %c192_125 = arith.constant 192 : index
    %c0_126 = arith.constant 0 : index
    %214 = vector.load %arg5[%c192_125, %c0_126] : memref<1024x32xbf16, #tpu.memory_space<vmem>>, vector<64x32xbf16>
    %cst_127 = arith.constant dense<0.000000e+00> : vector<64x512xf32>
    %215 = tpu.matmul %214, %186, %cst_127 {dimension_numbers = #tpu.dot_dimension_numbers<[1], [0], [0], [1], [0, 0, 1, 1], [], []>} : vector<64x32xbf16>, vector<32x512xbf16>, vector<64x512xf32> -> vector<64x512xf32>
    %c192_128 = arith.constant 192 : index
    %c0_129 = arith.constant 0 : index
    %216 = vector.load %arg6[%c192_128, %c0_129] : memref<1024x1xf32, #tpu.memory_space<vmem>>, vector<64x1xf32>
    %217 = vector.broadcast %216 : vector<64x1xf32> to vector<64x512xf32>
    %218 = arith.addf %215, %217 : vector<64x512xf32>
    %cst_130 = arith.constant 0.000000e+00 : f32
    %219 = vector.broadcast %cst_130 : f32 to vector<64x512xf32>
    %220 = arith.maximumf %218, %219 : vector<64x512xf32>
    %221 = arith.truncf %220 : vector<64x512xf32> to vector<64x512xbf16>
    %c192_131 = arith.constant 192 : index
    %c0_132 = arith.constant 0 : index
    %222 = vector.load %arg11[%c192_131, %c0_132] : memref<1024x512xbf16, #tpu.memory_space<vmem>>, vector<64x512xbf16>
    tpu.vector_store %arg11[%c192_131, %c0_132], %221 {strides = array<i32>} : memref<1024x512xbf16, #tpu.memory_space<vmem>>, vector<64x512xbf16>,
    %c256_133 = arith.constant 256 : index
    %c0_134 = arith.constant 0 : index
    %223 = vector.load %arg5[%c256_133, %c0_134] : memref<1024x32xbf16, #tpu.memory_space<vmem>>, vector<64x32xbf16>
    %cst_135 = arith.constant dense<0.000000e+00> : vector<64x512xf32>
    %224 = tpu.matmul %223, %186, %cst_135 {dimension_numbers = #tpu.dot_dimension_numbers<[1], [0], [0], [1], [0, 0, 1, 1], [], []>} : vector<64x32xbf16>, vector<32x512xbf16>, vector<64x512xf32> -> vector<64x512xf32>
    %c256_136 = arith.constant 256 : index
    %c0_137 = arith.constant 0 : index
    %225 = vector.load %arg6[%c256_136, %c0_137] : memref<1024x1xf32, #tpu.memory_space<vmem>>, vector<64x1xf32>
    %226 = vector.broadcast %225 : vector<64x1xf32> to vector<64x512xf32>
    %227 = arith.addf %224, %226 : vector<64x512xf32>
    %cst_138 = arith.constant 0.000000e+00 : f32
    %228 = vector.broadcast %cst_138 : f32 to vector<64x512xf32>
    %229 = arith.maximumf %227, %228 : vector<64x512xf32>
    %230 = arith.truncf %229 : vector<64x512xf32> to vector<64x512xbf16>
    %c256_139 = arith.constant 256 : index
    %c0_140 = arith.constant 0 : index
    %231 = vector.load %arg11[%c256_139, %c0_140] : memref<1024x512xbf16, #tpu.memory_space<vmem>>, vector<64x512xbf16>
    tpu.vector_store %arg11[%c256_139, %c0_140], %230 {strides = array<i32>} : memref<1024x512xbf16, #tpu.memory_space<vmem>>, vector<64x512xbf16>,
    %c320 = arith.constant 320 : index
    %c0_141 = arith.constant 0 : index
    %232 = vector.load %arg5[%c320, %c0_141] : memref<1024x32xbf16, #tpu.memory_space<vmem>>, vector<64x32xbf16>
    %cst_142 = arith.constant dense<0.000000e+00> : vector<64x512xf32>
    %233 = tpu.matmul %232, %186, %cst_142 {dimension_numbers = #tpu.dot_dimension_numbers<[1], [0], [0], [1], [0, 0, 1, 1], [], []>} : vector<64x32xbf16>, vector<32x512xbf16>, vector<64x512xf32> -> vector<64x512xf32>
    %c320_143 = arith.constant 320 : index
    %c0_144 = arith.constant 0 : index
    %234 = vector.load %arg6[%c320_143, %c0_144] : memref<1024x1xf32, #tpu.memory_space<vmem>>, vector<64x1xf32>
    %235 = vector.broadcast %234 : vector<64x1xf32> to vector<64x512xf32>
    %236 = arith.addf %233, %235 : vector<64x512xf32>
    %cst_145 = arith.constant 0.000000e+00 : f32
    %237 = vector.broadcast %cst_145 : f32 to vector<64x512xf32>
    %238 = arith.maximumf %236, %237 : vector<64x512xf32>
    %239 = arith.truncf %238 : vector<64x512xf32> to vector<64x512xbf16>
    %c320_146 = arith.constant 320 : index
    %c0_147 = arith.constant 0 : index
    %240 = vector.load %arg11[%c320_146, %c0_147] : memref<1024x512xbf16, #tpu.memory_space<vmem>>, vector<64x512xbf16>
    tpu.vector_store %arg11[%c320_146, %c0_147], %239 {strides = array<i32>} : memref<1024x512xbf16, #tpu.memory_space<vmem>>, vector<64x512xbf16>,
    %c384 = arith.constant 384 : index
    %c0_148 = arith.constant 0 : index
    %241 = vector.load %arg5[%c384, %c0_148] : memref<1024x32xbf16, #tpu.memory_space<vmem>>, vector<64x32xbf16>
    %cst_149 = arith.constant dense<0.000000e+00> : vector<64x512xf32>
    %242 = tpu.matmul %241, %186, %cst_149 {dimension_numbers = #tpu.dot_dimension_numbers<[1], [0], [0], [1], [0, 0, 1, 1], [], []>} : vector<64x32xbf16>, vector<32x512xbf16>, vector<64x512xf32> -> vector<64x512xf32>
    %c384_150 = arith.constant 384 : index
    %c0_151 = arith.constant 0 : index
    %243 = vector.load %arg6[%c384_150, %c0_151] : memref<1024x1xf32, #tpu.memory_space<vmem>>, vector<64x1xf32>
    %244 = vector.broadcast %243 : vector<64x1xf32> to vector<64x512xf32>
    %245 = arith.addf %242, %244 : vector<64x512xf32>
    %cst_152 = arith.constant 0.000000e+00 : f32
    %246 = vector.broadcast %cst_152 : f32 to vector<64x512xf32>
    %247 = arith.maximumf %245, %246 : vector<64x512xf32>
    %248 = arith.truncf %247 : vector<64x512xf32> to vector<64x512xbf16>
    %c384_153 = arith.constant 384 : index
    %c0_154 = arith.constant 0 : index
    %249 = vector.load %arg11[%c384_153, %c0_154] : memref<1024x512xbf16, #tpu.memory_space<vmem>>, vector<64x512xbf16>
    tpu.vector_store %arg11[%c384_153, %c0_154], %248 {strides = array<i32>} : memref<1024x512xbf16, #tpu.memory_space<vmem>>, vector<64x512xbf16>,
    %c448 = arith.constant 448 : index
    %c0_155 = arith.constant 0 : index
    %250 = vector.load %arg5[%c448, %c0_155] : memref<1024x32xbf16, #tpu.memory_space<vmem>>, vector<64x32xbf16>
    %cst_156 = arith.constant dense<0.000000e+00> : vector<64x512xf32>
    %251 = tpu.matmul %250, %186, %cst_156 {dimension_numbers = #tpu.dot_dimension_numbers<[1], [0], [0], [1], [0, 0, 1, 1], [], []>} : vector<64x32xbf16>, vector<32x512xbf16>, vector<64x512xf32> -> vector<64x512xf32>
    %c448_157 = arith.constant 448 : index
    %c0_158 = arith.constant 0 : index
    %252 = vector.load %arg6[%c448_157, %c0_158] : memref<1024x1xf32, #tpu.memory_space<vmem>>, vector<64x1xf32>
    %253 = vector.broadcast %252 : vector<64x1xf32> to vector<64x512xf32>
    %254 = arith.addf %251, %253 : vector<64x512xf32>
    %cst_159 = arith.constant 0.000000e+00 : f32
    %255 = vector.broadcast %cst_159 : f32 to vector<64x512xf32>
    %256 = arith.maximumf %254, %255 : vector<64x512xf32>
    %257 = arith.truncf %256 : vector<64x512xf32> to vector<64x512xbf16>
    %c448_160 = arith.constant 448 : index
    %c0_161 = arith.constant 0 : index
    %258 = vector.load %arg11[%c448_160, %c0_161] : memref<1024x512xbf16, #tpu.memory_space<vmem>>, vector<64x512xbf16>
    tpu.vector_store %arg11[%c448_160, %c0_161], %257 {strides = array<i32>} : memref<1024x512xbf16, #tpu.memory_space<vmem>>, vector<64x512xbf16>,
    %c512 = arith.constant 512 : index
    %c0_162 = arith.constant 0 : index
    %259 = vector.load %arg5[%c512, %c0_162] : memref<1024x32xbf16, #tpu.memory_space<vmem>>, vector<64x32xbf16>
    %cst_163 = arith.constant dense<0.000000e+00> : vector<64x512xf32>
    %260 = tpu.matmul %259, %186, %cst_163 {dimension_numbers = #tpu.dot_dimension_numbers<[1], [0], [0], [1], [0, 0, 1, 1], [], []>} : vector<64x32xbf16>, vector<32x512xbf16>, vector<64x512xf32> -> vector<64x512xf32>
    %c512_164 = arith.constant 512 : index
    %c0_165 = arith.constant 0 : index
    %261 = vector.load %arg6[%c512_164, %c0_165] : memref<1024x1xf32, #tpu.memory_space<vmem>>, vector<64x1xf32>
    %262 = vector.broadcast %261 : vector<64x1xf32> to vector<64x512xf32>
    %263 = arith.addf %260, %262 : vector<64x512xf32>
    %cst_166 = arith.constant 0.000000e+00 : f32
    %264 = vector.broadcast %cst_166 : f32 to vector<64x512xf32>
    %265 = arith.maximumf %263, %264 : vector<64x512xf32>
    %266 = arith.truncf %265 : vector<64x512xf32> to vector<64x512xbf16>
    %c512_167 = arith.constant 512 : index
    %c0_168 = arith.constant 0 : index
    %267 = vector.load %arg11[%c512_167, %c0_168] : memref<1024x512xbf16, #tpu.memory_space<vmem>>, vector<64x512xbf16>
    tpu.vector_store %arg11[%c512_167, %c0_168], %266 {strides = array<i32>} : memref<1024x512xbf16, #tpu.memory_space<vmem>>, vector<64x512xbf16>,
    %c576 = arith.constant 576 : index
    %c0_169 = arith.constant 0 : index
    %268 = vector.load %arg5[%c576, %c0_169] : memref<1024x32xbf16, #tpu.memory_space<vmem>>, vector<64x32xbf16>
    %cst_170 = arith.constant dense<0.000000e+00> : vector<64x512xf32>
    %269 = tpu.matmul %268, %186, %cst_170 {dimension_numbers = #tpu.dot_dimension_numbers<[1], [0], [0], [1], [0, 0, 1, 1], [], []>} : vector<64x32xbf16>, vector<32x512xbf16>, vector<64x512xf32> -> vector<64x512xf32>
    %c576_171 = arith.constant 576 : index
    %c0_172 = arith.constant 0 : index
    %270 = vector.load %arg6[%c576_171, %c0_172] : memref<1024x1xf32, #tpu.memory_space<vmem>>, vector<64x1xf32>
    %271 = vector.broadcast %270 : vector<64x1xf32> to vector<64x512xf32>
    %272 = arith.addf %269, %271 : vector<64x512xf32>
    %cst_173 = arith.constant 0.000000e+00 : f32
    %273 = vector.broadcast %cst_173 : f32 to vector<64x512xf32>
    %274 = arith.maximumf %272, %273 : vector<64x512xf32>
    %275 = arith.truncf %274 : vector<64x512xf32> to vector<64x512xbf16>
    %c576_174 = arith.constant 576 : index
    %c0_175 = arith.constant 0 : index
    %276 = vector.load %arg11[%c576_174, %c0_175] : memref<1024x512xbf16, #tpu.memory_space<vmem>>, vector<64x512xbf16>
    tpu.vector_store %arg11[%c576_174, %c0_175], %275 {strides = array<i32>} : memref<1024x512xbf16, #tpu.memory_space<vmem>>, vector<64x512xbf16>,
    %c640 = arith.constant 640 : index
    %c0_176 = arith.constant 0 : index
    %277 = vector.load %arg5[%c640, %c0_176] : memref<1024x32xbf16, #tpu.memory_space<vmem>>, vector<64x32xbf16>
    %cst_177 = arith.constant dense<0.000000e+00> : vector<64x512xf32>
    %278 = tpu.matmul %277, %186, %cst_177 {dimension_numbers = #tpu.dot_dimension_numbers<[1], [0], [0], [1], [0, 0, 1, 1], [], []>} : vector<64x32xbf16>, vector<32x512xbf16>, vector<64x512xf32> -> vector<64x512xf32>
    %c640_178 = arith.constant 640 : index
    %c0_179 = arith.constant 0 : index
    %279 = vector.load %arg6[%c640_178, %c0_179] : memref<1024x1xf32, #tpu.memory_space<vmem>>, vector<64x1xf32>
    %280 = vector.broadcast %279 : vector<64x1xf32> to vector<64x512xf32>
    %281 = arith.addf %278, %280 : vector<64x512xf32>
    %cst_180 = arith.constant 0.000000e+00 : f32
    %282 = vector.broadcast %cst_180 : f32 to vector<64x512xf32>
    %283 = arith.maximumf %281, %282 : vector<64x512xf32>
    %284 = arith.truncf %283 : vector<64x512xf32> to vector<64x512xbf16>
    %c640_181 = arith.constant 640 : index
    %c0_182 = arith.constant 0 : index
    %285 = vector.load %arg11[%c640_181, %c0_182] : memref<1024x512xbf16, #tpu.memory_space<vmem>>, vector<64x512xbf16>
    tpu.vector_store %arg11[%c640_181, %c0_182], %284 {strides = array<i32>} : memref<1024x512xbf16, #tpu.memory_space<vmem>>, vector<64x512xbf16>,
    %c704 = arith.constant 704 : index
    %c0_183 = arith.constant 0 : index
    %286 = vector.load %arg5[%c704, %c0_183] : memref<1024x32xbf16, #tpu.memory_space<vmem>>, vector<64x32xbf16>
    %cst_184 = arith.constant dense<0.000000e+00> : vector<64x512xf32>
    %287 = tpu.matmul %286, %186, %cst_184 {dimension_numbers = #tpu.dot_dimension_numbers<[1], [0], [0], [1], [0, 0, 1, 1], [], []>} : vector<64x32xbf16>, vector<32x512xbf16>, vector<64x512xf32> -> vector<64x512xf32>
    %c704_185 = arith.constant 704 : index
    %c0_186 = arith.constant 0 : index
    %288 = vector.load %arg6[%c704_185, %c0_186] : memref<1024x1xf32, #tpu.memory_space<vmem>>, vector<64x1xf32>
    %289 = vector.broadcast %288 : vector<64x1xf32> to vector<64x512xf32>
    %290 = arith.addf %287, %289 : vector<64x512xf32>
    %cst_187 = arith.constant 0.000000e+00 : f32
    %291 = vector.broadcast %cst_187 : f32 to vector<64x512xf32>
    %292 = arith.maximumf %290, %291 : vector<64x512xf32>
    %293 = arith.truncf %292 : vector<64x512xf32> to vector<64x512xbf16>
    %c704_188 = arith.constant 704 : index
    %c0_189 = arith.constant 0 : index
    %294 = vector.load %arg11[%c704_188, %c0_189] : memref<1024x512xbf16, #tpu.memory_space<vmem>>, vector<64x512xbf16>
    tpu.vector_store %arg11[%c704_188, %c0_189], %293 {strides = array<i32>} : memref<1024x512xbf16, #tpu.memory_space<vmem>>, vector<64x512xbf16>,
    %c768 = arith.constant 768 : index
    %c0_190 = arith.constant 0 : index
    %295 = vector.load %arg5[%c768, %c0_190] : memref<1024x32xbf16, #tpu.memory_space<vmem>>, vector<64x32xbf16>
    %cst_191 = arith.constant dense<0.000000e+00> : vector<64x512xf32>
    %296 = tpu.matmul %295, %186, %cst_191 {dimension_numbers = #tpu.dot_dimension_numbers<[1], [0], [0], [1], [0, 0, 1, 1], [], []>} : vector<64x32xbf16>, vector<32x512xbf16>, vector<64x512xf32> -> vector<64x512xf32>
    %c768_192 = arith.constant 768 : index
    %c0_193 = arith.constant 0 : index
    %297 = vector.load %arg6[%c768_192, %c0_193] : memref<1024x1xf32, #tpu.memory_space<vmem>>, vector<64x1xf32>
    %298 = vector.broadcast %297 : vector<64x1xf32> to vector<64x512xf32>
    %299 = arith.addf %296, %298 : vector<64x512xf32>
    %cst_194 = arith.constant 0.000000e+00 : f32
    %300 = vector.broadcast %cst_194 : f32 to vector<64x512xf32>
    %301 = arith.maximumf %299, %300 : vector<64x512xf32>
    %302 = arith.truncf %301 : vector<64x512xf32> to vector<64x512xbf16>
    %c768_195 = arith.constant 768 : index
    %c0_196 = arith.constant 0 : index
    %303 = vector.load %arg11[%c768_195, %c0_196] : memref<1024x512xbf16, #tpu.memory_space<vmem>>, vector<64x512xbf16>
    tpu.vector_store %arg11[%c768_195, %c0_196], %302 {strides = array<i32>} : memref<1024x512xbf16, #tpu.memory_space<vmem>>, vector<64x512xbf16>,
    %c832 = arith.constant 832 : index
    %c0_197 = arith.constant 0 : index
    %304 = vector.load %arg5[%c832, %c0_197] : memref<1024x32xbf16, #tpu.memory_space<vmem>>, vector<64x32xbf16>
    %cst_198 = arith.constant dense<0.000000e+00> : vector<64x512xf32>
    %305 = tpu.matmul %304, %186, %cst_198 {dimension_numbers = #tpu.dot_dimension_numbers<[1], [0], [0], [1], [0, 0, 1, 1], [], []>} : vector<64x32xbf16>, vector<32x512xbf16>, vector<64x512xf32> -> vector<64x512xf32>
    %c832_199 = arith.constant 832 : index
    %c0_200 = arith.constant 0 : index
    %306 = vector.load %arg6[%c832_199, %c0_200] : memref<1024x1xf32, #tpu.memory_space<vmem>>, vector<64x1xf32>
    %307 = vector.broadcast %306 : vector<64x1xf32> to vector<64x512xf32>
    %308 = arith.addf %305, %307 : vector<64x512xf32>
    %cst_201 = arith.constant 0.000000e+00 : f32
    %309 = vector.broadcast %cst_201 : f32 to vector<64x512xf32>
    %310 = arith.maximumf %308, %309 : vector<64x512xf32>
    %311 = arith.truncf %310 : vector<64x512xf32> to vector<64x512xbf16>
    %c832_202 = arith.constant 832 : index
    %c0_203 = arith.constant 0 : index
    %312 = vector.load %arg11[%c832_202, %c0_203] : memref<1024x512xbf16, #tpu.memory_space<vmem>>, vector<64x512xbf16>
    tpu.vector_store %arg11[%c832_202, %c0_203], %311 {strides = array<i32>} : memref<1024x512xbf16, #tpu.memory_space<vmem>>, vector<64x512xbf16>,
    %c896 = arith.constant 896 : index
    %c0_204 = arith.constant 0 : index
    %313 = vector.load %arg5[%c896, %c0_204] : memref<1024x32xbf16, #tpu.memory_space<vmem>>, vector<64x32xbf16>
    %cst_205 = arith.constant dense<0.000000e+00> : vector<64x512xf32>
    %314 = tpu.matmul %313, %186, %cst_205 {dimension_numbers = #tpu.dot_dimension_numbers<[1], [0], [0], [1], [0, 0, 1, 1], [], []>} : vector<64x32xbf16>, vector<32x512xbf16>, vector<64x512xf32> -> vector<64x512xf32>
    %c896_206 = arith.constant 896 : index
    %c0_207 = arith.constant 0 : index
    %315 = vector.load %arg6[%c896_206, %c0_207] : memref<1024x1xf32, #tpu.memory_space<vmem>>, vector<64x1xf32>
    %316 = vector.broadcast %315 : vector<64x1xf32> to vector<64x512xf32>
    %317 = arith.addf %314, %316 : vector<64x512xf32>
    %cst_208 = arith.constant 0.000000e+00 : f32
    %318 = vector.broadcast %cst_208 : f32 to vector<64x512xf32>
    %319 = arith.maximumf %317, %318 : vector<64x512xf32>
    %320 = arith.truncf %319 : vector<64x512xf32> to vector<64x512xbf16>
    %c896_209 = arith.constant 896 : index
    %c0_210 = arith.constant 0 : index
    %321 = vector.load %arg11[%c896_209, %c0_210] : memref<1024x512xbf16, #tpu.memory_space<vmem>>, vector<64x512xbf16>
    tpu.vector_store %arg11[%c896_209, %c0_210], %320 {strides = array<i32>} : memref<1024x512xbf16, #tpu.memory_space<vmem>>, vector<64x512xbf16>,
    %c960 = arith.constant 960 : index
    %c0_211 = arith.constant 0 : index
    %322 = vector.load %arg5[%c960, %c0_211] : memref<1024x32xbf16, #tpu.memory_space<vmem>>, vector<64x32xbf16>
    %cst_212 = arith.constant dense<0.000000e+00> : vector<64x512xf32>
    %323 = tpu.matmul %322, %186, %cst_212 {dimension_numbers = #tpu.dot_dimension_numbers<[1], [0], [0], [1], [0, 0, 1, 1], [], []>} : vector<64x32xbf16>, vector<32x512xbf16>, vector<64x512xf32> -> vector<64x512xf32>
    %c960_213 = arith.constant 960 : index
    %c0_214 = arith.constant 0 : index
    %324 = vector.load %arg6[%c960_213, %c0_214] : memref<1024x1xf32, #tpu.memory_space<vmem>>, vector<64x1xf32>
    %325 = vector.broadcast %324 : vector<64x1xf32> to vector<64x512xf32>
    %326 = arith.addf %323, %325 : vector<64x512xf32>
    %cst_215 = arith.constant 0.000000e+00 : f32
    %327 = vector.broadcast %cst_215 : f32 to vector<64x512xf32>
    %328 = arith.maximumf %326, %327 : vector<64x512xf32>
    %329 = arith.truncf %328 : vector<64x512xf32> to vector<64x512xbf16>
    %c960_216 = arith.constant 960 : index
    %c0_217 = arith.constant 0 : index
    %330 = vector.load %arg11[%c960_216, %c0_217] : memref<1024x512xbf16, #tpu.memory_space<vmem>>, vector<64x512xbf16>
    tpu.vector_store %arg11[%c960_216, %c0_217], %329 {strides = array<i32>} : memref<1024x512xbf16, #tpu.memory_space<vmem>>, vector<64x512xbf16>,
    %c0_218 = arith.constant 0 : index
    %c0_219 = arith.constant 0 : index
    %331 = vector.load %arg7[%c0_218, %c0_219] : memref<80x1024xbf16, #tpu.memory_space<vmem>>, vector<80x1024xbf16>
    %c0_220 = arith.constant 0 : index
    %c0_221 = arith.constant 0 : index
    %332 = vector.load %arg11[%c0_220, %c0_221] : memref<1024x512xbf16, #tpu.memory_space<vmem>>, vector<1024x512xbf16>
    %cst_222 = arith.constant dense<0.000000e+00> : vector<80x512xf32>
    %333 = tpu.matmul %331, %332, %cst_222 {dimension_numbers = #tpu.dot_dimension_numbers<[1], [0], [0], [1], [0, 0, 1, 1], [], []>} : vector<80x1024xbf16>, vector<1024x512xbf16>, vector<80x512xf32> -> vector<80x512xf32>
    %c0_223 = arith.constant 0 : index
    %c0_224 = arith.constant 0 : index
    %334 = vector.load %arg8[%c0_223, %c0_224] : memref<80x1xf32, #tpu.memory_space<vmem>>, vector<80x1xf32>
    %335 = vector.broadcast %334 : vector<80x1xf32> to vector<80x512xf32>
    %336 = arith.addf %333, %335 : vector<80x512xf32>
    %337 = vector.extract_strided_slice %336 {offsets = [0, 0], sizes = [80, 256], strides = [1, 1]} : vector<80x512xf32> to vector<80x256xf32>
    %c0_225 = arith.constant 0 : index
    %c0_226 = arith.constant 0 : index
    %c0_227 = arith.constant 0 : index
    %338 = vector.load %arg9[%c0_225, %c0_226, %c0_227] : memref<2x80x256xf32, #tpu.memory_space<vmem>>, vector<1x80x256xf32>
    %339 = vector.shape_cast %338 : vector<1x80x256xf32> to vector<80x256xf32>
    %340 = vector.shape_cast %337 : vector<80x256xf32> to vector<1x80x256xf32>
    tpu.vector_store %arg9[%c0_225, %c0_226, %c0_227], %340 {strides = array<i32>} : memref<2x80x256xf32, #tpu.memory_space<vmem>>, vector<1x80x256xf32>,
    %341 = vector.extract_strided_slice %336 {offsets = [0, 256], sizes = [80, 256], strides = [1, 1]} : vector<80x512xf32> to vector<80x256xf32>
    %c1_228 = arith.constant 1 : index
    %c0_229 = arith.constant 0 : index
    %c0_230 = arith.constant 0 : index
    %342 = vector.load %arg9[%c1_228, %c0_229, %c0_230] : memref<2x80x256xf32, #tpu.memory_space<vmem>>, vector<1x80x256xf32>
    %343 = vector.shape_cast %342 : vector<1x80x256xf32> to vector<80x256xf32>
    %344 = vector.shape_cast %341 : vector<80x256xf32> to vector<1x80x256xf32>
    tpu.vector_store %arg9[%c1_228, %c0_229, %c0_230], %344 {strides = array<i32>} : memref<2x80x256xf32, #tpu.memory_space<vmem>>, vector<1x80x256xf32>,
    return
  }
  func.func @transform_0(%arg0: i32) -> (i32, i32, i32) {
    %c0_i32 = arith.constant 0 : i32
    %c0_i32_0 = arith.constant 0 : i32
    %c0_i32_1 = arith.constant 0 : i32
    return %arg0, %c0_i32, %c0_i32_0 : i32, i32, i32
  }
  func.func @transform_1(%arg0: i32) -> (i32, i32) {
    %c0_i32 = arith.constant 0 : i32
    %c0_i32_0 = arith.constant 0 : i32
    %c0_i32_1 = arith.constant 0 : i32
    return %c0_i32, %c0_i32_0 : i32, i32
  }
  func.func @transform_2(%arg0: i32) -> (i32, i32, i32) {
    %c0_i32 = arith.constant 0 : i32
    %c0_i32_0 = arith.constant 0 : i32
    %c0_i32_1 = arith.constant 0 : i32
    %c0_i32_2 = arith.constant 0 : i32
    return %c0_i32, %c0_i32_0, %c0_i32_1 : i32, i32, i32
  }
  func.func @transform_3(%arg0: i32) -> (i32, i32, i32) {
    %c0_i32 = arith.constant 0 : i32
    %c0_i32_0 = arith.constant 0 : i32
    %c0_i32_1 = arith.constant 0 : i32
    %c0_i32_2 = arith.constant 0 : i32
    return %c0_i32, %c0_i32_0, %c0_i32_1 : i32, i32, i32
  }
  func.func @transform_4(%arg0: i32) -> (i32, i32) {
    %c0_i32 = arith.constant 0 : i32
    %c0_i32_0 = arith.constant 0 : i32
    %c0_i32_1 = arith.constant 0 : i32
    return %c0_i32, %c0_i32_0 : i32, i32
  }
  func.func @transform_5(%arg0: i32) -> (i32, i32) {
    %c0_i32 = arith.constant 0 : i32
    %c0_i32_0 = arith.constant 0 : i32
    %c0_i32_1 = arith.constant 0 : i32
    return %c0_i32, %c0_i32_0 : i32, i32
  }
  func.func @transform_6(%arg0: i32) -> (i32, i32) {
    %c0_i32 = arith.constant 0 : i32
    %c0_i32_0 = arith.constant 0 : i32
    %c0_i32_1 = arith.constant 0 : i32
    return %c0_i32, %c0_i32_0 : i32, i32
  }
  func.func @transform_7(%arg0: i32) -> (i32, i32) {
    %c0_i32 = arith.constant 0 : i32
    %c0_i32_0 = arith.constant 0 : i32
    %c0_i32_1 = arith.constant 0 : i32
    return %c0_i32, %c0_i32_0 : i32, i32
  }
  func.func @transform_8(%arg0: i32) -> (i32, i32, i32) {
    %c0_i32 = arith.constant 0 : i32
    %c0_i32_0 = arith.constant 0 : i32
    %c0_i32_1 = arith.constant 0 : i32
    return %arg0, %c0_i32, %c0_i32_0 : i32, i32, i32
  }
}

</mosaic_0001>

<bundles_post_ra>
// kernel: initial_stage_forward.1
= control target key start
LH: loop header
LB: loop body
LE: loop exit
PB: predicated region body
PF: predicated region fallthrough
CT: control target
= control target key end

     0   :  { %s10028_s9 = smov 17   ;;  %s10029_s17 = smov 16   ;;  %v95_v18 = vlaneseq  ;;  %vm1031_vm8 = vcmask 261120   ;;  %s15685_s0 = inlined_call_operand.vmem [shape: f32[2,32,256], index: 0, kind: input, shape index: {}]   ;;  %s15686_s1 = inlined_call_operand.vmem [shape: s32[1,512], index: 1, kind: input, shape index: {}]   ;;  %s15687_s2 = inlined_call_operand.vmem [shape: bf16[3,32,288], index: 2, kind: input, shape index: {}]   ;;  %s15688_s3 = inlined_call_operand.vmem [shape: f32[3,32,1], index: 3, kind: input, shape index: {}]   ;;  %s15689_s5 = inlined_call_operand.vmem [shape: f32[1024,1], index: 5, kind: input, shape index: {}]   ;;  %s15690_s4 = inlined_call_operand.vmem [shape: bf16[1024,32], index: 4, kind: input, shape index: {}]   ;;  %s15691_s7 = inlined_call_operand.vmem [shape: f32[80,1], index: 7, kind: input, shape index: {}]   ;;  %s15692_s6 = inlined_call_operand.vmem [shape: bf16[80,1024], index: 6, kind: input, shape index: {}]   ;;  %s15693_s8 = inlined_call_operand.vmem [shape: f32[2,80,256], index: 8, kind: output, shape index: {}]  }
   0x1   :  { %v10085_v0 = vld [vmem:[%s15685_s0 + $0x8] sm:$0xff]  ;;  %v10090_v1 = vld [vmem:[%s15685_s0] sm:$0xff]  ;;  %v10099_v2 = vld [vmem:[%s15685_s0 + $0x18] sm:$0xff]  ;;  %s10031_s18 = smov 1   ;;  %s10033_s21 = smov 113  }
   0x2   :  { %71 = vrot.lane.b32.xlu1 %v10085_v0, %s10028_s9  ;;  %63 = vrot.lane.b32.xlu0 %v10090_v1, %s10028_s9  ;;  %v10104_v3 = vld [vmem:[%s15685_s0 + $0x10] sm:$0xff]  ;;  %v10118_v5 = vld [vmem:[%s15685_s0 + $0x40] sm:$0xff]  ;;  %v116_v23 = vshrl.u32 %v95_v18, 7  ;;  %v10285_v24 = vand.u32 127, %v95_v18  ;;  %s10034_s22 = smov 112   ;;  %s10035_s25 = smov 111  }
   0x3   :  { %v10113_v4 = vld [vmem:[%s15685_s0 + $0x50] sm:$0xff]  ;;  %v10127_v6 = vld [vmem:[%s15685_s0 + $0x58] sm:$0xff]  ;;  %v10132_v7 = vld [vmem:[%s15685_s0 + $0x48] sm:$0xff] }
   0x4   :  { %v10141_v8 = vld [vmem:[%s15685_s0 + $0x30] sm:$0xff]  ;;  %v10146_v9 = vld [vmem:[%s15685_s0 + $0x20] sm:$0xff]  ;;  %v10155_v10 = vld [vmem:[%s15685_s0 + $0x38] sm:$0xff]  ;;  %v10293_v26 = vsub.s32 1, %v116_v23  ;;  %vm97_vm0 = vcmp.lt.s32.totalorder %v10285_v24, 17  ;;  %v10305_v33 = vsub.s32 2, %v116_v23 }
   0x5   :  { %v10160_v11 = vld [vmem:[%s15685_s0 + $0x28] sm:$0xff]  ;;  %v10169_v12 = vld [vmem:[%s15685_s0 + $0x70] sm:$0xff]  ;;  %v10174_v13 = vld [vmem:[%s15685_s0 + $0x60] sm:$0xff]  ;;  %v10315_v37 = vsub.s32 0, %v116_v23  ;;  %v10317_v38 = vsub.s32 3, %v116_v23  ;;  %vm199_vm1 = vcmp.lt.s32.totalorder %v10285_v24, 16 }
   0x6   :  { %73 = vrot.lane.b32.xlu1 %v10099_v2, %s10028_s9  ;;  %65 = vrot.lane.b32.xlu0 %v10104_v3, %s10028_s9  ;;  %v10183_v14 = vld [vmem:[%s15685_s0 + $0x78] sm:$0xff]  ;;  %v10188_v15 = vld [vmem:[%s15685_s0 + $0x68] sm:$0xff]  ;;  %s10030_s0 = smov 15   ;;  %vm301_vm2 = vcmp.lt.s32.totalorder %v10285_v24, 15  ;;  %vm403_vm3 = vcmp.lt.s32.totalorder %v10285_v24, 1  ;;  %vm521_vm4 = vcmp.lt.s32.totalorder %v10285_v24, 127 }
   0x7   :  { %v10265_v16 = vld [vmem:[%s15686_s1] sm:$0xf]  ;;  %s10032_s1 = smov 127   ;;  %vm623_vm5 = vcmp.lt.s32.totalorder %v10285_v24, 113  ;;  %vm725_vm6 = vcmp.lt.s32.totalorder %v10285_v24, 112  ;;  %vm827_vm7 = vcmp.lt.s32.totalorder %v10285_v24, 111 }
   0x8   :  { %v53_v17 = vshra.s32 %v10265_v16, 2  ;;  %v48_v19 = vand.u32 1, %v10265_v16  ;;  %v5129_v24 = vld [vmem:[%s15689_s5 + $0x1b8] sm:$0xff] }
   0xa   :  { %81 = vrot.lane.b32.xlu1 %v10113_v4, %s10028_s9  ;;  %79 = vrot.lane.b32.xlu0 %v10118_v5, %s10028_s9  ;;  %v54_v20 = vand.u32 1, %v53_v17  ;;  %v10281_v21 = vcvt.s32.f32 %v48_v19 }
   0xc   :  { %v10283_v22 = vcvt.s32.f32 %v54_v20 }
   0xe   :  { %89 = vrot.lane.b32.xlu1 %v10127_v6, %s10028_s9  ;;  %87 = vrot.lane.b32.xlu0 %v10132_v7, %s10028_s9  ;;  %v59_v25 = vmul.f32 %v10283_v22, %v10281_v21 }
  0x10   :  { %v10301_v29 = vrot.slane %v59_v25, %v10293_v26  ;;  %v10320_v42 = vrot.slane %v59_v25, %v10305_v33  ;;  %v10331_v45 = vrot.slane %v59_v25, %v10315_v37  ;;  %v10334_v46 = vrot.slane %v59_v25, %v10317_v38 }
  0x12   :  { %69 = vrot.lane.b32.xlu1 %v10141_v8, %s10028_s9  ;;  %67 = vrot.lane.b32.xlu0 %v10146_v9, %s10028_s9  ;;  %15864 = vst [vmem:[#allocation4_spill] sm:$0xff] %v10301_v29  ;;  %15865 = vst [vmem:[#allocation5_spill] sm:$0xff] %v10320_v42 }
  0x13   :  { %15866 = vst [vmem:[#allocation6_spill] sm:$0xff] %v10331_v45  ;;  %15867 = vst [vmem:[#allocation7_spill] sm:$0xff] %v10334_v46 }
  0x16   :  { %77 = vrot.lane.b32.xlu1 %v10155_v10, %s10028_s9  ;;  %75 = vrot.lane.b32.xlu0 %v10160_v11, %s10028_s9 }
  0x1a   :  { %85 = vrot.lane.b32.xlu1 %v10169_v12, %s10028_s9  ;;  %83 = vrot.lane.b32.xlu0 %v10174_v13, %s10028_s9 }
  0x1e   :  { %93 = vrot.lane.b32.xlu1 %v10183_v14, %s10028_s9  ;;  %91 = vrot.lane.b32.xlu0 %v10188_v15, %s10028_s9 }
  0x22   :  { %169 = vrot.lane.b32.xlu1 %v10104_v3, %s10029_s17  ;;  %167 = vrot.lane.b32.xlu0 %v10090_v1, %s10029_s17 }
  0x26   :  { %177 = vrot.lane.b32.xlu1 %v10099_v2, %s10029_s17  ;;  %175 = vrot.lane.b32.xlu0 %v10085_v0, %s10029_s17 }
  0x2a   :  { %185 = vrot.lane.b32.xlu1 %v10113_v4, %s10029_s17  ;;  %183 = vrot.lane.b32.xlu0 %v10118_v5, %s10029_s17 }
  0x2e   :  { %193 = vrot.lane.b32.xlu1 %v10127_v6, %s10029_s17  ;;  %191 = vrot.lane.b32.xlu0 %v10132_v7, %s10029_s17 }
  0x32   :  { %173 = vrot.lane.b32.xlu1 %v10141_v8, %s10029_s17  ;;  %171 = vrot.lane.b32.xlu0 %v10146_v9, %s10029_s17 }
  0x36   :  { %181 = vrot.lane.b32.xlu1 %v10155_v10, %s10029_s17  ;;  %179 = vrot.lane.b32.xlu0 %v10160_v11, %s10029_s17 }
  0x3a   :  { %189 = vrot.lane.b32.xlu1 %v10169_v12, %s10029_s17  ;;  %187 = vrot.lane.b32.xlu0 %v10174_v13, %s10029_s17 }
  0x3e   :  { %197 = vrot.lane.b32.xlu1 %v10183_v14, %s10029_s17  ;;  %195 = vrot.lane.b32.xlu0 %v10188_v15, %s10029_s17 }
  0x42   :  { %271 = vrot.lane.b32.xlu1 %v10104_v3, %s10030_s0  ;;  %269 = vrot.lane.b32.xlu0 %v10090_v1, %s10030_s0 }
  0x46   :  { %279 = vrot.lane.b32.xlu1 %v10099_v2, %s10030_s0  ;;  %277 = vrot.lane.b32.xlu0 %v10085_v0, %s10030_s0 }
  0x4a   :  { %287 = vrot.lane.b32.xlu1 %v10113_v4, %s10030_s0  ;;  %285 = vrot.lane.b32.xlu0 %v10118_v5, %s10030_s0 }
  0x4e   :  { %295 = vrot.lane.b32.xlu1 %v10127_v6, %s10030_s0  ;;  %293 = vrot.lane.b32.xlu0 %v10132_v7, %s10030_s0 }
  0x52   :  { %275 = vrot.lane.b32.xlu1 %v10141_v8, %s10030_s0  ;;  %273 = vrot.lane.b32.xlu0 %v10146_v9, %s10030_s0 }
  0x56   :  { %283 = vrot.lane.b32.xlu1 %v10155_v10, %s10030_s0  ;;  %281 = vrot.lane.b32.xlu0 %v10160_v11, %s10030_s0 }
  0x5a   :  { %291 = vrot.lane.b32.xlu1 %v10169_v12, %s10030_s0  ;;  %289 = vrot.lane.b32.xlu0 %v10174_v13, %s10030_s0 }
  0x5e   :  { %299 = vrot.lane.b32.xlu1 %v10183_v14, %s10030_s0  ;;  %297 = vrot.lane.b32.xlu0 %v10188_v15, %s10030_s0 }
  0x62   :  { %373 = vrot.lane.b32.xlu1 %v10104_v3, %s10031_s18  ;;  %371 = vrot.lane.b32.xlu0 %v10090_v1, %s10031_s18 }
  0x66   :  { %381 = vrot.lane.b32.xlu1 %v10099_v2, %s10031_s18  ;;  %379 = vrot.lane.b32.xlu0 %v10085_v0, %s10031_s18 }
  0x6a   :  { %389 = vrot.lane.b32.xlu1 %v10113_v4, %s10031_s18  ;;  %387 = vrot.lane.b32.xlu0 %v10118_v5, %s10031_s18 }
  0x6e   :  { %397 = vrot.lane.b32.xlu1 %v10127_v6, %s10031_s18  ;;  %395 = vrot.lane.b32.xlu0 %v10132_v7, %s10031_s18 }
  0x72   :  { %377 = vrot.lane.b32.xlu1 %v10141_v8, %s10031_s18  ;;  %375 = vrot.lane.b32.xlu0 %v10146_v9, %s10031_s18 }
  0x74   :  { %v72_v27 = vpop.permute.xlu1 %71  ;;  %v64_v28 = vpop.permute.xlu0 %63 }
  0x75   :  { %v106_v30 = vsel %vm97_vm0, %v64_v28, %v72_v27 }
  0x76   :  { %385 = vrot.lane.b32.xlu1 %v10155_v10, %s10031_s18  ;;  %383 = vrot.lane.b32.xlu0 %v10160_v11, %s10031_s18  ;;  %v136_v35 = vmul.f32 %v10301_v29, %v106_v30 }
  0x78   :  { %v74_v31 = vpop.permute.xlu1 %73  ;;  %v66_v32 = vpop.permute.xlu0 %65 }
  0x79   :  { %v107_v34 = vsel %vm97_vm0, %v66_v32, %v74_v31 }
  0x7a   :  { %393 = vrot.lane.b32.xlu1 %v10169_v12, %s10031_s18  ;;  %391 = vrot.lane.b32.xlu0 %v10174_v13, %s10031_s18  ;;  %v140_v36 = vmul.f32 %v10301_v29, %v107_v34 }
  0x7c   :  { %v82_v39 = vpop.permute.xlu1 %81  ;;  %v80_v40 = vpop.permute.xlu0 %79  ;;  %v152_v41 = vpack.c.bf16 %v140_v36, %v136_v35 }
  0x7d   :  { %v103_v43 = vsel %vm97_vm0, %v74_v31, %v82_v39  ;;  %v102_v44 = vsel %vm97_vm0, %v72_v27, %v80_v40 }
  0x7e   :  { %401 = vrot.lane.b32.xlu1 %v10183_v14, %s10031_s18  ;;  %399 = vrot.lane.b32.xlu0 %v10188_v15, %s10031_s18  ;;  %v137_v49 = vmul.f32 %v10320_v42, %v102_v44  ;;  %v141_v50 = vmul.f32 %v10320_v42, %v103_v43 }
  0x7f   :  { %1038 = vmatprep.subr.bf16.mxu0 %v152_v41 }
  0x80   :  { %v90_v47 = vpop.permute.xlu1 %89  ;;  %v88_v48 = vpop.permute.xlu0 %87  ;;  %v153_v63 = vpack.c.bf16 %v141_v50, %v137_v49 }
  0x81   :  { %v111_v51 = vsel %vm97_vm0, %v90_v47, %v66_v32  ;;  %v110_v52 = vsel %vm97_vm0, %v88_v48, %v64_v28  ;;  %v98_v53 = vsel %vm97_vm0, %v80_v40, %v88_v48  ;;  %v99_v54 = vsel %vm97_vm0, %v82_v39, %v90_v47 }
  0x82   :  { %491 = vrot.lane.b32.xlu1 %v10104_v3, %s10032_s1  ;;  %489 = vrot.lane.b32.xlu0 %v10090_v1, %s10032_s1  ;;  %v135_v55 = vmul.f32 %v10331_v45, %v110_v52  ;;  %v139_v56 = vmul.f32 %v10331_v45, %v111_v51  ;;  %v138_v57 = vmul.f32 %v10334_v46, %v98_v53 }
  0x83   :  { %v142_v58 = vmul.f32 %v10334_v46, %v99_v54 }
  0x84   :  { %v70_v59 = vpop.permute.xlu1 %69  ;;  %v68_v60 = vpop.permute.xlu0 %67  ;;  %v151_v61 = vpack.c.bf16 %v139_v56, %v135_v55  ;;  %v10399_v56 = vrot.slane %v10281_v21, %v10293_v26 }
  0x85   :  { %v154_v62 = vpack.c.bf16 %v142_v58, %v138_v57 }
  0x86   :  { %499 = vrot.lane.b32.xlu1 %v10099_v2, %s10032_s1  ;;  %497 = vrot.lane.b32.xlu0 %v10085_v0, %s10032_s1 }
  0x87   :  { %1039 = vmatpush1.bf16.msra.mxu0 %v151_v61  ;;  %1144 = vmatprep.subr.bf16.mxu1 %v154_v62 }
  0x88   :  { %1145 = vmatpush1.bf16.msra.mxu1 %v153_v63  ;;  %v78_v17 = vpop.permute.xlu1 %77  ;;  %v76_v18 = vpop.permute.xlu0 %75  ;;  %v10415_v63 = vrot.slane %v10281_v21, %v10305_v33 }
  0x89   :  { %v109_v19 = vsel %vm97_vm0, %v70_v59, %v78_v17  ;;  %v108_v20 = vsel %vm97_vm0, %v68_v60, %v76_v18 }
  0x8a   :  { %v148_v23 = vmul.f32 %v10301_v29, %v109_v19  ;;  %v144_v25 = vmul.f32 %v10301_v29, %v108_v20  ;;  %507 = vrot.lane.b32.xlu1 %v10113_v4, %s10032_s1  ;;  %505 = vrot.lane.b32.xlu0 %v10118_v5, %s10032_s1 }
  0x8c   :  { %v86_v27 = vpop.permute.xlu1 %85  ;;  %v84_v28 = vpop.permute.xlu0 %83  ;;  %v156_v30 = vpack.c.bf16 %v148_v23, %v144_v25  ;;  %v10425_v25 = vrot.slane %v10281_v21, %v10315_v37 }
  0x8d   :  { %v105_v31 = vsel %vm97_vm0, %v78_v17, %v86_v27  ;;  %v104_v32 = vsel %vm97_vm0, %v76_v18, %v84_v28 }
  0x8e   :  { %515 = vrot.lane.b32.xlu1 %v10127_v6, %s10032_s1  ;;  %513 = vrot.lane.b32.xlu0 %v10132_v7, %s10032_s1  ;;  %v149_v34 = vmul.f32 %v10320_v42, %v105_v31  ;;  %v145_v35 = vmul.f32 %v10320_v42, %v104_v32 }
  0x8f   :  { %1040 = vmatprep.subr.bf16.mxu0 %v156_v30 }
  0x90   :  { %v94_v36 = vpop.permute.xlu1 %93  ;;  %v92_v39 = vpop.permute.xlu0 %91  ;;  %v157_v55 = vpack.c.bf16 %v149_v34, %v145_v35 }
  0x91   :  { %v101_v40 = vsel %vm97_vm0, %v86_v27, %v94_v36  ;;  %v113_v41 = vsel %vm97_vm0, %v94_v36, %v70_v59  ;;  %v100_v43 = vsel %vm97_vm0, %v84_v28, %v92_v39  ;;  %v112_v44 = vsel %vm97_vm0, %v92_v39, %v68_v60 }
  0x92   :  { %v147_v47 = vmul.f32 %v10331_v45, %v113_v41  ;;  %v150_v48 = vmul.f32 %v10334_v46, %v101_v40  ;;  %v143_v49 = vmul.f32 %v10331_v45, %v112_v44  ;;  %v146_v50 = vmul.f32 %v10334_v46, %v100_v43  ;;  %495 = vrot.lane.b32.xlu1 %v10141_v8, %s10032_s1 }
  0x93   :  { %493 = vrot.lane.b32.xlu0 %v10146_v9, %s10032_s1  ;;  %v10429_v27 = vrot.slane %v10281_v21, %v10317_v38 }
  0x94   :  { %v170_v51 = vpop.permute.xlu1 %169  ;;  %v168_v52 = vpop.permute.xlu0 %167  ;;  %v155_v53 = vpack.c.bf16 %v147_v47, %v143_v49  ;;  %v158_v54 = vpack.c.bf16 %v150_v48, %v146_v50 }
  0x96   :  { %503 = vrot.lane.b32.xlu1 %v10155_v10, %s10032_s1  ;;  %1041 = vmatpush1.bf16.msra.mxu0 %v155_v53 }
  0x97   :  { %501 = vrot.lane.b32.xlu0 %v10160_v11, %s10032_s1  ;;  %1146 = vmatprep.subr.bf16.mxu1 %v158_v54 }
  0x98   :  { %1147 = vmatpush1.bf16.msra.mxu1 %v157_v55  ;;  %v178_v57 = vpop.permute.xlu1 %177  ;;  %v176_v58 = vpop.permute.xlu0 %175 }
  0x99   :  { %v209_v59 = vsel %vm199_vm1, %v170_v51, %v178_v57  ;;  %v208_v60 = vsel %vm199_vm1, %v168_v52, %v176_v58 }
  0x9a   :  { %v242_v61 = vmul.f32 %v10399_v56, %v209_v59  ;;  %v238_v62 = vmul.f32 %v10399_v56, %v208_v60  ;;  %511 = vrot.lane.b32.xlu1 %v10169_v12, %s10032_s1 }
  0x9b   :  { %509 = vrot.lane.b32.xlu0 %v10174_v13, %s10032_s1 }
  0x9c   :  { %v186_v17 = vpop.permute.xlu1 %185  ;;  %v184_v18 = vpop.permute.xlu0 %183  ;;  %v254_v19 = vpack.c.bf16 %v242_v61, %v238_v62 }
  0x9d   :  { %v205_v20 = vsel %vm199_vm1, %v178_v57, %v186_v17  ;;  %v204_v23 = vsel %vm199_vm1, %v176_v58, %v184_v18 }
  0x9e   :  { %519 = vrot.lane.b32.xlu1 %v10183_v14, %s10032_s1  ;;  %1042 = vmatprep.subr.bf16.mxu0 %v254_v19  ;;  %v243_v28 = vmul.f32 %v10415_v63, %v205_v20  ;;  %v239_v30 = vmul.f32 %v10415_v63, %v204_v23 }
  0x9f   :  { %517 = vrot.lane.b32.xlu0 %v10188_v15, %s10032_s1 }
  0xa0   :  { %v194_v31 = vpop.permute.xlu1 %193  ;;  %v192_v32 = vpop.permute.xlu0 %191 }
  0xa1   :  { %v201_v34 = vsel %vm199_vm1, %v186_v17, %v194_v31  ;;  %v213_v35 = vsel %vm199_vm1, %v194_v31, %v170_v51  ;;  %v200_v36 = vsel %vm199_vm1, %v184_v18, %v192_v32  ;;  %v212_v39 = vsel %vm199_vm1, %v192_v32, %v168_v52 }
  0xa2   :  { %v241_v40 = vmul.f32 %v10425_v25, %v213_v35  ;;  %v244_v41 = vmul.f32 %v10429_v27, %v201_v34  ;;  %v237_v43 = vmul.f32 %v10425_v25, %v212_v39  ;;  %v240_v44 = vmul.f32 %v10429_v27, %v200_v36  ;;  %593 = vrot.lane.b32.xlu1 %v10104_v3, %s10033_s21 }
  0xa3   :  { %591 = vrot.lane.b32.xlu0 %v10090_v1, %s10033_s21  ;;  %v56_v51 = vshra.s32 %v10265_v16, 3  ;;  %v255_v52 = vpack.c.bf16 %v243_v28, %v239_v30 }
  0xa4   :  { %v174_v47 = vpop.permute.xlu1 %173  ;;  %v172_v48 = vpop.permute.xlu0 %171  ;;  %v253_v49 = vpack.c.bf16 %v241_v40, %v237_v43  ;;  %v256_v50 = vpack.c.bf16 %v244_v41, %v240_v44 }
  0xa5   :  { %v57_v55 = vand.u32 1, %v56_v51 }
  0xa6   :  { %601 = vrot.lane.b32.xlu1 %v10099_v2, %s10033_s21  ;;  %1043 = vmatpush1.bf16.msra.mxu0 %v253_v49 }
  0xa7   :  { %599 = vrot.lane.b32.xlu0 %v10085_v0, %s10033_s21  ;;  %1148 = vmatprep.subr.bf16.mxu1 %v256_v50  ;;  %v10466_v18 = vcvt.s32.f32 %v57_v55 }
  0xa8   :  { %1149 = vmatpush1.bf16.msra.mxu1 %v255_v52  ;;  %v182_v53 = vpop.permute.xlu1 %181  ;;  %v180_v54 = vpop.permute.xlu0 %179 }
  0xa9   :  { %v211_v57 = vsel %vm199_vm1, %v174_v47, %v182_v53  ;;  %v210_v58 = vsel %vm199_vm1, %v172_v48, %v180_v54  ;;  %v60_v32 = vmul.f32 %v10466_v18, %v10281_v21 }
  0xaa   :  { %v250_v59 = vmul.f32 %v10399_v56, %v211_v57  ;;  %v246_v60 = vmul.f32 %v10399_v56, %v210_v58  ;;  %609 = vrot.lane.b32.xlu1 %v10113_v4, %s10033_s21 }
  0xab   :  { %607 = vrot.lane.b32.xlu0 %v10118_v5, %s10033_s21  ;;  %v10500_v51 = vrot.slane %v60_v32, %v10293_v26 }
  0xac   :  { %v190_v61 = vpop.permute.xlu1 %189  ;;  %v188_v62 = vpop.permute.xlu0 %187  ;;  %v258_v17 = vpack.c.bf16 %v250_v59, %v246_v60  ;;  %v10515_v59 = vrot.slane %v60_v32, %v10305_v33 }
  0xad   :  { %v207_v19 = vsel %vm199_vm1, %v182_v53, %v190_v61  ;;  %v206_v20 = vsel %vm199_vm1, %v180_v54, %v188_v62 }
  0xae   :  { %617 = vrot.lane.b32.xlu1 %v10127_v6, %s10033_s21  ;;  %1044 = vmatprep.subr.bf16.mxu0 %v258_v17  ;;  %v251_v23 = vmul.f32 %v10415_v63, %v207_v19  ;;  %v247_v28 = vmul.f32 %v10415_v63, %v206_v20  ;;  %v10524_v20 = vrot.slane %v60_v32, %v10315_v37 }
  0xaf   :  { %615 = vrot.lane.b32.xlu0 %v10132_v7, %s10033_s21 }
  0xb0   :  { %v198_v30 = vpop.permute.xlu1 %197  ;;  %v196_v31 = vpop.permute.xlu0 %195 }
  0xb1   :  { %v203_v34 = vsel %vm199_vm1, %v190_v61, %v198_v30  ;;  %v215_v35 = vsel %vm199_vm1, %v198_v30, %v174_v47  ;;  %v202_v36 = vsel %vm199_vm1, %v188_v62, %v196_v31  ;;  %v214_v39 = vsel %vm199_vm1, %v196_v31, %v172_v48 }
  0xb2   :  { %v249_v40 = vmul.f32 %v10425_v25, %v215_v35  ;;  %v252_v41 = vmul.f32 %v10429_v27, %v203_v34  ;;  %v245_v43 = vmul.f32 %v10425_v25, %v214_v39  ;;  %v248_v21 = vmul.f32 %v10429_v27, %v202_v36  ;;  %597 = vrot.lane.b32.xlu1 %v10141_v8, %s10033_s21 }
  0xb3   :  { %595 = vrot.lane.b32.xlu0 %v10146_v9, %s10033_s21  ;;  %v259_v48 = vpack.c.bf16 %v251_v23, %v247_v28  ;;  %v10527_v23 = vrot.slane %v60_v32, %v10317_v38 }
  0xb4   :  { %v272_v44 = vpop.permute.xlu1 %271  ;;  %v270_v47 = vpop.permute.xlu0 %269  ;;  %v257_v49 = vpack.c.bf16 %v249_v40, %v245_v43  ;;  %v260_v50 = vpack.c.bf16 %v252_v41, %v248_v21 }
  0xb6   :  { %605 = vrot.lane.b32.xlu1 %v10155_v10, %s10033_s21  ;;  %1045 = vmatpush1.bf16.msra.mxu0 %v257_v49 }
  0xb7   :  { %603 = vrot.lane.b32.xlu0 %v10160_v11, %s10033_s21  ;;  %1150 = vmatprep.subr.bf16.mxu1 %v260_v50 }
  0xb8   :  { %1151 = vmatpush1.bf16.msra.mxu1 %v259_v48  ;;  %v280_v52 = vpop.permute.xlu1 %279  ;;  %v278_v53 = vpop.permute.xlu0 %277 }
  0xb9   :  { %v311_v54 = vsel %vm301_vm2, %v272_v44, %v280_v52  ;;  %v310_v55 = vsel %vm301_vm2, %v270_v47, %v278_v53 }
  0xba   :  { %v344_v57 = vmul.f32 %v10500_v51, %v311_v54  ;;  %v340_v58 = vmul.f32 %v10500_v51, %v310_v55  ;;  %613 = vrot.lane.b32.xlu1 %v10169_v12, %s10033_s21 }
  0xbb   :  { %611 = vrot.lane.b32.xlu0 %v10174_v13, %s10033_s21 }
  0xbc   :  { %v288_v60 = vpop.permute.xlu1 %287  ;;  %v286_v61 = vpop.permute.xlu0 %285  ;;  %v356_v62 = vpack.c.bf16 %v344_v57, %v340_v58 }
  0xbd   :  { %v307_v17 = vsel %vm301_vm2, %v280_v52, %v288_v60  ;;  %v306_v19 = vsel %vm301_vm2, %v278_v53, %v286_v61 }
  0xbe   :  { %621 = vrot.lane.b32.xlu1 %v10183_v14, %s10033_s21  ;;  %1046 = vmatprep.subr.bf16.mxu0 %v356_v62  ;;  %v345_v28 = vmul.f32 %v10515_v59, %v307_v17  ;;  %v341_v30 = vmul.f32 %v10515_v59, %v306_v19 }
  0xbf   :  { %619 = vrot.lane.b32.xlu0 %v10188_v15, %s10033_s21 }
  0xc0   :  { %v296_v31 = vpop.permute.xlu1 %295  ;;  %v294_v34 = vpop.permute.xlu0 %293 }
  0xc1   :  { %v303_v35 = vsel %vm301_vm2, %v288_v60, %v296_v31  ;;  %v315_v36 = vsel %vm301_vm2, %v296_v31, %v272_v44  ;;  %v302_v39 = vsel %vm301_vm2, %v286_v61, %v294_v34  ;;  %v314_v32 = vsel %vm301_vm2, %v294_v34, %v270_v47 }
  0xc2   :  { %v343_v40 = vmul.f32 %v10524_v20, %v315_v36  ;;  %v346_v41 = vmul.f32 %v10527_v23, %v303_v35  ;;  %v339_v43 = vmul.f32 %v10524_v20, %v314_v32  ;;  %v342_v21 = vmul.f32 %v10527_v23, %v302_v39  ;;  %695 = vrot.lane.b32.xlu1 %v10104_v3, %s10034_s22 }
  0xc3   :  { %693 = vrot.lane.b32.xlu0 %v10090_v1, %s10034_s22  ;;  %v357_v47 = vpack.c.bf16 %v345_v28, %v341_v30 }
  0xc4   :  { %v276_v44 = vpop.permute.xlu1 %275  ;;  %v274_v49 = vpop.permute.xlu0 %273  ;;  %v355_v50 = vpack.c.bf16 %v343_v40, %v339_v43  ;;  %v358_v48 = vpack.c.bf16 %v346_v41, %v342_v21 }
  0xc6   :  { %703 = vrot.lane.b32.xlu1 %v10099_v2, %s10034_s22  ;;  %1047 = vmatpush1.bf16.msra.mxu0 %v355_v50 }
  0xc7   :  { %701 = vrot.lane.b32.xlu0 %v10085_v0, %s10034_s22  ;;  %1152 = vmatprep.subr.bf16.mxu1 %v358_v48 }
  0xc8   :  { %1153 = vmatpush1.bf16.msra.mxu1 %v357_v47  ;;  %v284_v52 = vpop.permute.xlu1 %283  ;;  %v282_v53 = vpop.permute.xlu0 %281 }
  0xc9   :  { %v313_v54 = vsel %vm301_vm2, %v276_v44, %v284_v52  ;;  %v312_v55 = vsel %vm301_vm2, %v274_v49, %v282_v53 }
  0xca   :  { %v352_v57 = vmul.f32 %v10500_v51, %v313_v54  ;;  %v348_v58 = vmul.f32 %v10500_v51, %v312_v55  ;;  %711 = vrot.lane.b32.xlu1 %v10113_v4, %s10034_s22 }
  0xcb   :  { %709 = vrot.lane.b32.xlu0 %v10118_v5, %s10034_s22 }
  0xcc   :  { %v292_v60 = vpop.permute.xlu1 %291  ;;  %v290_v61 = vpop.permute.xlu0 %289  ;;  %v360_v62 = vpack.c.bf16 %v352_v57, %v348_v58 }
  0xcd   :  { %v309_v17 = vsel %vm301_vm2, %v284_v52, %v292_v60  ;;  %v308_v19 = vsel %vm301_vm2, %v282_v53, %v290_v61  ;;  %v10594_v52 = vrot.slane %v10283_v22, %v10293_v26 }
  0xce   :  { %719 = vrot.lane.b32.xlu1 %v10127_v6, %s10034_s22  ;;  %1048 = vmatprep.subr.bf16.mxu0 %v360_v62  ;;  %v353_v28 = vmul.f32 %v10515_v59, %v309_v17  ;;  %v349_v30 = vmul.f32 %v10515_v59, %v308_v19 }
  0xcf   :  { %717 = vrot.lane.b32.xlu0 %v10132_v7, %s10034_s22 }
  0xd0   :  { %v300_v31 = vpop.permute.xlu1 %299  ;;  %v298_v34 = vpop.permute.xlu0 %297 }
  0xd1   :  { %v305_v35 = vsel %vm301_vm2, %v292_v60, %v300_v31  ;;  %v317_v36 = vsel %vm301_vm2, %v300_v31, %v276_v44  ;;  %v304_v39 = vsel %vm301_vm2, %v290_v61, %v298_v34  ;;  %v316_v32 = vsel %vm301_vm2, %v298_v34, %v274_v49 }
  0xd2   :  { %v351_v40 = vmul.f32 %v10524_v20, %v317_v36  ;;  %v354_v41 = vmul.f32 %v10527_v23, %v305_v35  ;;  %v347_v43 = vmul.f32 %v10524_v20, %v316_v32  ;;  %v350_v21 = vmul.f32 %v10527_v23, %v304_v39  ;;  %699 = vrot.lane.b32.xlu1 %v10141_v8, %s10034_s22 }
  0xd3   :  { %697 = vrot.lane.b32.xlu0 %v10146_v9, %s10034_s22  ;;  %v361_v49 = vpack.c.bf16 %v353_v28, %v349_v30  ;;  %v10610_v61 = vrot.slane %v10283_v22, %v10305_v33  ;;  %v10620_v31 = vrot.slane %v10283_v22, %v10315_v37  ;;  %v10624_v34 = vrot.slane %v10283_v22, %v10317_v38 }
  0xd4   :  { %v374_v44 = vpop.permute.xlu1 %373  ;;  %v372_v50 = vpop.permute.xlu0 %371  ;;  %v359_v48 = vpack.c.bf16 %v351_v40, %v347_v43  ;;  %v362_v47 = vpack.c.bf16 %v354_v41, %v350_v21 }
  0xd5   :  { %15868 = vst [vmem:[#allocation8_spill] sm:$0xff] %v10620_v31  ;;  %15869 = vst [vmem:[#allocation9_spill] sm:$0xff] %v10624_v34 }
  0xd6   :  { %707 = vrot.lane.b32.xlu1 %v10155_v10, %s10034_s22  ;;  %1049 = vmatpush1.bf16.msra.mxu0 %v359_v48  ;;  %v9942_v48 = vld [vmem:[%s15687_s2 + $0x4] ss:$12 sps:$4 sm:$0xff]  }
  0xd7   :  { %705 = vrot.lane.b32.xlu0 %v10160_v11, %s10034_s22  ;;  %1154 = vmatprep.subr.bf16.mxu1 %v362_v47 }
  0xd8   :  { %1155 = vmatpush1.bf16.msra.mxu1 %v361_v49  ;;  %v382_v53 = vpop.permute.xlu1 %381  ;;  %v380_v54 = vpop.permute.xlu0 %379  ;;  %1070 = vmatprep.mubr.bf16.mxu0 %v9942_v48 }
  0xd9   :  { %v413_v55 = vsel %vm403_vm3, %v374_v44, %v382_v53  ;;  %v412_v57 = vsel %vm403_vm3, %v372_v50, %v380_v54  ;;  %1176 = vmatprep.mubr.bf16.mxu1 %v9942_v48 }
  0xda   :  { %v446_v58 = vmul.f32 %v10594_v52, %v413_v55  ;;  %v442_v60 = vmul.f32 %v10594_v52, %v412_v57  ;;  %715 = vrot.lane.b32.xlu1 %v10169_v12, %s10034_s22 }
  0xdb   :  { %713 = vrot.lane.b32.xlu0 %v10174_v13, %s10034_s22 }
  0xdc   :  { %v390_v62 = vpop.permute.xlu1 %389  ;;  %v388_v17 = vpop.permute.xlu0 %387  ;;  %v458_v19 = vpack.c.bf16 %v446_v58, %v442_v60 }
  0xdd   :  { %v409_v28 = vsel %vm403_vm3, %v382_v53, %v390_v62  ;;  %v408_v30 = vsel %vm403_vm3, %v380_v54, %v388_v17 }
  0xde   :  { %723 = vrot.lane.b32.xlu1 %v10183_v14, %s10034_s22  ;;  %1050 = vmatprep.subr.bf16.mxu0 %v458_v19  ;;  %v447_v35 = vmul.f32 %v10610_v61, %v409_v28  ;;  %v443_v36 = vmul.f32 %v10610_v61, %v408_v30 }
  0xdf   :  { %721 = vrot.lane.b32.xlu0 %v10188_v15, %s10034_s22 }
  0xe0   :  { %v398_v39 = vpop.permute.xlu1 %397  ;;  %v396_v32 = vpop.permute.xlu0 %395  ;;  %v459_v58 = vpack.c.bf16 %v447_v35, %v443_v36 }
  0xe1   :  { %v405_v40 = vsel %vm403_vm3, %v390_v62, %v398_v39  ;;  %v417_v41 = vsel %vm403_vm3, %v398_v39, %v374_v44  ;;  %v404_v43 = vsel %vm403_vm3, %v388_v17, %v396_v32  ;;  %v416_v21 = vsel %vm403_vm3, %v396_v32, %v372_v50 }
  0xe2   :  { %v445_v47 = vmul.f32 %v10620_v31, %v417_v41  ;;  %v448_v49 = vmul.f32 %v10624_v34, %v405_v40  ;;  %v441_v53 = vmul.f32 %v10620_v31, %v416_v21  ;;  %v444_v54 = vmul.f32 %v10624_v34, %v404_v43  ;;  %797 = vrot.lane.b32.xlu1 %v10104_v3, %s10035_s25 }
  0xe3   :  { %795 = vrot.lane.b32.xlu0 %v10090_v1, %s10035_s25 }
  0xe4   :  { %v378_v44 = vpop.permute.xlu1 %377  ;;  %v376_v50 = vpop.permute.xlu0 %375  ;;  %v457_v55 = vpack.c.bf16 %v445_v47, %v441_v53  ;;  %v460_v57 = vpack.c.bf16 %v448_v49, %v444_v54 }
  0xe6   :  { %805 = vrot.lane.b32.xlu1 %v10099_v2, %s10035_s25  ;;  %1051 = vmatpush1.bf16.msra.mxu0 %v457_v55 }
  0xe7   :  { %803 = vrot.lane.b32.xlu0 %v10085_v0, %s10035_s25  ;;  %1156 = vmatprep.subr.bf16.mxu1 %v460_v57 }
  0xe8   :  { %1157 = vmatpush1.bf16.msra.mxu1 %v459_v58  ;;  %v386_v60 = vpop.permute.xlu1 %385  ;;  %v384_v62 = vpop.permute.xlu0 %383 }
  0xe9   :  { %v415_v17 = vsel %vm403_vm3, %v378_v44, %v386_v60  ;;  %v414_v19 = vsel %vm403_vm3, %v376_v50, %v384_v62 }
  0xea   :  { %v454_v28 = vmul.f32 %v10594_v52, %v415_v17  ;;  %v450_v30 = vmul.f32 %v10594_v52, %v414_v19  ;;  %813 = vrot.lane.b32.xlu1 %v10113_v4, %s10035_s25 }
  0xeb   :  { %811 = vrot.lane.b32.xlu0 %v10118_v5, %s10035_s25 }
  0xec   :  { %v394_v35 = vpop.permute.xlu1 %393  ;;  %v392_v36 = vpop.permute.xlu0 %391  ;;  %v462_v39 = vpack.c.bf16 %v454_v28, %v450_v30  ;;  %v476_v28 = vpack.c.bf16 %v10127_v6, %v10132_v7 }
  0xed   :  { %v411_v32 = vsel %vm403_vm3, %v386_v60, %v394_v35  ;;  %v410_v40 = vsel %vm403_vm3, %v384_v62, %v392_v36 }
  0xee   :  { %821 = vrot.lane.b32.xlu1 %v10127_v6, %s10035_s25  ;;  %1052 = vmatprep.subr.bf16.mxu0 %v462_v39  ;;  %v455_v41 = vmul.f32 %v10610_v61, %v411_v32  ;;  %v451_v43 = vmul.f32 %v10610_v61, %v410_v40 }
  0xef   :  { %819 = vrot.lane.b32.xlu0 %v10132_v7, %s10035_s25 }
  0xf0   :  { %v402_v21 = vpop.permute.xlu1 %401  ;;  %v400_v48 = vpop.permute.xlu0 %399  ;;  %v463_v30 = vpack.c.bf16 %v455_v41, %v451_v43  ;;  %v479_v43 = vpack.c.bf16 %v10169_v12, %v10174_v13 }
  0xf1   :  { %v407_v47 = vsel %vm403_vm3, %v394_v35, %v402_v21  ;;  %v419_v49 = vsel %vm403_vm3, %v402_v21, %v378_v44  ;;  %v406_v53 = vsel %vm403_vm3, %v392_v36, %v400_v48  ;;  %v418_v54 = vsel %vm403_vm3, %v400_v48, %v376_v50 }
  0xf2   :  { %v453_v55 = vmul.f32 %v10620_v31, %v419_v49  ;;  %v456_v57 = vmul.f32 %v10624_v34, %v407_v47  ;;  %v449_v58 = vmul.f32 %v10620_v31, %v418_v54  ;;  %v452_v60 = vmul.f32 %v10624_v34, %v406_v53  ;;  %801 = vrot.lane.b32.xlu1 %v10141_v8, %s10035_s25 }
  0xf3   :  { %799 = vrot.lane.b32.xlu0 %v10146_v9, %s10035_s25  ;;  %v474_v50 = vpack.c.bf16 %v10099_v2, %v10085_v0  ;;  %v473_v35 = vpack.c.bf16 %v10104_v3, %v10090_v1  ;;  %v478_v0 = vpack.c.bf16 %v10155_v10, %v10160_v11  ;;  %v10704_v2 = vrot.slane %v10466_v18, %v10315_v37 }
  0xf4   :  { %v492_v44 = vpop.permute.xlu1 %491  ;;  %v490_v62 = vpop.permute.xlu0 %489  ;;  %v461_v17 = vpack.c.bf16 %v453_v55, %v449_v58  ;;  %v464_v19 = vpack.c.bf16 %v456_v57, %v452_v60  ;;  %v475_v36 = vpack.c.bf16 %v10113_v4, %v10118_v5  ;;  %v10719_v4 = vrot.slane %v10466_v18, %v10293_v26 }
  0xf5   :  { %15870 = vst [vmem:[#allocation10_spill] sm:$0xff] %v10704_v2  ;;  %v477_v5 = vpack.c.bf16 %v10141_v8, %v10146_v9  ;;  %v10736_v9 = vrot.slane %v10466_v18, %v10305_v33 }
  0xf6   :  { %809 = vrot.lane.b32.xlu1 %v10155_v10, %s10035_s25  ;;  %1053 = vmatpush1.bf16.msra.mxu0 %v461_v17  ;;  %v480_v10 = vpack.c.bf16 %v10183_v14, %v10188_v15  ;;  %15871 = vst [vmem:[#allocation11_spill] sm:$0xff] %v10719_v4 }
  0xf7   :  { %807 = vrot.lane.b32.xlu0 %v10160_v11, %s10035_s25  ;;  %1158 = vmatprep.subr.bf16.mxu1 %v464_v19  ;;  %v15694_v11 = vmov 0   ;;  %15872 = vst [vmem:[#allocation12_spill] sm:$0xff] %v10736_v9 }
  0xf8   :  { %1159 = vmatpush1.bf16.msra.mxu1 %v463_v30  ;;  %v500_v6 = vpop.permute.xlu1 %499  ;;  %v498_v7 = vpop.permute.xlu0 %497  ;;  %1054 = vmatprep.subr.bf16.mxu0 %v474_v50 }
  0xf9   :  { %v531_v1 = vsel %vm521_vm4, %v492_v44, %v500_v6  ;;  %v530_v3 = vsel %vm521_vm4, %v490_v62, %v498_v7  ;;  %1160 = vmatprep.subr.bf16.mxu1 %v476_v28  ;;  %9939 = vset.pattern.permute.xlu1 %v15694_v11 }
  0xfa   :  { %817 = vrot.lane.b32.xlu1 %v10169_v12, %s10035_s25  ;;  %1055 = vmatpush1.bf16.msra.mxu0 %v473_v35  ;;  %v563_v39 = vmul.f32 %v10704_v2, %v531_v1  ;;  %v559_v32 = vmul.f32 %v10704_v2, %v530_v3  ;;  %v10744_v12 = vrot.slane %v10466_v18, %v10317_v38 }
  0xfb   :  { %815 = vrot.lane.b32.xlu0 %v10174_v13, %s10035_s25  ;;  %1056 = vmatprep.subr.bf16.mxu0 %v478_v0  ;;  %v979_v0 = vld [vmem:[%s15688_s3 + $0x10] sm:$0xff] }
  0xfc   :  { %v508_v40 = vpop.permute.xlu1 %507  ;;  %v506_v41 = vpop.permute.xlu0 %505  ;;  %1161 = vmatpush1.bf16.msra.mxu1 %v475_v36  ;;  %9938 = vset.pattern.permute.xlu0 %v15694_v11  ;;  %15873 = vst [vmem:[#allocation13_spill] sm:$0xff] %v10744_v12  ;;  %v575_v54 = vpack.c.bf16 %v563_v39, %v559_v32  ;;  %v50_v36 = vshra.s32 %v10265_v16, 1 }
  0xfd   :  { %v527_v21 = vsel %vm521_vm4, %v500_v6, %v508_v40  ;;  %v526_v8 = vsel %vm521_vm4, %v498_v7, %v506_v41  ;;  %1162 = vmatprep.subr.bf16.mxu1 %v480_v10  ;;  %v980_v6 = vld [vmem:[%s15688_s3 + $0x18] sm:$0xff] }
  0xfe   :  { %v564_v48 = vmul.f32 %v10719_v4, %v527_v21  ;;  %v560_v47 = vmul.f32 %v10719_v4, %v526_v8  ;;  %825 = vrot.lane.b32.xlu1 %v10183_v14, %s10035_s25  ;;  %1057 = vmatpush1.bf16.msra.mxu0 %v477_v5  ;;  %v51_v39 = vand.u32 1, %v50_v36 }
  0xff   :  { %823 = vrot.lane.b32.xlu0 %v10188_v15, %s10035_s25 }
 0x100   :  { %v516_v13 = vpop.permute.xlu1 %515  ;;  %v514_v49 = vpop.permute.xlu0 %513  ;;  %v576_v53 = vpack.c.bf16 %v564_v48, %v560_v47  ;;  %1163 = vmatpush1.bf16.msra.mxu1 %v479_v43  ;;  %v10785_v47 = vcvt.s32.f32 %v51_v39 }
 0x101   :  { %v523_v55 = vsel %vm521_vm4, %v508_v40, %v516_v13  ;;  %v535_v57 = vsel %vm521_vm4, %v516_v13, %v492_v44  ;;  %v522_v14 = vsel %vm521_vm4, %v506_v41, %v514_v49  ;;  %v534_v58 = vsel %vm521_vm4, %v514_v49, %v490_v62  ;;  %v978_v44 = vld [vmem:[%s15688_s3 + $0x8] sm:$0xff]  ;;  %v977_v62 = vld [vmem:[%s15688_s3] sm:$0xff] }
 0x102   :  { %v565_v60 = vmul.f32 %v10736_v9, %v523_v55  ;;  %v566_v15 = vmul.f32 %v10744_v12, %v535_v57  ;;  %v561_v17 = vmul.f32 %v10736_v9, %v522_v14  ;;  %v562_v19 = vmul.f32 %v10744_v12, %v534_v58  ;;  %1058 = vmatprep.subr.bf16.mxu0 %v576_v53 }
 0x103   :  { %1059 = vmatpush1.bf16.msra.mxu0 %v575_v54  ;;  %988 = vperm.xlu1 %9939, %v978_v44   ;;  %v61_v44 = vmul.f32 %v10283_v22, %v10785_v47 }
 0x104   :  { %v496_v50 = vpop.permute.xlu1 %495  ;;  %v578_v28 = vpack.c.bf16 %v566_v15, %v562_v19  ;;  %v577_v30 = vpack.c.bf16 %v565_v60, %v561_v17  ;;  %983 = vperm.xlu0 %9938, %v977_v62  }
 0x105   :  { %v494_v35 = vpop.permute.xlu0 %493  ;;  %v10810_v36 = vrot.slane %v61_v44, %v10293_v26 }
 0x106   :  { %1164 = vmatprep.subr.bf16.mxu1 %v578_v28 }
 0x107   :  { %1165 = vmatpush1.bf16.msra.mxu1 %v577_v30  ;;  %993 = vperm.xlu1 %9939, %v979_v0   ;;  %15875 = vst [vmem:[#allocation15_spill] sm:$0xff] %v10810_v36 }
 0x108   :  { %v504_v7 = vpop.permute.xlu1 %503  ;;  %998 = vperm.xlu0 %9938, %v980_v6  }
 0x109   :  { %v502_v1 = vpop.permute.xlu0 %501  ;;  %v533_v3 = vsel %vm521_vm4, %v496_v50, %v504_v7 }
 0x10a   :  { %v532_v10 = vsel %vm521_vm4, %v494_v35, %v502_v1  ;;  %v571_v32 = vmul.f32 %v10704_v2, %v533_v3 }
 0x10b   :  { %v567_v40 = vmul.f32 %v10704_v2, %v532_v10 }
 0x10c   :  { %v512_v5 = vpop.permute.xlu1 %511 }
 0x10d   :  { %v529_v41 = vsel %vm521_vm4, %v504_v7, %v512_v5  ;;  %v510_v43 = vpop.permute.xlu0 %509  ;;  %v579_v55 = vpack.c.bf16 %v571_v32, %v567_v40  ;;  %v10820_v40 = vrot.slane %v61_v44, %v10305_v33 }
 0x10e   :  { %v572_v16 = vmul.f32 %v10719_v4, %v529_v41  ;;  %v528_v21 = vsel %vm521_vm4, %v502_v1, %v510_v43  ;;  %v10823_v41 = vrot.slane %v61_v44, %v10317_v38 }
 0x10f   :  { %v568_v8 = vmul.f32 %v10719_v4, %v528_v21  ;;  %15876 = vst [vmem:[#allocation16_spill] sm:$0xff] %v10820_v40 }
 0x110   :  { %v520_v48 = vpop.permute.xlu1 %519  ;;  %15877 = vst [vmem:[#allocation17_spill] sm:$0xff] %v10823_v41 }
 0x111   :  { %v525_v13 = vsel %vm521_vm4, %v512_v5, %v520_v48  ;;  %v537_v49 = vsel %vm521_vm4, %v520_v48, %v496_v50  ;;  %v518_v53 = vpop.permute.xlu0 %517  ;;  %v580_v54 = vpack.c.bf16 %v572_v16, %v568_v8 }
 0x112   :  { %v573_v57 = vmul.f32 %v10736_v9, %v525_v13  ;;  %v574_v14 = vmul.f32 %v10744_v12, %v537_v49  ;;  %v524_v58 = vsel %vm521_vm4, %v510_v43, %v518_v53  ;;  %v536_v60 = vsel %vm521_vm4, %v518_v53, %v494_v35 }
 0x113   :  { %v569_v15 = vmul.f32 %v10736_v9, %v524_v58  ;;  %v570_v17 = vmul.f32 %v10744_v12, %v536_v60  ;;  %1060 = vmatprep.subr.bf16.mxu0 %v580_v54  ;;  %v10803_v35 = vrot.slane %v61_v44, %v10315_v37 }
 0x114   :  { %1061 = vmatpush1.bf16.msra.mxu0 %v579_v55  ;;  %v594_v19 = vpop.permute.xlu1 %593 }
 0x115   :  { %v592_v50 = vpop.permute.xlu0 %591  ;;  %v582_v28 = vpack.c.bf16 %v574_v14, %v570_v17  ;;  %v581_v30 = vpack.c.bf16 %v573_v57, %v569_v15  ;;  %15874 = vst [vmem:[#allocation14_spill] sm:$0xff] %v10803_v35 }
 0x117   :  { %1166 = vmatprep.subr.bf16.mxu1 %v582_v28 }
 0x118   :  { %1167 = vmatpush1.bf16.msra.mxu1 %v581_v30  ;;  %v602_v62 = vpop.permute.xlu1 %601 }
 0x119   :  { %v600_v0 = vpop.permute.xlu0 %599  ;;  %v633_v6 = vsel %vm623_vm5, %v594_v19, %v602_v62 }
 0x11a   :  { %v632_v7 = vsel %vm623_vm5, %v592_v50, %v600_v0  ;;  %v665_v22 = vmul.f32 %v10803_v35, %v633_v6 }
 0x11b   :  { %v661_v3 = vmul.f32 %v10803_v35, %v632_v7 }
 0x11c   :  { %v610_v1 = vpop.permute.xlu1 %609 }
 0x11d   :  { %v629_v10 = vsel %vm623_vm5, %v602_v62, %v610_v1  ;;  %v608_v5 = vpop.permute.xlu0 %607  ;;  %v677_v49 = vpack.c.bf16 %v665_v22, %v661_v3 }
 0x11e   :  { %v666_v39 = vmul.f32 %v10810_v36, %v629_v10  ;;  %v628_v32 = vsel %vm623_vm5, %v600_v0, %v608_v5 }
 0x11f   :  { %v662_v43 = vmul.f32 %v10810_v36, %v628_v32 }
 0x120   :  { %v618_v16 = vpop.permute.xlu1 %617 }
 0x121   :  { %v625_v21 = vsel %vm623_vm5, %v610_v1, %v618_v16  ;;  %v637_v8 = vsel %vm623_vm5, %v618_v16, %v594_v19  ;;  %v616_v48 = vpop.permute.xlu0 %615  ;;  %v678_v13 = vpack.c.bf16 %v666_v39, %v662_v43 }
 0x122   :  { %v667_v53 = vmul.f32 %v10820_v40, %v625_v21  ;;  %v668_v54 = vmul.f32 %v10823_v41, %v637_v8  ;;  %v624_v55 = vsel %vm623_vm5, %v608_v5, %v616_v48  ;;  %v636_v57 = vsel %vm623_vm5, %v616_v48, %v592_v50 }
 0x123   :  { %v663_v14 = vmul.f32 %v10820_v40, %v624_v55  ;;  %v664_v58 = vmul.f32 %v10823_v41, %v636_v57  ;;  %1062 = vmatprep.subr.bf16.mxu0 %v678_v13 }
 0x124   :  { %1063 = vmatpush1.bf16.msra.mxu0 %v677_v49  ;;  %v598_v60 = vpop.permute.xlu1 %597 }
 0x125   :  { %v596_v15 = vpop.permute.xlu0 %595  ;;  %v680_v17 = vpack.c.bf16 %v668_v54, %v664_v58  ;;  %v679_v19 = vpack.c.bf16 %v667_v53, %v663_v14 }
 0x127   :  { %1168 = vmatprep.subr.bf16.mxu1 %v680_v17  ;;  %v10865_v17 = vrot.slane %v10785_v47, %v10315_v37 }
 0x128   :  { %1169 = vmatpush1.bf16.msra.mxu1 %v679_v19  ;;  %v606_v28 = vpop.permute.xlu1 %605 }
 0x129   :  { %v604_v30 = vpop.permute.xlu0 %603  ;;  %v635_v44 = vsel %vm623_vm5, %v598_v60, %v606_v28  ;;  %15878 = vst [vmem:[#allocation18_spill] sm:$0xff] %v10865_v17 }
 0x12a   :  { %v634_v50 = vsel %vm623_vm5, %v596_v15, %v604_v30  ;;  %v673_v0 = vmul.f32 %v10803_v35, %v635_v44 }
 0x12b   :  { %v669_v6 = vmul.f32 %v10803_v35, %v634_v50 }
 0x12c   :  { %v614_v62 = vpop.permute.xlu1 %613 }
 0x12d   :  { %v631_v7 = vsel %vm623_vm5, %v606_v28, %v614_v62  ;;  %v612_v1 = vpop.permute.xlu0 %611  ;;  %v681_v21 = vpack.c.bf16 %v673_v0, %v669_v6 }
 0x12e   :  { %v674_v22 = vmul.f32 %v10810_v36, %v631_v7  ;;  %v630_v3 = vsel %vm623_vm5, %v604_v30, %v612_v1  ;;  %v10873_v30 = vrot.slane %v10785_v47, %v10293_v26 }
 0x12f   :  { %v670_v10 = vmul.f32 %v10810_v36, %v630_v3  ;;  %v10888_v3 = vrot.slane %v10785_v47, %v10317_v38 }
 0x130   :  { %v622_v5 = vpop.permute.xlu1 %621  ;;  %15879 = vst [vmem:[#allocation19_spill] sm:$0xff] %v10873_v30 }
 0x131   :  { %v627_v39 = vsel %vm623_vm5, %v614_v62, %v622_v5  ;;  %v639_v32 = vsel %vm623_vm5, %v622_v5, %v598_v60  ;;  %v620_v43 = vpop.permute.xlu0 %619  ;;  %v682_v16 = vpack.c.bf16 %v674_v22, %v670_v10  ;;  %v10884_v22 = vrot.slane %v10785_v47, %v10305_v33  ;;  %15881 = vst [vmem:[#allocation21_spill] sm:$0xff] %v10888_v3 }
 0x132   :  { %v675_v8 = vmul.f32 %v10820_v40, %v627_v39  ;;  %v676_v48 = vmul.f32 %v10823_v41, %v639_v32  ;;  %v626_v13 = vsel %vm623_vm5, %v612_v1, %v620_v43  ;;  %v638_v49 = vsel %vm623_vm5, %v620_v43, %v596_v15 }
 0x133   :  { %v671_v53 = vmul.f32 %v10820_v40, %v626_v13  ;;  %v672_v54 = vmul.f32 %v10823_v41, %v638_v49  ;;  %1064 = vmatprep.subr.bf16.mxu0 %v682_v16  ;;  %15880 = vst [vmem:[#allocation20_spill] sm:$0xff] %v10884_v22 }
 0x134   :  { %1065 = vmatpush1.bf16.msra.mxu0 %v681_v21  ;;  %v696_v55 = vpop.permute.xlu1 %695 }
 0x135   :  { %v694_v57 = vpop.permute.xlu0 %693  ;;  %v684_v14 = vpack.c.bf16 %v676_v48, %v672_v54  ;;  %v683_v58 = vpack.c.bf16 %v675_v8, %v671_v53 }
 0x137   :  { %1170 = vmatprep.subr.bf16.mxu1 %v684_v14 }
 0x138   :  { %1171 = vmatpush1.bf16.msra.mxu1 %v683_v58  ;;  %v704_v60 = vpop.permute.xlu1 %703 }
 0x139   :  { %v702_v15 = vpop.permute.xlu0 %701  ;;  %v735_v19 = vsel %vm725_vm6, %v696_v55, %v704_v60 }
 0x13a   :  { %v734_v28 = vsel %vm725_vm6, %v694_v57, %v702_v15  ;;  %v767_v50 = vmul.f32 %v10865_v17, %v735_v19 }
 0x13b   :  { %v763_v62 = vmul.f32 %v10865_v17, %v734_v28 }
 0x13c   :  { %v712_v44 = vpop.permute.xlu1 %711 }
 0x13d   :  { %v731_v0 = vsel %vm725_vm6, %v704_v60, %v712_v44  ;;  %v710_v6 = vpop.permute.xlu0 %709  ;;  %v779_v21 = vpack.c.bf16 %v767_v50, %v763_v62 }
 0x13e   :  { %v768_v7 = vmul.f32 %v10873_v30, %v731_v0  ;;  %v730_v1 = vsel %vm725_vm6, %v702_v15, %v710_v6 }
 0x13f   :  { %v764_v10 = vmul.f32 %v10873_v30, %v730_v1 }
 0x140   :  { %v720_v5 = vpop.permute.xlu1 %719 }
 0x141   :  { %v727_v39 = vsel %vm725_vm6, %v712_v44, %v720_v5  ;;  %v739_v32 = vsel %vm725_vm6, %v720_v5, %v696_v55  ;;  %v718_v43 = vpop.permute.xlu0 %717  ;;  %v780_v16 = vpack.c.bf16 %v768_v7, %v764_v10 }
 0x142   :  { %v769_v8 = vmul.f32 %v10884_v22, %v727_v39  ;;  %v770_v48 = vmul.f32 %v10888_v3, %v739_v32  ;;  %v726_v13 = vsel %vm725_vm6, %v710_v6, %v718_v43  ;;  %v738_v49 = vsel %vm725_vm6, %v718_v43, %v694_v57 }
 0x143   :  { %v765_v53 = vmul.f32 %v10884_v22, %v726_v13  ;;  %v766_v54 = vmul.f32 %v10888_v3, %v738_v49  ;;  %1066 = vmatprep.subr.bf16.mxu0 %v780_v16 }
 0x144   :  { %1067 = vmatpush1.bf16.msra.mxu0 %v779_v21  ;;  %v700_v55 = vpop.permute.xlu1 %699 }
 0x145   :  { %v698_v14 = vpop.permute.xlu0 %697  ;;  %v782_v58 = vpack.c.bf16 %v770_v48, %v766_v54  ;;  %v781_v60 = vpack.c.bf16 %v769_v8, %v765_v53 }
 0x147   :  { %1172 = vmatprep.subr.bf16.mxu1 %v782_v58 }
 0x148   :  { %1173 = vmatpush1.bf16.msra.mxu1 %v781_v60  ;;  %v708_v15 = vpop.permute.xlu1 %707  ;;  %v9943_v60 = vld [vmem:[%s15687_s2 + $0x1c] ss:$12 sps:$4 sm:$0xff]  }
 0x149   :  { %v706_v19 = vpop.permute.xlu0 %705  ;;  %v737_v28 = vsel %vm725_vm6, %v700_v55, %v708_v15 }
 0x14a   :  { %v736_v57 = vsel %vm725_vm6, %v698_v14, %v706_v19  ;;  %v775_v50 = vmul.f32 %v10865_v17, %v737_v28 }
 0x14b   :  { %v771_v62 = vmul.f32 %v10865_v17, %v736_v57 }
 0x14c   :  { %v716_v44 = vpop.permute.xlu1 %715 }
 0x14d   :  { %v733_v0 = vsel %vm725_vm6, %v708_v15, %v716_v44  ;;  %v714_v6 = vpop.permute.xlu0 %713  ;;  %v783_v21 = vpack.c.bf16 %v775_v50, %v771_v62 }
 0x14e   :  { %v776_v7 = vmul.f32 %v10873_v30, %v733_v0  ;;  %v732_v1 = vsel %vm725_vm6, %v706_v19, %v714_v6 }
 0x14f   :  { %v772_v10 = vmul.f32 %v10873_v30, %v732_v1 }
 0x150   :  { %v724_v5 = vpop.permute.xlu1 %723 }
 0x151   :  { %v729_v39 = vsel %vm725_vm6, %v716_v44, %v724_v5  ;;  %v741_v32 = vsel %vm725_vm6, %v724_v5, %v700_v55  ;;  %v722_v43 = vpop.permute.xlu0 %721  ;;  %v784_v16 = vpack.c.bf16 %v776_v7, %v772_v10  ;;  %v9940_v55 = vld [vmem:[%s15687_s2] ss:$12 sps:$4 sm:$0xff]  }
 0x152   :  { %v777_v8 = vmul.f32 %v10884_v22, %v729_v39  ;;  %v778_v48 = vmul.f32 %v10888_v3, %v741_v32  ;;  %v728_v13 = vsel %vm725_vm6, %v714_v6, %v722_v43  ;;  %v740_v49 = vsel %vm725_vm6, %v722_v43, %v698_v14 }
 0x153   :  { %v773_v53 = vmul.f32 %v10884_v22, %v728_v13  ;;  %v774_v54 = vmul.f32 %v10888_v3, %v740_v49  ;;  %1068 = vmatprep.subr.bf16.mxu0 %v784_v16  ;;  %v62_v14 = vmul.f32 %v10466_v18, %v10785_v47  ;;  %v9945_v18 = vld [vmem:[%s15687_s2 + $0x18] ss:$12 sps:$4 sm:$0xff]  }
 0x154   :  { %1069 = vmatpush1.bf16.msra.mxu0 %v783_v21  ;;  %v798_v58 = vpop.permute.xlu1 %797 }
 0x155   :  { %v796_v15 = vpop.permute.xlu0 %795  ;;  %v786_v19 = vpack.c.bf16 %v778_v48, %v774_v54  ;;  %v785_v28 = vpack.c.bf16 %v777_v8, %v773_v53  ;;  %v10937_v44 = vrot.slane %v62_v14, %v10315_v37  ;;  %v10944_v6 = vrot.slane %v62_v14, %v10293_v26 }
 0x156   :  { %v10957_v39 = vrot.slane %v62_v14, %v10305_v33  ;;  %v10960_v32 = vrot.slane %v62_v14, %v10317_v38 }
 0x157   :  { %1174 = vmatprep.subr.bf16.mxu1 %v786_v19  ;;  %1071 = vmatmul.mubr.bf16.vlgmr.msra.gmra.mrb[0].mxu0 %v9940_v55  ;;  %15882 = vst [vmem:[#allocation22_spill] sm:$0xff] %v10937_v44  ;;  %15883 = vst [vmem:[#allocation23_spill] sm:$0xff] %v10944_v6 }
 0x158   :  { %1175 = vmatpush1.bf16.msra.mxu1 %v785_v28  ;;  %v806_v57 = vpop.permute.xlu1 %805  ;;  %1080 = vmatprep.mubr.bf16.mxu0 %v9943_v60  ;;  %15884 = vst [vmem:[#allocation24_spill] sm:$0xff] %v10957_v39  ;;  %15885 = vst [vmem:[#allocation25_spill] sm:$0xff] %v10960_v32 }
 0x159   :  { %v804_v50 = vpop.permute.xlu0 %803  ;;  %v837_v62 = vsel %vm827_vm7, %v798_v58, %v806_v57 }
 0x15a   :  { %v836_v0 = vsel %vm827_vm7, %v796_v15, %v804_v50  ;;  %v869_v37 = vmul.f32 %v10937_v44, %v837_v62 }
 0x15b   :  { %1177 = vmatmul.mubr.bf16.vlgmr.msra.gmra.mrb[0].mxu1 %v9940_v55  ;;  %v865_v7 = vmul.f32 %v10937_v44, %v836_v0 }
 0x15c   :  { %v814_v47 = vpop.permute.xlu1 %813  ;;  %1186 = vmatprep.mubr.bf16.mxu1 %v9943_v60 }
 0x15d   :  { %v833_v1 = vsel %vm827_vm7, %v806_v57, %v814_v47  ;;  %v812_v10 = vpop.permute.xlu0 %811  ;;  %v881_v21 = vpack.c.bf16 %v869_v37, %v865_v7 }
 0x15e   :  { %v870_v5 = vmul.f32 %v10944_v6, %v833_v1  ;;  %v832_v26 = vsel %vm827_vm7, %v804_v50, %v812_v10 }
 0x15f   :  { %v866_v43 = vmul.f32 %v10944_v6, %v832_v26  ;;  %1081 = vmatmul.mubr.bf16.gmra.mrb[4].mxu0 %v9945_v18 }
 0x160   :  { %v822_v16 = vpop.permute.xlu1 %821  ;;  %1123 = vmatprep.mubr.bf16.mxu0 %v15694_v11 }
 0x161   :  { %v829_v8 = vsel %vm827_vm7, %v814_v47, %v822_v16  ;;  %v841_v48 = vsel %vm827_vm7, %v822_v16, %v798_v58  ;;  %v820_v13 = vpop.permute.xlu0 %819  ;;  %v882_v49 = vpack.c.bf16 %v870_v5, %v866_v43 }
 0x162   :  { %v871_v33 = vmul.f32 %v10957_v39, %v829_v8  ;;  %v872_v38 = vmul.f32 %v10960_v32, %v841_v48  ;;  %v828_v53 = vsel %vm827_vm7, %v812_v10, %v820_v13  ;;  %v840_v54 = vsel %vm827_vm7, %v820_v13, %v796_v15 }
 0x163   :  { %v867_v55 = vmul.f32 %v10957_v39, %v828_v53  ;;  %v868_v60 = vmul.f32 %v10960_v32, %v840_v54  ;;  %1091 = vmatprep.subr.bf16.mxu0 %v882_v49  ;;  %1187 = vmatmul.mubr.bf16.gmra.mrb[4].mxu1 %v9945_v18 }
 0x164   :  { %1092 = vmatpush1.bf16.msra.mxu0 %v881_v21  ;;  %v802_v58 = vpop.permute.xlu1 %801  ;;  %1229 = vmatprep.mubr.bf16.mxu1 %v15694_v11 }
 0x165   :  { %v883_v19 = vpack.c.bf16 %v871_v33, %v867_v55  ;;  %v800_v28 = vpop.permute.xlu0 %799  ;;  %v884_v14 = vpack.c.bf16 %v872_v38, %v868_v60  ;;  %v9946_v55 = vld [vmem:[%s15687_s2 + $0x8] ss:$12 sps:$4 sm:$0xff]  }
 0x167   :  { %1197 = vmatprep.subr.bf16.mxu1 %v884_v14 }
 0x168   :  { %1198 = vmatpush1.bf16.msra.mxu1 %v883_v19  ;;  %v810_v57 = vpop.permute.xlu1 %809  ;;  %v9947_v19 = vld [vmem:[%s15687_s2 + $0x20] ss:$12 sps:$4 sm:$0xff]  }
 0x169   :  { %v808_v50 = vpop.permute.xlu0 %807  ;;  %v839_v15 = vsel %vm827_vm7, %v802_v58, %v810_v57 }
 0x16a   :  { %v838_v62 = vsel %vm827_vm7, %v800_v28, %v808_v50  ;;  %v877_v18 = vmul.f32 %v10937_v44, %v839_v15 }
 0x16b   :  { %v873_v47 = vmul.f32 %v10937_v44, %v838_v62 }
 0x16c   :  { %v818_v0 = vpop.permute.xlu1 %817 }
 0x16d   :  { %v835_v37 = vsel %vm827_vm7, %v810_v57, %v818_v0  ;;  %v816_v7 = vpop.permute.xlu0 %815  ;;  %v885_v43 = vpack.c.bf16 %v877_v18, %v873_v47 }
 0x16e   :  { %v878_v1 = vmul.f32 %v10944_v6, %v835_v37  ;;  %v834_v10 = vsel %vm827_vm7, %v808_v50, %v816_v7 }
 0x16f   :  { %v874_v5 = vmul.f32 %v10944_v6, %v834_v10 }
 0x170   :  { %v826_v26 = vpop.permute.xlu1 %825 }
 0x171   :  { %v831_v16 = vsel %vm827_vm7, %v818_v0, %v826_v26  ;;  %v843_v21 = vsel %vm827_vm7, %v826_v26, %v802_v58  ;;  %v824_v8 = vpop.permute.xlu0 %823  ;;  %v886_v48 = vpack.c.bf16 %v878_v1, %v874_v5 }
 0x172   :  { %v879_v13 = vmul.f32 %v10957_v39, %v831_v16  ;;  %v880_v49 = vmul.f32 %v10960_v32, %v843_v21  ;;  %v830_v33 = vsel %vm827_vm7, %v816_v7, %v824_v8  ;;  %v842_v38 = vsel %vm827_vm7, %v824_v8, %v800_v28 }
 0x173   :  { %v875_v53 = vmul.f32 %v10957_v39, %v830_v33  ;;  %v876_v54 = vmul.f32 %v10960_v32, %v842_v38  ;;  %1093 = vmatprep.subr.bf16.mxu0 %v886_v48 }
 0x174   :  { %1094 = vmatpush1.bf16.msra.mxu0 %v885_v43 }
 0x175   :  { %v887_v60 = vpack.c.bf16 %v879_v13, %v875_v53  ;;  %v888_v58 = vpack.c.bf16 %v880_v49, %v876_v54 }
 0x177   :  { %9373 = vmatmul.mubr.msk.bf16.vlgmr.msra.gmra.mrb[0].mxu0 %vm1031_vm8, %v9946_v55  ;;  %1199 = vmatprep.subr.bf16.mxu1 %v888_v58 }
 0x178   :  { %1200 = vmatpush1.bf16.msra.mxu1 %v887_v60  ;;  %1133 = vmatprep.mubr.bf16.mxu0 %v15694_v11 }
 0x17b   :  { %9375 = vmatmul.mubr.msk.bf16.vlgmr.msra.gmra.mrb[0].mxu1 %vm1031_vm8, %v9946_v55 }
 0x17c   :  { %1239 = vmatprep.mubr.bf16.mxu1 %v15694_v11 }
 0x17f   :  { %9374 = vmatmul.mubr.msk.bf16.gmra.mrb[4].mxu0 %vm1031_vm8, %v9947_v19 }
 0x182   :  { %v989_v15 = vpop.permute.xlu1 %988 }
 0x183   :  { %9376 = vmatmul.mubr.msk.bf16.gmra.mrb[4].mxu1 %vm1031_vm8, %v9947_v19  ;;  %v984_v28 = vpop.permute.xlu0 %983 }
 0x24a   :  { %v1125_v14 = vpop.f32.mrb[0].mxu0 }
 0x24b   :  { %v9673_v57 = vadd.f32 %v1125_v14, %v984_v28  ;;  %v1127_v50 = vpop.f32.mrb[1].mxu0 }
 0x24c   :  { %v1129_v62 = vpop.f32.mrb[2].mxu0  ;;  %v9674_v55 = vadd.f32 %v1127_v50, %v984_v28 }
 0x24d   :  { %v11013_v0 = vmax.f32 %v9673_v57, 0.0  ;;  %v9675_v18 = vadd.f32 %v1129_v62, %v989_v15  ;;  %v1131_v47 = vpop.f32.mrb[3].mxu0 }
 0x24e   :  { %v1231_v37 = vpop.f32.mrb[0].mxu1  ;;  %v9676_v60 = vadd.f32 %v1131_v47, %v989_v15  ;;  %v11071_v58 = vmax.f32 %v9674_v55, 0.0 }
 0x24f   :  { %15886 = vst [vmem:[#allocation26_spill] sm:$0xff] %v11013_v0  ;;  %v11015_v7 = vmax.f32 %v9675_v18, 0.0  ;;  %v9681_v1 = vadd.f32 %v1231_v37, %v984_v28  ;;  %v1233_v10 = vpop.f32.mrb[1].mxu1  ;;  %1266 = vrot.lane.b32.xlu1 %v11013_v0, %s10028_s9  ;;  %v999_v18 = vpop.permute.xlu0 %998 }
 0x250   :  { %v1235_v5 = vpop.f32.mrb[2].mxu1  ;;  %15890 = vst [vmem:[#allocation30_spill] sm:$0xff] %v11071_v58  ;;  %v9682_v19 = vadd.f32 %v1233_v10, %v984_v28  ;;  %v11075_v14 = vmax.f32 %v9676_v60, 0.0  ;;  %v994_v28 = vpop.permute.xlu1 %993 }
 0x251   :  { %15887 = vst [vmem:[#allocation27_spill] sm:$0xff] %v11015_v7  ;;  %v11019_v26 = vmax.f32 %v9681_v1, 0.0  ;;  %v9683_v43 = vadd.f32 %v1235_v5, %v989_v15  ;;  %v1237_v16 = vpop.f32.mrb[3].mxu1  ;;  %1268 = vrot.lane.b32.xlu0 %v11015_v7, %s10028_s9 }
 0x252   :  { %v1135_v21 = vpop.f32.mrb[4].mxu0  ;;  %15891 = vst [vmem:[#allocation31_spill] sm:$0xff] %v11075_v14  ;;  %v9684_v57 = vadd.f32 %v1237_v16, %v989_v15  ;;  %v11079_v50 = vmax.f32 %v9682_v19, 0.0 }
 0x253   :  { %15888 = vst [vmem:[#allocation28_spill] sm:$0xff] %v11019_v26  ;;  %v11023_v8 = vmax.f32 %v9683_v43, 0.0  ;;  %v11025_v48 = vpop.f32.mrb[5].mxu0  ;;  %1282 = vrot.lane.b32.xlu1 %v11019_v26, %s10028_s9  ;;  %v9677_v15 = vadd.f32 %v1135_v21, %v994_v28 }
 0x254   :  { %v1139_v13 = vpop.f32.mrb[6].mxu0  ;;  %15892 = vst [vmem:[#allocation32_spill] sm:$0xff] %v11079_v50  ;;  %v11083_v62 = vmax.f32 %v9684_v57, 0.0 }
 0x255   :  { %15889 = vst [vmem:[#allocation29_spill] sm:$0xff] %v11023_v8  ;;  %v11029_v49 = vpop.f32.mrb[7].mxu0  ;;  %1284 = vrot.lane.b32.xlu0 %v11023_v8, %s10028_s9  ;;  %v9679_v47 = vadd.f32 %v1139_v13, %v999_v18  ;;  %v11119_v37 = vmax.f32 %v9677_v15, 0.0 }
 0x256   :  { %v1241_v33 = vpop.f32.mrb[4].mxu1  ;;  %15893 = vst [vmem:[#allocation33_spill] sm:$0xff] %v11083_v62  ;;  %v9680_v55 = vadd.f32 %v11029_v49, %v999_v18 }
 0x257   :  { %v11033_v38 = vpop.f32.mrb[5].mxu1  ;;  %1346 = vrot.lane.b32.xlu1 %v11013_v0, %s10029_s17  ;;  %15894 = vst [vmem:[#allocation34_spill] sm:$0xff] %v11119_v37  ;;  %v9685_v1 = vadd.f32 %v1241_v33, %v994_v28  ;;  %v11123_v10 = vmax.f32 %v9679_v47, 0.0  ;;  %v9678_v33 = vadd.f32 %v11025_v48, %v994_v28 }
 0x258   :  { %v1245_v53 = vpop.f32.mrb[6].mxu1  ;;  %v9686_v57 = vadd.f32 %v11033_v38, %v994_v28  ;;  %v11182_v48 = vmax.f32 %v9680_v55, 0.0 }
 0x259   :  { %v11037_v54 = vpop.f32.mrb[7].mxu1  ;;  %1348 = vrot.lane.b32.xlu0 %v11015_v7, %s10029_s17  ;;  %15895 = vst [vmem:[#allocation35_spill] sm:$0xff] %v11123_v10  ;;  %v9687_v5 = vadd.f32 %v1245_v53, %v999_v18  ;;  %v11127_v43 = vmax.f32 %v9685_v1, 0.0  ;;  %v11175_v19 = vmax.f32 %v9678_v33, 0.0 }
 0x25a   :  { %v9688_v47 = vadd.f32 %v11037_v54, %v999_v18  ;;  %v11189_v49 = vmax.f32 %v9686_v57, 0.0 }
 0x25b   :  { %1362 = vrot.lane.b32.xlu1 %v11019_v26, %s10029_s17  ;;  %v11131_v16 = vmax.f32 %v9687_v5, 0.0 }
 0x25c   :  { %v11195_v28 = vmax.f32 %v9688_v47, 0.0 }
 0x25d   :  { %1364 = vrot.lane.b32.xlu0 %v11023_v8, %s10029_s17 }
 0x25f   :  { %1426 = vrot.lane.b32.xlu1 %v11013_v0, %s10030_s0 }
 0x261   :  { %1428 = vrot.lane.b32.xlu0 %v11015_v7, %s10030_s0 }
 0x263   :  { %1442 = vrot.lane.b32.xlu1 %v11019_v26, %s10030_s0 }
 0x265   :  { %1444 = vrot.lane.b32.xlu0 %v11023_v8, %s10030_s0 }
 0x267   :  { %1506 = vrot.lane.b32.xlu1 %v11013_v0, %s10031_s18 }
 0x269   :  { %1508 = vrot.lane.b32.xlu0 %v11015_v7, %s10031_s18 }
 0x26b   :  { %1522 = vrot.lane.b32.xlu1 %v11019_v26, %s10031_s18 }
 0x26d   :  { %1524 = vrot.lane.b32.xlu0 %v11023_v8, %s10031_s18 }
 0x26f   :  { %1602 = vrot.lane.b32.xlu1 %v11013_v0, %s10032_s1 }
 0x271   :  { %1604 = vrot.lane.b32.xlu0 %v11015_v7, %s10032_s1 }
 0x273   :  { %1618 = vrot.lane.b32.xlu1 %v11019_v26, %s10032_s1 }
 0x275   :  { %1620 = vrot.lane.b32.xlu0 %v11023_v8, %s10032_s1 }
 0x277   :  { %1682 = vrot.lane.b32.xlu1 %v11013_v0, %s10033_s21 }
 0x279   :  { %1684 = vrot.lane.b32.xlu0 %v11015_v7, %s10033_s21 }
 0x27b   :  { %1274 = vrot.lane.b32.xlu1 %v11071_v58, %s10028_s9 }
 0x27d   :  { %1276 = vrot.lane.b32.xlu0 %v11075_v14, %s10028_s9 }
 0x27f   :  { %1290 = vrot.lane.b32.xlu1 %v11079_v50, %s10028_s9 }
 0x281   :  { %1292 = vrot.lane.b32.xlu0 %v11083_v62, %s10028_s9 }
 0x283   :  { %1354 = vrot.lane.b32.xlu1 %v11071_v58, %s10029_s17 }
 0x285   :  { %1356 = vrot.lane.b32.xlu0 %v11075_v14, %s10029_s17 }
 0x287   :  { %1370 = vrot.lane.b32.xlu1 %v11079_v50, %s10029_s17 }
 0x289   :  { %1372 = vrot.lane.b32.xlu0 %v11083_v62, %s10029_s17 }
 0x28b   :  { %1434 = vrot.lane.b32.xlu1 %v11071_v58, %s10030_s0 }
 0x28d   :  { %1436 = vrot.lane.b32.xlu0 %v11075_v14, %s10030_s0 }
 0x28f   :  { %1450 = vrot.lane.b32.xlu1 %v11079_v50, %s10030_s0 }
 0x291   :  { %1452 = vrot.lane.b32.xlu0 %v11083_v62, %s10030_s0 }
 0x293   :  { %1514 = vrot.lane.b32.xlu1 %v11071_v58, %s10031_s18 }
 0x295   :  { %1516 = vrot.lane.b32.xlu0 %v11075_v14, %s10031_s18 }
 0x297   :  { %1530 = vrot.lane.b32.xlu1 %v11079_v50, %s10031_s18 }
 0x299   :  { %1532 = vrot.lane.b32.xlu0 %v11083_v62, %s10031_s18 }
 0x29b   :  { %1610 = vrot.lane.b32.xlu1 %v11071_v58, %s10032_s1 }
 0x29d   :  { %1612 = vrot.lane.b32.xlu0 %v11075_v14, %s10032_s1 }
 0x29f   :  { %1626 = vrot.lane.b32.xlu1 %v11079_v50, %s10032_s1 }
 0x2a1   :  { %1628 = vrot.lane.b32.xlu0 %v11083_v62, %s10032_s1 }
 0x2a3   :  { %1270 = vrot.lane.b32.xlu1 %v11119_v37, %s10028_s9 }
 0x2a5   :  { %1272 = vrot.lane.b32.xlu0 %v11123_v10, %s10028_s9 }
 0x2a7   :  { %1286 = vrot.lane.b32.xlu1 %v11127_v43, %s10028_s9 }
 0x2a9   :  { %1288 = vrot.lane.b32.xlu0 %v11131_v16, %s10028_s9 }
 0x2ab   :  { %1350 = vrot.lane.b32.xlu1 %v11119_v37, %s10029_s17 }
 0x2ad   :  { %1352 = vrot.lane.b32.xlu0 %v11123_v10, %s10029_s17 }
 0x2af   :  { %1366 = vrot.lane.b32.xlu1 %v11127_v43, %s10029_s17 }
 0x2b1   :  { %1368 = vrot.lane.b32.xlu0 %v11131_v16, %s10029_s17 }
 0x2b3   :  { %1430 = vrot.lane.b32.xlu1 %v11119_v37, %s10030_s0 }
 0x2b5   :  { %1432 = vrot.lane.b32.xlu0 %v11123_v10, %s10030_s0 }
 0x2b7   :  { %1446 = vrot.lane.b32.xlu1 %v11127_v43, %s10030_s0 }
 0x2b9   :  { %1448 = vrot.lane.b32.xlu0 %v11131_v16, %s10030_s0 }
 0x2bb   :  { %1510 = vrot.lane.b32.xlu1 %v11119_v37, %s10031_s18 }
 0x2bd   :  { %1512 = vrot.lane.b32.xlu0 %v11123_v10, %s10031_s18 }
 0x2bf   :  { %1526 = vrot.lane.b32.xlu1 %v11127_v43, %s10031_s18 }
 0x2c1   :  { %1528 = vrot.lane.b32.xlu0 %v11131_v16, %s10031_s18  ;;  %v11161_v21 = vpop.permute.xlu1 %1266 }
 0x2c3   :  { %v11163_v13 = vpop.permute.xlu0 %1268  ;;  %1606 = vrot.lane.b32.xlu1 %v11119_v37, %s10032_s1 }
 0x2c5   :  { %1608 = vrot.lane.b32.xlu0 %v11123_v10, %s10032_s1  ;;  %v1283_v53 = vpop.permute.xlu1 %1282 }
 0x2c7   :  { %v11171_v60 = vpop.permute.xlu0 %1284  ;;  %1622 = vrot.lane.b32.xlu1 %v11127_v43, %s10032_s1 }
 0x2c9   :  { %1624 = vrot.lane.b32.xlu0 %v11131_v16, %s10032_s1  ;;  %v11180_v15 = vpop.permute.xlu1 %1346 }
 0x2cb   :  { %v11185_v1 = vpop.permute.xlu0 %1348  ;;  %1278 = vrot.lane.b32.xlu1 %v11175_v19, %s10028_s9 }
 0x2cd   :  { %1280 = vrot.lane.b32.xlu0 %v11182_v48, %s10028_s9  ;;  %v11193_v38 = vpop.permute.xlu1 %1362 }
 0x2cf   :  { %v11197_v5 = vpop.permute.xlu0 %1364  ;;  %1294 = vrot.lane.b32.xlu1 %v11189_v49, %s10028_s9 }
 0x2d1   :  { %1296 = vrot.lane.b32.xlu0 %v11195_v28, %s10028_s9  ;;  %v11203_v54 = vpop.permute.xlu1 %1426 }
 0x2d3   :  { %v11205_v18 = vpop.permute.xlu0 %1428  ;;  %1358 = vrot.lane.b32.xlu1 %v11175_v19, %s10029_s17 }
 0x2d5   :  { %1360 = vrot.lane.b32.xlu0 %v11182_v48, %s10029_s17  ;;  %v11211_v33 = vpop.permute.xlu1 %1442 }
 0x2d7   :  { %v11213_v55 = vpop.permute.xlu0 %1444  ;;  %1374 = vrot.lane.b32.xlu1 %v11189_v49, %s10029_s17 }
 0x2d9   :  { %1376 = vrot.lane.b32.xlu0 %v11195_v28, %s10029_s17  ;;  %v11219_v57 = vpop.permute.xlu1 %1506 }
 0x2db   :  { %v11221_v47 = vpop.permute.xlu0 %1508  ;;  %1438 = vrot.lane.b32.xlu1 %v11175_v19, %s10030_s0 }
 0x2dd   :  { %1440 = vrot.lane.b32.xlu0 %v11182_v48, %s10030_s0  ;;  %v11227_v11 = vpop.permute.xlu1 %1522 }
 0x2df   :  { %v11229_v32 = vpop.permute.xlu0 %1524  ;;  %1454 = vrot.lane.b32.xlu1 %v11189_v49, %s10030_s0 }
 0x2e0   :  { %15896 = vst [vmem:[#allocation36_spill] sm:$0xff] %v11229_v32 }
 0x2e1   :  { %1456 = vrot.lane.b32.xlu0 %v11195_v28, %s10030_s0  ;;  %v11235_v39 = vpop.permute.xlu1 %1602 }
 0x2e2   :  { %15897 = vst [vmem:[#allocation37_spill] sm:$0xff] %v11235_v39 }
 0x2e3   :  { %v11237_v6 = vpop.permute.xlu0 %1604  ;;  %1518 = vrot.lane.b32.xlu1 %v11175_v19, %s10031_s18 }
 0x2e4   :  { %15898 = vst [vmem:[#allocation38_spill] sm:$0xff] %v11237_v6 }
 0x2e5   :  { %1520 = vrot.lane.b32.xlu0 %v11182_v48, %s10031_s18  ;;  %v11243_v44 = vpop.permute.xlu1 %1618 }
 0x2e6   :  { %15899 = vst [vmem:[#allocation39_spill] sm:$0xff] %v11243_v44 }
 0x2e7   :  { %v11245_v3 = vpop.permute.xlu0 %1620  ;;  %1534 = vrot.lane.b32.xlu1 %v11189_v49, %s10031_s18 }
 0x2e8   :  { %15900 = vst [vmem:[#allocation40_spill] sm:$0xff] %v11245_v3 }
 0x2e9   :  { %1536 = vrot.lane.b32.xlu0 %v11195_v28, %s10031_s18  ;;  %v11251_v22 = vpop.permute.xlu1 %1682 }
 0x2ea   :  { %15901 = vst [vmem:[#allocation41_spill] sm:$0xff] %v11251_v22 }
 0x2eb   :  { %v11253_v30 = vpop.permute.xlu0 %1684  ;;  %1614 = vrot.lane.b32.xlu1 %v11175_v19, %s10032_s1 }
 0x2ec   :  { %15902 = vst [vmem:[#allocation42_spill] sm:$0xff] %v11253_v30 }
 0x2ed   :  { %1616 = vrot.lane.b32.xlu0 %v11182_v48, %s10032_s1  ;;  %v1275_v17 = vpop.permute.xlu1 %1274 }
 0x2ee   :  { %v1306_v41 = vsel %vm97_vm0, %v11161_v21, %v1275_v17 }
 0x2ef   :  { %v1277_v40 = vpop.permute.xlu0 %1276  ;;  %1630 = vrot.lane.b32.xlu1 %v11189_v49, %s10032_s1  ;;  %v1315_v36 = vmul.f32 %v1306_v41, %v10301_v29  ;;  %v1302_v41 = vsel %vm97_vm0, %v1275_v17, %v1283_v53 }
 0x2f0   :  { %v1307_v35 = vsel %vm97_vm0, %v11163_v13, %v1277_v40  ;;  %v1303_v22 = vsel %vm97_vm0, %v1277_v40, %v11171_v60 }
 0x2f1   :  { %v1319_v30 = vmul.f32 %v1307_v35, %v10301_v29  ;;  %1632 = vrot.lane.b32.xlu0 %v11195_v28, %s10032_s1  ;;  %v1291_v9 = vpop.permute.xlu1 %1290  ;;  %v1320_v35 = vmul.f32 %v1303_v22, %v10320_v42 }
 0x2f2   :  { %v1298_v12 = vsel %vm97_vm0, %v1283_v53, %v1291_v9  ;;  %v1310_v2 = vsel %vm97_vm0, %v1291_v9, %v11161_v21 }
 0x2f3   :  { %v1293_v4 = vpop.permute.xlu0 %1292  ;;  %1690 = vrot.lane.b32.xlu1 %v11071_v58, %s10033_s21  ;;  %v1331_v40 = vpack.c.bf16 %v1319_v30, %v1315_v36  ;;  %v1314_v39 = vmul.f32 %v1310_v2, %v10331_v45  ;;  %v1317_v21 = vmul.f32 %v1298_v12, %v10334_v46  ;;  %v1316_v2 = vmul.f32 %v1302_v41, %v10320_v42 }
 0x2f4   :  { %v1299_v44 = vsel %vm97_vm0, %v11171_v60, %v1293_v4  ;;  %v1311_v9 = vsel %vm97_vm0, %v1293_v4, %v11163_v13 }
 0x2f5   :  { %v1318_v17 = vmul.f32 %v1311_v9, %v10331_v45  ;;  %v1321_v53 = vmul.f32 %v1299_v44, %v10334_v46  ;;  %1692 = vrot.lane.b32.xlu0 %v11075_v14, %s10033_s21  ;;  %2064 = vmatprep.subr.bf16.mxu0 %v1331_v40  ;;  %v11296_v36 = vpop.permute.xlu1 %1354  ;;  %v1332_v12 = vpack.c.bf16 %v1320_v35, %v1316_v2 }
 0x2f7   :  { %v1330_v30 = vpack.c.bf16 %v1318_v17, %v1314_v39  ;;  %v11299_v22 = vpop.permute.xlu0 %1356  ;;  %1698 = vrot.lane.b32.xlu1 %v11019_v26, %s10033_s21  ;;  %v1333_v4 = vpack.c.bf16 %v1321_v53, %v1317_v21 }
 0x2f9   :  { %1700 = vrot.lane.b32.xlu0 %v11023_v8, %s10033_s21  ;;  %2065 = vmatpush1.bf16.msra.mxu0 %v1330_v30  ;;  %v11305_v44 = vpop.permute.xlu1 %1370 }
 0x2fa   :  { %2170 = vmatprep.subr.bf16.mxu1 %v1333_v4 }
 0x2fb   :  { %2171 = vmatpush1.bf16.msra.mxu1 %v1332_v12  ;;  %v11307_v13 = vpop.permute.xlu0 %1372  ;;  %1706 = vrot.lane.b32.xlu1 %v11079_v50, %s10033_s21 }
 0x2fd   :  { %1708 = vrot.lane.b32.xlu0 %v11083_v62, %s10033_s21  ;;  %v11313_v39 = vpop.permute.xlu1 %1434 }
 0x2ff   :  { %v11315_v60 = vpop.permute.xlu0 %1436  ;;  %1686 = vrot.lane.b32.xlu1 %v11119_v37, %s10033_s21 }
 0x301   :  { %1688 = vrot.lane.b32.xlu0 %v11123_v10, %s10033_s21  ;;  %v11321_v41 = vpop.permute.xlu1 %1450 }
 0x303   :  { %v11323_v40 = vpop.permute.xlu0 %1452  ;;  %1694 = vrot.lane.b32.xlu1 %v11175_v19, %s10033_s21 }
 0x305   :  { %1696 = vrot.lane.b32.xlu0 %v11182_v48, %s10033_s21  ;;  %v11329_v35 = vpop.permute.xlu1 %1514 }
 0x307   :  { %v11331_v9 = vpop.permute.xlu0 %1516  ;;  %1702 = vrot.lane.b32.xlu1 %v11127_v43, %s10033_s21 }
 0x309   :  { %1704 = vrot.lane.b32.xlu0 %v11131_v16, %s10033_s21  ;;  %v11337_v21 = vpop.permute.xlu1 %1530 }
 0x30a   :  { %15903 = vst [vmem:[#allocation43_spill] sm:$0xff] %v11337_v21 }
 0x30b   :  { %v11339_v17 = vpop.permute.xlu0 %1532  ;;  %1710 = vrot.lane.b32.xlu1 %v11189_v49, %s10033_s21 }
 0x30c   :  { %15904 = vst [vmem:[#allocation44_spill] sm:$0xff] %v11339_v17 }
 0x30d   :  { %1712 = vrot.lane.b32.xlu0 %v11195_v28, %s10033_s21  ;;  %v11345_v53 = vpop.permute.xlu1 %1610 }
 0x30e   :  { %15905 = vst [vmem:[#allocation45_spill] sm:$0xff] %v11345_v53 }
 0x30f   :  { %v11347_v2 = vpop.permute.xlu0 %1612  ;;  %1762 = vrot.lane.b32.xlu1 %v11013_v0, %s10034_s22 }
 0x310   :  { %15906 = vst [vmem:[#allocation46_spill] sm:$0xff] %v11347_v2 }
 0x311   :  { %1764 = vrot.lane.b32.xlu0 %v11015_v7, %s10034_s22  ;;  %v11353_v30 = vpop.permute.xlu1 %1626 }
 0x312   :  { %15907 = vst [vmem:[#allocation47_spill] sm:$0xff] %v11353_v30 }
 0x313   :  { %v11355_v4 = vpop.permute.xlu0 %1628  ;;  %1770 = vrot.lane.b32.xlu1 %v11071_v58, %s10034_s22 }
 0x314   :  { %15908 = vst [vmem:[#allocation48_spill] sm:$0xff] %v11355_v4 }
 0x315   :  { %1772 = vrot.lane.b32.xlu0 %v11075_v14, %s10034_s22  ;;  %v11361_v12 = vpop.permute.xlu1 %1270 }
 0x317   :  { %v11363_v53 = vpop.permute.xlu0 %1272  ;;  %1778 = vrot.lane.b32.xlu1 %v11019_v26, %s10034_s22 }
 0x319   :  { %1780 = vrot.lane.b32.xlu0 %v11023_v8, %s10034_s22  ;;  %v11369_v6 = vpop.permute.xlu1 %1286 }
 0x31b   :  { %v11371_v30 = vpop.permute.xlu0 %1288  ;;  %1786 = vrot.lane.b32.xlu1 %v11079_v50, %s10034_s22 }
 0x31d   :  { %1788 = vrot.lane.b32.xlu0 %v11083_v62, %s10034_s22  ;;  %v11377_v4 = vpop.permute.xlu1 %1350 }
 0x31f   :  { %v11379_v2 = vpop.permute.xlu0 %1352  ;;  %1766 = vrot.lane.b32.xlu1 %v11119_v37, %s10034_s22 }
 0x321   :  { %1768 = vrot.lane.b32.xlu0 %v11123_v10, %s10034_s22  ;;  %v11385_v3 = vpop.permute.xlu1 %1366 }
 0x322   :  { %15909 = vst [vmem:[#allocation49_spill] sm:$0xff] %v11385_v3 }
 0x323   :  { %v11387_v31 = vpop.permute.xlu0 %1368  ;;  %1774 = vrot.lane.b32.xlu1 %v11175_v19, %s10034_s22 }
 0x325   :  { %1776 = vrot.lane.b32.xlu0 %v11182_v48, %s10034_s22  ;;  %v11393_v34 = vpop.permute.xlu1 %1430 }
 0x326   :  { %15910 = vst [vmem:[#allocation50_spill] sm:$0xff] %v11393_v34 }
 0x327   :  { %v11395_v17 = vpop.permute.xlu0 %1432  ;;  %1782 = vrot.lane.b32.xlu1 %v11127_v43, %s10034_s22 }
 0x328   :  { %15911 = vst [vmem:[#allocation51_spill] sm:$0xff] %v11395_v17  ;;  %v9950_v17 = vld [vmem:[%s15687_s2 + $0x34] ss:$12 sps:$4 sm:$0xff]  }
 0x329   :  { %1784 = vrot.lane.b32.xlu0 %v11131_v16, %s10034_s22  ;;  %v11401_v21 = vpop.permute.xlu1 %1446  ;;  %2096 = vmatprep.mubr.bf16.mxu0 %v9950_v17 }
 0x32a   :  { %15912 = vst [vmem:[#allocation52_spill] sm:$0xff] %v11401_v21  ;;  %2202 = vmatprep.mubr.bf16.mxu1 %v9950_v17  ;;  %v1383_v17 = vsel %vm199_vm1, %v11299_v22, %v11197_v5 }
 0x32b   :  { %v11403_v32 = vpop.permute.xlu0 %1448  ;;  %1790 = vrot.lane.b32.xlu1 %v11189_v49, %s10034_s22 }
 0x32c   :  { %15913 = vst [vmem:[#allocation53_spill] sm:$0xff] %v11403_v32 }
 0x32d   :  { %1792 = vrot.lane.b32.xlu0 %v11195_v28, %s10034_s22  ;;  %v11409_v3 = vpop.permute.xlu1 %1510 }
 0x32f   :  { %v11411_v34 = vpop.permute.xlu0 %1512  ;;  %1842 = vrot.lane.b32.xlu1 %v11013_v0, %s10035_s25 }
 0x330   :  { %15914 = vst [vmem:[#allocation54_spill] sm:$0xff] %v11411_v34  ;;  %v1387_v34 = vsel %vm199_vm1, %v11185_v1, %v11299_v22  ;;  %v1379_v22 = vsel %vm199_vm1, %v11197_v5, %v11307_v13  ;;  %v11470_v5 = vmul.f32 %v1383_v17, %v10415_v63 }
 0x331   :  { %1844 = vrot.lane.b32.xlu0 %v11015_v7, %s10035_s25  ;;  %v11420_v21 = vpop.permute.xlu1 %1526  ;;  %v1391_v7 = vsel %vm199_vm1, %v11307_v13, %v11185_v1  ;;  %v1382_v1 = vsel %vm199_vm1, %v11296_v36, %v11193_v38 }
 0x333   :  { %v11422_v32 = vpop.permute.xlu0 %1528  ;;  %1850 = vrot.lane.b32.xlu1 %v11071_v58, %s10035_s25 }
 0x335   :  { %1852 = vrot.lane.b32.xlu0 %v11075_v14, %s10035_s25  ;;  %v11428_v0 = vpop.permute.xlu1 %1606 }
 0x336   :  { %15915 = vst [vmem:[#allocation55_spill] sm:$0xff] %v11428_v0  ;;  %v1386_v0 = vsel %vm199_vm1, %v11180_v15, %v11296_v36  ;;  %v1378_v36 = vsel %vm199_vm1, %v11193_v38, %v11305_v44  ;;  %v11494_v38 = vmul.f32 %v1382_v1, %v10415_v63  ;;  %v1467_v1 = vsel %vm301_vm2, %v11205_v18, %v11315_v60 }
 0x337   :  { %v11442_v58 = vpop.permute.xlu0 %1608  ;;  %1858 = vrot.lane.b32.xlu1 %v11019_v26, %s10035_s25  ;;  %v1390_v26 = vsel %vm199_vm1, %v11305_v44, %v11180_v15  ;;  %v1463_v15 = vsel %vm301_vm2, %v11315_v60, %v11213_v55  ;;  %v11484_v13 = vmul.f32 %v1386_v0, %v10399_v56  ;;  %v1462_v0 = vsel %vm301_vm2, %v11313_v39, %v11211_v33 }
 0x338   :  { %15916 = vst [vmem:[#allocation56_spill] sm:$0xff] %v11442_v58  ;;  %v11459_v58 = vmul.f32 %v1387_v34, %v10399_v56  ;;  %v11477_v34 = vmul.f32 %v1391_v7, %v10425_v25  ;;  %v11497_v7 = vmul.f32 %v1390_v26, %v10425_v25  ;;  %v1466_v44 = vsel %vm301_vm2, %v11203_v54, %v11313_v39 }
 0x339   :  { %1860 = vrot.lane.b32.xlu0 %v11023_v8, %s10035_s25  ;;  %v11467_v14 = vpop.permute.xlu1 %1622  ;;  %v11515_v26 = vmul.f32 %v1463_v15, %v10515_v59  ;;  %v11529_v15 = vmul.f32 %v1466_v44, %v10500_v51  ;;  %v1471_v8 = vsel %vm301_vm2, %v11323_v40, %v11205_v18  ;;  %v1470_v18 = vsel %vm301_vm2, %v11321_v41, %v11203_v54 }
 0x33a   :  { %15917 = vst [vmem:[#allocation57_spill] sm:$0xff] %v11467_v14  ;;  %v11487_v14 = vmul.f32 %v1379_v22, %v10429_v27  ;;  %v11508_v22 = vmul.f32 %v1378_v36, %v10429_v27  ;;  %v1411_v60 = vpack.c.bf16 %v11459_v58, %v11484_v13  ;;  %v11543_v58 = vmul.f32 %v1467_v1, %v10500_v51 }
 0x33b   :  { %v11489_v17 = vpop.permute.xlu0 %1624  ;;  %1866 = vrot.lane.b32.xlu1 %v11079_v50, %s10035_s25  ;;  %v11532_v50 = vmul.f32 %v1462_v0, %v10515_v59  ;;  %v1458_v13 = vsel %vm301_vm2, %v11211_v33, %v11321_v41  ;;  %v1459_v54 = vsel %vm301_vm2, %v11213_v55, %v11323_v40  ;;  %v11570_v41 = vmul.f32 %v1471_v8, %v10524_v20 }
 0x33c   :  { %15918 = vst [vmem:[#allocation58_spill] sm:$0xff] %v11489_v17  ;;  %v1546_v55 = vsel %vm403_vm3, %v11219_v57, %v11329_v35 }
 0x33d   :  { %1868 = vrot.lane.b32.xlu0 %v11083_v62, %s10035_s25  ;;  %v1279_v17 = vpop.permute.xlu1 %1278 }
 0x33e   :  { %v1308_v36 = vsel %vm97_vm0, %v11361_v12, %v1279_v17  ;;  %v1304_v8 = vsel %vm97_vm0, %v1279_v17, %v11369_v6 }
 0x33f   :  { %v1281_v62 = vpop.permute.xlu0 %1280  ;;  %1846 = vrot.lane.b32.xlu1 %v11119_v37, %s10035_s25  ;;  %v1323_v1 = vmul.f32 %v1308_v36, %v10301_v29 }
 0x340   :  { %v1309_v0 = vsel %vm97_vm0, %v11363_v53, %v1281_v62  ;;  %v1305_v39 = vsel %vm97_vm0, %v1281_v62, %v11371_v30 }
 0x341   :  { %v1327_v33 = vmul.f32 %v1309_v0, %v10301_v29  ;;  %1848 = vrot.lane.b32.xlu0 %v11123_v10, %s10035_s25  ;;  %v1295_v37 = vpop.permute.xlu1 %1294  ;;  %v1542_v0 = vsel %vm403_vm3, %v11329_v35, %v11227_v11 }
 0x342   :  { %v1300_v36 = vsel %vm97_vm0, %v11369_v6, %v1295_v37  ;;  %v1312_v62 = vsel %vm97_vm0, %v1295_v37, %v11361_v12  ;;  %v1328_v37 = vmul.f32 %v1305_v39, %v10320_v42 }
 0x343   :  { %v1297_v40 = vpop.permute.xlu0 %1296  ;;  %1854 = vrot.lane.b32.xlu1 %v11175_v19, %s10035_s25  ;;  %v1335_v44 = vpack.c.bf16 %v1327_v33, %v1323_v1  ;;  %v1322_v12 = vmul.f32 %v1312_v62, %v10331_v45  ;;  %v1325_v10 = vmul.f32 %v1300_v36, %v10334_v46  ;;  %v11605_v1 = vmul.f32 %v1470_v18, %v10524_v20 }
 0x344   :  { %v1301_v29 = vsel %vm97_vm0, %v11371_v30, %v1297_v40  ;;  %v1313_v35 = vsel %vm97_vm0, %v1297_v40, %v11363_v53  ;;  %v11608_v30 = vmul.f32 %v1458_v13, %v10527_v23  ;;  %v11611_v33 = vmul.f32 %v1459_v54, %v10527_v23 }
 0x345   :  { %v1326_v6 = vmul.f32 %v1313_v35, %v10331_v45  ;;  %v1329_v17 = vmul.f32 %v1301_v29, %v10334_v46  ;;  %1856 = vrot.lane.b32.xlu0 %v11182_v48, %s10035_s25  ;;  %2066 = vmatprep.subr.bf16.mxu0 %v1335_v44  ;;  %v1359_v39 = vpop.permute.xlu1 %1358  ;;  %v1491_v53 = vpack.c.bf16 %v11543_v58, %v11529_v15 }
 0x346   :  { %v1324_v36 = vmul.f32 %v1304_v8, %v10320_v42  ;;  %v1388_v44 = vsel %vm199_vm1, %v11377_v4, %v1359_v39  ;;  %v1490_v13 = vpack.c.bf16 %v11570_v41, %v11605_v1  ;;  %v11624_v54 = vmul.f32 %v1546_v55, %v10594_v52 }
 0x347   :  { %v1334_v29 = vpack.c.bf16 %v1326_v6, %v1322_v12  ;;  %v1361_v62 = vpop.permute.xlu0 %1360  ;;  %1862 = vrot.lane.b32.xlu1 %v11127_v43, %s10035_s25  ;;  %v1337_v18 = vpack.c.bf16 %v1329_v17, %v1325_v10  ;;  %v11627_v40 = vmul.f32 %v1542_v0, %v10610_v61  ;;  %v1403_v6 = vmul.f32 %v1388_v44, %v10399_v56 }
 0x348   :  { %v1389_v8 = vsel %vm199_vm1, %v11379_v2, %v1361_v62  ;;  %v1336_v12 = vpack.c.bf16 %v1328_v37, %v1324_v36  ;;  %v1385_v35 = vsel %vm199_vm1, %v1361_v62, %v11387_v31  ;;  %v1493_v37 = vpack.c.bf16 %v11611_v33, %v11608_v30  ;;  %v15919_v36 = vld [vmem:[#allocation49_spill] sm:$0xff] }
 0x349   :  { %v1407_v10 = vmul.f32 %v1389_v8, %v10399_v56  ;;  %1864 = vrot.lane.b32.xlu0 %v11131_v16, %s10035_s25  ;;  %2067 = vmatpush1.bf16.msra.mxu0 %v1334_v29  ;;  %v1375_v55 = vpop.permute.xlu1 %1374  ;;  %v1547_v17 = vsel %vm403_vm3, %v11221_v47, %v11331_v9  ;;  %v1384_v29 = vsel %vm199_vm1, %v1359_v39, %v15919_v36 }
 0x34a   :  { %2172 = vmatprep.subr.bf16.mxu1 %v1337_v18  ;;  %v1392_v0 = vsel %vm199_vm1, %v1375_v55, %v11377_v4  ;;  %2068 = vmatprep.subr.bf16.mxu0 %v1411_v60  ;;  %v1380_v44 = vsel %vm199_vm1, %v15919_v36, %v1375_v55  ;;  %v1408_v4 = vmul.f32 %v1385_v35, %v10415_v63  ;;  %v9385_v18 = vld [vmem:[%s15688_s3 + $0x20] sm:$0xff]  ;;  %v15923_v55 = vld [vmem:[#allocation43_spill] sm:$0xff] }
 0x34b   :  { %2173 = vmatpush1.bf16.msra.mxu1 %v1336_v12  ;;  %v1377_v62 = vpop.permute.xlu0 %1376  ;;  %1870 = vrot.lane.b32.xlu1 %v11189_v49, %s10035_s25  ;;  %v15920_v39 = vpack.c.bf16 %v11487_v14, %v11508_v22  ;;  %v1415_v33 = vpack.c.bf16 %v1407_v10, %v1403_v6  ;;  %v1402_v8 = vmul.f32 %v1392_v0, %v10425_v25 }
 0x34c   :  { %v1381_v60 = vsel %vm199_vm1, %v11387_v31, %v1377_v62  ;;  %v1393_v30 = vsel %vm199_vm1, %v1377_v62, %v11379_v2  ;;  %v15921_v31 = vpack.c.bf16 %v11477_v34, %v11497_v7  ;;  %v15922_v2 = vld [vmem:[#allocation36_spill] sm:$0xff]  ;;  %v11682_v10 = vmul.f32 %v1547_v17, %v10594_v52  ;;  %v9386_v34 = vld [vmem:[%s15688_s3 + $0x28] sm:$0xff]  ;;  %v15924_v62 = vld [vmem:[#allocation50_spill] sm:$0xff] }
 0x34d   :  { %2174 = vmatprep.subr.bf16.mxu1 %v15920_v39  ;;  %v1406_v12 = vmul.f32 %v1393_v30, %v10425_v25  ;;  %v1409_v35 = vmul.f32 %v1381_v60, %v10429_v27  ;;  %1872 = vrot.lane.b32.xlu0 %v11195_v28, %s10035_s25  ;;  %v1439_v14 = vpop.permute.xlu1 %1438  ;;  %v1543_v22 = vsel %vm403_vm3, %v11331_v9, %v15922_v2  ;;  %v15927_v30 = vld [vmem:[#allocation51_spill] sm:$0xff] }
 0x34e   :  { %2069 = vmatpush1.bf16.msra.mxu0 %v15921_v31  ;;  %v1538_v6 = vsel %vm403_vm3, %v11227_v11, %v15923_v55  ;;  %v1405_v0 = vmul.f32 %v1380_v44, %v10429_v27  ;;  %v1404_v7 = vmul.f32 %v1384_v29, %v10415_v63  ;;  %v1468_v9 = vsel %vm301_vm2, %v15924_v62, %v1439_v14  ;;  %v15926_v44 = vld [vmem:[#allocation53_spill] sm:$0xff] }
 0x34f   :  { %2070 = vmatprep.subr.bf16.mxu0 %v1415_v33  ;;  %v1414_v36 = vpack.c.bf16 %v1406_v12, %v1402_v8  ;;  %v15925_v17 = vpack.c.bf16 %v11470_v5, %v11494_v38  ;;  %v1441_v60 = vpop.permute.xlu0 %1440  ;;  %2010 = vperm.xlu1 %9939, %v9385_v18   ;;  %v1550_v11 = vsel %vm403_vm3, %v15923_v55, %v11219_v57  ;;  %v9387_v5 = vld [vmem:[%s15688_s3 + $0x30] sm:$0xff]  ;;  %v15928_v38 = vld [vmem:[#allocation44_spill] sm:$0xff] }
 0x350   :  { %v1465_v29 = vsel %vm301_vm2, %v1441_v60, %v15926_v44  ;;  %v1469_v39 = vsel %vm301_vm2, %v15927_v30, %v1441_v60  ;;  %v1417_v33 = vpack.c.bf16 %v1409_v35, %v1405_v0  ;;  %v1539_v18 = vsel %vm403_vm3, %v15922_v2, %v15928_v38  ;;  %v15929_v55 = vld [vmem:[#allocation52_spill] sm:$0xff] }
 0x351   :  { %2175 = vmatpush1.bf16.msra.mxu1 %v15925_v17  ;;  %v1416_v8 = vpack.c.bf16 %v1408_v4, %v1404_v7  ;;  %v1487_v57 = vmul.f32 %v1469_v39, %v10500_v51  ;;  %2015 = vperm.xlu0 %9938, %v9386_v34   ;;  %v1455_v12 = vpop.permute.xlu1 %1454  ;;  %v1483_v31 = vmul.f32 %v1468_v9, %v10500_v51  ;;  %v9388_v4 = vld [vmem:[%s15688_s3 + $0x38] sm:$0xff]  ;;  %v15931_v39 = vld [vmem:[#allocation8_spill] sm:$0xff] }
 0x352   :  { %2071 = vmatpush1.bf16.msra.mxu0 %v1414_v36  ;;  %2176 = vmatprep.subr.bf16.mxu1 %v1417_v33  ;;  %v1460_v35 = vsel %vm301_vm2, %v15929_v55, %v1455_v12  ;;  %v1472_v0 = vsel %vm301_vm2, %v1455_v12, %v15924_v62  ;;  %v1551_v2 = vsel %vm403_vm3, %v15928_v38, %v11221_v47 }
 0x353   :  { %2072 = vmatprep.subr.bf16.mxu0 %v1491_v53  ;;  %v1464_v34 = vsel %vm301_vm2, %v1439_v14, %v15929_v55  ;;  %v1488_v7 = vmul.f32 %v1465_v29, %v10515_v59  ;;  %v1457_v36 = vpop.permute.xlu0 %1456  ;;  %2020 = vperm.xlu1 %9939, %v9387_v5   ;;  %v1482_v15 = vmul.f32 %v1472_v0, %v10524_v20 }
 0x354   :  { %v1461_v58 = vsel %vm301_vm2, %v15926_v44, %v1457_v36  ;;  %v1473_v53 = vsel %vm301_vm2, %v1457_v36, %v15927_v30  ;;  %v1495_v47 = vpack.c.bf16 %v1487_v57, %v1483_v31  ;;  %v1485_v62 = vmul.f32 %v1460_v35, %v10527_v23  ;;  %v15930_v44 = vld [vmem:[#allocation9_spill] sm:$0xff] }
 0x355   :  { %2177 = vmatpush1.bf16.msra.mxu1 %v1416_v8  ;;  %v1486_v14 = vmul.f32 %v1473_v53, %v10524_v20  ;;  %v1489_v9 = vmul.f32 %v1461_v58, %v10527_v23  ;;  %2025 = vperm.xlu0 %9938, %v9388_v4   ;;  %v1519_v17 = vpop.permute.xlu1 %1518  ;;  %v1560_v60 = vmul.f32 %v1543_v22, %v10610_v61  ;;  %v15933_v8 = vld [vmem:[#allocation54_spill] sm:$0xff] }
 0x356   :  { %2178 = vmatprep.subr.bf16.mxu1 %v1493_v37  ;;  %2073 = vmatpush1.bf16.msra.mxu0 %v1490_v13  ;;  %v1561_v29 = vmul.f32 %v1539_v18, %v15930_v44  ;;  %v1484_v30 = vmul.f32 %v1464_v34, %v10515_v59  ;;  %v1548_v37 = vsel %vm403_vm3, %v11409_v3, %v1519_v17 }
 0x357   :  { %2074 = vmatprep.subr.bf16.mxu0 %v1495_v47  ;;  %v1554_v33 = vmul.f32 %v1550_v11, %v15931_v39  ;;  %v1558_v5 = vmul.f32 %v1551_v2, %v15931_v39  ;;  %v1494_v38 = vpack.c.bf16 %v1486_v14, %v1482_v15  ;;  %v15932_v41 = vpack.c.bf16 %v11515_v26, %v11532_v50  ;;  %v1521_v1 = vpop.permute.xlu0 %1520  ;;  %v15934_v14 = vld [vmem:[#allocation30_spill] sm:$0xff] }
 0x358   :  { %v1497_v13 = vpack.c.bf16 %v1489_v9, %v1485_v62  ;;  %v1557_v22 = vmul.f32 %v1538_v6, %v15930_v44  ;;  %v1496_v18 = vpack.c.bf16 %v1488_v7, %v1484_v30  ;;  %v1549_v57 = vsel %vm403_vm3, %v15933_v8, %v1521_v1  ;;  %v15935_v9 = vld [vmem:[#allocation31_spill] sm:$0xff] }
 0x359   :  { %2179 = vmatpush1.bf16.msra.mxu1 %v15932_v41  ;;  %v1571_v12 = vpack.c.bf16 %v11682_v10, %v11624_v54  ;;  %v1563_v11 = vmul.f32 %v1548_v37, %v10594_v52  ;;  %v1545_v31 = vsel %vm403_vm3, %v1521_v1, %v11422_v32  ;;  %v1567_v50 = vmul.f32 %v1549_v57, %v10594_v52  ;;  %v1535_v26 = vpop.permute.xlu1 %1534  ;;  %v15939_v41 = vld [vmem:[#allocation48_spill] sm:$0xff]  ;;  %v15943_v57 = vld [vmem:[#allocation27_spill] sm:$0xff] }
 0x35a   :  { %2075 = vmatpush1.bf16.msra.mxu0 %v1494_v38  ;;  %2180 = vmatprep.subr.bf16.mxu1 %v1497_v13  ;;  %v1540_v6 = vsel %vm403_vm3, %v11420_v21, %v1535_v26  ;;  %v1552_v55 = vsel %vm403_vm3, %v1535_v26, %v11409_v3  ;;  %v1573_v54 = vpack.c.bf16 %v1561_v29, %v1557_v22  ;;  %v15937_v29 = vld [vmem:[#allocation46_spill] sm:$0xff]  ;;  %v15940_v13 = vld [vmem:[#allocation32_spill] sm:$0xff]  ;;  %v15941_v22 = vld [vmem:[#allocation33_spill] sm:$0xff] }
 0x35b   :  { %2076 = vmatprep.subr.bf16.mxu0 %v1571_v12  ;;  %v1572_v10 = vpack.c.bf16 %v1560_v60, %v11627_v40  ;;  %v1570_v35 = vpack.c.bf16 %v1558_v5, %v1554_v33  ;;  %v1537_v0 = vpop.permute.xlu0 %1536  ;;  %v1575_v4 = vpack.c.bf16 %v1567_v50, %v1563_v11  ;;  %v1544_v2 = vsel %vm403_vm3, %v1519_v17, %v11420_v21  ;;  %v15936_v60 = vld [vmem:[#allocation40_spill] sm:$0xff]  ;;  %v15938_v5 = vld [vmem:[#allocation38_spill] sm:$0xff]  ;;  %v15944_v11 = vld [vmem:[#allocation39_spill] sm:$0xff] }
 0x35c   :  { %v1568_v34 = vmul.f32 %v1545_v31, %v10610_v61  ;;  %v1541_v7 = vsel %vm403_vm3, %v11422_v32, %v1537_v0  ;;  %v1553_v3 = vsel %vm403_vm3, %v1537_v0, %v15933_v8  ;;  %v1562_v40 = vmul.f32 %v1552_v55, %v15931_v39  ;;  %v15942_v8 = vld [vmem:[#allocation26_spill] sm:$0xff]  ;;  %v15945_v31 = vld [vmem:[#allocation45_spill] sm:$0xff] }
 0x35d   :  { %2181 = vmatpush1.bf16.msra.mxu1 %v1496_v18  ;;  %v1565_v36 = vmul.f32 %v1540_v6, %v15930_v44  ;;  %v1566_v15 = vmul.f32 %v1553_v3, %v15931_v39  ;;  %v1569_v58 = vmul.f32 %v1541_v7, %v15930_v44  ;;  %v1615_v21 = vpop.permute.xlu1 %1614  ;;  %v1564_v53 = vmul.f32 %v1544_v2, %v10610_v61  ;;  %v15946_v26 = vld [vmem:[#allocation37_spill] sm:$0xff]  ;;  %v15949_v0 = vld [vmem:[#allocation34_spill] sm:$0xff]  ;;  %v15952_v3 = vld [vmem:[#allocation47_spill] sm:$0xff] }
 0x35e   :  { %2182 = vmatprep.subr.bf16.mxu1 %v1573_v54  ;;  %2077 = vmatpush1.bf16.msra.mxu0 %v1570_v35  ;;  %v1587_v17 = vpack.c.bf16 %v15935_v9, %v15934_v14  ;;  %v1639_v30 = vsel %vm521_vm4, %v15937_v29, %v15936_v60  ;;  %v1643_v38 = vsel %vm521_vm4, %v15938_v5, %v15937_v29  ;;  %v15947_v54 = vld [vmem:[#allocation28_spill] sm:$0xff]  ;;  %v15955_v14 = vld [vmem:[#allocation58_spill] sm:$0xff] }
 0x35f   :  { %2078 = vmatprep.subr.bf16.mxu0 %v1575_v4  ;;  %v1574_v47 = vpack.c.bf16 %v1566_v15, %v1562_v40  ;;  %v1617_v32 = vpop.permute.xlu0 %1616  ;;  %v1577_v62 = vpack.c.bf16 %v1569_v58, %v1565_v36  ;;  %v1576_v37 = vpack.c.bf16 %v1568_v34, %v1564_v53  ;;  %v1647_v1 = vsel %vm521_vm4, %v15939_v41, %v15938_v5  ;;  %v15950_v4 = vld [vmem:[#allocation35_spill] sm:$0xff]  ;;  %v15953_v58 = vld [vmem:[#allocation10_spill] sm:$0xff]  ;;  %v15956_v5 = vld [vmem:[#allocation12_spill] sm:$0xff] }
 0x360   :  { %v1589_v18 = vpack.c.bf16 %v15941_v22, %v15940_v13  ;;  %v1586_v12 = vpack.c.bf16 %v15943_v57, %v15942_v8  ;;  %v1638_v50 = vsel %vm521_vm4, %v15945_v31, %v15944_v11  ;;  %v1642_v6 = vsel %vm521_vm4, %v15946_v26, %v15945_v31  ;;  %v15951_v34 = vld [vmem:[#allocation11_spill] sm:$0xff] }
 0x361   :  { %2183 = vmatpush1.bf16.msra.mxu1 %v1572_v10  ;;  %v1631_v33 = vpop.permute.xlu1 %1630  ;;  %v15948_v10 = vld [vmem:[#allocation29_spill] sm:$0xff]  ;;  %v1590_v2 = vpack.c.bf16 %v15950_v4, %v15949_v0  ;;  %v1655_v7 = vmul.f32 %v1639_v30, %v15951_v34  ;;  %v1646_v40 = vsel %vm521_vm4, %v15952_v3, %v15946_v26  ;;  %v1635_v36 = vsel %vm521_vm4, %v15936_v60, %v15939_v41 }
 0x362   :  { %2079 = vmatpush1.bf16.msra.mxu0 %v1574_v47  ;;  %2184 = vmatprep.subr.bf16.mxu1 %v1577_v62  ;;  %v1588_v35 = vpack.c.bf16 %v15948_v10, %v15947_v54  ;;  %v1591_v15 = vpack.c.bf16 %v11182_v48, %v11175_v19  ;;  %v1654_v53 = vmul.f32 %v1643_v38, %v15953_v58  ;;  %v15954_v47 = vld [vmem:[#allocation13_spill] sm:$0xff] }
 0x363   :  { %2080 = vmatprep.subr.bf16.mxu0 %v1587_v17  ;;  %v1633_v55 = vpop.permute.xlu0 %1632  ;;  %v1657_v62 = vmul.f32 %v1647_v1, %v15954_v47  ;;  %v1641_v9 = vsel %vm521_vm4, %v1617_v32, %v15955_v14  ;;  %v1592_v29 = vpack.c.bf16 %v11131_v16, %v11127_v43  ;;  %v1650_v30 = vmul.f32 %v1642_v6, %v15953_v58  ;;  %v15957_v41 = vld [vmem:[#allocation57_spill] sm:$0xff]  ;;  %v15958_v16 = vld [vmem:[#allocation56_spill] sm:$0xff] }
 0x364   :  { %v1651_v60 = vmul.f32 %v1638_v50, %v15951_v34  ;;  %v1634_v19 = vsel %vm521_vm4, %v15944_v11, %v15952_v3  ;;  %v1593_v48 = vpack.c.bf16 %v11195_v28, %v11189_v49  ;;  %v1656_v38 = vmul.f32 %v1635_v36, %v15956_v5  ;;  %v15959_v28 = vld [vmem:[#allocation55_spill] sm:$0xff] }
 0x365   :  { %2185 = vmatpush1.bf16.msra.mxu1 %v1576_v37  ;;  %v1691_v17 = vpop.permute.xlu1 %1690  ;;  %v1653_v37 = vmul.f32 %v1646_v40, %v15954_v47  ;;  %v1640_v43 = vsel %vm521_vm4, %v1615_v21, %v15957_v41  ;;  %v1649_v1 = vsel %vm521_vm4, %v1633_v55, %v15958_v16  ;;  %v1645_v22 = vsel %vm521_vm4, %v15958_v16, %v1617_v32 }
 0x366   :  { %2186 = vmatprep.subr.bf16.mxu1 %v1589_v18  ;;  %2081 = vmatpush1.bf16.msra.mxu0 %v1586_v12  ;;  %v1663_v49 = vmul.f32 %v1641_v9, %v15951_v34  ;;  %v1648_v18 = vsel %vm521_vm4, %v1631_v33, %v15959_v28  ;;  %v1667_v8 = vpack.c.bf16 %v1655_v7, %v1651_v60 }
 0x367   :  { %2082 = vmatprep.subr.bf16.mxu0 %v1591_v15  ;;  %v1693_v13 = vpop.permute.xlu0 %1692  ;;  %v1666_v57 = vpack.c.bf16 %v1654_v53, %v1650_v30  ;;  %v1652_v12 = vmul.f32 %v1634_v19, %v15956_v5  ;;  %v1637_v11 = vsel %vm521_vm4, %v15955_v14, %v1633_v55  ;;  %v1669_v50 = vpack.c.bf16 %v1657_v62, %v1653_v37  ;;  %v15961_v15 = vld [vmem:[#allocation41_spill] sm:$0xff]  ;;  %v15962_v53 = vld [vmem:[#allocation15_spill] sm:$0xff]  ;;  %v15963_v37 = vld [vmem:[#allocation14_spill] sm:$0xff] }
 0x368   :  { %v1644_v32 = vsel %vm521_vm4, %v15959_v28, %v1615_v21  ;;  %v1659_v26 = vmul.f32 %v1640_v43, %v15951_v34  ;;  %v1665_v6 = vmul.f32 %v1649_v1, %v15954_v47  ;;  %v1636_v55 = vsel %vm521_vm4, %v15957_v41, %v1631_v33  ;;  %v15965_v28 = vld [vmem:[#allocation17_spill] sm:$0xff] }
 0x369   :  { %2187 = vmatpush1.bf16.msra.mxu1 %v1588_v35  ;;  %v1699_v31 = vpop.permute.xlu1 %1698  ;;  %v1668_v10 = vpack.c.bf16 %v1656_v38, %v1652_v12  ;;  %v1662_v35 = vmul.f32 %v1645_v22, %v15953_v58  ;;  %v1661_v0 = vmul.f32 %v1648_v18, %v15954_v47  ;;  %v1664_v21 = vmul.f32 %v1637_v11, %v15956_v5  ;;  %v15964_v22 = vld [vmem:[#allocation16_spill] sm:$0xff] }
 0x36a   :  { %2188 = vmatprep.subr.bf16.mxu1 %v1593_v48  ;;  %2083 = vmatpush1.bf16.msra.mxu0 %v1590_v2  ;;  %v1718_v54 = vsel %vm623_vm5, %v1691_v17, %v1699_v31  ;;  %v15960_v2 = vld [vmem:[#allocation42_spill] sm:$0xff]  ;;  %v1671_v40 = vpack.c.bf16 %v1663_v49, %v1659_v26  ;;  %v1658_v36 = vmul.f32 %v1644_v32, %v15953_v58 }
 0x36b   :  { %2084 = vmatprep.subr.bf16.mxu0 %v1667_v8  ;;  %v1701_v4 = vpop.permute.xlu0 %1700  ;;  %v1723_v7 = vsel %vm623_vm5, %v15960_v2, %v1693_v13  ;;  %v1722_v33 = vsel %vm623_vm5, %v15961_v15, %v1691_v17  ;;  %v1731_v62 = vmul.f32 %v1718_v54, %v15962_v53  ;;  %v1673_v19 = vpack.c.bf16 %v1665_v6, %v1661_v0 }
 0x36c   :  { %v1719_v3 = vsel %vm623_vm5, %v1693_v13, %v1701_v4  ;;  %v1670_v48 = vpack.c.bf16 %v1662_v35, %v1658_v36  ;;  %v1734_v17 = vmul.f32 %v1723_v7, %v15963_v37  ;;  %v1730_v16 = vmul.f32 %v1722_v33, %v15963_v37 }
 0x36d   :  { %2189 = vmatpush1.bf16.msra.mxu1 %v1592_v29  ;;  %v1735_v14 = vmul.f32 %v1719_v3, %v15962_v53  ;;  %v1707_v9 = vpop.permute.xlu1 %1706  ;;  %v1660_v29 = vmul.f32 %v1636_v55, %v15956_v5 }
 0x36e   :  { %2190 = vmatprep.subr.bf16.mxu1 %v1669_v50  ;;  %2085 = vmatpush1.bf16.msra.mxu0 %v1666_v57  ;;  %v1714_v30 = vsel %vm623_vm5, %v1699_v31, %v1707_v9  ;;  %v1726_v60 = vsel %vm623_vm5, %v1707_v9, %v15961_v15  ;;  %v1746_v11 = vpack.c.bf16 %v1734_v17, %v1730_v16 }
 0x36f   :  { %2086 = vmatprep.subr.bf16.mxu0 %v1671_v40  ;;  %v1709_v38 = vpop.permute.xlu0 %1708  ;;  %v1747_v41 = vpack.c.bf16 %v1735_v14, %v1731_v62  ;;  %v1672_v43 = vpack.c.bf16 %v1664_v21, %v1660_v29  ;;  %v1732_v49 = vmul.f32 %v1714_v30, %v15964_v22  ;;  %v1733_v18 = vmul.f32 %v1726_v60, %v15965_v28 }
 0x370   :  { %v1715_v1 = vsel %vm623_vm5, %v1701_v4, %v1709_v38  ;;  %v1727_v13 = vsel %vm623_vm5, %v1709_v38, %v15960_v2 }
 0x371   :  { %2191 = vmatpush1.bf16.msra.mxu1 %v1668_v10  ;;  %v1736_v8 = vmul.f32 %v1715_v1, %v15964_v22  ;;  %v1737_v57 = vmul.f32 %v1727_v13, %v15965_v28  ;;  %v1687_v12 = vpop.permute.xlu1 %1686 }
 0x372   :  { %2192 = vmatprep.subr.bf16.mxu1 %v1673_v19  ;;  %2087 = vmatpush1.bf16.msra.mxu0 %v1670_v48 }
 0x373   :  { %2088 = vmatprep.subr.bf16.mxu0 %v1747_v41  ;;  %v1748_v31 = vpack.c.bf16 %v1736_v8, %v1732_v49  ;;  %v1689_v50 = vpop.permute.xlu0 %1688  ;;  %v1749_v32 = vpack.c.bf16 %v1737_v57, %v1733_v18 }
 0x375   :  { %2193 = vmatpush1.bf16.msra.mxu1 %v1672_v43  ;;  %v1695_v26 = vpop.permute.xlu1 %1694 }
 0x376   :  { %2194 = vmatprep.subr.bf16.mxu1 %v1749_v32  ;;  %2089 = vmatpush1.bf16.msra.mxu0 %v1746_v11  ;;  %v1724_v55 = vsel %vm623_vm5, %v1687_v12, %v1695_v26 }
 0x377   :  { %v1697_v6 = vpop.permute.xlu0 %1696  ;;  %v1738_v40 = vmul.f32 %v1724_v55, %v15963_v37 }
 0x378   :  { %v1725_v54 = vsel %vm623_vm5, %v1689_v50, %v1697_v6 }
 0x379   :  { %2195 = vmatpush1.bf16.msra.mxu1 %v1748_v31  ;;  %v1703_v10 = vpop.permute.xlu1 %1702  ;;  %v1742_v4 = vmul.f32 %v1725_v54, %v15963_v37 }
 0x37a   :  { %v1720_v35 = vsel %vm623_vm5, %v1695_v26, %v1703_v10 }
 0x37b   :  { %v1705_v0 = vpop.permute.xlu0 %1704  ;;  %v1739_v2 = vmul.f32 %v1720_v35, %v15962_v53  ;;  %v1750_v14 = vpack.c.bf16 %v1742_v4, %v1738_v40  ;;  %v15969_v40 = vld [vmem:[#allocation21_spill] sm:$0xff] }
 0x37c   :  { %v1721_v21 = vsel %vm623_vm5, %v1697_v6, %v1705_v0 }
 0x37d   :  { %v1743_v7 = vmul.f32 %v1721_v21, %v15962_v53  ;;  %v1711_v3 = vpop.permute.xlu1 %1710 }
 0x37e   :  { %v1716_v36 = vsel %vm623_vm5, %v1703_v10, %v1711_v3  ;;  %v1728_v15 = vsel %vm623_vm5, %v1711_v3, %v1687_v12  ;;  %v15966_v12 = vld [vmem:[#allocation18_spill] sm:$0xff] }
 0x37f   :  { %v1713_v33 = vpop.permute.xlu0 %1712  ;;  %v1751_v62 = vpack.c.bf16 %v1743_v7, %v1739_v2  ;;  %v1740_v30 = vmul.f32 %v1716_v36, %v15964_v22  ;;  %v1741_v60 = vmul.f32 %v1728_v15, %v15965_v28  ;;  %v15968_v7 = vld [vmem:[#allocation20_spill] sm:$0xff] }
 0x380   :  { %v1717_v9 = vsel %vm623_vm5, %v1705_v0, %v1713_v33  ;;  %v1729_v29 = vsel %vm623_vm5, %v1713_v33, %v1689_v50  ;;  %v15967_v50 = vld [vmem:[#allocation19_spill] sm:$0xff] }
 0x381   :  { %v1744_v19 = vmul.f32 %v1717_v9, %v15964_v22  ;;  %v1745_v48 = vmul.f32 %v1729_v29, %v15965_v28  ;;  %v1763_v17 = vpop.permute.xlu1 %1762  ;;  %2090 = vmatprep.subr.bf16.mxu0 %v1751_v62 }
 0x382   :  { %2091 = vmatpush1.bf16.msra.mxu0 %v1750_v14 }
 0x383   :  { %v1752_v38 = vpack.c.bf16 %v1744_v19, %v1740_v30  ;;  %v1765_v41 = vpop.permute.xlu0 %1764  ;;  %v1753_v43 = vpack.c.bf16 %v1745_v48, %v1741_v60 }
 0x385   :  { %2196 = vmatprep.subr.bf16.mxu1 %v1753_v43  ;;  %v1771_v16 = vpop.permute.xlu1 %1770 }
 0x386   :  { %2197 = vmatpush1.bf16.msra.mxu1 %v1752_v38  ;;  %v1802_v8 = vsel %vm725_vm6, %v1763_v17, %v1771_v16 }
 0x387   :  { %v1773_v1 = vpop.permute.xlu0 %1772  ;;  %v1810_v54 = vmul.f32 %v1802_v8, %v15966_v12 }
 0x388   :  { %v1803_v13 = vsel %vm725_vm6, %v1765_v41, %v1773_v1 }
 0x389   :  { %v1779_v49 = vpop.permute.xlu1 %1778  ;;  %v1814_v11 = vmul.f32 %v1803_v13, %v15966_v12 }
 0x38a   :  { %v1798_v18 = vsel %vm725_vm6, %v1771_v16, %v1779_v49 }
 0x38b   :  { %v1781_v57 = vpop.permute.xlu0 %1780  ;;  %v1811_v32 = vmul.f32 %v1798_v18, %v15967_v50  ;;  %v1826_v4 = vpack.c.bf16 %v1814_v11, %v1810_v54 }
 0x38c   :  { %v1799_v31 = vsel %vm725_vm6, %v1773_v1, %v1781_v57 }
 0x38d   :  { %v1815_v26 = vmul.f32 %v1799_v31, %v15967_v50  ;;  %v1787_v6 = vpop.permute.xlu1 %1786 }
 0x38e   :  { %v1794_v10 = vsel %vm725_vm6, %v1779_v49, %v1787_v6  ;;  %v1806_v35 = vsel %vm725_vm6, %v1787_v6, %v1763_v17 }
 0x38f   :  { %v1789_v55 = vpop.permute.xlu0 %1788  ;;  %v1827_v0 = vpack.c.bf16 %v1815_v26, %v1811_v32  ;;  %v1812_v3 = vmul.f32 %v1794_v10, %v15968_v7  ;;  %v1813_v36 = vmul.f32 %v1806_v35, %v15969_v40 }
 0x390   :  { %v1795_v21 = vsel %vm725_vm6, %v1781_v57, %v1789_v55  ;;  %v1807_v2 = vsel %vm725_vm6, %v1789_v55, %v1765_v41 }
 0x391   :  { %v1816_v15 = vmul.f32 %v1795_v21, %v15968_v7  ;;  %v1817_v33 = vmul.f32 %v1807_v2, %v15969_v40  ;;  %v1767_v62 = vpop.permute.xlu1 %1766  ;;  %2092 = vmatprep.subr.bf16.mxu0 %v1827_v0  ;;  %v9951_v21 = vld [vmem:[%s15687_s2 + $0x4c] ss:$12 sps:$4 sm:$0xff]  }
 0x392   :  { %2093 = vmatpush1.bf16.msra.mxu0 %v1826_v4  ;;  %v9948_v4 = vld [vmem:[%s15687_s2 + $0x30] ss:$12 sps:$4 sm:$0xff]  }
 0x393   :  { %v1828_v14 = vpack.c.bf16 %v1816_v15, %v1812_v3  ;;  %v1769_v9 = vpop.permute.xlu0 %1768  ;;  %v1829_v29 = vpack.c.bf16 %v1817_v33, %v1813_v36 }
 0x395   :  { %2198 = vmatprep.subr.bf16.mxu1 %v1829_v29  ;;  %v1775_v30 = vpop.permute.xlu1 %1774 }
 0x396   :  { %2199 = vmatpush1.bf16.msra.mxu1 %v1828_v14  ;;  %v1804_v38 = vsel %vm725_vm6, %v1767_v62, %v1775_v30 }
 0x397   :  { %v1777_v60 = vpop.permute.xlu0 %1776  ;;  %v1818_v18 = vmul.f32 %v1804_v38, %v15966_v12  ;;  %v15971_v38 = vld [vmem:[#allocation23_spill] sm:$0xff] }
 0x398   :  { %v1805_v19 = vsel %vm725_vm6, %v1769_v9, %v1777_v60 }
 0x399   :  { %v1783_v48 = vpop.permute.xlu1 %1782  ;;  %v1822_v43 = vmul.f32 %v1805_v19, %v15966_v12  ;;  %v15970_v19 = vld [vmem:[#allocation22_spill] sm:$0xff] }
 0x39a   :  { %v1800_v17 = vsel %vm725_vm6, %v1775_v30, %v1783_v48 }
 0x39b   :  { %v1785_v41 = vpop.permute.xlu0 %1784  ;;  %v1819_v1 = vmul.f32 %v1800_v17, %v15967_v50  ;;  %v1830_v32 = vpack.c.bf16 %v1822_v43, %v1818_v18  ;;  %v15972_v18 = vmov 0  }
 0x39c   :  { %v1801_v16 = vsel %vm725_vm6, %v1777_v60, %v1785_v41 }
 0x39d   :  { %v1823_v13 = vmul.f32 %v1801_v16, %v15967_v50  ;;  %v1791_v49 = vpop.permute.xlu1 %1790 }
 0x39e   :  { %v1796_v8 = vsel %vm725_vm6, %v1783_v48, %v1791_v49  ;;  %v1808_v57 = vsel %vm725_vm6, %v1791_v49, %v1767_v62 }
 0x39f   :  { %v1793_v11 = vpop.permute.xlu0 %1792  ;;  %v1831_v31 = vpack.c.bf16 %v1823_v13, %v1819_v1  ;;  %v1820_v54 = vmul.f32 %v1796_v8, %v15968_v7  ;;  %v1821_v10 = vmul.f32 %v1808_v57, %v15969_v40 }
 0x3a0   :  { %v1797_v26 = vsel %vm725_vm6, %v1785_v41, %v1793_v11  ;;  %v1809_v6 = vsel %vm725_vm6, %v1793_v11, %v1769_v9  ;;  %v9953_v9 = vld [vmem:[%s15687_s2 + $0x48] ss:$12 sps:$4 sm:$0xff]  }
 0x3a1   :  { %v1824_v35 = vmul.f32 %v1797_v26, %v15968_v7  ;;  %v1825_v55 = vmul.f32 %v1809_v6, %v15969_v40  ;;  %v1843_v0 = vpop.permute.xlu1 %1842  ;;  %2094 = vmatprep.subr.bf16.mxu0 %v1831_v31  ;;  %v15973_v31 = vld [vmem:[#allocation24_spill] sm:$0xff] }
 0x3a2   :  { %2095 = vmatpush1.bf16.msra.mxu0 %v1830_v32 }
 0x3a3   :  { %v1832_v2 = vpack.c.bf16 %v1824_v35, %v1820_v54  ;;  %v1845_v3 = vpop.permute.xlu0 %1844  ;;  %v1833_v36 = vpack.c.bf16 %v1825_v55, %v1821_v10  ;;  %v15974_v54 = vld [vmem:[#allocation25_spill] sm:$0xff] }
 0x3a5   :  { %2200 = vmatprep.subr.bf16.mxu1 %v1833_v36  ;;  %v1851_v15 = vpop.permute.xlu1 %1850  ;;  %2097 = vmatmul.mubr.bf16.vlgmr.msra.gmra.mrb[8].mxu0 %v9948_v4 }
 0x3a6   :  { %2201 = vmatpush1.bf16.msra.mxu1 %v1832_v2  ;;  %2106 = vmatprep.mubr.bf16.mxu0 %v9951_v21  ;;  %v1882_v30 = vsel %vm827_vm7, %v1843_v0, %v1851_v15 }
 0x3a7   :  { %v1853_v33 = vpop.permute.xlu0 %1852  ;;  %v1890_v1 = vmul.f32 %v1882_v30, %v15970_v19 }
 0x3a8   :  { %v1883_v62 = vsel %vm827_vm7, %v1845_v3, %v1853_v33 }
 0x3a9   :  { %v1859_v14 = vpop.permute.xlu1 %1858  ;;  %2203 = vmatmul.mubr.bf16.vlgmr.msra.gmra.mrb[8].mxu1 %v9948_v4  ;;  %v1894_v48 = vmul.f32 %v1883_v62, %v15970_v19 }
 0x3aa   :  { %v1878_v29 = vsel %vm827_vm7, %v1851_v15, %v1859_v14  ;;  %2212 = vmatprep.mubr.bf16.mxu1 %v9951_v21 }
 0x3ab   :  { %v1861_v60 = vpop.permute.xlu0 %1860  ;;  %v1891_v41 = vmul.f32 %v1878_v29, %v15971_v38  ;;  %v1906_v11 = vpack.c.bf16 %v1894_v48, %v1890_v1 }
 0x3ac   :  { %v1879_v17 = vsel %vm827_vm7, %v1853_v33, %v1861_v60 }
 0x3ad   :  { %v1895_v43 = vmul.f32 %v1879_v17, %v15971_v38  ;;  %v1867_v16 = vpop.permute.xlu1 %1866  ;;  %2107 = vmatmul.mubr.bf16.gmra.mrb[12].mxu0 %v9953_v9 }
 0x3ae   :  { %v1874_v13 = vsel %vm827_vm7, %v1859_v14, %v1867_v16  ;;  %v1886_v49 = vsel %vm827_vm7, %v1867_v16, %v1843_v0  ;;  %2149 = vmatprep.mubr.bf16.mxu0 %v15972_v18 }
 0x3af   :  { %v1869_v8 = vpop.permute.xlu0 %1868  ;;  %v1907_v57 = vpack.c.bf16 %v1895_v43, %v1891_v41  ;;  %v1892_v32 = vmul.f32 %v1874_v13, %v15973_v31  ;;  %v1893_v10 = vmul.f32 %v1886_v49, %v15974_v54 }
 0x3b0   :  { %v1875_v26 = vsel %vm827_vm7, %v1861_v60, %v1869_v8  ;;  %v1887_v6 = vsel %vm827_vm7, %v1869_v8, %v1845_v3 }
 0x3b1   :  { %v1896_v35 = vmul.f32 %v1875_v26, %v15973_v31  ;;  %v1897_v55 = vmul.f32 %v1887_v6, %v15974_v54  ;;  %v1847_v0 = vpop.permute.xlu1 %1846  ;;  %2117 = vmatprep.subr.bf16.mxu0 %v1907_v57  ;;  %2213 = vmatmul.mubr.bf16.gmra.mrb[12].mxu1 %v9953_v9 }
 0x3b2   :  { %2118 = vmatpush1.bf16.msra.mxu0 %v1906_v11  ;;  %2255 = vmatprep.mubr.bf16.mxu1 %v15972_v18 }
 0x3b3   :  { %v1908_v4 = vpack.c.bf16 %v1896_v35, %v1892_v32  ;;  %v1849_v21 = vpop.permute.xlu0 %1848  ;;  %v1909_v2 = vpack.c.bf16 %v1897_v55, %v1893_v10  ;;  %v9954_v10 = vld [vmem:[%s15687_s2 + $0x38] ss:$12 sps:$4 sm:$0xff]  }
 0x3b5   :  { %2223 = vmatprep.subr.bf16.mxu1 %v1909_v2  ;;  %v1855_v36 = vpop.permute.xlu1 %1854 }
 0x3b6   :  { %2224 = vmatpush1.bf16.msra.mxu1 %v1908_v4  ;;  %v1884_v14 = vsel %vm827_vm7, %v1847_v0, %v1855_v36 }
 0x3b7   :  { %v1857_v15 = vpop.permute.xlu0 %1856  ;;  %v1898_v41 = vmul.f32 %v1884_v14, %v15970_v19 }
 0x3b8   :  { %v1885_v3 = vsel %vm827_vm7, %v1849_v21, %v1857_v15 }
 0x3b9   :  { %v1863_v33 = vpop.permute.xlu1 %1862  ;;  %v1902_v29 = vmul.f32 %v1885_v3, %v15970_v19 }
 0x3ba   :  { %v1880_v62 = vsel %vm827_vm7, %v1855_v36, %v1863_v33 }
 0x3bb   :  { %v1865_v9 = vpop.permute.xlu0 %1864  ;;  %v1899_v60 = vmul.f32 %v1880_v62, %v15971_v38  ;;  %v1910_v49 = vpack.c.bf16 %v1902_v29, %v1898_v41 }
 0x3bc   :  { %v1881_v30 = vsel %vm827_vm7, %v1857_v15, %v1865_v9 }
 0x3bd   :  { %v1903_v48 = vmul.f32 %v1881_v30, %v15971_v38  ;;  %v1871_v17 = vpop.permute.xlu1 %1870 }
 0x3be   :  { %v1876_v43 = vsel %vm827_vm7, %v1863_v33, %v1871_v17  ;;  %v1888_v16 = vsel %vm827_vm7, %v1871_v17, %v1847_v0  ;;  %v9955_v0 = vld [vmem:[%s15687_s2 + $0x50] ss:$12 sps:$4 sm:$0xff]  }
 0x3bf   :  { %v1873_v1 = vpop.permute.xlu0 %1872  ;;  %v1911_v13 = vpack.c.bf16 %v1903_v48, %v1899_v60  ;;  %v1900_v11 = vmul.f32 %v1876_v43, %v15973_v31  ;;  %v1901_v32 = vmul.f32 %v1888_v16, %v15974_v54 }
 0x3c0   :  { %v1877_v8 = vsel %vm827_vm7, %v1865_v9, %v1873_v1  ;;  %v1889_v57 = vsel %vm827_vm7, %v1873_v1, %v1849_v21 }
 0x3c1   :  { %v1904_v26 = vmul.f32 %v1877_v8, %v15973_v31  ;;  %v1905_v6 = vmul.f32 %v1889_v57, %v15974_v54  ;;  %2119 = vmatprep.subr.bf16.mxu0 %v1911_v13 }
 0x3c2   :  { %2120 = vmatpush1.bf16.msra.mxu0 %v1910_v49 }
 0x3c3   :  { %v1912_v35 = vpack.c.bf16 %v1904_v26, %v1900_v11  ;;  %v1913_v55 = vpack.c.bf16 %v1905_v6, %v1901_v32 }
 0x3c5   :  { %9395 = vmatmul.mubr.msk.bf16.vlgmr.msra.gmra.mrb[8].mxu0 %vm1031_vm8, %v9954_v10  ;;  %2225 = vmatprep.subr.bf16.mxu1 %v1913_v55 }
 0x3c6   :  { %2226 = vmatpush1.bf16.msra.mxu1 %v1912_v35  ;;  %2159 = vmatprep.mubr.bf16.mxu0 %v15972_v18 }
 0x3c9   :  { %9397 = vmatmul.mubr.msk.bf16.vlgmr.msra.gmra.mrb[8].mxu1 %vm1031_vm8, %v9954_v10 }
 0x3ca   :  { %2265 = vmatprep.mubr.bf16.mxu1 %v15972_v18 }
 0x3cd   :  { %9396 = vmatmul.mubr.msk.bf16.gmra.mrb[12].mxu0 %vm1031_vm8, %v9955_v0 }
 0x3ce   :  { %v2011_v4 = vpop.permute.xlu1 %2010 }
 0x3d0   :  { %v2016_v15 = vpop.permute.xlu0 %2015 }
 0x3d1   :  { %9398 = vmatmul.mubr.msk.bf16.gmra.mrb[12].mxu1 %vm1031_vm8, %v9955_v0 }
 0x498   :  { %v2151_v21 = vpop.f32.mrb[8].mxu0 }
 0x499   :  { %v9689_v2 = vadd.f32 %v2151_v21, %v2011_v4  ;;  %v2153_v36 = vpop.f32.mrb[9].mxu0 }
 0x49a   :  { %v2155_v3 = vpop.f32.mrb[10].mxu0  ;;  %v9690_v10 = vadd.f32 %v2153_v36, %v2011_v4 }
 0x49b   :  { %v12054_v33 = vmax.f32 %v9689_v2, 0.0  ;;  %v9691_v62 = vadd.f32 %v2155_v3, %v2016_v15  ;;  %v2157_v14 = vpop.f32.mrb[11].mxu0 }
 0x49c   :  { %v2257_v9 = vpop.f32.mrb[8].mxu1  ;;  %v9692_v35 = vadd.f32 %v2157_v14, %v2016_v15  ;;  %v12138_v55 = vmax.f32 %v9690_v10, 0.0 }
 0x49d   :  { %15975 = vst [vmem:[#allocation49_spill] sm:$0xff] %v12054_v33  ;;  %v12056_v29 = vmax.f32 %v9691_v62, 0.0  ;;  %v9697_v30 = vadd.f32 %v2257_v9, %v2011_v4  ;;  %v2259_v60 = vpop.f32.mrb[9].mxu1  ;;  %2292 = vrot.lane.b32.xlu1 %v12054_v33, %s10028_s9 }
 0x49e   :  { %v2261_v48 = vpop.f32.mrb[10].mxu1  ;;  %15979 = vst [vmem:[#allocation53_spill] sm:$0xff] %v12138_v55  ;;  %v9698_v0 = vadd.f32 %v2259_v60, %v2011_v4  ;;  %v12142_v21 = vmax.f32 %v9692_v35, 0.0  ;;  %v12198_v4 = vpop.permute.xlu1 %2020 }
 0x49f   :  { %15976 = vst [vmem:[#allocation36_spill] sm:$0xff] %v12056_v29  ;;  %v12060_v17 = vmax.f32 %v9697_v30, 0.0  ;;  %v9699_v41 = vadd.f32 %v2261_v48, %v2016_v15  ;;  %v2263_v43 = vpop.f32.mrb[11].mxu1  ;;  %2294 = vrot.lane.b32.xlu0 %v12056_v29, %s10028_s9 }
 0x4a0   :  { %v12066_v1 = vpop.f32.mrb[12].mxu0  ;;  %v9700_v2 = vadd.f32 %v2263_v43, %v2016_v15  ;;  %v12146_v36 = vmax.f32 %v9698_v0, 0.0  ;;  %v12202_v15 = vpop.permute.xlu0 %2025 }
 0x4a1   :  { %15977 = vst [vmem:[#allocation43_spill] sm:$0xff] %v12060_v17  ;;  %v12068_v13 = vmax.f32 %v9699_v41, 0.0  ;;  %v12070_v49 = vpop.f32.mrb[13].mxu0  ;;  %2308 = vrot.lane.b32.xlu1 %v12060_v17, %s10028_s9  ;;  %v9693_v62 = vadd.f32 %v12066_v1, %v12198_v4 }
 0x4a2   :  { %v12074_v8 = vpop.f32.mrb[14].mxu0  ;;  %15980 = vst [vmem:[#allocation51_spill] sm:$0xff] %v12146_v36  ;;  %v12150_v3 = vmax.f32 %v9700_v2, 0.0 }
 0x4a3   :  { %15978 = vst [vmem:[#allocation50_spill] sm:$0xff] %v12068_v13  ;;  %v12076_v57 = vpop.f32.mrb[15].mxu0  ;;  %2310 = vrot.lane.b32.xlu0 %v12068_v13, %s10028_s9  ;;  %v9695_v9 = vadd.f32 %v12074_v8, %v12202_v15  ;;  %v12218_v60 = vmax.f32 %v9693_v62, 0.0 }
 0x4a4   :  { %v12080_v11 = vpop.f32.mrb[12].mxu1  ;;  %15981 = vst [vmem:[#allocation44_spill] sm:$0xff] %v12150_v3 }
 0x4a5   :  { %v12082_v32 = vpop.f32.mrb[13].mxu1  ;;  %2372 = vrot.lane.b32.xlu1 %v12054_v33, %s10029_s17  ;;  %15982 = vst [vmem:[#allocation52_spill] sm:$0xff] %v12218_v60  ;;  %v9701_v48 = vadd.f32 %v12080_v11, %v12198_v4  ;;  %v12226_v43 = vmax.f32 %v9695_v9, 0.0 }
 0x4a6   :  { %v12086_v26 = vpop.f32.mrb[14].mxu1 }
 0x4a7   :  { %v12088_v6 = vpop.f32.mrb[15].mxu1  ;;  %2374 = vrot.lane.b32.xlu0 %v12056_v29, %s10029_s17  ;;  %15983 = vst [vmem:[#allocation54_spill] sm:$0xff] %v12226_v43  ;;  %v9703_v1 = vadd.f32 %v12086_v26, %v12202_v15  ;;  %v12234_v10 = vmax.f32 %v9701_v48, 0.0 }
 0x4a9   :  { %2388 = vrot.lane.b32.xlu1 %v12060_v17, %s10029_s17  ;;  %15984 = vst [vmem:[#allocation30_spill] sm:$0xff] %v12234_v10  ;;  %v12240_v35 = vmax.f32 %v9703_v1, 0.0 }
 0x4ab   :  { %2390 = vrot.lane.b32.xlu0 %v12068_v13, %s10029_s17  ;;  %15985 = vst [vmem:[#allocation31_spill] sm:$0xff] %v12240_v35 }
 0x4ad   :  { %2452 = vrot.lane.b32.xlu1 %v12054_v33, %s10030_s0 }
 0x4af   :  { %2454 = vrot.lane.b32.xlu0 %v12056_v29, %s10030_s0 }
 0x4b1   :  { %2468 = vrot.lane.b32.xlu1 %v12060_v17, %s10030_s0 }
 0x4b3   :  { %2470 = vrot.lane.b32.xlu0 %v12068_v13, %s10030_s0 }
 0x4b5   :  { %2532 = vrot.lane.b32.xlu1 %v12054_v33, %s10031_s18 }
 0x4b7   :  { %2534 = vrot.lane.b32.xlu0 %v12056_v29, %s10031_s18 }
 0x4b9   :  { %2548 = vrot.lane.b32.xlu1 %v12060_v17, %s10031_s18 }
 0x4bb   :  { %2550 = vrot.lane.b32.xlu0 %v12068_v13, %s10031_s18 }
 0x4bd   :  { %2628 = vrot.lane.b32.xlu1 %v12054_v33, %s10032_s1 }
 0x4bf   :  { %2630 = vrot.lane.b32.xlu0 %v12056_v29, %s10032_s1 }
 0x4c1   :  { %2644 = vrot.lane.b32.xlu1 %v12060_v17, %s10032_s1 }
 0x4c3   :  { %2646 = vrot.lane.b32.xlu0 %v12068_v13, %s10032_s1 }
 0x4c5   :  { %2708 = vrot.lane.b32.xlu1 %v12054_v33, %s10033_s21 }
 0x4c7   :  { %2710 = vrot.lane.b32.xlu0 %v12056_v29, %s10033_s21 }
 0x4c9   :  { %2724 = vrot.lane.b32.xlu1 %v12060_v17, %s10033_s21 }
 0x4cb   :  { %2726 = vrot.lane.b32.xlu0 %v12068_v13, %s10033_s21 }
 0x4cd   :  { %2788 = vrot.lane.b32.xlu1 %v12054_v33, %s10034_s22 }
 0x4cf   :  { %2790 = vrot.lane.b32.xlu0 %v12056_v29, %s10034_s22 }
 0x4d1   :  { %2804 = vrot.lane.b32.xlu1 %v12060_v17, %s10034_s22 }
 0x4d3   :  { %2806 = vrot.lane.b32.xlu0 %v12068_v13, %s10034_s22 }
 0x4d5   :  { %2868 = vrot.lane.b32.xlu1 %v12054_v33, %s10035_s25 }
 0x4d7   :  { %2870 = vrot.lane.b32.xlu0 %v12056_v29, %s10035_s25 }
 0x4d9   :  { %2300 = vrot.lane.b32.xlu1 %v12138_v55, %s10028_s9 }
 0x4db   :  { %2302 = vrot.lane.b32.xlu0 %v12142_v21, %s10028_s9 }
 0x4dd   :  { %2316 = vrot.lane.b32.xlu1 %v12146_v36, %s10028_s9 }
 0x4df   :  { %2318 = vrot.lane.b32.xlu0 %v12150_v3, %s10028_s9 }
 0x4e1   :  { %2380 = vrot.lane.b32.xlu1 %v12138_v55, %s10029_s17 }
 0x4e3   :  { %2382 = vrot.lane.b32.xlu0 %v12142_v21, %s10029_s17 }
 0x4e5   :  { %2396 = vrot.lane.b32.xlu1 %v12146_v36, %s10029_s17 }
 0x4e7   :  { %2398 = vrot.lane.b32.xlu0 %v12150_v3, %s10029_s17 }
 0x4e9   :  { %2460 = vrot.lane.b32.xlu1 %v12138_v55, %s10030_s0 }
 0x4eb   :  { %2462 = vrot.lane.b32.xlu0 %v12142_v21, %s10030_s0 }
 0x4ed   :  { %2476 = vrot.lane.b32.xlu1 %v12146_v36, %s10030_s0 }
 0x4ef   :  { %2478 = vrot.lane.b32.xlu0 %v12150_v3, %s10030_s0 }
 0x4f1   :  { %2540 = vrot.lane.b32.xlu1 %v12138_v55, %s10031_s18 }
 0x4f3   :  { %2542 = vrot.lane.b32.xlu0 %v12142_v21, %s10031_s18 }
 0x4f5   :  { %2556 = vrot.lane.b32.xlu1 %v12146_v36, %s10031_s18 }
 0x4f7   :  { %2558 = vrot.lane.b32.xlu0 %v12150_v3, %s10031_s18 }
 0x4f9   :  { %2636 = vrot.lane.b32.xlu1 %v12138_v55, %s10032_s1 }
 0x4fb   :  { %2638 = vrot.lane.b32.xlu0 %v12142_v21, %s10032_s1 }
 0x4fd   :  { %2652 = vrot.lane.b32.xlu1 %v12146_v36, %s10032_s1 }
 0x4ff   :  { %2654 = vrot.lane.b32.xlu0 %v12150_v3, %s10032_s1 }
 0x501   :  { %2716 = vrot.lane.b32.xlu1 %v12138_v55, %s10033_s21 }
 0x503   :  { %2718 = vrot.lane.b32.xlu0 %v12142_v21, %s10033_s21 }
 0x505   :  { %2732 = vrot.lane.b32.xlu1 %v12146_v36, %s10033_s21 }
 0x507   :  { %2734 = vrot.lane.b32.xlu0 %v12150_v3, %s10033_s21 }
 0x509   :  { %2796 = vrot.lane.b32.xlu1 %v12138_v55, %s10034_s22 }
 0x50b   :  { %2798 = vrot.lane.b32.xlu0 %v12142_v21, %s10034_s22 }
 0x50d   :  { %2812 = vrot.lane.b32.xlu1 %v12146_v36, %s10034_s22 }
 0x50f   :  { %2814 = vrot.lane.b32.xlu0 %v12150_v3, %s10034_s22  ;;  %v12210_v14 = vpop.permute.xlu1 %2292 }
 0x511   :  { %v12214_v30 = vpop.permute.xlu0 %2294  ;;  %2876 = vrot.lane.b32.xlu1 %v12138_v55, %s10035_s25 }
 0x513   :  { %2878 = vrot.lane.b32.xlu0 %v12142_v21, %s10035_s25  ;;  %v12224_v41 = vpop.permute.xlu1 %2308 }
 0x515   :  { %v12230_v8 = vpop.permute.xlu0 %2310  ;;  %2296 = vrot.lane.b32.xlu1 %v12218_v60, %s10028_s9 }
 0x517   :  { %2298 = vrot.lane.b32.xlu0 %v12226_v43, %s10028_s9  ;;  %v12238_v11 = vpop.permute.xlu1 %2372 }
 0x519   :  { %v12242_v0 = vpop.permute.xlu0 %2374  ;;  %2312 = vrot.lane.b32.xlu1 %v12234_v10, %s10028_s9 }
 0x51b   :  { %2314 = vrot.lane.b32.xlu0 %v12240_v35, %s10028_s9  ;;  %v12248_v26 = vpop.permute.xlu1 %2388 }
 0x51d   :  { %v12250_v2 = vpop.permute.xlu0 %2390  ;;  %2376 = vrot.lane.b32.xlu1 %v12218_v60, %s10029_s17 }
 0x51f   :  { %2378 = vrot.lane.b32.xlu0 %v12226_v43, %s10029_s17  ;;  %v12256_v62 = vpop.permute.xlu1 %2452 }
 0x521   :  { %v12258_v9 = vpop.permute.xlu0 %2454  ;;  %2392 = vrot.lane.b32.xlu1 %v12234_v10, %s10029_s17 }
 0x523   :  { %2394 = vrot.lane.b32.xlu0 %v12240_v35, %s10029_s17  ;;  %v12264_v48 = vpop.permute.xlu1 %2468 }
 0x525   :  { %v12266_v1 = vpop.permute.xlu0 %2470  ;;  %2456 = vrot.lane.b32.xlu1 %v12218_v60, %s10030_s0 }
 0x527   :  { %2458 = vrot.lane.b32.xlu0 %v12226_v43, %s10030_s0  ;;  %v12272_v16 = vpop.permute.xlu1 %2532 }
 0x529   :  { %v12274_v18 = vpop.permute.xlu0 %2534  ;;  %2472 = vrot.lane.b32.xlu1 %v12234_v10, %s10030_s0 }
 0x52b   :  { %2474 = vrot.lane.b32.xlu0 %v12240_v35, %s10030_s0  ;;  %v12280_v31 = vpop.permute.xlu1 %2548 }
 0x52d   :  { %v12282_v19 = vpop.permute.xlu0 %2550  ;;  %2536 = vrot.lane.b32.xlu1 %v12218_v60, %s10031_s18 }
 0x52f   :  { %2538 = vrot.lane.b32.xlu0 %v12226_v43, %s10031_s18  ;;  %v12288_v54 = vpop.permute.xlu1 %2628 }
 0x530   :  { %15986 = vst [vmem:[#allocation40_spill] sm:$0xff] %v12288_v54 }
 0x531   :  { %v12290_v38 = vpop.permute.xlu0 %2630  ;;  %2552 = vrot.lane.b32.xlu1 %v12234_v10, %s10031_s18 }
 0x532   :  { %15987 = vst [vmem:[#allocation46_spill] sm:$0xff] %v12290_v38 }
 0x533   :  { %2554 = vrot.lane.b32.xlu0 %v12240_v35, %s10031_s18  ;;  %v12296_v40 = vpop.permute.xlu1 %2644 }
 0x534   :  { %15988 = vst [vmem:[#allocation38_spill] sm:$0xff] %v12296_v40 }
 0x535   :  { %v12298_v7 = vpop.permute.xlu0 %2646  ;;  %2632 = vrot.lane.b32.xlu1 %v12218_v60, %s10032_s1 }
 0x536   :  { %15989 = vst [vmem:[#allocation48_spill] sm:$0xff] %v12298_v7 }
 0x537   :  { %2634 = vrot.lane.b32.xlu0 %v12226_v43, %s10032_s1  ;;  %v12304_v50 = vpop.permute.xlu1 %2708 }
 0x538   :  { %15990 = vst [vmem:[#allocation32_spill] sm:$0xff] %v12304_v50 }
 0x539   :  { %v12306_v12 = vpop.permute.xlu0 %2710  ;;  %2648 = vrot.lane.b32.xlu1 %v12234_v10, %s10032_s1 }
 0x53a   :  { %15991 = vst [vmem:[#allocation33_spill] sm:$0xff] %v12306_v12 }
 0x53b   :  { %2650 = vrot.lane.b32.xlu0 %v12240_v35, %s10032_s1  ;;  %v12312_v33 = vpop.permute.xlu1 %2724 }
 0x53c   :  { %15992 = vst [vmem:[#allocation26_spill] sm:$0xff] %v12312_v33  ;;  %v9694_v33 = vadd.f32 %v12070_v49, %v12198_v4 }
 0x53d   :  { %v12314_v29 = vpop.permute.xlu0 %2726  ;;  %2712 = vrot.lane.b32.xlu1 %v12218_v60, %s10033_s21 }
 0x53e   :  { %15993 = vst [vmem:[#allocation27_spill] sm:$0xff] %v12314_v29 }
 0x53f   :  { %2714 = vrot.lane.b32.xlu0 %v12226_v43, %s10033_s21  ;;  %v12320_v28 = vpop.permute.xlu1 %2788 }
 0x540   :  { %15994 = vst [vmem:[#allocation39_spill] sm:$0xff] %v12320_v28 }
 0x541   :  { %v12322_v22 = vpop.permute.xlu0 %2790  ;;  %2728 = vrot.lane.b32.xlu1 %v12234_v10, %s10033_s21 }
 0x542   :  { %15995 = vst [vmem:[#allocation45_spill] sm:$0xff] %v12322_v22  ;;  %v9696_v22 = vadd.f32 %v12076_v57, %v12202_v15  ;;  %v9704_v57 = vadd.f32 %v12088_v6, %v12202_v15 }
 0x543   :  { %2730 = vrot.lane.b32.xlu0 %v12240_v35, %s10033_s21  ;;  %v12328_v53 = vpop.permute.xlu1 %2804 }
 0x544   :  { %15996 = vst [vmem:[#allocation37_spill] sm:$0xff] %v12328_v53  ;;  %v9702_v53 = vadd.f32 %v12082_v32, %v12198_v4  ;;  %v12355_v50 = vmax.f32 %v9696_v22, 0.0  ;;  %v16003_v4 = vld [vmem:[#allocation4_spill] sm:$0xff]  ;;  %v12379_v5 = vmax.f32 %v9704_v57, 0.0 }
 0x545   :  { %v12330_v37 = vpop.permute.xlu0 %2806  ;;  %2792 = vrot.lane.b32.xlu1 %v12218_v60, %s10034_s22 }
 0x546   :  { %15997 = vst [vmem:[#allocation28_spill] sm:$0xff] %v12330_v37  ;;  %v12346_v37 = vmax.f32 %v9694_v33, 0.0  ;;  %16001 = vst [vmem:[#allocation47_spill] sm:$0xff] %v12355_v50  ;;  %v12364_v32 = vmax.f32 %v9702_v53, 0.0 }
 0x547   :  { %2794 = vrot.lane.b32.xlu0 %v12226_v43, %s10034_s22  ;;  %v12338_v28 = vpop.permute.xlu1 %2868  ;;  %16004 = vst [vmem:[#allocation57_spill] sm:$0xff] %v12379_v5 }
 0x548   :  { %15998 = vst [vmem:[#allocation29_spill] sm:$0xff] %v12338_v28  ;;  %16000 = vst [vmem:[#allocation35_spill] sm:$0xff] %v12346_v37 }
 0x549   :  { %v12342_v29 = vpop.permute.xlu0 %2870  ;;  %2808 = vrot.lane.b32.xlu1 %v12234_v10, %s10034_s22  ;;  %16002 = vst [vmem:[#allocation58_spill] sm:$0xff] %v12364_v32 }
 0x54a   :  { %15999 = vst [vmem:[#allocation34_spill] sm:$0xff] %v12342_v29 }
 0x54b   :  { %2810 = vrot.lane.b32.xlu0 %v12240_v35, %s10034_s22  ;;  %v2301_v49 = vpop.permute.xlu1 %2300 }
 0x54c   :  { %v2332_v28 = vsel %vm97_vm0, %v12210_v14, %v2301_v49 }
 0x54d   :  { %v2303_v29 = vpop.permute.xlu0 %2302  ;;  %2304 = vrot.lane.b32.xlu1 %v12346_v37, %s10028_s9  ;;  %v2341_v12 = vmul.f32 %v2332_v28, %v16003_v4  ;;  %v2328_v28 = vsel %vm97_vm0, %v2301_v49, %v12224_v41 }
 0x54e   :  { %v2333_v33 = vsel %vm97_vm0, %v12214_v30, %v2303_v29  ;;  %v2329_v22 = vsel %vm97_vm0, %v2303_v29, %v12230_v8 }
 0x54f   :  { %v2345_v47 = vmul.f32 %v2333_v33, %v16003_v4  ;;  %2306 = vrot.lane.b32.xlu0 %v12355_v50, %s10028_s9  ;;  %v2317_v6 = vpop.permute.xlu1 %2316  ;;  %v2346_v34 = vmul.f32 %v2329_v22, %v10320_v42 }
 0x550   :  { %v2324_v15 = vsel %vm97_vm0, %v12224_v41, %v2317_v6  ;;  %v2336_v53 = vsel %vm97_vm0, %v2317_v6, %v12210_v14 }
 0x551   :  { %v2319_v29 = vpop.permute.xlu0 %2318  ;;  %2320 = vrot.lane.b32.xlu1 %v12364_v32, %s10028_s9  ;;  %v2357_v33 = vpack.c.bf16 %v2345_v47, %v2341_v12  ;;  %v2340_v38 = vmul.f32 %v2336_v53, %v10331_v45  ;;  %v2343_v57 = vmul.f32 %v2324_v15, %v10334_v46  ;;  %v2342_v12 = vmul.f32 %v2328_v28, %v10320_v42  ;;  %v9410_v42 = vld [vmem:[%s15688_s3 + $0x58] sm:$0xff] }
 0x552   :  { %v2325_v7 = vsel %vm97_vm0, %v12230_v8, %v2319_v29  ;;  %v2337_v14 = vsel %vm97_vm0, %v2319_v29, %v12214_v30 }
 0x553   :  { %v2344_v41 = vmul.f32 %v2337_v14, %v10331_v45  ;;  %v2347_v49 = vmul.f32 %v2325_v7, %v10334_v46  ;;  %2322 = vrot.lane.b32.xlu0 %v12379_v5, %s10028_s9  ;;  %3090 = vmatprep.subr.bf16.mxu0 %v2357_v33  ;;  %v12399_v47 = vpop.permute.xlu1 %2380  ;;  %v2358_v6 = vpack.c.bf16 %v2346_v34, %v2342_v12 }
 0x555   :  { %v2356_v22 = vpack.c.bf16 %v2344_v41, %v2340_v38  ;;  %v12402_v8 = vpop.permute.xlu0 %2382  ;;  %2384 = vrot.lane.b32.xlu1 %v12346_v37, %s10029_s17  ;;  %v2359_v30 = vpack.c.bf16 %v2347_v49, %v2343_v57 }
 0x557   :  { %2386 = vrot.lane.b32.xlu0 %v12355_v50, %s10029_s17  ;;  %3091 = vmatpush1.bf16.msra.mxu0 %v2356_v22  ;;  %v12408_v7 = vpop.permute.xlu1 %2396 }
 0x558   :  { %3196 = vmatprep.subr.bf16.mxu1 %v2359_v30 }
 0x559   :  { %3197 = vmatpush1.bf16.msra.mxu1 %v2358_v6  ;;  %v12410_v15 = vpop.permute.xlu0 %2398  ;;  %2400 = vrot.lane.b32.xlu1 %v12364_v32, %s10029_s17 }
 0x55a   :  { %v2417_v39 = vsel %vm199_vm1, %v12410_v15, %v12242_v0 }
 0x55b   :  { %2402 = vrot.lane.b32.xlu0 %v12379_v5, %s10029_s17  ;;  %v12416_v38 = vpop.permute.xlu1 %2460 }
 0x55d   :  { %v12418_v53 = vpop.permute.xlu0 %2462  ;;  %2464 = vrot.lane.b32.xlu1 %v12346_v37, %s10030_s0 }
 0x55f   :  { %2466 = vrot.lane.b32.xlu0 %v12355_v50, %s10030_s0  ;;  %v12424_v34 = vpop.permute.xlu1 %2476 }
 0x561   :  { %v12426_v28 = vpop.permute.xlu0 %2478  ;;  %2480 = vrot.lane.b32.xlu1 %v12364_v32, %s10030_s0 }
 0x563   :  { %2482 = vrot.lane.b32.xlu0 %v12379_v5, %s10030_s0  ;;  %v12432_v29 = vpop.permute.xlu1 %2540 }
 0x565   :  { %v12434_v33 = vpop.permute.xlu0 %2542  ;;  %2544 = vrot.lane.b32.xlu1 %v12346_v37, %s10031_s18 }
 0x567   :  { %2546 = vrot.lane.b32.xlu0 %v12355_v50, %s10031_s18  ;;  %v12440_v14 = vpop.permute.xlu1 %2556 }
 0x569   :  { %v12442_v57 = vpop.permute.xlu0 %2558  ;;  %2560 = vrot.lane.b32.xlu1 %v12364_v32, %s10031_s18 }
 0x56b   :  { %2562 = vrot.lane.b32.xlu0 %v12379_v5, %s10031_s18  ;;  %v12448_v41 = vpop.permute.xlu1 %2636 }
 0x56c   :  { %16005 = vst [vmem:[#allocation56_spill] sm:$0xff] %v12448_v41 }
 0x56d   :  { %v12450_v49 = vpop.permute.xlu0 %2638  ;;  %2884 = vrot.lane.b32.xlu1 %v12060_v17, %s10035_s25  ;;  %v16047_v17 = vld [vmem:[#allocation6_spill] sm:$0xff] }
 0x56e   :  { %16006 = vst [vmem:[#allocation55_spill] sm:$0xff] %v12450_v49 }
 0x56f   :  { %2886 = vrot.lane.b32.xlu0 %v12068_v13, %s10035_s25  ;;  %v12456_v12 = vpop.permute.xlu1 %2652 }
 0x570   :  { %16007 = vst [vmem:[#allocation42_spill] sm:$0xff] %v12456_v12 }
 0x571   :  { %v12458_v22 = vpop.permute.xlu0 %2654  ;;  %2640 = vrot.lane.b32.xlu1 %v12346_v37, %s10032_s1 }
 0x572   :  { %16008 = vst [vmem:[#allocation41_spill] sm:$0xff] %v12458_v22 }
 0x573   :  { %2894 = vrot.lane.b32.xlu0 %v12150_v3, %s10035_s25  ;;  %v12464_v30 = vpop.permute.xlu1 %2716 }
 0x574   :  { %16009 = vst [vmem:[#allocation4_spill] sm:$0xff] %v12464_v30 }
 0x575   :  { %v12466_v6 = vpop.permute.xlu0 %2718  ;;  %2656 = vrot.lane.b32.xlu1 %v12364_v32, %s10032_s1 }
 0x576   :  { %16010 = vst [vmem:[#allocation59_spill] sm:$0xff] %v12466_v6 }
 0x577   :  { %2642 = vrot.lane.b32.xlu0 %v12355_v50, %s10032_s1  ;;  %v12472_v49 = vpop.permute.xlu1 %2732 }
 0x578   :  { %16011 = vst [vmem:[#allocation60_spill] sm:$0xff] %v12472_v49 }
 0x579   :  { %v12474_v12 = vpop.permute.xlu0 %2734  ;;  %2720 = vrot.lane.b32.xlu1 %v12346_v37, %s10033_s21 }
 0x57a   :  { %16012 = vst [vmem:[#allocation61_spill] sm:$0xff] %v12474_v12 }
 0x57b   :  { %2658 = vrot.lane.b32.xlu0 %v12379_v5, %s10032_s1  ;;  %v12480_v22 = vpop.permute.xlu1 %2796 }
 0x57c   :  { %16013 = vst [vmem:[#allocation62_spill] sm:$0xff] %v12480_v22  ;;  %v9958_v22 = vld [vmem:[%s15687_s2 + $0x64] ss:$12 sps:$4 sm:$0xff]  }
 0x57d   :  { %v12482_v30 = vpop.permute.xlu0 %2798  ;;  %2736 = vrot.lane.b32.xlu1 %v12364_v32, %s10033_s21  ;;  %3122 = vmatprep.mubr.bf16.mxu0 %v9958_v22 }
 0x57e   :  { %16014 = vst [vmem:[#allocation63_spill] sm:$0xff] %v12482_v30  ;;  %3228 = vmatprep.mubr.bf16.mxu1 %v9958_v22 }
 0x57f   :  { %2722 = vrot.lane.b32.xlu0 %v12355_v50, %s10033_s21  ;;  %v12488_v6 = vpop.permute.xlu1 %2812 }
 0x580   :  { %16015 = vst [vmem:[#allocation64_spill] sm:$0xff] %v12488_v6 }
 0x581   :  { %v12490_v49 = vpop.permute.xlu0 %2814  ;;  %2800 = vrot.lane.b32.xlu1 %v12346_v37, %s10034_s22 }
 0x582   :  { %16016 = vst [vmem:[#allocation65_spill] sm:$0xff] %v12490_v49 }
 0x583   :  { %2738 = vrot.lane.b32.xlu0 %v12379_v5, %s10033_s21  ;;  %v12496_v12 = vpop.permute.xlu1 %2876 }
 0x584   :  { %16017 = vst [vmem:[#allocation66_spill] sm:$0xff] %v12496_v12 }
 0x585   :  { %v12501_v30 = vpop.permute.xlu0 %2878  ;;  %2816 = vrot.lane.b32.xlu1 %v12364_v32, %s10034_s22 }
 0x586   :  { %16018 = vst [vmem:[#allocation67_spill] sm:$0xff] %v12501_v30 }
 0x587   :  { %2802 = vrot.lane.b32.xlu0 %v12355_v50, %s10034_s22  ;;  %v12507_v49 = vpop.permute.xlu1 %2296 }
 0x589   :  { %v12509_v6 = vpop.permute.xlu0 %2298  ;;  %2892 = vrot.lane.b32.xlu1 %v12146_v36, %s10035_s25  ;;  %v16052_v36 = vld [vmem:[#allocation10_spill] sm:$0xff] }
 0x58b   :  { %2818 = vrot.lane.b32.xlu0 %v12379_v5, %s10034_s22  ;;  %v12515_v12 = vpop.permute.xlu1 %2312 }
 0x58d   :  { %v12517_v30 = vpop.permute.xlu0 %2314  ;;  %2872 = vrot.lane.b32.xlu1 %v12218_v60, %s10035_s25 }
 0x58f   :  { %2874 = vrot.lane.b32.xlu0 %v12226_v43, %s10035_s25  ;;  %v12523_v22 = vpop.permute.xlu1 %2376 }
 0x590   :  { %16019 = vst [vmem:[#allocation68_spill] sm:$0xff] %v12523_v22 }
 0x591   :  { %v12525_v58 = vpop.permute.xlu0 %2378  ;;  %2880 = vrot.lane.b32.xlu1 %v12346_v37, %s10035_s25 }
 0x592   :  { %16020 = vst [vmem:[#allocation69_spill] sm:$0xff] %v12525_v58  ;;  %v9407_v58 = vld [vmem:[%s15688_s3 + $0x40] sm:$0xff] }
 0x593   :  { %2890 = vrot.lane.b32.xlu0 %v12240_v35, %s10035_s25  ;;  %v12531_v40 = vpop.permute.xlu1 %2392 }
 0x594   :  { %16021 = vst [vmem:[#allocation70_spill] sm:$0xff] %v12531_v40 }
 0x595   :  { %v12533_v44 = vpop.permute.xlu0 %2394  ;;  %2888 = vrot.lane.b32.xlu1 %v12234_v10, %s10035_s25 }
 0x596   :  { %16022 = vst [vmem:[#allocation71_spill] sm:$0xff] %v12533_v44  ;;  %v9408_v44 = vld [vmem:[%s15688_s3 + $0x48] sm:$0xff] }
 0x597   :  { %2882 = vrot.lane.b32.xlu0 %v12355_v50, %s10035_s25  ;;  %v12539_v46 = vpop.permute.xlu1 %2456  ;;  %v3932_v50 = vld [vmem:[%s15689_s5 + $0x90] sm:$0xff] }
 0x598   :  { %16023 = vst [vmem:[#allocation72_spill] sm:$0xff] %v12539_v46 }
 0x599   :  { %v12541_v22 = vpop.permute.xlu0 %2458  ;;  %2896 = vrot.lane.b32.xlu1 %v12364_v32, %s10035_s25  ;;  %v2565_v32 = vsel %vm403_vm3, %v12282_v19, %v12442_v57 }
 0x59a   :  { %16024 = vst [vmem:[#allocation73_spill] sm:$0xff] %v12541_v22  ;;  %v9409_v22 = vld [vmem:[%s15688_s3 + $0x50] sm:$0xff] }
 0x59b   :  { %2898 = vrot.lane.b32.xlu0 %v12379_v5, %s10035_s25  ;;  %v12550_v40 = vpop.permute.xlu1 %2472 }
 0x59c   :  { %16025 = vst [vmem:[#allocation74_spill] sm:$0xff] %v12550_v40  ;;  %v3334_v40 = vld [vmem:[%s15689_s5] sm:$0xff] }
 0x59d   :  { %v12555_v45 = vpop.permute.xlu0 %2474  ;;  %3036 = vperm.xlu1 %9939, %v9407_v58  }
 0x59e   :  { %16026 = vst [vmem:[#allocation75_spill] sm:$0xff] %v12555_v45 }
 0x59f   :  { %3041 = vperm.xlu0 %9938, %v9408_v44   ;;  %v12560_v46 = vpop.permute.xlu1 %2536  ;;  %v3335_v44 = vld [vmem:[%s15689_s5 + $0x8] sm:$0xff] }
 0x5a0   :  { %16027 = vst [vmem:[#allocation76_spill] sm:$0xff] %v12560_v46  ;;  %v3336_v46 = vld [vmem:[%s15689_s5 + $0x10] sm:$0xff] }
 0x5a1   :  { %v12565_v54 = vpop.permute.xlu0 %2538  ;;  %3046 = vperm.xlu1 %9939, %v9409_v22  }
 0x5a2   :  { %16028 = vst [vmem:[#allocation77_spill] sm:$0xff] %v12565_v54 }
 0x5a3   :  { %3051 = vperm.xlu0 %9938, %v9410_v42   ;;  %v12570_v58 = vpop.permute.xlu1 %2552  ;;  %v3337_v42 = vld [vmem:[%s15689_s5 + $0x18] sm:$0xff] }
 0x5a4   :  { %16029 = vst [vmem:[#allocation78_spill] sm:$0xff] %v12570_v58  ;;  %v3338_v58 = vld [vmem:[%s15689_s5 + $0x20] sm:$0xff] }
 0x5a5   :  { %v12575_v45 = vpop.permute.xlu0 %2554  ;;  %3344 = vperm.xlu1 %9939, %v3334_v40  }
 0x5a6   :  { %16030 = vst [vmem:[#allocation79_spill] sm:$0xff] %v12575_v45 }
 0x5a7   :  { %3349 = vperm.xlu0 %9938, %v3335_v44   ;;  %v12580_v22 = vpop.permute.xlu1 %2632  ;;  %v3339_v44 = vld [vmem:[%s15689_s5 + $0x28] sm:$0xff] }
 0x5a8   :  { %16031 = vst [vmem:[#allocation80_spill] sm:$0xff] %v12580_v22  ;;  %v3340_v22 = vld [vmem:[%s15689_s5 + $0x30] sm:$0xff] }
 0x5a9   :  { %v12585_v54 = vpop.permute.xlu0 %2634  ;;  %3354 = vperm.xlu1 %9939, %v3336_v46  }
 0x5aa   :  { %16032 = vst [vmem:[#allocation81_spill] sm:$0xff] %v12585_v54 }
 0x5ab   :  { %3359 = vperm.xlu0 %9938, %v3337_v42   ;;  %v12590_v40 = vpop.permute.xlu1 %2648  ;;  %v3341_v42 = vld [vmem:[%s15689_s5 + $0x38] sm:$0xff] }
 0x5ac   :  { %16033 = vst [vmem:[#allocation82_spill] sm:$0xff] %v12590_v40 }
 0x5ad   :  { %v12595_v45 = vpop.permute.xlu0 %2650  ;;  %3364 = vperm.xlu1 %9939, %v3338_v58   ;;  %v3632_v58 = vld [vmem:[%s15689_s5 + $0x40] sm:$0xff] }
 0x5ae   :  { %16034 = vst [vmem:[#allocation83_spill] sm:$0xff] %v12595_v45  ;;  %v2409_v45 = vsel %vm199_vm1, %v12402_v8, %v12250_v2 }
 0x5af   :  { %3369 = vperm.xlu0 %9938, %v3339_v44   ;;  %v12600_v46 = vpop.permute.xlu1 %2712 }
 0x5b0   :  { %16035 = vst [vmem:[#allocation84_spill] sm:$0xff] %v12600_v46  ;;  %v2408_v46 = vsel %vm199_vm1, %v12399_v47, %v12248_v26 }
 0x5b1   :  { %v12605_v54 = vpop.permute.xlu0 %2714  ;;  %3374 = vperm.xlu1 %9939, %v3340_v22   ;;  %v2413_v22 = vsel %vm199_vm1, %v12242_v0, %v12402_v8  ;;  %v12654_v8 = vmul.f32 %v2408_v46, %v10415_v63  ;;  %v2404_v0 = vsel %vm199_vm1, %v12248_v26, %v12408_v7  ;;  %v2405_v46 = vsel %vm199_vm1, %v12250_v2, %v12410_v15  ;;  %v3635_v26 = vld [vmem:[%s15689_s5 + $0x58] sm:$0xff] }
 0x5b2   :  { %16036 = vst [vmem:[#allocation85_spill] sm:$0xff] %v12605_v54  ;;  %v3633_v54 = vld [vmem:[%s15689_s5 + $0x48] sm:$0xff]  ;;  %v2489_v2 = vsel %vm301_vm2, %v12418_v53, %v12266_v1  ;;  %v2493_v15 = vsel %vm301_vm2, %v12258_v9, %v12418_v53  ;;  %v3636_v53 = vld [vmem:[%s15689_s5 + $0x60] sm:$0xff] }
 0x5b3   :  { %3379 = vperm.xlu0 %9938, %v3341_v42   ;;  %v12614_v44 = vpop.permute.xlu1 %2728  ;;  %v2412_v42 = vsel %vm199_vm1, %v12238_v11, %v12399_v47  ;;  %v3634_v47 = vld [vmem:[%s15689_s5 + $0x50] sm:$0xff] }
 0x5b4   :  { %16037 = vst [vmem:[#allocation86_spill] sm:$0xff] %v12614_v44  ;;  %v12632_v44 = vmul.f32 %v2409_v45, %v10415_v63  ;;  %v2416_v45 = vsel %vm199_vm1, %v12408_v7, %v12238_v11  ;;  %v12670_v41 = vmul.f32 %v2412_v42, %v10399_v56  ;;  %v12686_v7 = vmul.f32 %v2417_v39, %v10425_v25 }
 0x5b5   :  { %v12634_v40 = vpop.permute.xlu0 %2730  ;;  %3642 = vperm.xlu1 %9939, %v3632_v58   ;;  %v2485_v39 = vsel %vm301_vm2, %v12266_v1, %v12426_v28  ;;  %v2497_v11 = vsel %vm301_vm2, %v12426_v28, %v12258_v9  ;;  %v2492_v1 = vsel %vm301_vm2, %v12256_v62, %v12416_v38  ;;  %v12731_v28 = vmul.f32 %v2493_v15, %v10500_v51 }
 0x5b6   :  { %16038 = vst [vmem:[#allocation87_spill] sm:$0xff] %v12634_v40  ;;  %v12657_v40 = vmul.f32 %v2413_v22, %v10399_v56  ;;  %v12702_v22 = vmul.f32 %v2404_v0, %v10429_v27  ;;  %v12753_v9 = vmul.f32 %v2485_v39, %v10527_v23  ;;  %v2572_v39 = vsel %vm403_vm3, %v12272_v16, %v12432_v29 }
 0x5b7   :  { %3647 = vperm.xlu0 %9938, %v3633_v54   ;;  %v12667_v58 = vpop.permute.xlu1 %2792  ;;  %v12699_v54 = vmul.f32 %v2416_v45, %v10425_v25  ;;  %v2488_v45 = vsel %vm301_vm2, %v12416_v38, %v12264_v48  ;;  %v2496_v38 = vsel %vm301_vm2, %v12424_v34, %v12256_v62  ;;  %v12762_v62 = vmul.f32 %v2492_v1, %v10500_v51 }
 0x5b8   :  { %16039 = vst [vmem:[#allocation88_spill] sm:$0xff] %v12667_v58  ;;  %v2484_v58 = vsel %vm301_vm2, %v12264_v48, %v12424_v34  ;;  %v2569_v48 = vsel %vm403_vm3, %v12434_v33, %v12282_v19  ;;  %v12765_v34 = vmul.f32 %v2488_v45, %v10515_v59  ;;  %v12779_v1 = vmul.f32 %v2496_v38, %v10524_v20  ;;  %v3639_v38 = vld [vmem:[%s15689_s5 + $0x78] sm:$0xff] }
 0x5b9   :  { %v12696_v42 = vpop.permute.xlu0 %2794  ;;  %3652 = vperm.xlu1 %9939, %v3634_v47   ;;  %v12716_v47 = vmul.f32 %v2405_v46, %v10429_v27  ;;  %v12734_v46 = vmul.f32 %v2489_v2, %v10515_v59  ;;  %v12750_v2 = vmul.f32 %v2497_v11, %v10524_v20  ;;  %v2568_v11 = vsel %vm403_vm3, %v12432_v29, %v12280_v31 }
 0x5ba   :  { %16040 = vst [vmem:[#allocation89_spill] sm:$0xff] %v12696_v42  ;;  %v12782_v45 = vmul.f32 %v2484_v58, %v10527_v23  ;;  %v2573_v15 = vsel %vm403_vm3, %v12274_v18, %v12434_v33  ;;  %v12793_v10 = vmul.f32 %v2569_v48, %v10610_v61  ;;  %v12806_v29 = vmul.f32 %v2572_v39, %v10594_v52 }
 0x5bb   :  { %3657 = vperm.xlu0 %9938, %v3635_v26   ;;  %v12726_v0 = vpop.permute.xlu1 %2808  ;;  %v3637_v26 = vld [vmem:[%s15689_s5 + $0x68] sm:$0xff]  ;;  %v12809_v48 = vmul.f32 %v2568_v11, %v10610_v61  ;;  %v12814_v60 = vmul.f32 %v2573_v15, %v10594_v52  ;;  %v2564_v33 = vsel %vm403_vm3, %v12280_v31, %v12440_v14  ;;  %v2577_v39 = vsel %vm403_vm3, %v12442_v57, %v12274_v18 }
 0x5bc   :  { %16041 = vst [vmem:[#allocation90_spill] sm:$0xff] %v12726_v0  ;;  %v2576_v15 = vsel %vm403_vm3, %v12440_v14, %v12272_v16 }
 0x5bd   :  { %v12759_v42 = vpop.permute.xlu0 %2810  ;;  %3662 = vperm.xlu1 %9939, %v3636_v53   ;;  %v3638_v53 = vld [vmem:[%s15689_s5 + $0x70] sm:$0xff] }
 0x5be   :  { %16042 = vst [vmem:[#allocation91_spill] sm:$0xff] %v12759_v42 }
 0x5bf   :  { %3667 = vperm.xlu0 %9938, %v3637_v26   ;;  %v2305_v42 = vpop.permute.xlu1 %2304 }
 0x5c0   :  { %v2334_v58 = vsel %vm97_vm0, %v12507_v49, %v2305_v42  ;;  %v2330_v57 = vsel %vm97_vm0, %v2305_v42, %v12515_v12 }
 0x5c1   :  { %v2307_v0 = vpop.permute.xlu0 %2306  ;;  %3672 = vperm.xlu1 %9939, %v3638_v53   ;;  %v3930_v53 = vld [vmem:[%s15689_s5 + $0x80] sm:$0xff]  ;;  %v2349_v31 = vmul.f32 %v2334_v58, %v16003_v4 }
 0x5c2   :  { %v2335_v11 = vsel %vm97_vm0, %v12509_v6, %v2307_v0  ;;  %v2331_v26 = vsel %vm97_vm0, %v2307_v0, %v12517_v30  ;;  %v16043_v0 = vld [vmem:[#allocation8_spill] sm:$0xff] }
 0x5c3   :  { %v2353_v18 = vmul.f32 %v2335_v11, %v16003_v4  ;;  %3677 = vperm.xlu0 %9938, %v3639_v38   ;;  %v2321_v35 = vpop.permute.xlu1 %2320  ;;  %v3931_v4 = vld [vmem:[%s15689_s5 + $0x88] sm:$0xff]  ;;  %v12855_v58 = vmul.f32 %v2577_v39, %v16043_v0  ;;  %v16044_v38 = vld [vmem:[#allocation56_spill] sm:$0xff] }
 0x5c4   :  { %v2326_v16 = vsel %vm97_vm0, %v12515_v12, %v2321_v35  ;;  %v2338_v14 = vsel %vm97_vm0, %v2321_v35, %v12507_v49  ;;  %v16045_v11 = vld [vmem:[#allocation40_spill] sm:$0xff]  ;;  %v16046_v35 = vld [vmem:[#allocation5_spill] sm:$0xff]  ;;  %v16048_v12 = vld [vmem:[#allocation7_spill] sm:$0xff] }
 0x5c5   :  { %v2668_v19 = vsel %vm521_vm4, %v16045_v11, %v16044_v38  ;;  %v2323_v43 = vpop.permute.xlu0 %2322  ;;  %3940 = vperm.xlu1 %9939, %v3930_v53   ;;  %v2361_v5 = vpack.c.bf16 %v2353_v18, %v2349_v31  ;;  %v2354_v49 = vmul.f32 %v2331_v26, %v16046_v35  ;;  %v2348_v13 = vmul.f32 %v2338_v14, %v16047_v17 }
 0x5c6   :  { %v2327_v39 = vsel %vm97_vm0, %v12517_v30, %v2323_v43  ;;  %v2339_v37 = vsel %vm97_vm0, %v2323_v43, %v12509_v6  ;;  %v2351_v42 = vmul.f32 %v2326_v16, %v16048_v12  ;;  %v12879_v18 = vmul.f32 %v2576_v15, %v16043_v0  ;;  %v16049_v30 = vld [vmem:[#allocation9_spill] sm:$0xff]  ;;  %v3933_v6 = vld [vmem:[%s15689_s5 + $0x98] sm:$0xff]  ;;  %v16050_v16 = vld [vmem:[#allocation68_spill] sm:$0xff] }
 0x5c7   :  { %v2352_v53 = vmul.f32 %v2339_v37, %v16047_v17  ;;  %v2355_v26 = vmul.f32 %v2327_v39, %v16048_v12  ;;  %3945 = vperm.xlu0 %9938, %v3931_v4   ;;  %3092 = vmatprep.subr.bf16.mxu0 %v2361_v5  ;;  %v2385_v31 = vpop.permute.xlu1 %2384  ;;  %v12882_v14 = vmul.f32 %v2564_v33, %v16049_v30  ;;  %v16051_v39 = vld [vmem:[#allocation38_spill] sm:$0xff] }
 0x5c8   :  { %v12885_v43 = vmul.f32 %v2565_v32, %v16049_v30  ;;  %v2350_v17 = vmul.f32 %v2330_v57, %v16046_v35  ;;  %v2414_v15 = vsel %vm199_vm1, %v16050_v16, %v2385_v31  ;;  %v2664_v12 = vsel %vm521_vm4, %v16044_v38, %v16051_v39  ;;  %v16053_v57 = vld [vmem:[#allocation69_spill] sm:$0xff]  ;;  %v16056_v32 = vld [vmem:[#allocation55_spill] sm:$0xff] }
 0x5c9   :  { %v2360_v5 = vpack.c.bf16 %v2352_v53, %v2348_v13  ;;  %v2387_v4 = vpop.permute.xlu0 %2386  ;;  %3950 = vperm.xlu1 %9939, %v3932_v50   ;;  %v2363_v33 = vpack.c.bf16 %v2355_v26, %v2351_v42  ;;  %v12903_v37 = vmul.f32 %v2668_v19, %v16052_v36  ;;  %v3934_v50 = vld [vmem:[%s15689_s5 + $0xa0] sm:$0xff]  ;;  %v16054_v42 = vld [vmem:[#allocation71_spill] sm:$0xff]  ;;  %v2429_v55 = vmul.f32 %v2414_v15, %v10399_v56 }
 0x5ca   :  { %v2415_v13 = vsel %vm199_vm1, %v16053_v57, %v2387_v4  ;;  %v2362_v35 = vpack.c.bf16 %v2354_v49, %v2350_v17  ;;  %v2411_v53 = vsel %vm199_vm1, %v2387_v4, %v16054_v42  ;;  %v16055_v19 = vld [vmem:[#allocation48_spill] sm:$0xff]  ;;  %v16057_v17 = vpack.c.bf16 %v12657_v40, %v12670_v41 }
 0x5cb   :  { %v2433_v26 = vmul.f32 %v2415_v13, %v10399_v56  ;;  %3955 = vperm.xlu0 %9938, %v3933_v6   ;;  %3093 = vmatpush1.bf16.msra.mxu0 %v2360_v5  ;;  %v2401_v38 = vpop.permute.xlu1 %2400  ;;  %v2665_v3 = vsel %vm521_vm4, %v16056_v32, %v16055_v19  ;;  %v3935_v6 = vld [vmem:[%s15689_s5 + $0xa8] sm:$0xff]  ;;  %v16058_v5 = vld [vmem:[#allocation46_spill] sm:$0xff]  ;;  %v2434_v40 = vmul.f32 %v2411_v53, %v10415_v63 }
 0x5cc   :  { %3198 = vmatprep.subr.bf16.mxu1 %v2363_v33  ;;  %v2418_v49 = vsel %vm199_vm1, %v2401_v38, %v16050_v16  ;;  %3094 = vmatprep.subr.bf16.mxu0 %v16057_v17  ;;  %v2669_v4 = vsel %vm521_vm4, %v16058_v5, %v16056_v32  ;;  %v16059_v13 = vld [vmem:[#allocation70_spill] sm:$0xff]  ;;  %v16062_v17 = vld [vmem:[#allocation11_spill] sm:$0xff] }
 0x5cd   :  { %v2410_v56 = vsel %vm199_vm1, %v2385_v31, %v16059_v13  ;;  %v2406_v16 = vsel %vm199_vm1, %v16059_v13, %v2401_v38  ;;  %3199 = vmatpush1.bf16.msra.mxu1 %v2362_v35  ;;  %v2403_v41 = vpop.permute.xlu0 %2402  ;;  %3960 = vperm.xlu1 %9939, %v3934_v50   ;;  %v16060_v31 = vpack.c.bf16 %v12716_v47, %v12702_v22  ;;  %v3936_v35 = vld [vmem:[%s15689_s5 + $0xb0] sm:$0xff] }
 0x5ce   :  { %v2407_v15 = vsel %vm199_vm1, %v16054_v42, %v2403_v41  ;;  %v2419_v33 = vsel %vm199_vm1, %v2403_v41, %v16053_v57  ;;  %v2441_v32 = vpack.c.bf16 %v2433_v26, %v2429_v55  ;;  %v2428_v50 = vmul.f32 %v2418_v49, %v10425_v25  ;;  %v16063_v49 = vld [vmem:[#allocation72_spill] sm:$0xff]  ;;  %v16065_v13 = vld [vmem:[#allocation42_spill] sm:$0xff] }
 0x5cf   :  { %3200 = vmatprep.subr.bf16.mxu1 %v16060_v31  ;;  %v2432_v53 = vmul.f32 %v2419_v33, %v10425_v25  ;;  %v2435_v38 = vmul.f32 %v2407_v15, %v10429_v27  ;;  %3965 = vperm.xlu0 %9938, %v3935_v6   ;;  %v16061_v42 = vpack.c.bf16 %v12686_v7, %v12699_v54  ;;  %v2465_v57 = vpop.permute.xlu1 %2464  ;;  %v3937_v25 = vld [vmem:[%s15689_s5 + $0xb8] sm:$0xff] }
 0x5d0   :  { %v12959_v22 = vmul.f32 %v2664_v12, %v16062_v17  ;;  %v12962_v55 = vmul.f32 %v2669_v4, %v16052_v36  ;;  %v2431_v47 = vmul.f32 %v2406_v16, %v10429_v27  ;;  %v2599_v26 = vpack.c.bf16 %v12885_v43, %v12882_v14  ;;  %v16067_v15 = vld [vmem:[#allocation75_spill] sm:$0xff]  ;;  %v16084_v14 = vld [vmem:[#allocation4_spill] sm:$0xff] }
 0x5d1   :  { %3095 = vmatpush1.bf16.msra.mxu0 %v16061_v42  ;;  %v2430_v54 = vmul.f32 %v2410_v56, %v10415_v63  ;;  %v2440_v7 = vpack.c.bf16 %v2432_v53, %v2428_v50  ;;  %v2494_v12 = vsel %vm301_vm2, %v16063_v49, %v2465_v57  ;;  %v16064_v6 = vpack.c.bf16 %v12632_v44, %v12654_v8  ;;  %v2467_v27 = vpop.permute.xlu0 %2466  ;;  %v16066_v63 = vld [vmem:[#allocation73_spill] sm:$0xff]  ;;  %v4228_v44 = vld [vmem:[%s15689_s5 + $0xc0] sm:$0xff] }
 0x5d2   :  { %3096 = vmatprep.subr.bf16.mxu0 %v2441_v32  ;;  %3970 = vperm.xlu1 %9939, %v3936_v35   ;;  %v12978_v4 = vmul.f32 %v2665_v3, %v16062_v17  ;;  %v2660_v16 = vsel %vm521_vm4, %v16051_v39, %v16065_v13  ;;  %v2495_v56 = vsel %vm301_vm2, %v16066_v63, %v2467_v27  ;;  %v4229_v50 = vld [vmem:[%s15689_s5 + $0xc8] sm:$0xff]  ;;  %v16085_v43 = vld [vmem:[#allocation32_spill] sm:$0xff] }
 0x5d3   :  { %3201 = vmatpush1.bf16.msra.mxu1 %v16064_v6  ;;  %v2443_v41 = vpack.c.bf16 %v2435_v38, %v2431_v47  ;;  %v2442_v8 = vpack.c.bf16 %v2434_v40, %v2430_v54  ;;  %v2491_v3 = vsel %vm301_vm2, %v2467_v27, %v16067_v15  ;;  %v2513_v33 = vmul.f32 %v2495_v56, %v10500_v51  ;;  %v2481_v31 = vpop.permute.xlu1 %2480  ;;  %v16069_v38 = vld [vmem:[#allocation74_spill] sm:$0xff]  ;;  %v16074_v56 = vld [vmem:[#allocation41_spill] sm:$0xff] }
 0x5d4   :  { %3975 = vperm.xlu0 %9938, %v3937_v25   ;;  %v2672_v39 = vsel %vm521_vm4, %v16065_v13, %v16045_v11  ;;  %v2509_v32 = vmul.f32 %v2494_v12, %v10500_v51  ;;  %v2498_v40 = vsel %vm301_vm2, %v2481_v31, %v16063_v49  ;;  %v16068_v35 = vpack.c.bf16 %v12731_v28, %v12762_v62  ;;  %v4230_v54 = vld [vmem:[%s15689_s5 + $0xd0] sm:$0xff]  ;;  %v16072_v13 = vld [vmem:[#allocation12_spill] sm:$0xff] }
 0x5d5   :  { %3097 = vmatpush1.bf16.msra.mxu0 %v2440_v7  ;;  %3202 = vmatprep.subr.bf16.mxu1 %v2443_v41  ;;  %v2692_v53 = vpack.c.bf16 %v12962_v55, %v12903_v37  ;;  %v2490_v51 = vsel %vm301_vm2, %v2465_v57, %v16069_v38  ;;  %v2486_v11 = vsel %vm301_vm2, %v16069_v38, %v2481_v31  ;;  %v2483_v42 = vpop.permute.xlu0 %2482  ;;  %v16133_v55 = vld [vmem:[#allocation86_spill] sm:$0xff] }
 0x5d6   :  { %3098 = vmatprep.subr.bf16.mxu0 %v16068_v35  ;;  %4238 = vperm.xlu1 %9939, %v4228_v44   ;;  %v2514_v28 = vmul.f32 %v2491_v3, %v10515_v59  ;;  %v2487_v62 = vsel %vm301_vm2, %v16067_v15, %v2483_v42  ;;  %v2499_v47 = vsel %vm301_vm2, %v2483_v42, %v16066_v63  ;;  %v4233_v42 = vld [vmem:[%s15689_s5 + $0xe8] sm:$0xff] }
 0x5d7   :  { %3203 = vmatpush1.bf16.msra.mxu1 %v2442_v8  ;;  %v16070_v57 = vpack.c.bf16 %v12753_v9, %v12782_v45  ;;  %v2521_v25 = vpack.c.bf16 %v2513_v33, %v2509_v32  ;;  %v2508_v7 = vmul.f32 %v2498_v40, %v10524_v20  ;;  %v2512_v49 = vmul.f32 %v2499_v47, %v10524_v20  ;;  %v2545_v27 = vpop.permute.xlu1 %2544  ;;  %v16073_v45 = vld [vmem:[#allocation13_spill] sm:$0xff] }
 0x5d8   :  { %v2515_v12 = vmul.f32 %v2487_v62, %v10527_v23  ;;  %4243 = vperm.xlu0 %9938, %v4229_v50   ;;  %v16071_v6 = vpack.c.bf16 %v12750_v2, %v12779_v1  ;;  %v13036_v9 = vmul.f32 %v2660_v16, %v16072_v13  ;;  %v13039_v63 = vmul.f32 %v2672_v39, %v16073_v45  ;;  %v4231_v2 = vld [vmem:[%s15689_s5 + $0xd8] sm:$0xff]  ;;  %v16075_v16 = vld [vmem:[#allocation76_spill] sm:$0xff]  ;;  %v16078_v33 = vld [vmem:[#allocation77_spill] sm:$0xff] }
 0x5d9   :  { %3204 = vmatprep.subr.bf16.mxu1 %v16070_v57  ;;  %v2661_v41 = vsel %vm521_vm4, %v16055_v19, %v16074_v56  ;;  %v2511_v20 = vmul.f32 %v2486_v11, %v10527_v23  ;;  %v2510_v1 = vmul.f32 %v2490_v51, %v10515_v59  ;;  %v2520_v44 = vpack.c.bf16 %v2512_v49, %v2508_v7  ;;  %v2547_v3 = vpop.permute.xlu0 %2546  ;;  %v16077_v19 = vld [vmem:[#allocation79_spill] sm:$0xff]  ;;  %v16079_v50 = vld [vmem:[#allocation78_spill] sm:$0xff]  ;;  %v16082_v62 = vld [vmem:[#allocation33_spill] sm:$0xff] }
 0x5da   :  { %3099 = vmatpush1.bf16.msra.mxu0 %v16071_v6  ;;  %v2574_v8 = vsel %vm403_vm3, %v16075_v16, %v2545_v27  ;;  %v16076_v15 = vpack.c.bf16 %v12734_v46, %v12765_v34  ;;  %4248 = vperm.xlu1 %9939, %v4230_v54   ;;  %v2673_v23 = vsel %vm521_vm4, %v16074_v56, %v16058_v5  ;;  %v4232_v46 = vld [vmem:[%s15689_s5 + $0xe0] sm:$0xff]  ;;  %v4234_v49 = vld [vmem:[%s15689_s5 + $0xf0] sm:$0xff] }
 0x5db   :  { %3100 = vmatprep.subr.bf16.mxu0 %v2521_v25  ;;  %v2571_v59 = vsel %vm403_vm3, %v2547_v3, %v16077_v19  ;;  %v2575_v31 = vsel %vm403_vm3, %v16078_v33, %v2547_v3  ;;  %v2523_v39 = vpack.c.bf16 %v2515_v12, %v2511_v20  ;;  %v13070_v34 = vmul.f32 %v2661_v41, %v16072_v13  ;;  %v2561_v5 = vpop.permute.xlu1 %2560  ;;  %v16086_v20 = vld [vmem:[#allocation27_spill] sm:$0xff] }
 0x5dc   :  { %3205 = vmatpush1.bf16.msra.mxu1 %v16076_v15  ;;  %v2522_v32 = vpack.c.bf16 %v2514_v28, %v2510_v1  ;;  %v2593_v40 = vmul.f32 %v2575_v31, %v10594_v52  ;;  %4253 = vperm.xlu0 %9938, %v4231_v2   ;;  %v2589_v35 = vmul.f32 %v2574_v8, %v10594_v52  ;;  %v16081_v28 = vld [vmem:[#allocation59_spill] sm:$0xff] }
 0x5dd   :  { %3206 = vmatprep.subr.bf16.mxu1 %v2523_v39  ;;  %v2566_v38 = vsel %vm403_vm3, %v16079_v50, %v2561_v5  ;;  %v2578_v51 = vsel %vm403_vm3, %v2561_v5, %v16075_v16  ;;  %v16080_v11 = vpack.c.bf16 %v12814_v60, %v12806_v29  ;;  %v2749_v52 = vsel %vm623_vm5, %v16082_v62, %v16081_v28  ;;  %v2563_v25 = vpop.permute.xlu0 %2562  ;;  %v16092_v5 = vld [vmem:[#allocation15_spill] sm:$0xff] }
 0x5de   :  { %3101 = vmatpush1.bf16.msra.mxu0 %v2520_v44  ;;  %v2570_v47 = vsel %vm403_vm3, %v2545_v27, %v16079_v50  ;;  %v2594_v57 = vmul.f32 %v2571_v59, %v10610_v61  ;;  %4258 = vperm.xlu1 %9939, %v4232_v46   ;;  %v2588_v60 = vmul.f32 %v2578_v51, %v16043_v0  ;;  %v16089_v59 = vld [vmem:[#allocation26_spill] sm:$0xff]  ;;  %v16093_v50 = vld [vmem:[#allocation16_spill] sm:$0xff]  ;;  %v16094_v51 = vld [vmem:[#allocation53_spill] sm:$0xff] }
 0x5df   :  { %3102 = vmatprep.subr.bf16.mxu0 %v16080_v11  ;;  %v2567_v29 = vsel %vm403_vm3, %v16077_v19, %v2563_v25  ;;  %v2579_v54 = vsel %vm403_vm3, %v2563_v25, %v16078_v33  ;;  %v2601_v7 = vpack.c.bf16 %v2593_v40, %v2589_v35  ;;  %v2591_v12 = vmul.f32 %v2566_v38, %v16049_v30  ;;  %v13113_v41 = vpop.permute.xlu1 %2884  ;;  %v16090_v33 = vld [vmem:[#allocation14_spill] sm:$0xff] }
 0x5e0   :  { %3207 = vmatpush1.bf16.msra.mxu1 %v2522_v32  ;;  %v2592_v6 = vmul.f32 %v2579_v54, %v16043_v0  ;;  %v2595_v27 = vmul.f32 %v2567_v29, %v16049_v30  ;;  %4263 = vperm.xlu0 %9938, %v4233_v42   ;;  %v16083_v56 = vpack.c.bf16 %v12855_v58, %v12879_v18  ;;  %v16087_v0 = vld [vmem:[#allocation61_spill] sm:$0xff]  ;;  %v4235_v58 = vld [vmem:[%s15689_s5 + $0xf8] sm:$0xff] }
 0x5e1   :  { %3208 = vmatprep.subr.bf16.mxu1 %v2599_v26  ;;  %v2748_v26 = vsel %vm623_vm5, %v16085_v43, %v16084_v14  ;;  %v2745_v2 = vsel %vm623_vm5, %v16081_v28, %v16086_v20  ;;  %v2741_v30 = vsel %vm623_vm5, %v16086_v20, %v16087_v0  ;;  %v2693_v18 = vpack.c.bf16 %v12978_v4, %v12959_v22  ;;  %v13136_v8 = vpop.permute.xlu0 %2886  ;;  %v4527_v42 = vld [vmem:[%s15689_s5 + $0x108] sm:$0xff]  ;;  %v16105_v20 = vld [vmem:[#allocation28_spill] sm:$0xff] }
 0x5e2   :  { %3103 = vmatpush1.bf16.msra.mxu0 %v16083_v56  ;;  %v2590_v1 = vmul.f32 %v2570_v47, %v10610_v61  ;;  %v2600_v44 = vpack.c.bf16 %v2592_v6, %v2588_v60  ;;  %v16088_v16 = vpack.c.bf16 %v12793_v10, %v12809_v48  ;;  %4268 = vperm.xlu1 %9939, %v4234_v49   ;;  %v4526_v10 = vld [vmem:[%s15689_s5 + $0x100] sm:$0xff]  ;;  %v16097_v47 = vld [vmem:[#allocation45_spill] sm:$0xff]  ;;  %v16103_v56 = vld [vmem:[#allocation51_spill] sm:$0xff] }
 0x5e3   :  { %3104 = vmatprep.subr.bf16.mxu0 %v2601_v7  ;;  %v2603_v15 = vpack.c.bf16 %v2595_v27, %v2591_v12  ;;  %v13139_v3 = vmul.f32 %v2673_v23, %v16073_v45  ;;  %v2694_v19 = vpack.c.bf16 %v13070_v34, %v13036_v9  ;;  %v2744_v61 = vsel %vm623_vm5, %v16084_v14, %v16089_v59  ;;  %v16091_v48 = vld [vmem:[#allocation60_spill] sm:$0xff]  ;;  %v2641_v32 = vpop.permute.xlu1 %2640  ;;  %v16098_v60 = vld [vmem:[#allocation17_spill] sm:$0xff]  ;;  %v16100_v7 = vld [vmem:[#allocation62_spill] sm:$0xff] }
 0x5e4   :  { %3209 = vmatpush1.bf16.msra.mxu1 %v16088_v16  ;;  %v13148_v31 = vmul.f32 %v2749_v52, %v16090_v33  ;;  %v2740_v23 = vsel %vm623_vm5, %v16089_v59, %v16091_v48  ;;  %v2753_v39 = vsel %vm623_vm5, %v16087_v0, %v16082_v62  ;;  %v2602_v46 = vpack.c.bf16 %v2594_v57, %v2590_v1  ;;  %v16096_v52 = vld [vmem:[#allocation63_spill] sm:$0xff]  ;;  %v16099_v54 = vld [vmem:[#allocation37_spill] sm:$0xff]  ;;  %v16102_v27 = vld [vmem:[#allocation44_spill] sm:$0xff] }
 0x5e5   :  { %4273 = vperm.xlu0 %9938, %v4235_v58   ;;  %v13162_v40 = vmul.f32 %v2748_v26, %v16090_v33  ;;  %v13165_v35 = vmul.f32 %v2745_v2, %v16092_v5  ;;  %v13168_v38 = vmul.f32 %v2741_v30, %v16093_v50  ;;  %3210 = vmatprep.subr.bf16.mxu1 %v2603_v15  ;;  %v16101_v12 = vld [vmem:[#allocation39_spill] sm:$0xff]  ;;  %v16106_v30 = vld [vmem:[#allocation36_spill] sm:$0xff]  ;;  %v16107_v58 = vld [vmem:[#allocation49_spill] sm:$0xff] }
 0x5e6   :  { %3105 = vmatpush1.bf16.msra.mxu0 %v2600_v44  ;;  %v16095_v11 = vpack.c.bf16 %v12142_v21, %v16094_v51  ;;  %v13177_v28 = vmul.f32 %v2744_v61, %v16092_v5  ;;  %v2752_v62 = vsel %vm623_vm5, %v16091_v48, %v16085_v43  ;;  %v2829_v57 = vsel %vm725_vm6, %v16097_v47, %v16096_v52  ;;  %v13187_v21 = vpop.permute.xlu0 %2894  ;;  %v4528_v43 = vld [vmem:[%s15689_s5 + $0x110] sm:$0xff]  ;;  %v16111_v48 = vld [vmem:[#allocation35_spill] sm:$0xff]  ;;  %v16137_v9 = vld [vmem:[#allocation84_spill] sm:$0xff] }
 0x5e7   :  { %4536 = vperm.xlu1 %9939, %v4526_v10   ;;  %v13190_v25 = vmul.f32 %v2740_v23, %v16093_v50  ;;  %v13193_v29 = vmul.f32 %v2753_v39, %v16098_v60  ;;  %v2824_v49 = vsel %vm725_vm6, %v16100_v7, %v16099_v54  ;;  %v2828_v6 = vsel %vm725_vm6, %v16101_v12, %v16100_v7  ;;  %v2657_v0 = vpop.permute.xlu1 %2656  ;;  %v16109_v59 = vld [vmem:[#allocation18_spill] sm:$0xff]  ;;  %v16110_v10 = vld [vmem:[#allocation47_spill] sm:$0xff] }
 0x5e8   :  { %3106 = vmatprep.subr.bf16.mxu0 %v16095_v11  ;;  %3211 = vmatpush1.bf16.msra.mxu1 %v2602_v46  ;;  %v16104_v14 = vpack.c.bf16 %v16102_v27, %v16103_v56  ;;  %v2772_v26 = vpack.c.bf16 %v13148_v31, %v13162_v40  ;;  %v2825_v2 = vsel %vm725_vm6, %v16096_v52, %v16105_v20  ;;  %v4529_v39 = vld [vmem:[%s15689_s5 + $0x118] sm:$0xff]  ;;  %v16114_v11 = vld [vmem:[#allocation82_spill] sm:$0xff] }
 0x5e9   :  { %4541 = vperm.xlu0 %9938, %v4527_v42   ;;  %v16108_v1 = vpack.c.bf16 %v16106_v30, %v16107_v58  ;;  %v2695_v44 = vpack.c.bf16 %v13139_v3, %v13039_v63  ;;  %v13221_v16 = vmul.f32 %v2752_v62, %v16098_v60  ;;  %v13226_v61 = vmul.f32 %v2829_v57, %v16109_v59  ;;  %v16113_v46 = vld [vmem:[#allocation19_spill] sm:$0xff]  ;;  %v16115_v62 = vld [vmem:[#allocation50_spill] sm:$0xff]  ;;  %v16120_v30 = vld [vmem:[#allocation57_spill] sm:$0xff] }
 0x5ea   :  { %3212 = vmatprep.subr.bf16.mxu1 %v16104_v14  ;;  %v16112_v23 = vpack.c.bf16 %v16110_v10, %v16111_v48  ;;  %v2773_v63 = vpack.c.bf16 %v13165_v35, %v13177_v28  ;;  %v13237_v3 = vmul.f32 %v2828_v6, %v16109_v59  ;;  %v13240_v51 = vmul.f32 %v2824_v49, %v16113_v46  ;;  %v16116_v52 = vld [vmem:[#allocation43_spill] sm:$0xff]  ;;  %v2643_v7 = vpop.permute.xlu0 %2642  ;;  %v16119_v14 = vld [vmem:[#allocation81_spill] sm:$0xff]  ;;  %v16121_v58 = vld [vmem:[#allocation58_spill] sm:$0xff] }
 0x5eb   :  { %3107 = vmatpush1.bf16.msra.mxu0 %v16108_v1  ;;  %v2666_v42 = vsel %vm521_vm4, %v2641_v32, %v16114_v11  ;;  %v16117_v57 = vpack.c.bf16 %v16115_v62, %v16116_v52  ;;  %4546 = vperm.xlu1 %9939, %v4528_v43   ;;  %v13249_v27 = vmul.f32 %v2825_v2, %v16113_v46  ;;  %v16118_v56 = vld [vmem:[#allocation83_spill] sm:$0xff]  ;;  %v4530_v10 = vld [vmem:[%s15689_s5 + $0x120] sm:$0xff] }
 0x5ec   :  { %3108 = vmatprep.subr.bf16.mxu0 %v16112_v23  ;;  %v2667_v6 = vsel %vm521_vm4, %v2643_v7, %v16118_v56  ;;  %v2671_v49 = vsel %vm521_vm4, %v16119_v14, %v2643_v7  ;;  %v16122_v1 = vpack.c.bf16 %v16120_v30, %v16121_v58  ;;  %v2775_v43 = vpack.c.bf16 %v13193_v29, %v13221_v16  ;;  %v16123_v2 = vld [vmem:[#allocation64_spill] sm:$0xff]  ;;  %v16125_v7 = vld [vmem:[#allocation54_spill] sm:$0xff] }
 0x5ed   :  { %3213 = vmatpush1.bf16.msra.mxu1 %v16117_v57  ;;  %v2820_v48 = vsel %vm725_vm6, %v16099_v54, %v16123_v2  ;;  %v16124_v23 = vld [vmem:[#allocation80_spill] sm:$0xff]  ;;  %v2689_v52 = vmul.f32 %v2667_v6, %v16062_v17  ;;  %4551 = vperm.xlu0 %9938, %v4529_v39   ;;  %v2721_v57 = vpop.permute.xlu1 %2720  ;;  %v2832_v54 = vsel %vm725_vm6, %v16123_v2, %v16101_v12  ;;  %v4531_v39 = vld [vmem:[%s15689_s5 + $0x128] sm:$0xff]  ;;  %v16139_v29 = vld [vmem:[#allocation34_spill] sm:$0xff] }
 0x5ee   :  { %3214 = vmatprep.subr.bf16.mxu1 %v16122_v1  ;;  %v2670_v62 = vsel %vm521_vm4, %v16124_v23, %v2641_v32  ;;  %v16126_v30 = vld [vmem:[#allocation52_spill] sm:$0xff]  ;;  %v2852_v1 = vpack.c.bf16 %v13226_v61, %v13237_v3  ;;  %v2685_v15 = vmul.f32 %v2666_v42, %v16062_v17  ;;  %v2662_v32 = vsel %vm521_vm4, %v16114_v11, %v2657_v0  ;;  %v16128_v6 = vld [vmem:[#allocation65_spill] sm:$0xff]  ;;  %v16129_v11 = vld [vmem:[#allocation31_spill] sm:$0xff]  ;;  %v2659_v22 = vpop.permute.xlu0 %2658 }
 0x5ef   :  { %v16127_v58 = vpack.c.bf16 %v16125_v7, %v16126_v30  ;;  %v2821_v7 = vsel %vm725_vm6, %v16105_v20, %v16128_v6  ;;  %v2674_v17 = vsel %vm521_vm4, %v2657_v0, %v16124_v23  ;;  %v2688_v12 = vmul.f32 %v2671_v49, %v16052_v36  ;;  %v16130_v42 = vld [vmem:[#allocation30_spill] sm:$0xff]  ;;  %4556 = vperm.xlu1 %9939, %v4530_v10   ;;  %v16134_v30 = vld [vmem:[#allocation21_spill] sm:$0xff] }
 0x5f0   :  { %v16131_v2 = vpack.c.bf16 %v16129_v11, %v16130_v42  ;;  %v2684_v4 = vmul.f32 %v2670_v62, %v16052_v36  ;;  %v2675_v20 = vsel %vm521_vm4, %v2659_v22, %v16119_v14  ;;  %v2697_v0 = vpack.c.bf16 %v2689_v52, %v2685_v15  ;;  %v4532_v49 = vld [vmem:[%s15689_s5 + $0x130] sm:$0xff]  ;;  %v4533_v52 = vld [vmem:[%s15689_s5 + $0x138] sm:$0xff] }
 0x5f1   :  { %3109 = vmatpush1.bf16.msra.mxu0 %v16127_v58  ;;  %v2686_v23 = vmul.f32 %v2662_v32, %v16072_v13  ;;  %v2691_v36 = vmul.f32 %v2675_v20, %v16073_v45  ;;  %4561 = vperm.xlu0 %9938, %v4531_v39   ;;  %v2737_v62 = vpop.permute.xlu1 %2736  ;;  %v13340_v58 = vmul.f32 %v2832_v54, %v16134_v30  ;;  %v16136_v39 = vld [vmem:[#allocation85_spill] sm:$0xff] }
 0x5f2   :  { %3110 = vmatprep.subr.bf16.mxu0 %v2693_v18  ;;  %3215 = vmatpush1.bf16.msra.mxu1 %v16131_v2  ;;  %v2663_v18 = vsel %vm521_vm4, %v16118_v56, %v2659_v22  ;;  %v16132_v56 = vld [vmem:[#allocation20_spill] sm:$0xff]  ;;  %v2696_v37 = vpack.c.bf16 %v2688_v12, %v2684_v4  ;;  %v2750_v34 = vsel %vm623_vm5, %v16137_v9, %v2721_v57 }
 0x5f3   :  { %3216 = vmatprep.subr.bf16.mxu1 %v2695_v44  ;;  %v2690_v10 = vmul.f32 %v2663_v18, %v16072_v13  ;;  %v13320_v14 = vmul.f32 %v2820_v48, %v16132_v56  ;;  %v2833_v44 = vsel %vm725_vm6, %v16128_v6, %v16097_v47  ;;  %v13327_v15 = vmul.f32 %v2821_v7, %v16132_v56  ;;  %v2723_v47 = vpop.permute.xlu0 %2722  ;;  %v4826_v18 = vld [vmem:[%s15689_s5 + $0x150] sm:$0xff] }
 0x5f4   :  { %v2687_v13 = vmul.f32 %v2674_v17, %v16073_v45  ;;  %4566 = vperm.xlu1 %9939, %v4532_v49   ;;  %v16135_v45 = vld [vmem:[#allocation87_spill] sm:$0xff]  ;;  %v2751_v6 = vsel %vm623_vm5, %v16136_v39, %v2723_v47  ;;  %v4824_v17 = vld [vmem:[%s15689_s5 + $0x140] sm:$0xff]  ;;  %v2853_v12 = vpack.c.bf16 %v13249_v27, %v13240_v51  ;;  %v13358_v11 = vmul.f32 %v2833_v44, %v16134_v30 }
 0x5f5   :  { %3111 = vmatpush1.bf16.msra.mxu0 %v2692_v53  ;;  %v2746_v53 = vsel %vm623_vm5, %v2721_v57, %v16133_v55  ;;  %v2698_v48 = vpack.c.bf16 %v2690_v10, %v2686_v23  ;;  %v2747_v32 = vsel %vm623_vm5, %v2723_v47, %v16135_v45  ;;  %4571 = vperm.xlu0 %9938, %v4533_v52   ;;  %v2801_v54 = vpop.permute.xlu1 %2800  ;;  %v4825_v57 = vld [vmem:[%s15689_s5 + $0x148] sm:$0xff]  ;;  %v16138_v23 = vld [vmem:[#allocation67_spill] sm:$0xff] }
 0x5f6   :  { %3112 = vmatprep.subr.bf16.mxu0 %v2697_v0  ;;  %3217 = vmatpush1.bf16.msra.mxu1 %v2694_v19  ;;  %v2699_v7 = vpack.c.bf16 %v2691_v36, %v2687_v13  ;;  %v2769_v19 = vmul.f32 %v2747_v32, %v16092_v5  ;;  %v2765_v42 = vmul.f32 %v2746_v53, %v16092_v5  ;;  %v4827_v10 = vld [vmem:[%s15689_s5 + $0x158] sm:$0xff] }
 0x5f7   :  { %v2742_v2 = vsel %vm623_vm5, %v16133_v55, %v2737_v62  ;;  %v2854_v51 = vpack.c.bf16 %v13327_v15, %v13320_v14  ;;  %v2754_v5 = vsel %vm623_vm5, %v2737_v62, %v16137_v9  ;;  %v2768_v27 = vmul.f32 %v2751_v6, %v16090_v33  ;;  %v2739_v22 = vpop.permute.xlu0 %2738  ;;  %v16143_v55 = vld [vmem:[#allocation91_spill] sm:$0xff]  ;;  %v9956_v15 = vld [vmem:[%s15687_s2 + $0x60] ss:$12 sps:$4 sm:$0xff]  }
 0x5f8   :  { %3218 = vmatprep.subr.bf16.mxu1 %v2699_v7  ;;  %4834 = vperm.xlu1 %9939, %v4824_v17   ;;  %v2764_v4 = vmul.f32 %v2750_v34, %v16090_v33  ;;  %v2743_v35 = vsel %vm623_vm5, %v16135_v45, %v2739_v22  ;;  %v2755_v28 = vsel %vm623_vm5, %v2739_v22, %v16136_v39  ;;  %v16146_v17 = vld [vmem:[#allocation88_spill] sm:$0xff]  ;;  %v4829_v34 = vld [vmem:[%s15689_s5 + $0x168] sm:$0xff] }
 0x5f9   :  { %3113 = vmatpush1.bf16.msra.mxu0 %v2696_v37  ;;  %v2766_v20 = vmul.f32 %v2742_v2, %v16093_v50  ;;  %v2770_v33 = vmul.f32 %v2743_v35, %v16093_v50  ;;  %v2771_v0 = vmul.f32 %v2755_v28, %v16098_v60  ;;  %4839 = vperm.xlu0 %9938, %v4825_v57   ;;  %v2817_v49 = vpop.permute.xlu1 %2816 }
 0x5fa   :  { %3114 = vmatprep.subr.bf16.mxu0 %v2773_v63  ;;  %3219 = vmatpush1.bf16.msra.mxu1 %v2698_v48  ;;  %v2777_v63 = vpack.c.bf16 %v2769_v19, %v2765_v42  ;;  %v2909_v16 = vsel %vm827_vm7, %v16139_v29, %v16138_v23  ;;  %v2767_v50 = vmul.f32 %v2754_v5, %v16098_v60  ;;  %v16142_v60 = vld [vmem:[#allocation66_spill] sm:$0xff]  ;;  %v16147_v42 = vld [vmem:[#allocation29_spill] sm:$0xff] }
 0x5fb   :  { %3220 = vmatprep.subr.bf16.mxu1 %v2775_v43  ;;  %v2905_v43 = vsel %vm827_vm7, %v16138_v23, %v13136_v8  ;;  %v2855_v31 = vpack.c.bf16 %v13358_v11, %v13340_v58  ;;  %v2776_v40 = vpack.c.bf16 %v2768_v27, %v2764_v4  ;;  %v2778_v62 = vpack.c.bf16 %v2770_v33, %v2766_v20  ;;  %v2803_v13 = vpop.permute.xlu0 %2802  ;;  %v16145_v58 = vld [vmem:[#allocation89_spill] sm:$0xff]  ;;  %v4830_v27 = vld [vmem:[%s15689_s5 + $0x170] sm:$0xff]  ;;  %v4831_v33 = vld [vmem:[%s15689_s5 + $0x178] sm:$0xff] }
 0x5fc   :  { %v16141_v44 = vpack.c.bf16 %v13168_v38, %v13190_v25  ;;  %4844 = vperm.xlu1 %9939, %v4826_v18   ;;  %v2904_v52 = vsel %vm827_vm7, %v16142_v60, %v13113_v41  ;;  %v2827_v53 = vsel %vm725_vm6, %v2803_v13, %v16143_v55  ;;  %v2779_v48 = vpack.c.bf16 %v2771_v0, %v2767_v50  ;;  %v4828_v38 = vld [vmem:[%s15689_s5 + $0x160] sm:$0xff]  ;;  %v16144_v25 = vld [vmem:[#allocation23_spill] sm:$0xff]  ;;  %v16148_v20 = vld [vmem:[#allocation25_spill] sm:$0xff] }
 0x5fd   :  { %3115 = vmatpush1.bf16.msra.mxu0 %v2772_v26  ;;  %v16140_v26 = vld [vmem:[#allocation90_spill] sm:$0xff]  ;;  %v2921_v47 = vmul.f32 %v2905_v43, %v16144_v25  ;;  %v2831_v45 = vsel %vm725_vm6, %v16145_v58, %v2803_v13  ;;  %v2849_v32 = vmul.f32 %v2827_v53, %v16113_v46  ;;  %4849 = vperm.xlu0 %9938, %v4827_v10   ;;  %v2893_v39 = vpop.permute.xlu1 %2892  ;;  %v16150_v43 = vld [vmem:[#allocation24_spill] sm:$0xff] }
 0x5fe   :  { %3116 = vmatprep.subr.bf16.mxu0 %v2777_v63  ;;  %v2826_v36 = vsel %vm725_vm6, %v2801_v54, %v16140_v26  ;;  %3221 = vmatpush1.bf16.msra.mxu1 %v16141_v44  ;;  %v2822_v37 = vsel %vm725_vm6, %v16140_v26, %v2817_v49  ;;  %v2913_v6 = vsel %vm827_vm7, %v13187_v21, %v16139_v29  ;;  %v16149_v0 = vld [vmem:[#allocation22_spill] sm:$0xff]  ;;  %v9959_v26 = vld [vmem:[%s15687_s2 + $0x7c] ss:$12 sps:$4 sm:$0xff]  }
 0x5ff   :  { %v2845_v7 = vmul.f32 %v2826_v36, %v16113_v46  ;;  %v2834_v9 = vsel %vm725_vm6, %v2817_v49, %v16146_v17  ;;  %3222 = vmatprep.subr.bf16.mxu1 %v2779_v48  ;;  %v2830_v19 = vsel %vm725_vm6, %v16146_v17, %v2801_v54  ;;  %v2846_v11 = vmul.f32 %v2822_v37, %v16132_v56  ;;  %v2819_v2 = vpop.permute.xlu0 %2818  ;;  %v5124_v13 = vld [vmem:[%s15689_s5 + $0x190] sm:$0xff]  ;;  %v5125_v37 = vld [vmem:[%s15689_s5 + $0x198] sm:$0xff] }
 0x600   :  { %v2912_v46 = vsel %vm827_vm7, %v2893_v39, %v16147_v42  ;;  %4854 = vperm.xlu1 %9939, %v4828_v38   ;;  %v2848_v57 = vmul.f32 %v2831_v45, %v16109_v59  ;;  %v2835_v5 = vsel %vm725_vm6, %v2819_v2, %v16145_v58  ;;  %v2847_v22 = vmul.f32 %v2834_v9, %v16134_v30 }
 0x601   :  { %3117 = vmatpush1.bf16.msra.mxu0 %v2776_v40  ;;  %v2857_v54 = vpack.c.bf16 %v2849_v32, %v2845_v7  ;;  %v2851_v35 = vmul.f32 %v2835_v5, %v16134_v30  ;;  %4859 = vperm.xlu0 %9938, %v4829_v34   ;;  %v13464_v28 = vpop.permute.xlu1 %2872  ;;  %v2908_v63 = vsel %vm827_vm7, %v16147_v42, %v16142_v60  ;;  %v5128_v5 = vld [vmem:[%s15689_s5 + $0x1b0] sm:$0xff] }
 0x602   :  { %3118 = vmatprep.subr.bf16.mxu0 %v2853_v12  ;;  %3223 = vmatpush1.bf16.msra.mxu1 %v2778_v62  ;;  %v2823_v12 = vsel %vm725_vm6, %v16143_v55, %v2819_v2  ;;  %v2844_v18 = vmul.f32 %v2830_v19, %v16109_v59  ;;  %v2919_v30 = vmul.f32 %v2912_v46, %v16148_v20 }
 0x603   :  { %3224 = vmatprep.subr.bf16.mxu1 %v2855_v31  ;;  %v2850_v4 = vmul.f32 %v2823_v12, %v16132_v56  ;;  %v2900_v56 = vsel %vm827_vm7, %v13113_v41, %v2893_v39  ;;  %v2917_v61 = vmul.f32 %v2904_v52, %v16144_v25  ;;  %v2859_v59 = vpack.c.bf16 %v2851_v35, %v2847_v22  ;;  %v5126_v39 = vld [vmem:[%s15689_s5 + $0x1a0] sm:$0xff]  ;;  %v9962_v35 = vld [vmem:[%s15687_s2 + $0x68] ss:$12 sps:$4 sm:$0xff]  }
 0x604   :  { %4864 = vperm.xlu1 %9939, %v4830_v27   ;;  %v2920_v49 = vmul.f32 %v2909_v16, %v16149_v0  ;;  %v2901_v41 = vsel %vm827_vm7, %v13136_v8, %v13187_v21  ;;  %v2923_v23 = vmul.f32 %v2913_v6, %v16148_v20  ;;  %v2856_v29 = vpack.c.bf16 %v2848_v57, %v2844_v18  ;;  %v5123_v21 = vld [vmem:[%s15689_s5 + $0x188] sm:$0xff]  ;;  %v9961_v6 = vld [vmem:[%s15687_s2 + $0x78] ss:$12 sps:$4 sm:$0xff]  }
 0x605   :  { %3119 = vmatpush1.bf16.msra.mxu0 %v2852_v1  ;;  %v2858_v3 = vpack.c.bf16 %v2850_v4, %v2846_v11  ;;  %v2875_v1 = vpop.permute.xlu0 %2874  ;;  %v2918_v50 = vmul.f32 %v2900_v56, %v16150_v43  ;;  %4869 = vperm.xlu0 %9938, %v4831_v33   ;;  %v2881_v10 = vpop.permute.xlu1 %2880  ;;  %v2933_v14 = vpack.c.bf16 %v2921_v47, %v2917_v61  ;;  %v16151_v22 = vmov 0   ;;  %v5420_v4 = vld [vmem:[%s15689_s5 + $0x1c0] sm:$0xff]  ;;  %v5423_v18 = vld [vmem:[%s15689_s5 + $0x1d8] sm:$0xff]  ;;  %v5426_v33 = vld [vmem:[%s15689_s5 + $0x1f0] sm:$0xff] }
 0x606   :  { %3120 = vmatprep.subr.bf16.mxu0 %v2857_v54  ;;  %3225 = vmatpush1.bf16.msra.mxu1 %v2854_v51  ;;  %v5122_v51 = vld [vmem:[%s15689_s5 + $0x180] sm:$0xff]  ;;  %v2916_v16 = vmul.f32 %v2908_v63, %v16149_v0  ;;  %v2935_v8 = vpack.c.bf16 %v2923_v23, %v2919_v30  ;;  %v2922_v31 = vmul.f32 %v2901_v41, %v16150_v43  ;;  %v5422_v63 = vld [vmem:[%s15689_s5 + $0x1d0] sm:$0xff]  ;;  %v5425_v30 = vld [vmem:[%s15689_s5 + $0x1e8] sm:$0xff] }
 0x607   :  { %3226 = vmatprep.subr.bf16.mxu1 %v2859_v59  ;;  %v2910_v60 = vsel %vm827_vm7, %v13464_v28, %v2881_v10  ;;  %v5424_v56 = vld [vmem:[%s15689_s5 + $0x1e0] sm:$0xff]  ;;  %v5427_v61 = vld [vmem:[%s15689_s5 + $0x1f8] sm:$0xff]  ;;  %v5720_v59 = vld [vmem:[%s15689_s5 + $0x210] sm:$0xff] }
 0x608   :  { %v2932_v36 = vpack.c.bf16 %v2920_v49, %v2916_v16  ;;  %5132 = vperm.xlu1 %9939, %v5122_v51   ;;  %v2934_v62 = vpack.c.bf16 %v2922_v31, %v2918_v50  ;;  %v2924_v38 = vmul.f32 %v2910_v60, %v16149_v0  ;;  %v5722_v49 = vld [vmem:[%s15689_s5 + $0x220] sm:$0xff]  ;;  %v5723_v41 = vld [vmem:[%s15689_s5 + $0x228] sm:$0xff]  ;;  %v5724_v23 = vld [vmem:[%s15689_s5 + $0x230] sm:$0xff] }
 0x609   :  { %3121 = vmatpush1.bf16.msra.mxu0 %v2856_v29  ;;  %v2891_v40 = vpop.permute.xlu0 %2890  ;;  %5137 = vperm.xlu0 %9938, %v5123_v21   ;;  %v2889_v44 = vpop.permute.xlu1 %2888  ;;  %v5725_v29 = vld [vmem:[%s15689_s5 + $0x238] sm:$0xff]  ;;  %v6017_v50 = vld [vmem:[%s15689_s5 + $0x248] sm:$0xff]  ;;  %v6020_v16 = vld [vmem:[%s15689_s5 + $0x260] sm:$0xff] }
 0x60a   :  { %3143 = vmatprep.subr.bf16.mxu0 %v2933_v14  ;;  %3227 = vmatpush1.bf16.msra.mxu1 %v2858_v3  ;;  %v2906_v52 = vsel %vm827_vm7, %v2881_v10, %v2889_v44  ;;  %v5718_v3 = vld [vmem:[%s15689_s5 + $0x200] sm:$0xff]  ;;  %v6018_v10 = vld [vmem:[%s15689_s5 + $0x250] sm:$0xff] }
 0x60b   :  { %3249 = vmatprep.subr.bf16.mxu1 %v2935_v8  ;;  %v2925_v47 = vmul.f32 %v2906_v52, %v16144_v25  ;;  %v6021_v8 = vld [vmem:[%s15689_s5 + $0x268] sm:$0xff]  ;;  %v6316_v60 = vld [vmem:[%s15689_s5 + $0x290] sm:$0xff]  ;;  %v6317_v52 = vld [vmem:[%s15689_s5 + $0x298] sm:$0xff] }
 0x60c   :  { %3123 = vmatmul.mubr.bf16.vlgmr.msra.gmra.mrb[16].mxu0 %v9956_v15  ;;  %5142 = vperm.xlu1 %9939, %v5124_v13  }
 0x60d   :  { %3229 = vmatmul.mubr.bf16.vlgmr.msra.gmra.mrb[16].mxu1 %v9956_v15  ;;  %3144 = vmatpush1.bf16.msra.mxu0 %v2932_v36  ;;  %v2883_v55 = vpop.permute.xlu0 %2882  ;;  %v2897_v32 = vpop.permute.xlu1 %2896  ;;  %v6019_v15 = vld [vmem:[%s15689_s5 + $0x258] sm:$0xff]  ;;  %v6314_v36 = vld [vmem:[%s15689_s5 + $0x280] sm:$0xff] }
 0x60e   :  { %3250 = vmatpush1.bf16.msra.mxu1 %v2934_v62  ;;  %3132 = vmatprep.mubr.bf16.mxu0 %v9959_v26  ;;  %v2907_v53 = vsel %vm827_vm7, %v2883_v55, %v2891_v40  ;;  %v2911_v48 = vsel %vm827_vm7, %v2875_v1, %v2883_v55  ;;  %v2902_v7 = vsel %vm827_vm7, %v2889_v44, %v2897_v32  ;;  %v6315_v44 = vld [vmem:[%s15689_s5 + $0x288] sm:$0xff] }
 0x60f   :  { %3238 = vmatprep.mubr.bf16.mxu1 %v9959_v26  ;;  %v2928_v58 = vmul.f32 %v2911_v48, %v16149_v0  ;;  %v2929_v45 = vmul.f32 %v2907_v53, %v16144_v25  ;;  %5147 = vperm.xlu0 %9938, %v5125_v37   ;;  %v2914_v17 = vsel %vm827_vm7, %v2897_v32, %v13464_v28  ;;  %v5127_v25 = vld [vmem:[%s15689_s5 + $0x1a8] sm:$0xff]  ;;  %v5721_v0 = vld [vmem:[%s15689_s5 + $0x218] sm:$0xff]  ;;  %v6318_v53 = vld [vmem:[%s15689_s5 + $0x2a0] sm:$0xff] }
 0x610   :  { %v2926_v11 = vmul.f32 %v2902_v7, %v16150_v43  ;;  %5152 = vperm.xlu1 %9939, %v5126_v39   ;;  %v2927_v2 = vmul.f32 %v2914_v17, %v16148_v20  ;;  %v5421_v28 = vld [vmem:[%s15689_s5 + $0x1c8] sm:$0xff]  ;;  %v6023_v26 = vld [vmem:[%s15689_s5 + $0x278] sm:$0xff]  ;;  %v6612_v32 = vld [vmem:[%s15689_s5 + $0x2c0] sm:$0xff] }
 0x611   :  { %v2936_v9 = vpack.c.bf16 %v2928_v58, %v2924_v38  ;;  %v2899_v34 = vpop.permute.xlu0 %2898  ;;  %v2937_v19 = vpack.c.bf16 %v2929_v45, %v2925_v47  ;;  %v6319_v48 = vld [vmem:[%s15689_s5 + $0x2a8] sm:$0xff]  ;;  %v6320_v38 = vld [vmem:[%s15689_s5 + $0x2b0] sm:$0xff]  ;;  %v6321_v58 = vld [vmem:[%s15689_s5 + $0x2b8] sm:$0xff] }
 0x612   :  { %v2903_v42 = vsel %vm827_vm7, %v2891_v40, %v2899_v34  ;;  %v2915_v46 = vsel %vm827_vm7, %v2899_v34, %v2875_v1  ;;  %v5719_v1 = vld [vmem:[%s15689_s5 + $0x208] sm:$0xff]  ;;  %v6022_v40 = vld [vmem:[%s15689_s5 + $0x270] sm:$0xff] }
 0x613   :  { %v2930_v57 = vmul.f32 %v2903_v42, %v16150_v43  ;;  %v2931_v12 = vmul.f32 %v2915_v46, %v16148_v20  ;;  %5157 = vperm.xlu0 %9938, %v5127_v25   ;;  %3145 = vmatprep.subr.bf16.mxu0 %v2937_v19  ;;  %v9963_v20 = vld [vmem:[%s15687_s2 + $0x80] ss:$12 sps:$4 sm:$0xff]   ;;  %v6614_v17 = vld [vmem:[%s15689_s5 + $0x2d0] sm:$0xff]  ;;  %v6615_v25 = vld [vmem:[%s15689_s5 + $0x2d8] sm:$0xff] }
 0x614   :  { %3133 = vmatmul.mubr.bf16.gmra.mrb[20].mxu0 %v9961_v6  ;;  %5162 = vperm.xlu1 %9939, %v5128_v5   ;;  %v6016_v43 = vld [vmem:[%s15689_s5 + $0x240] sm:$0xff]  ;;  %v6613_v39 = vld [vmem:[%s15689_s5 + $0x2c8] sm:$0xff]  ;;  %v6618_v42 = vld [vmem:[%s15689_s5 + $0x2f0] sm:$0xff] }
 0x615   :  { %3239 = vmatmul.mubr.bf16.gmra.mrb[20].mxu1 %v9961_v6  ;;  %v2938_v54 = vpack.c.bf16 %v2930_v57, %v2926_v11  ;;  %3146 = vmatpush1.bf16.msra.mxu0 %v2936_v9  ;;  %v2939_v27 = vpack.c.bf16 %v2931_v12, %v2927_v2  ;;  %v6616_v9 = vld [vmem:[%s15689_s5 + $0x2e0] sm:$0xff]  ;;  %v6617_v19 = vld [vmem:[%s15689_s5 + $0x2e8] sm:$0xff]  ;;  %v6619_v46 = vld [vmem:[%s15689_s5 + $0x2f8] sm:$0xff] }
 0x616   :  { %3175 = vmatprep.mubr.bf16.mxu0 %v16151_v22  ;;  %3281 = vmatprep.mubr.bf16.mxu1 %v16151_v22  ;;  %v6910_v12 = vld [vmem:[%s15689_s5 + $0x300] sm:$0xff]  ;;  %v6911_v5 = vld [vmem:[%s15689_s5 + $0x308] sm:$0xff] }
 0x617   :  { %5167 = vperm.xlu0 %9938, %v5129_v24   ;;  %3251 = vmatprep.subr.bf16.mxu1 %v2939_v27  ;;  %v6912_v24 = vld [vmem:[%s15689_s5 + $0x310] sm:$0xff]  ;;  %v6913_v27 = vld [vmem:[%s15689_s5 + $0x318] sm:$0xff] }
 0x618   :  { %3252 = vmatpush1.bf16.msra.mxu1 %v2938_v54  ;;  %5430 = vperm.xlu1 %9939, %v5420_v4  }
 0x61b   :  { %5435 = vperm.xlu0 %9938, %v5421_v28   ;;  %v6915_v28 = vld [vmem:[%s15689_s5 + $0x328] sm:$0xff] }
 0x61c   :  { %9417 = vmatmul.mubr.msk.bf16.vlgmr.msra.gmra.mrb[16].mxu0 %vm1031_vm8, %v9962_v35  ;;  %5440 = vperm.xlu1 %9939, %v5422_v63   ;;  %v13626_v14 = vpop.permute.xlu1 %3036 }
 0x61d   :  { %9419 = vmatmul.mubr.msk.bf16.vlgmr.msra.gmra.mrb[16].mxu1 %vm1031_vm8, %v9962_v35  ;;  %3185 = vmatprep.mubr.bf16.mxu0 %v16151_v22  ;;  %v6914_v35 = vld [vmem:[%s15689_s5 + $0x320] sm:$0xff] }
 0x61e   :  { %3291 = vmatprep.mubr.bf16.mxu1 %v16151_v22  ;;  %v13631_v51 = vpop.permute.xlu0 %3041 }
 0x61f   :  { %5445 = vperm.xlu0 %9938, %v5423_v18  }
 0x620   :  { %5450 = vperm.xlu1 %9939, %v5424_v56   ;;  %v13639_v21 = vpop.permute.xlu1 %3046  ;;  %v6916_v56 = vld [vmem:[%s15689_s5 + $0x330] sm:$0xff] }
 0x622   :  { %v13641_v31 = vpop.permute.xlu0 %3051 }
 0x623   :  { %5455 = vperm.xlu0 %9938, %v5425_v30   ;;  %v7208_v30 = vld [vmem:[%s15689_s5 + $0x340] sm:$0xff] }
 0x624   :  { %9418 = vmatmul.mubr.msk.bf16.gmra.mrb[20].mxu0 %vm1031_vm8, %v9963_v20  ;;  %5460 = vperm.xlu1 %9939, %v5426_v33   ;;  %v13652_v62 = vpop.permute.xlu1 %3344 }
 0x625   :  { %9420 = vmatmul.mubr.msk.bf16.gmra.mrb[20].mxu1 %vm1031_vm8, %v9963_v20  ;;  %3446 = vmatprep.mubr.bf16.mxu0 %v16151_v22  ;;  %v6917_v20 = vld [vmem:[%s15689_s5 + $0x338] sm:$0xff] }
 0x626   :  { %3519 = vmatprep.mubr.bf16.mxu1 %v16151_v22  ;;  %v13657_v13 = vpop.permute.xlu0 %3349 }
 0x627   :  { %5465 = vperm.xlu0 %9938, %v5427_v61   ;;  %v7209_v61 = vld [vmem:[%s15689_s5 + $0x348] sm:$0xff] }
 0x628   :  { %5728 = vperm.xlu1 %9939, %v5718_v3   ;;  %v13665_v37 = vpop.permute.xlu1 %3354 }
 0x62a   :  { %v13667_v55 = vpop.permute.xlu0 %3359 }
 0x62b   :  { %5733 = vperm.xlu0 %9938, %v5719_v1   ;;  %v7210_v1 = vld [vmem:[%s15689_s5 + $0x350] sm:$0xff] }
 0x62c   :  { %5738 = vperm.xlu1 %9939, %v5720_v59   ;;  %v13678_v47 = vpop.permute.xlu1 %3364  ;;  %v7211_v59 = vld [vmem:[%s15689_s5 + $0x358] sm:$0xff] }
 0x62e   :  { %v13683_v45 = vpop.permute.xlu0 %3369 }
 0x62f   :  { %5743 = vperm.xlu0 %9938, %v5721_v0  }
 0x630   :  { %5748 = vperm.xlu1 %9939, %v5722_v49   ;;  %v13691_v6 = vpop.permute.xlu1 %3374 }
 0x632   :  { %v13693_v7 = vpop.permute.xlu0 %3379 }
 0x633   :  { %5753 = vperm.xlu0 %9938, %v5723_v41   ;;  %v7212_v41 = vld [vmem:[%s15689_s5 + $0x360] sm:$0xff] }
 0x634   :  { %5758 = vperm.xlu1 %9939, %v5724_v23   ;;  %v13704_v34 = vpop.permute.xlu1 %3642  ;;  %v7213_v23 = vld [vmem:[%s15689_s5 + $0x368] sm:$0xff] }
 0x636   :  { %v13709_v11 = vpop.permute.xlu0 %3647 }
 0x637   :  { %5763 = vperm.xlu0 %9938, %v5725_v29   ;;  %v7214_v29 = vld [vmem:[%s15689_s5 + $0x370] sm:$0xff] }
 0x638   :  { %6026 = vperm.xlu1 %9939, %v6016_v43   ;;  %v13717_v2 = vpop.permute.xlu1 %3652  ;;  %v7215_v43 = vld [vmem:[%s15689_s5 + $0x378] sm:$0xff] }
 0x63a   :  { %v13719_v57 = vpop.permute.xlu0 %3657 }
 0x63b   :  { %6031 = vperm.xlu0 %9938, %v6017_v50  }
 0x63c   :  { %6036 = vperm.xlu1 %9939, %v6018_v10   ;;  %v13730_v54 = vpop.permute.xlu1 %3662 }
 0x63e   :  { %v13735_v4 = vpop.permute.xlu0 %3667 }
 0x63f   :  { %6041 = vperm.xlu0 %9938, %v6019_v15   ;;  %v7506_v15 = vld [vmem:[%s15689_s5 + $0x380] sm:$0xff] }
 0x640   :  { %6046 = vperm.xlu1 %9939, %v6020_v16   ;;  %v13743_v63 = vpop.permute.xlu1 %3672  ;;  %v7507_v16 = vld [vmem:[%s15689_s5 + $0x388] sm:$0xff] }
 0x642   :  { %v13745_v18 = vpop.permute.xlu0 %3677 }
 0x643   :  { %6051 = vperm.xlu0 %9938, %v6021_v8   ;;  %v7508_v8 = vld [vmem:[%s15689_s5 + $0x390] sm:$0xff] }
 0x644   :  { %6056 = vperm.xlu1 %9939, %v6022_v40   ;;  %v13756_v33 = vpop.permute.xlu1 %3940 }
 0x646   :  { %v13761_v3 = vpop.permute.xlu0 %3945 }
 0x647   :  { %6061 = vperm.xlu0 %9938, %v6023_v26  }
 0x648   :  { %6324 = vperm.xlu1 %9939, %v6314_v36   ;;  %v13769_v0 = vpop.permute.xlu1 %3950  ;;  %v7509_v36 = vld [vmem:[%s15689_s5 + $0x398] sm:$0xff] }
 0x64a   :  { %v13771_v49 = vpop.permute.xlu0 %3955 }
 0x64b   :  { %6329 = vperm.xlu0 %9938, %v6315_v44   ;;  %v7510_v44 = vld [vmem:[%s15689_s5 + $0x3a0] sm:$0xff] }
 0x64c   :  { %6334 = vperm.xlu1 %9939, %v6316_v60   ;;  %v13785_v50 = vpop.permute.xlu1 %3960  ;;  %v7511_v60 = vld [vmem:[%s15689_s5 + $0x3a8] sm:$0xff] }
 0x64e   :  { %v13787_v10 = vpop.permute.xlu0 %3965 }
 0x64f   :  { %6339 = vperm.xlu0 %9938, %v6317_v52  }
 0x650   :  { %6344 = vperm.xlu1 %9939, %v6318_v53  }
 0x651   :  { %v13798_v40 = vpop.permute.xlu1 %3970 }
 0x653   :  { %6349 = vperm.xlu0 %9938, %v6319_v48   ;;  %v13800_v26 = vpop.permute.xlu0 %3975  ;;  %v7512_v48 = vld [vmem:[%s15689_s5 + $0x3b0] sm:$0xff] }
 0x654   :  { %6354 = vperm.xlu1 %9939, %v6320_v38   ;;  %v7513_v38 = vld [vmem:[%s15689_s5 + $0x3b8] sm:$0xff] }
 0x655   :  { %v13811_v52 = vpop.permute.xlu1 %4238 }
 0x657   :  { %6359 = vperm.xlu0 %9938, %v6321_v58   ;;  %v13813_v53 = vpop.permute.xlu0 %4243  ;;  %v7804_v58 = vld [vmem:[%s15689_s5 + $0x3c0] sm:$0xff] }
 0x658   :  { %6622 = vperm.xlu1 %9939, %v6612_v32  }
 0x659   :  { %v13824_v32 = vpop.permute.xlu1 %4248 }
 0x65b   :  { %6627 = vperm.xlu0 %9938, %v6613_v39   ;;  %v7805_v39 = vld [vmem:[%s15689_s5 + $0x3c8] sm:$0xff] }
 0x65c   :  { %6632 = vperm.xlu1 %9939, %v6614_v17   ;;  %v13829_v17 = vpop.permute.xlu0 %4253 }
 0x65f   :  { %6637 = vperm.xlu0 %9938, %v6615_v25   ;;  %v7806_v25 = vld [vmem:[%s15689_s5 + $0x3d0] sm:$0xff] }
 0x660   :  { %6642 = vperm.xlu1 %9939, %v6616_v9   ;;  %v7807_v9 = vld [vmem:[%s15689_s5 + $0x3d8] sm:$0xff] }
 0x663   :  { %6647 = vperm.xlu0 %9938, %v6617_v19   ;;  %v13837_v19 = vpop.permute.xlu1 %4258 }
 0x664   :  { %6652 = vperm.xlu1 %9939, %v6618_v42   ;;  %v13839_v42 = vpop.permute.xlu0 %4263 }
 0x667   :  { %6657 = vperm.xlu0 %9938, %v6619_v46   ;;  %v7808_v46 = vld [vmem:[%s15689_s5 + $0x3e0] sm:$0xff] }
 0x668   :  { %6920 = vperm.xlu1 %9939, %v6910_v12   ;;  %v7809_v12 = vld [vmem:[%s15689_s5 + $0x3e8] sm:$0xff] }
 0x66b   :  { %6925 = vperm.xlu0 %9938, %v6911_v5   ;;  %v7810_v5 = vld [vmem:[%s15689_s5 + $0x3f0] sm:$0xff] }
 0x66c   :  { %6930 = vperm.xlu1 %9939, %v6912_v24   ;;  %v13850_v24 = vpop.permute.xlu1 %4268 }
 0x66f   :  { %6935 = vperm.xlu0 %9938, %v6913_v27   ;;  %v13852_v27 = vpop.permute.xlu0 %4273 }
 0x670   :  { %6940 = vperm.xlu1 %9939, %v6914_v35   ;;  %v7811_v35 = vld [vmem:[%s15689_s5 + $0x3f8] sm:$0xff] }
 0x673   :  { %6945 = vperm.xlu0 %9938, %v6915_v28   ;;  %v8390_v28 = vld [vmem:[%s15691_s7] sm:$0xff] }
 0x674   :  { %6950 = vperm.xlu1 %9939, %v6916_v56   ;;  %v8391_v56 = vld [vmem:[%s15691_s7 + $0x8] sm:$0xff] }
 0x677   :  { %6955 = vperm.xlu0 %9938, %v6917_v20   ;;  %v13863_v20 = vpop.permute.xlu1 %4536 }
 0x678   :  { %7218 = vperm.xlu1 %9939, %v7208_v30   ;;  %v13865_v30 = vpop.permute.xlu0 %4541 }
 0x67b   :  { %7223 = vperm.xlu0 %9938, %v7209_v61   ;;  %v8392_v61 = vld [vmem:[%s15691_s7 + $0x10] sm:$0xff] }
 0x67c   :  { %7228 = vperm.xlu1 %9939, %v7210_v1   ;;  %v8393_v1 = vld [vmem:[%s15691_s7 + $0x18] sm:$0xff] }
 0x67f   :  { %7233 = vperm.xlu0 %9938, %v7211_v59   ;;  %v13873_v59 = vpop.permute.xlu1 %4546 }
 0x680   :  { %7238 = vperm.xlu1 %9939, %v7212_v41   ;;  %v13875_v41 = vpop.permute.xlu0 %4551 }
 0x681   :  { %16152 = vst [vmem:[#allocation8_spill] sm:$0xff] %v13875_v41 }
 0x683   :  { %7243 = vperm.xlu0 %9938, %v7213_v23   ;;  %v8394_v23 = vld [vmem:[%s15691_s7 + $0x20] sm:$0xff] }
 0x684   :  { %7248 = vperm.xlu1 %9939, %v7214_v29   ;;  %v8395_v29 = vld [vmem:[%s15691_s7 + $0x28] sm:$0xff] }
 0x687   :  { %7253 = vperm.xlu0 %9938, %v7215_v43   ;;  %v8396_v43 = vld [vmem:[%s15691_s7 + $0x30] sm:$0xff] }
 0x688   :  { %7516 = vperm.xlu1 %9939, %v7506_v15   ;;  %v13886_v15 = vpop.permute.xlu1 %4556 }
 0x689   :  { %16153 = vst [vmem:[#allocation56_spill] sm:$0xff] %v13886_v15 }
 0x68b   :  { %7521 = vperm.xlu0 %9938, %v7507_v16   ;;  %v8397_v16 = vld [vmem:[%s15691_s7 + $0x38] sm:$0xff] }
 0x68c   :  { %7526 = vperm.xlu1 %9939, %v7508_v8   ;;  %v13891_v8 = vpop.permute.xlu0 %4561 }
 0x68d   :  { %16154 = vst [vmem:[#allocation40_spill] sm:$0xff] %v13891_v8 }
 0x68f   :  { %7531 = vperm.xlu0 %9938, %v7509_v36   ;;  %v8398_v36 = vld [vmem:[%s15691_s7 + $0x40] sm:$0xff] }
 0x690   :  { %7536 = vperm.xlu1 %9939, %v7510_v44   ;;  %v8399_v44 = vld [vmem:[%s15691_s7 + $0x48] sm:$0xff] }
 0x693   :  { %7541 = vperm.xlu0 %9938, %v7511_v60   ;;  %v13899_v60 = vpop.permute.xlu1 %4566 }
 0x694   :  { %7546 = vperm.xlu1 %9939, %v7512_v48   ;;  %16155 = vst [vmem:[#allocation5_spill] sm:$0xff] %v13899_v60  ;;  %v13901_v48 = vpop.permute.xlu0 %4571 }
 0x695   :  { %16156 = vst [vmem:[#allocation6_spill] sm:$0xff] %v13901_v48 }
 0x697   :  { %7551 = vperm.xlu0 %9938, %v7513_v38  }
 0x698   :  { %7814 = vperm.xlu1 %9939, %v7804_v58  }
 0x69b   :  { %7819 = vperm.xlu0 %9938, %v7805_v39  }
 0x69c   :  { %7824 = vperm.xlu1 %9939, %v7806_v25  }
 0x69f   :  { %7829 = vperm.xlu0 %9938, %v7807_v9  }
 0x6a0   :  { %7834 = vperm.xlu1 %9939, %v7808_v46  }
 0x6a3   :  { %7839 = vperm.xlu0 %9938, %v7809_v12  }
 0x6a4   :  { %7844 = vperm.xlu1 %9939, %v7810_v5  }
 0x6a7   :  { %7849 = vperm.xlu0 %9938, %v7811_v35  }
 0x6a8   :  { %8402 = vperm.xlu1 %9939, %v8390_v28  }
 0x6ab   :  { %8407 = vperm.xlu0 %9938, %v8391_v56  }
 0x6ac   :  { %8412 = vperm.xlu1 %9939, %v8392_v61  }
 0x6af   :  { %8417 = vperm.xlu0 %9938, %v8393_v1  }
 0x6b0   :  { %8422 = vperm.xlu1 %9939, %v8394_v23  }
 0x6b3   :  { %8427 = vperm.xlu0 %9938, %v8395_v29  }
 0x6b4   :  { %8432 = vperm.xlu1 %9939, %v8396_v43  }
 0x6b7   :  { %8437 = vperm.xlu0 %9938, %v8397_v16  }
 0x6b8   :  { %8442 = vperm.xlu1 %9939, %v8398_v36  }
 0x6bb   :  { %8447 = vperm.xlu0 %9938, %v8399_v44  }
 0x6ef   :  { %v3177_v38 = vpop.f32.mrb[16].mxu0 }
 0x6f0   :  { %v9705_v58 = vadd.f32 %v3177_v38, %v13626_v14  ;;  %v3179_v39 = vpop.f32.mrb[17].mxu0  ;;  %v3283_v25 = vpop.f32.mrb[16].mxu1 }
 0x6f1   :  { %v9706_v9 = vadd.f32 %v3179_v39, %v13626_v14  ;;  %v9713_v46 = vadd.f32 %v3283_v25, %v13626_v14  ;;  %v3181_v12 = vpop.f32.mrb[18].mxu0  ;;  %v3285_v5 = vpop.f32.mrb[17].mxu1 }
 0x6f2   :  { %v9707_v35 = vadd.f32 %v3181_v12, %v13631_v51  ;;  %v9714_v28 = vadd.f32 %v3285_v5, %v13626_v14  ;;  %v3287_v56 = vpop.f32.mrb[18].mxu1  ;;  %v3183_v1 = vpop.f32.mrb[19].mxu0  ;;  %v3302_v29 = vmax.f32 %v9705_v58, 0.0 }
 0x6f3   :  { %v9715_v61 = vadd.f32 %v3287_v56, %v13631_v51  ;;  %v3289_v23 = vpop.f32.mrb[19].mxu1  ;;  %v9708_v16 = vadd.f32 %v3183_v1, %v13631_v51  ;;  %v3303_v44 = vmax.f32 %v9706_v9, 0.0  ;;  %v3304_v38 = vmax.f32 %v9713_v46, 0.0 }
 0x6f4   :  { %v3306_v43 = vmax.f32 %v9707_v35, 0.0  ;;  %v9716_v36 = vadd.f32 %v3289_v23, %v13631_v51  ;;  %v3305_v48 = vmax.f32 %v9714_v28, 0.0 }
 0x6f5   :  { %v3308_v39 = vmax.f32 %v9715_v61, 0.0  ;;  %v3307_v12 = vmax.f32 %v9708_v16, 0.0 }
 0x6f6   :  { %v13911_v25 = vpack.c.bf16 %v3306_v43, %v3302_v29  ;;  %v3309_v60 = vmax.f32 %v9716_v36, 0.0 }
 0x6f7   :  { %v13913_v14 = vpack.c.bf16 %v3308_v39, %v3304_v38  ;;  %v3187_v5 = vpop.f32.mrb[20].mxu0  ;;  %v13915_v56 = vpack.c.bf16 %v3307_v12, %v3303_v44 }
 0x6f8   :  { %v13917_v8 = vpack.c.bf16 %v3309_v60, %v3305_v48  ;;  %v9709_v58 = vadd.f32 %v3187_v5, %v13639_v21  ;;  %v3189_v35 = vpop.f32.mrb[21].mxu0  ;;  %v3293_v9 = vpop.f32.mrb[20].mxu1 }
 0x6f9   :  { %v9710_v51 = vadd.f32 %v3189_v35, %v13639_v21  ;;  %v3191_v46 = vpop.f32.mrb[22].mxu0  ;;  %v9717_v61 = vadd.f32 %v3293_v9, %v13639_v21  ;;  %v3295_v1 = vpop.f32.mrb[21].mxu1  ;;  %3414 = vmatprep.subr.bf16.mxu0 %v13915_v56 }
 0x6fa   :  { %v9711_v28 = vadd.f32 %v3191_v46, %v13641_v31  ;;  %3487 = vmatprep.subr.bf16.mxu1 %v13917_v8  ;;  %v9718_v23 = vadd.f32 %v3295_v1, %v13639_v21  ;;  %v3297_v60 = vpop.f32.mrb[22].mxu1  ;;  %v3193_v48 = vpop.f32.mrb[23].mxu0  ;;  %3415 = vmatpush1.bf16.msra.mxu0 %v13911_v25  ;;  %v3310_v29 = vmax.f32 %v9709_v58, 0.0 }
 0x6fb   :  { %3488 = vmatpush1.bf16.msra.mxu1 %v13913_v14  ;;  %v9719_v16 = vadd.f32 %v3297_v60, %v13641_v31  ;;  %v9712_v36 = vadd.f32 %v3193_v48, %v13641_v31  ;;  %v3299_v44 = vpop.f32.mrb[23].mxu1  ;;  %v3311_v38 = vmax.f32 %v9710_v51, 0.0  ;;  %v3312_v12 = vmax.f32 %v9717_v61, 0.0  ;;  %v9964_v51 = vld [vmem:[%s15690_s4] sm:$0xff]   ;;  %v9966_v61 = vld [vmem:[%s15690_s4 + $0x10] sm:$0xff]   ;;  %v9969_v60 = vld [vmem:[%s15690_s4 + $0x28] sm:$0xff]  }
 0x6fc   :  { %v3314_v43 = vmax.f32 %v9711_v28, 0.0  ;;  %v9720_v39 = vadd.f32 %v3299_v44, %v13641_v31  ;;  %v3313_v9 = vmax.f32 %v9718_v23, 0.0  ;;  %v9965_v31 = vld [vmem:[%s15690_s4 + $0x8] sm:$0xff]   ;;  %v9967_v28 = vld [vmem:[%s15690_s4 + $0x18] sm:$0xff]   ;;  %v9968_v23 = vld [vmem:[%s15690_s4 + $0x20] sm:$0xff]  }
 0x6fd   :  { %v3316_v21 = vmax.f32 %v9719_v16, 0.0  ;;  %v3315_v35 = vmax.f32 %v9712_v36, 0.0  ;;  %v9970_v48 = vld [vmem:[%s15690_s4 + $0x30] sm:$0xff]   ;;  %v9973_v16 = vld [vmem:[%s15690_s4 + $0x48] sm:$0xff]   ;;  %v9975_v44 = vld [vmem:[%s15690_s4 + $0x58] sm:$0xff]  }
 0x6fe   :  { %v13931_v5 = vpack.c.bf16 %v3314_v43, %v3310_v29  ;;  %v3317_v46 = vmax.f32 %v9720_v39, 0.0  ;;  %v9971_v29 = vld [vmem:[%s15690_s4 + $0x38] sm:$0xff]   ;;  %v9972_v43 = vld [vmem:[%s15690_s4 + $0x40] sm:$0xff]   ;;  %v9974_v36 = vld [vmem:[%s15690_s4 + $0x50] sm:$0xff]  }
 0x6ff   :  { %v13933_v1 = vpack.c.bf16 %v3316_v21, %v3312_v12  ;;  %v13935_v15 = vpack.c.bf16 %v3315_v35, %v3311_v38  ;;  %v9976_v38 = vld [vmem:[%s15690_s4 + $0x60] sm:$0xff]   ;;  %v9977_v39 = vld [vmem:[%s15690_s4 + $0x68] sm:$0xff]   ;;  %v9978_v12 = vld [vmem:[%s15690_s4 + $0x70] sm:$0xff]  }
 0x700   :  { %v13937_v58 = vpack.c.bf16 %v3317_v46, %v3313_v9  ;;  %v9979_v21 = vld [vmem:[%s15690_s4 + $0x78] sm:$0xff]   ;;  %v9980_v35 = vld [vmem:[%s15690_s4 + $0x80] sm:$0xff]   ;;  %v9981_v9 = vld [vmem:[%s15690_s4 + $0x88] sm:$0xff]  }
 0x701   :  { %3416 = vmatprep.subr.bf16.mxu0 %v13935_v15  ;;  %v9982_v46 = vld [vmem:[%s15690_s4 + $0x90] sm:$0xff]  }
 0x702   :  { %3489 = vmatprep.subr.bf16.mxu1 %v13937_v58  ;;  %3417 = vmatpush1.bf16.msra.mxu0 %v13931_v5 }
 0x703   :  { %3490 = vmatpush1.bf16.msra.mxu1 %v13933_v1  ;;  %3712 = vmatprep.subr.bf16.mxu0 %v13915_v56 }
 0x704   :  { %3785 = vmatprep.subr.bf16.mxu1 %v13917_v8 }
 0x705   :  { %9425 = vmatmul.mubr.msk.bf16.vlgmr.msra.gmra.mrb[24].mxu0 %vm1031_vm8, %v9964_v51 }
 0x706   :  { %9429 = vmatmul.mubr.msk.bf16.vlgmr.msra.gmra.mrb[24].mxu1 %vm1031_vm8, %v9964_v51  ;;  %3713 = vmatpush1.bf16.msra.mxu0 %v13911_v25  ;;  %v9983_v51 = vld [vmem:[%s15690_s4 + $0x98] sm:$0xff]  }
 0x707   :  { %3714 = vmatprep.subr.bf16.mxu0 %v13935_v15  ;;  %3786 = vmatpush1.bf16.msra.mxu1 %v13913_v14 }
 0x708   :  { %3787 = vmatprep.subr.bf16.mxu1 %v13937_v58  ;;  %3456 = vmatprep.mubr.bf16.mxu0 %v16151_v22 }
 0x709   :  { %3529 = vmatprep.mubr.bf16.mxu1 %v16151_v22 }
 0x70a   :  { %3715 = vmatpush1.bf16.msra.mxu0 %v13931_v5 }
 0x70b   :  { %3788 = vmatpush1.bf16.msra.mxu1 %v13933_v1  ;;  %4010 = vmatprep.subr.bf16.mxu0 %v13915_v56 }
 0x70c   :  { %4083 = vmatprep.subr.bf16.mxu1 %v13917_v8 }
 0x70d   :  { %9426 = vmatmul.mubr.msk.bf16.gmra.mrb[28].mxu0 %vm1031_vm8, %v9965_v31 }
 0x70e   :  { %9430 = vmatmul.mubr.msk.bf16.gmra.mrb[28].mxu1 %vm1031_vm8, %v9965_v31  ;;  %3466 = vmatprep.mubr.bf16.mxu0 %v16151_v22  ;;  %v9984_v31 = vld [vmem:[%s15690_s4 + $0xa0] sm:$0xff]  }
 0x70f   :  { %3539 = vmatprep.mubr.bf16.mxu1 %v16151_v22 }
 0x715   :  { %9427 = vmatmul.mubr.msk.bf16.gmra.mrb[32].mxu0 %vm1031_vm8, %v9966_v61 }
 0x716   :  { %9431 = vmatmul.mubr.msk.bf16.gmra.mrb[32].mxu1 %vm1031_vm8, %v9966_v61  ;;  %3476 = vmatprep.mubr.bf16.mxu0 %v16151_v22  ;;  %v9985_v61 = vld [vmem:[%s15690_s4 + $0xa8] sm:$0xff]  }
 0x717   :  { %3549 = vmatprep.mubr.bf16.mxu1 %v16151_v22 }
 0x71d   :  { %9428 = vmatmul.mubr.msk.bf16.gmra.mrb[36].mxu0 %vm1031_vm8, %v9967_v28 }
 0x71e   :  { %9432 = vmatmul.mubr.msk.bf16.gmra.mrb[36].mxu1 %vm1031_vm8, %v9967_v28  ;;  %3744 = vmatprep.mubr.bf16.mxu0 %v16151_v22  ;;  %v9986_v28 = vld [vmem:[%s15690_s4 + $0xb0] sm:$0xff]  }
 0x71f   :  { %3817 = vmatprep.mubr.bf16.mxu1 %v16151_v22 }
 0x725   :  { %9437 = vmatmul.mubr.msk.bf16.vlgmr.msra.gmra.mrb[40].mxu0 %vm1031_vm8, %v9968_v23 }
 0x726   :  { %4011 = vmatpush1.bf16.msra.mxu0 %v13911_v25  ;;  %9441 = vmatmul.mubr.msk.bf16.vlgmr.msra.gmra.mrb[40].mxu1 %vm1031_vm8, %v9968_v23  ;;  %v9987_v23 = vld [vmem:[%s15690_s4 + $0xb8] sm:$0xff]  }
 0x727   :  { %4084 = vmatpush1.bf16.msra.mxu1 %v13913_v14  ;;  %4012 = vmatprep.subr.bf16.mxu0 %v13935_v15 }
 0x728   :  { %4085 = vmatprep.subr.bf16.mxu1 %v13937_v58  ;;  %3754 = vmatprep.mubr.bf16.mxu0 %v16151_v22 }
 0x729   :  { %3827 = vmatprep.mubr.bf16.mxu1 %v16151_v22 }
 0x72a   :  { %4013 = vmatpush1.bf16.msra.mxu0 %v13931_v5 }
 0x72b   :  { %4086 = vmatpush1.bf16.msra.mxu1 %v13933_v1  ;;  %4308 = vmatprep.subr.bf16.mxu0 %v13915_v56 }
 0x72c   :  { %4381 = vmatprep.subr.bf16.mxu1 %v13917_v8 }
 0x72d   :  { %9438 = vmatmul.mubr.msk.bf16.gmra.mrb[44].mxu0 %vm1031_vm8, %v9969_v60 }
 0x72e   :  { %9442 = vmatmul.mubr.msk.bf16.gmra.mrb[44].mxu1 %vm1031_vm8, %v9969_v60  ;;  %3764 = vmatprep.mubr.bf16.mxu0 %v16151_v22  ;;  %v9988_v60 = vld [vmem:[%s15690_s4 + $0xc0] sm:$0xff]  }
 0x72f   :  { %3837 = vmatprep.mubr.bf16.mxu1 %v16151_v22 }
 0x735   :  { %9439 = vmatmul.mubr.msk.bf16.gmra.mrb[48].mxu0 %vm1031_vm8, %v9970_v48 }
 0x736   :  { %9443 = vmatmul.mubr.msk.bf16.gmra.mrb[48].mxu1 %vm1031_vm8, %v9970_v48  ;;  %3774 = vmatprep.mubr.bf16.mxu0 %v16151_v22  ;;  %v9989_v48 = vld [vmem:[%s15690_s4 + $0xc8] sm:$0xff]  }
 0x737   :  { %3847 = vmatprep.mubr.bf16.mxu1 %v16151_v22 }
 0x73d   :  { %9440 = vmatmul.mubr.msk.bf16.gmra.mrb[52].mxu0 %vm1031_vm8, %v9971_v29 }
 0x73e   :  { %9444 = vmatmul.mubr.msk.bf16.gmra.mrb[52].mxu1 %vm1031_vm8, %v9971_v29  ;;  %4042 = vmatprep.mubr.bf16.mxu0 %v16151_v22  ;;  %v9990_v29 = vld [vmem:[%s15690_s4 + $0xd0] sm:$0xff]  }
 0x73f   :  { %4115 = vmatprep.mubr.bf16.mxu1 %v16151_v22 }
 0x745   :  { %9449 = vmatmul.mubr.msk.bf16.vlgmr.msra.gmra.mrb[56].mxu0 %vm1031_vm8, %v9972_v43 }
 0x746   :  { %4309 = vmatpush1.bf16.msra.mxu0 %v13911_v25  ;;  %9453 = vmatmul.mubr.msk.bf16.vlgmr.msra.gmra.mrb[56].mxu1 %vm1031_vm8, %v9972_v43 }
 0x747   :  { %4310 = vmatprep.subr.bf16.mxu0 %v13935_v15  ;;  %4382 = vmatpush1.bf16.msra.mxu1 %v13913_v14 }
 0x748   :  { %4383 = vmatprep.subr.bf16.mxu1 %v13937_v58  ;;  %4052 = vmatprep.mubr.bf16.mxu0 %v16151_v22 }
 0x749   :  { %4125 = vmatprep.mubr.bf16.mxu1 %v16151_v22 }
 0x74a   :  { %4311 = vmatpush1.bf16.msra.mxu0 %v13931_v5 }
 0x74b   :  { %4384 = vmatpush1.bf16.msra.mxu1 %v13933_v1  ;;  %4606 = vmatprep.subr.bf16.mxu0 %v13915_v56 }
 0x74c   :  { %4679 = vmatprep.subr.bf16.mxu1 %v13917_v8 }
 0x74d   :  { %9450 = vmatmul.mubr.msk.bf16.gmra.mrb[60].mxu0 %vm1031_vm8, %v9973_v16 }
 0x74e   :  { %9454 = vmatmul.mubr.msk.bf16.gmra.mrb[60].mxu1 %vm1031_vm8, %v9973_v16  ;;  %4062 = vmatprep.mubr.bf16.mxu0 %v16151_v22 }
 0x74f   :  { %4135 = vmatprep.mubr.bf16.mxu1 %v16151_v22 }
 0x755   :  { %9451 = vmatmul.mubr.msk.bf16.gmra.mrb[64].mxu0 %vm1031_vm8, %v9974_v36 }
 0x756   :  { %9455 = vmatmul.mubr.msk.bf16.gmra.mrb[64].mxu1 %vm1031_vm8, %v9974_v36  ;;  %4072 = vmatprep.mubr.bf16.mxu0 %v16151_v22 }
 0x757   :  { %4145 = vmatprep.mubr.bf16.mxu1 %v16151_v22 }
 0x75d   :  { %9452 = vmatmul.mubr.msk.bf16.gmra.mrb[68].mxu0 %vm1031_vm8, %v9975_v44 }
 0x75e   :  { %9456 = vmatmul.mubr.msk.bf16.gmra.mrb[68].mxu1 %vm1031_vm8, %v9975_v44  ;;  %4340 = vmatprep.mubr.bf16.mxu0 %v16151_v22  ;;  %v9991_v44 = vld [vmem:[%s15690_s4 + $0xd8] sm:$0xff]  }
 0x75f   :  { %4413 = vmatprep.mubr.bf16.mxu1 %v16151_v22 }
 0x765   :  { %9461 = vmatmul.mubr.msk.bf16.vlgmr.msra.gmra.mrb[72].mxu0 %vm1031_vm8, %v9976_v38 }
 0x766   :  { %4607 = vmatpush1.bf16.msra.mxu0 %v13911_v25  ;;  %9465 = vmatmul.mubr.msk.bf16.vlgmr.msra.gmra.mrb[72].mxu1 %vm1031_vm8, %v9976_v38 }
 0x767   :  { %4608 = vmatprep.subr.bf16.mxu0 %v13935_v15  ;;  %4680 = vmatpush1.bf16.msra.mxu1 %v13913_v14 }
 0x768   :  { %4681 = vmatprep.subr.bf16.mxu1 %v13937_v58  ;;  %4350 = vmatprep.mubr.bf16.mxu0 %v16151_v22 }
 0x769   :  { %4423 = vmatprep.mubr.bf16.mxu1 %v16151_v22 }
 0x76a   :  { %4609 = vmatpush1.bf16.msra.mxu0 %v13931_v5 }
 0x76b   :  { %4682 = vmatpush1.bf16.msra.mxu1 %v13933_v1  ;;  %4904 = vmatprep.subr.bf16.mxu0 %v13915_v56 }
 0x76c   :  { %4977 = vmatprep.subr.bf16.mxu1 %v13917_v8 }
 0x76d   :  { %9462 = vmatmul.mubr.msk.bf16.gmra.mrb[76].mxu0 %vm1031_vm8, %v9977_v39 }
 0x76e   :  { %9466 = vmatmul.mubr.msk.bf16.gmra.mrb[76].mxu1 %vm1031_vm8, %v9977_v39  ;;  %4360 = vmatprep.mubr.bf16.mxu0 %v16151_v22 }
 0x76f   :  { %4433 = vmatprep.mubr.bf16.mxu1 %v16151_v22 }
 0x775   :  { %9463 = vmatmul.mubr.msk.bf16.gmra.mrb[80].mxu0 %vm1031_vm8, %v9978_v12 }
 0x776   :  { %9467 = vmatmul.mubr.msk.bf16.gmra.mrb[80].mxu1 %vm1031_vm8, %v9978_v12  ;;  %4370 = vmatprep.mubr.bf16.mxu0 %v16151_v22 }
 0x777   :  { %4443 = vmatprep.mubr.bf16.mxu1 %v16151_v22 }
 0x77d   :  { %9464 = vmatmul.mubr.msk.bf16.gmra.mrb[84].mxu0 %vm1031_vm8, %v9979_v21 }
 0x77e   :  { %9468 = vmatmul.mubr.msk.bf16.gmra.mrb[84].mxu1 %vm1031_vm8, %v9979_v21  ;;  %4638 = vmatprep.mubr.bf16.mxu0 %v16151_v22 }
 0x77f   :  { %4711 = vmatprep.mubr.bf16.mxu1 %v16151_v22 }
 0x785   :  { %9473 = vmatmul.mubr.msk.bf16.vlgmr.msra.gmra.mrb[88].mxu0 %vm1031_vm8, %v9980_v35 }
 0x786   :  { %4905 = vmatpush1.bf16.msra.mxu0 %v13911_v25  ;;  %9477 = vmatmul.mubr.msk.bf16.vlgmr.msra.gmra.mrb[88].mxu1 %vm1031_vm8, %v9980_v35 }
 0x787   :  { %4906 = vmatprep.subr.bf16.mxu0 %v13935_v15  ;;  %4978 = vmatpush1.bf16.msra.mxu1 %v13913_v14 }
 0x788   :  { %4979 = vmatprep.subr.bf16.mxu1 %v13937_v58  ;;  %4648 = vmatprep.mubr.bf16.mxu0 %v16151_v22 }
 0x789   :  { %4721 = vmatprep.mubr.bf16.mxu1 %v16151_v22 }
 0x78a   :  { %4907 = vmatpush1.bf16.msra.mxu0 %v13931_v5 }
 0x78b   :  { %4980 = vmatpush1.bf16.msra.mxu1 %v13933_v1  ;;  %5202 = vmatprep.subr.bf16.mxu0 %v13915_v56 }
 0x78c   :  { %5275 = vmatprep.subr.bf16.mxu1 %v13917_v8 }
 0x78d   :  { %9474 = vmatmul.mubr.msk.bf16.gmra.mrb[92].mxu0 %vm1031_vm8, %v9981_v9 }
 0x78e   :  { %9478 = vmatmul.mubr.msk.bf16.gmra.mrb[92].mxu1 %vm1031_vm8, %v9981_v9  ;;  %4658 = vmatprep.mubr.bf16.mxu0 %v16151_v22 }
 0x78f   :  { %4731 = vmatprep.mubr.bf16.mxu1 %v16151_v22 }
 0x795   :  { %9475 = vmatmul.mubr.msk.bf16.gmra.mrb[96].mxu0 %vm1031_vm8, %v9982_v46 }
 0x796   :  { %9479 = vmatmul.mubr.msk.bf16.gmra.mrb[96].mxu1 %vm1031_vm8, %v9982_v46  ;;  %4668 = vmatprep.mubr.bf16.mxu0 %v16151_v22 }
 0x797   :  { %4741 = vmatprep.mubr.bf16.mxu1 %v16151_v22 }
 0x79d   :  { %9476 = vmatmul.mubr.msk.bf16.gmra.mrb[100].mxu0 %vm1031_vm8, %v9983_v51 }
 0x79e   :  { %9480 = vmatmul.mubr.msk.bf16.gmra.mrb[100].mxu1 %vm1031_vm8, %v9983_v51  ;;  %4936 = vmatprep.mubr.bf16.mxu0 %v16151_v22 }
 0x79f   :  { %5009 = vmatprep.mubr.bf16.mxu1 %v16151_v22 }
 0x7a5   :  { %9485 = vmatmul.mubr.msk.bf16.vlgmr.msra.gmra.mrb[104].mxu0 %vm1031_vm8, %v9984_v31 }
 0x7a6   :  { %5203 = vmatpush1.bf16.msra.mxu0 %v13911_v25  ;;  %9489 = vmatmul.mubr.msk.bf16.vlgmr.msra.gmra.mrb[104].mxu1 %vm1031_vm8, %v9984_v31 }
 0x7a7   :  { %5204 = vmatprep.subr.bf16.mxu0 %v13935_v15  ;;  %5276 = vmatpush1.bf16.msra.mxu1 %v13913_v14 }
 0x7a8   :  { %5277 = vmatprep.subr.bf16.mxu1 %v13937_v58  ;;  %4946 = vmatprep.mubr.bf16.mxu0 %v16151_v22 }
 0x7a9   :  { %5019 = vmatprep.mubr.bf16.mxu1 %v16151_v22 }
 0x7aa   :  { %5205 = vmatpush1.bf16.msra.mxu0 %v13931_v5 }
 0x7ab   :  { %5278 = vmatpush1.bf16.msra.mxu1 %v13933_v1  ;;  %5500 = vmatprep.subr.bf16.mxu0 %v13915_v56 }
 0x7ac   :  { %5573 = vmatprep.subr.bf16.mxu1 %v13917_v8 }
 0x7ad   :  { %9486 = vmatmul.mubr.msk.bf16.gmra.mrb[108].mxu0 %vm1031_vm8, %v9985_v61 }
 0x7ae   :  { %9490 = vmatmul.mubr.msk.bf16.gmra.mrb[108].mxu1 %vm1031_vm8, %v9985_v61  ;;  %4956 = vmatprep.mubr.bf16.mxu0 %v16151_v22 }
 0x7af   :  { %5029 = vmatprep.mubr.bf16.mxu1 %v16151_v22 }
 0x7b5   :  { %9487 = vmatmul.mubr.msk.bf16.gmra.mrb[112].mxu0 %vm1031_vm8, %v9986_v28 }
 0x7b6   :  { %9491 = vmatmul.mubr.msk.bf16.gmra.mrb[112].mxu1 %vm1031_vm8, %v9986_v28  ;;  %4966 = vmatprep.mubr.bf16.mxu0 %v16151_v22 }
 0x7b7   :  { %5039 = vmatprep.mubr.bf16.mxu1 %v16151_v22 }
 0x7bd   :  { %9488 = vmatmul.mubr.msk.bf16.gmra.mrb[116].mxu0 %vm1031_vm8, %v9987_v23 }
 0x7be   :  { %9492 = vmatmul.mubr.msk.bf16.gmra.mrb[116].mxu1 %vm1031_vm8, %v9987_v23  ;;  %5234 = vmatprep.mubr.bf16.mxu0 %v16151_v22 }
 0x7bf   :  { %5307 = vmatprep.mubr.bf16.mxu1 %v16151_v22 }
 0x7c5   :  { %9497 = vmatmul.mubr.msk.bf16.vlgmr.msra.gmra.mrb[120].mxu0 %vm1031_vm8, %v9988_v60 }
 0x7c6   :  { %5501 = vmatpush1.bf16.msra.mxu0 %v13911_v25  ;;  %9501 = vmatmul.mubr.msk.bf16.vlgmr.msra.gmra.mrb[120].mxu1 %vm1031_vm8, %v9988_v60 }
 0x7c7   :  { %5502 = vmatprep.subr.bf16.mxu0 %v13935_v15  ;;  %5574 = vmatpush1.bf16.msra.mxu1 %v13913_v14 }
 0x7c8   :  { %5575 = vmatprep.subr.bf16.mxu1 %v13937_v58  ;;  %5244 = vmatprep.mubr.bf16.mxu0 %v16151_v22 }
 0x7c9   :  { %5317 = vmatprep.mubr.bf16.mxu1 %v16151_v22 }
 0x7ca   :  { %5503 = vmatpush1.bf16.msra.mxu0 %v13931_v5 }
 0x7cb   :  { %5576 = vmatpush1.bf16.msra.mxu1 %v13933_v1  ;;  %5798 = vmatprep.subr.bf16.mxu0 %v13915_v56 }
 0x7cc   :  { %5871 = vmatprep.subr.bf16.mxu1 %v13917_v8 }
 0x7cd   :  { %9498 = vmatmul.mubr.msk.bf16.gmra.mrb[124].mxu0 %vm1031_vm8, %v9989_v48 }
 0x7ce   :  { %9502 = vmatmul.mubr.msk.bf16.gmra.mrb[124].mxu1 %vm1031_vm8, %v9989_v48  ;;  %5254 = vmatprep.mubr.bf16.mxu0 %v16151_v22 }
 0x7cf   :  { %5327 = vmatprep.mubr.bf16.mxu1 %v16151_v22 }
 0x7d5   :  { %9499 = vmatmul.mubr.msk.bf16.gmra.mrb[128].mxu0 %vm1031_vm8, %v9990_v29 }
 0x7d6   :  { %9503 = vmatmul.mubr.msk.bf16.gmra.mrb[128].mxu1 %vm1031_vm8, %v9990_v29  ;;  %5264 = vmatprep.mubr.bf16.mxu0 %v16151_v22 }
 0x7d7   :  { %5337 = vmatprep.mubr.bf16.mxu1 %v16151_v22 }
 0x7d8   :  { %v3448_v43 = vpop.f32.mrb[24].mxu0 }
 0x7d9   :  { %v3450_v16 = vpop.f32.mrb[25].mxu0  ;;  %v3521_v36 = vpop.f32.mrb[24].mxu1  ;;  %v3449_v38 = vadd.f32 %v3448_v43, %v13652_v62 }
 0x7da   :  { %v3452_v39 = vpop.f32.mrb[26].mxu0  ;;  %v3523_v12 = vpop.f32.mrb[25].mxu1  ;;  %v3451_v21 = vadd.f32 %v3450_v16, %v13652_v62  ;;  %v3522_v35 = vadd.f32 %v3521_v36, %v13652_v62 }
 0x7db   :  { %v3454_v9 = vpop.f32.mrb[27].mxu0  ;;  %v3525_v46 = vpop.f32.mrb[26].mxu1  ;;  %v3524_v51 = vadd.f32 %v3523_v12, %v13652_v62  ;;  %v3453_v31 = vadd.f32 %v3452_v39, %v13657_v13  ;;  %v3560_v48 = vmax.f32 %v3449_v38, 0.0 }
 0x7dc   :  { %v3527_v61 = vpop.f32.mrb[27].mxu1  ;;  %v3455_v28 = vadd.f32 %v3454_v9, %v13657_v13  ;;  %v3526_v23 = vadd.f32 %v3525_v46, %v13657_v13  ;;  %v3561_v43 = vmax.f32 %v3451_v21, 0.0  ;;  %v3562_v62 = vmax.f32 %v3522_v35, 0.0 }
 0x7dd   :  { %9500 = vmatmul.mubr.msk.bf16.gmra.mrb[132].mxu0 %vm1031_vm8, %v9991_v44  ;;  %v3528_v60 = vadd.f32 %v3527_v61, %v13657_v13  ;;  %v3564_v29 = vmax.f32 %v3453_v31, 0.0  ;;  %v3563_v39 = vmax.f32 %v3524_v51, 0.0 }
 0x7de   :  { %9504 = vmatmul.mubr.msk.bf16.gmra.mrb[132].mxu1 %vm1031_vm8, %v9991_v44  ;;  %5532 = vmatprep.mubr.bf16.mxu0 %v16151_v22  ;;  %v3565_v16 = vmax.f32 %v3455_v28, 0.0  ;;  %v3566_v36 = vmax.f32 %v3526_v23, 0.0  ;;  %v9992_v44 = vld [vmem:[%s15690_s4 + $0xe0] sm:$0xff]  }
 0x7df   :  { %5605 = vmatprep.mubr.bf16.mxu1 %v16151_v22  ;;  %v3567_v12 = vmax.f32 %v3528_v60, 0.0  ;;  %v14205_v9 = vpack.c.bf16 %v3564_v29, %v3560_v48 }
 0x7e0   :  { %v3458_v46 = vpop.f32.mrb[28].mxu0  ;;  %v14207_v41 = vpack.c.bf16 %v3565_v16, %v3561_v43  ;;  %v14209_v13 = vpack.c.bf16 %v3566_v36, %v3562_v62 }
 0x7e1   :  { %v3460_v38 = vpop.f32.mrb[29].mxu0  ;;  %v3531_v31 = vpop.f32.mrb[28].mxu1  ;;  %v14214_v21 = vpack.c.bf16 %v3567_v12, %v3563_v39  ;;  %v3459_v35 = vadd.f32 %v3458_v46, %v13665_v37 }
 0x7e2   :  { %16157 = vst [vmem:[#allocation7_spill] sm:$0xff] %v14209_v13  ;;  %v3462_v61 = vpop.f32.mrb[30].mxu0  ;;  %v3533_v51 = vpop.f32.mrb[29].mxu1  ;;  %v3461_v28 = vadd.f32 %v3460_v38, %v13665_v37  ;;  %v3532_v23 = vadd.f32 %v3531_v31, %v13665_v37 }
 0x7e3   :  { %v3464_v60 = vpop.f32.mrb[31].mxu0  ;;  %v3535_v48 = vpop.f32.mrb[30].mxu1  ;;  %v3534_v29 = vadd.f32 %v3533_v51, %v13665_v37  ;;  %v3463_v43 = vadd.f32 %v3462_v61, %v13667_v55  ;;  %v3568_v12 = vmax.f32 %v3459_v35, 0.0 }
 0x7e4   :  { %v3537_v16 = vpop.f32.mrb[31].mxu1  ;;  %v3465_v62 = vadd.f32 %v3464_v60, %v13667_v55  ;;  %v3536_v36 = vadd.f32 %v3535_v48, %v13667_v55  ;;  %v3569_v38 = vmax.f32 %v3461_v28, 0.0  ;;  %v3570_v37 = vmax.f32 %v3532_v23, 0.0 }
 0x7e5   :  { %9509 = vmatmul.mubr.msk.bf16.vlgmr.msra.gmra.mrb[136].mxu0 %vm1031_vm8, %v9992_v44  ;;  %v3538_v39 = vadd.f32 %v3537_v16, %v13667_v55  ;;  %v3572_v46 = vmax.f32 %v3463_v43, 0.0  ;;  %v3571_v61 = vmax.f32 %v3534_v29, 0.0  ;;  %v9993_v43 = vld [vmem:[%s15690_s4 + $0xe8] sm:$0xff]  }
 0x7e6   :  { %5799 = vmatpush1.bf16.msra.mxu0 %v13911_v25  ;;  %9513 = vmatmul.mubr.msk.bf16.vlgmr.msra.gmra.mrb[136].mxu1 %vm1031_vm8, %v9992_v44  ;;  %v3573_v31 = vmax.f32 %v3465_v62, 0.0  ;;  %v3574_v51 = vmax.f32 %v3536_v36, 0.0 }
 0x7e7   :  { %5800 = vmatprep.subr.bf16.mxu0 %v13935_v15  ;;  %5872 = vmatpush1.bf16.msra.mxu1 %v13913_v14  ;;  %v3575_v60 = vmax.f32 %v3538_v39, 0.0  ;;  %v14229_v48 = vpack.c.bf16 %v3572_v46, %v3568_v12 }
 0x7e8   :  { %5873 = vmatprep.subr.bf16.mxu1 %v13937_v58  ;;  %v3468_v55 = vpop.f32.mrb[32].mxu0  ;;  %5542 = vmatprep.mubr.bf16.mxu0 %v16151_v22  ;;  %v14233_v35 = vpack.c.bf16 %v3573_v31, %v3569_v38  ;;  %v14235_v44 = vpack.c.bf16 %v3574_v51, %v3570_v37 }
 0x7e9   :  { %16158 = vst [vmem:[#allocation9_spill] sm:$0xff] %v14229_v48  ;;  %v3470_v28 = vpop.f32.mrb[33].mxu0  ;;  %v3541_v23 = vpop.f32.mrb[32].mxu1  ;;  %5615 = vmatprep.mubr.bf16.mxu1 %v16151_v22  ;;  %v14241_v29 = vpack.c.bf16 %v3575_v60, %v3571_v61  ;;  %v3469_v16 = vadd.f32 %v3468_v55, %v13678_v47 }
 0x7ea   :  { %16159 = vst [vmem:[#allocation68_spill] sm:$0xff] %v14235_v44  ;;  %5801 = vmatpush1.bf16.msra.mxu0 %v13931_v5  ;;  %v3472_v62 = vpop.f32.mrb[34].mxu0  ;;  %v3543_v36 = vpop.f32.mrb[33].mxu1  ;;  %v3471_v39 = vadd.f32 %v3470_v28, %v13678_v47  ;;  %v3542_v12 = vadd.f32 %v3541_v23, %v13678_v47 }
 0x7eb   :  { %16160 = vst [vmem:[#allocation38_spill] sm:$0xff] %v14241_v29  ;;  %5874 = vmatpush1.bf16.msra.mxu1 %v13933_v1  ;;  %6096 = vmatprep.subr.bf16.mxu0 %v13915_v56  ;;  %v3474_v46 = vpop.f32.mrb[35].mxu0  ;;  %v3545_v38 = vpop.f32.mrb[34].mxu1  ;;  %v3544_v31 = vadd.f32 %v3543_v36, %v13678_v47  ;;  %v3473_v37 = vadd.f32 %v3472_v62, %v13683_v45  ;;  %v3576_v28 = vmax.f32 %v3469_v16, 0.0 }
 0x7ec   :  { %6169 = vmatprep.subr.bf16.mxu1 %v13917_v8  ;;  %v3547_v51 = vpop.f32.mrb[35].mxu1  ;;  %v3475_v61 = vadd.f32 %v3474_v46, %v13683_v45  ;;  %v3546_v60 = vadd.f32 %v3545_v38, %v13683_v45  ;;  %v3577_v47 = vmax.f32 %v3471_v39, 0.0  ;;  %v3578_v62 = vmax.f32 %v3542_v12, 0.0 }
 0x7ed   :  { %9510 = vmatmul.mubr.msk.bf16.gmra.mrb[140].mxu0 %vm1031_vm8, %v9993_v43  ;;  %v3548_v55 = vadd.f32 %v3547_v51, %v13683_v45  ;;  %v3580_v23 = vmax.f32 %v3473_v37, 0.0  ;;  %v3579_v48 = vmax.f32 %v3544_v31, 0.0 }
 0x7ee   :  { %9514 = vmatmul.mubr.msk.bf16.gmra.mrb[140].mxu1 %vm1031_vm8, %v9993_v43  ;;  %5552 = vmatprep.mubr.bf16.mxu0 %v16151_v22  ;;  %v3581_v36 = vmax.f32 %v3475_v61, 0.0  ;;  %v3582_v44 = vmax.f32 %v3546_v60, 0.0  ;;  %v9994_v43 = vld [vmem:[%s15690_s4 + $0xf0] sm:$0xff]  }
 0x7ef   :  { %5625 = vmatprep.mubr.bf16.mxu1 %v16151_v22  ;;  %v3583_v46 = vmax.f32 %v3548_v55, 0.0  ;;  %v14259_v29 = vpack.c.bf16 %v3580_v23, %v3576_v28 }
 0x7f0   :  { %v3478_v38 = vpop.f32.mrb[36].mxu0  ;;  %v14261_v13 = vpack.c.bf16 %v3581_v36, %v3577_v47  ;;  %v14263_v45 = vpack.c.bf16 %v3582_v44, %v3578_v62 }
 0x7f1   :  { %16161 = vst [vmem:[#allocation10_spill] sm:$0xff] %v14259_v29  ;;  %v3480_v16 = vpop.f32.mrb[37].mxu0  ;;  %v3551_v37 = vpop.f32.mrb[36].mxu1  ;;  %v14268_v39 = vpack.c.bf16 %v3583_v46, %v3579_v48  ;;  %v3479_v12 = vadd.f32 %v3478_v38, %v13691_v6 }
 0x7f2   :  { %16162 = vst [vmem:[#allocation69_spill] sm:$0xff] %v14263_v45  ;;  %v3482_v51 = vpop.f32.mrb[38].mxu0  ;;  %v3553_v31 = vpop.f32.mrb[37].mxu1  ;;  %v3481_v61 = vadd.f32 %v3480_v16, %v13691_v6  ;;  %v3552_v60 = vadd.f32 %v3551_v37, %v13691_v6 }
 0x7f3   :  { %v3484_v55 = vpop.f32.mrb[39].mxu0  ;;  %v3555_v28 = vpop.f32.mrb[38].mxu1  ;;  %v3554_v44 = vadd.f32 %v3553_v31, %v13691_v6  ;;  %v3483_v23 = vadd.f32 %v3482_v51, %v13693_v7  ;;  %v3584_v46 = vmax.f32 %v3479_v12, 0.0 }
 0x7f4   :  { %v3557_v47 = vpop.f32.mrb[39].mxu1  ;;  %v3485_v36 = vadd.f32 %v3484_v55, %v13693_v7  ;;  %v3556_v48 = vadd.f32 %v3555_v28, %v13693_v7  ;;  %v3585_v16 = vmax.f32 %v3481_v61, 0.0  ;;  %v3586_v6 = vmax.f32 %v3552_v60, 0.0 }
 0x7f5   :  { %9511 = vmatmul.mubr.msk.bf16.gmra.mrb[144].mxu0 %vm1031_vm8, %v9994_v43  ;;  %v3558_v62 = vadd.f32 %v3557_v47, %v13693_v7  ;;  %v3588_v38 = vmax.f32 %v3483_v23, 0.0  ;;  %v3587_v51 = vmax.f32 %v3554_v44, 0.0 }
 0x7f6   :  { %9515 = vmatmul.mubr.msk.bf16.gmra.mrb[144].mxu1 %vm1031_vm8, %v9994_v43  ;;  %5562 = vmatprep.mubr.bf16.mxu0 %v16151_v22  ;;  %v3589_v37 = vmax.f32 %v3485_v36, 0.0  ;;  %v3590_v31 = vmax.f32 %v3556_v48, 0.0  ;;  %v9995_v43 = vld [vmem:[%s15690_s4 + $0xf8] sm:$0xff]  }
 0x7f7   :  { %5635 = vmatprep.mubr.bf16.mxu1 %v16151_v22  ;;  %v3591_v55 = vmax.f32 %v3558_v62, 0.0  ;;  %v14282_v45 = vpack.c.bf16 %v3588_v38, %v3584_v46 }
 0x7f8   :  { %v3746_v28 = vpop.f32.mrb[40].mxu0  ;;  %v14284_v29 = vpack.c.bf16 %v3589_v37, %v3585_v16  ;;  %v14286_v7 = vpack.c.bf16 %v3590_v31, %v3586_v6 }
 0x7f9   :  { %16163 = vst [vmem:[#allocation71_spill] sm:$0xff] %v14282_v45  ;;  %v3748_v12 = vpop.f32.mrb[41].mxu0  ;;  %v3819_v23 = vpop.f32.mrb[40].mxu1  ;;  %v14291_v61 = vpack.c.bf16 %v3591_v55, %v3587_v51  ;;  %v3747_v60 = vadd.f32 %v3746_v28, %v13704_v34 }
 0x7fa   :  { %16164 = vst [vmem:[#allocation48_spill] sm:$0xff] %v14286_v7  ;;  %v3750_v47 = vpop.f32.mrb[42].mxu0  ;;  %v3821_v44 = vpop.f32.mrb[41].mxu1  ;;  %v3749_v36 = vadd.f32 %v3748_v12, %v13704_v34  ;;  %v3820_v48 = vadd.f32 %v3819_v23, %v13704_v34 }
 0x7fb   :  { %v3752_v62 = vpop.f32.mrb[43].mxu0  ;;  %v3823_v46 = vpop.f32.mrb[42].mxu1  ;;  %v3822_v38 = vadd.f32 %v3821_v44, %v13704_v34  ;;  %v3751_v16 = vadd.f32 %v3750_v47, %v13709_v11  ;;  %v3858_v55 = vmax.f32 %v3747_v60, 0.0 }
 0x7fc   :  { %v3825_v37 = vpop.f32.mrb[43].mxu1  ;;  %v3753_v6 = vadd.f32 %v3752_v62, %v13709_v11  ;;  %v3824_v31 = vadd.f32 %v3823_v46, %v13709_v11  ;;  %v3859_v12 = vmax.f32 %v3749_v36, 0.0  ;;  %v3860_v34 = vmax.f32 %v3820_v48, 0.0  ;;  %v9996_v36 = vld [vmem:[%s15690_s4 + $0x100] sm:$0xff]  }
 0x7fd   :  { %9512 = vmatmul.mubr.msk.bf16.gmra.mrb[148].mxu0 %vm1031_vm8, %v9995_v43  ;;  %v3826_v51 = vadd.f32 %v3825_v37, %v13709_v11  ;;  %v3862_v28 = vmax.f32 %v3751_v16, 0.0  ;;  %v3861_v47 = vmax.f32 %v3822_v38, 0.0 }
 0x7fe   :  { %9516 = vmatmul.mubr.msk.bf16.gmra.mrb[148].mxu1 %vm1031_vm8, %v9995_v43  ;;  %5830 = vmatprep.mubr.bf16.mxu0 %v16151_v22  ;;  %v3863_v23 = vmax.f32 %v3753_v6, 0.0  ;;  %v3864_v44 = vmax.f32 %v3824_v31, 0.0 }
 0x7ff   :  { %5903 = vmatprep.mubr.bf16.mxu1 %v16151_v22  ;;  %v3865_v62 = vmax.f32 %v3826_v51, 0.0  ;;  %v14305_v7 = vpack.c.bf16 %v3862_v28, %v3858_v55 }
 0x800   :  { %v3756_v46 = vpop.f32.mrb[44].mxu0  ;;  %v14307_v45 = vpack.c.bf16 %v3863_v23, %v3859_v12  ;;  %v14309_v11 = vpack.c.bf16 %v3864_v44, %v3860_v34 }
 0x801   :  { %16165 = vst [vmem:[#allocation55_spill] sm:$0xff] %v14305_v7  ;;  %v3757_v60 = vadd.f32 %v3756_v46, %v13717_v2  ;;  %v3758_v43 = vpop.f32.mrb[45].mxu0  ;;  %v3829_v16 = vpop.f32.mrb[44].mxu1  ;;  %v14315_v48 = vpack.c.bf16 %v3865_v62, %v3861_v47 }
 0x802   :  { %16166 = vst [vmem:[#allocation46_spill] sm:$0xff] %v14309_v11  ;;  %v3759_v38 = vadd.f32 %v3758_v43, %v13717_v2  ;;  %v3830_v37 = vadd.f32 %v3829_v16, %v13717_v2  ;;  %v3760_v6 = vpop.f32.mrb[46].mxu0  ;;  %v3831_v31 = vpop.f32.mrb[45].mxu1 }
 0x803   :  { %v3761_v51 = vadd.f32 %v3760_v6, %v13719_v57  ;;  %v3832_v55 = vadd.f32 %v3831_v31, %v13717_v2  ;;  %v3762_v28 = vpop.f32.mrb[47].mxu0  ;;  %v3833_v12 = vpop.f32.mrb[46].mxu1  ;;  %v3866_v46 = vmax.f32 %v3757_v60, 0.0 }
 0x804   :  { %v3763_v23 = vadd.f32 %v3762_v28, %v13719_v57  ;;  %v3834_v34 = vadd.f32 %v3833_v12, %v13719_v57  ;;  %v3835_v44 = vpop.f32.mrb[47].mxu1  ;;  %v3867_v43 = vmax.f32 %v3759_v38, 0.0  ;;  %v3868_v16 = vmax.f32 %v3830_v37, 0.0  ;;  %v9997_v28 = vld [vmem:[%s15690_s4 + $0x108] sm:$0xff]  }
 0x805   :  { %v3870_v47 = vmax.f32 %v3761_v51, 0.0  ;;  %v3836_v62 = vadd.f32 %v3835_v44, %v13719_v57  ;;  %9521 = vmatmul.mubr.msk.bf16.vlgmr.msra.gmra.mrb[152].mxu0 %vm1031_vm8, %v9996_v36  ;;  %v3869_v6 = vmax.f32 %v3832_v55, 0.0 }
 0x806   :  { %v3871_v11 = vmax.f32 %v3763_v23, 0.0  ;;  %v3872_v7 = vmax.f32 %v3834_v34, 0.0  ;;  %6097 = vmatpush1.bf16.msra.mxu0 %v13911_v25  ;;  %9525 = vmatmul.mubr.msk.bf16.vlgmr.msra.gmra.mrb[152].mxu1 %vm1031_vm8, %v9996_v36 }
 0x807   :  { %v14327_v2 = vpack.c.bf16 %v3870_v47, %v3866_v46  ;;  %v3873_v31 = vmax.f32 %v3836_v62, 0.0  ;;  %6098 = vmatprep.subr.bf16.mxu0 %v13935_v15  ;;  %6170 = vmatpush1.bf16.msra.mxu1 %v13913_v14 }
 0x808   :  { %v14331_v60 = vpack.c.bf16 %v3871_v11, %v3867_v43  ;;  %v14333_v57 = vpack.c.bf16 %v3872_v7, %v3868_v16  ;;  %6171 = vmatprep.subr.bf16.mxu1 %v13937_v58  ;;  %v3766_v38 = vpop.f32.mrb[48].mxu0  ;;  %5840 = vmatprep.mubr.bf16.mxu0 %v16151_v22 }
 0x809   :  { %v14337_v37 = vpack.c.bf16 %v3873_v31, %v3869_v6  ;;  %v3767_v36 = vadd.f32 %v3766_v38, %v13730_v54  ;;  %v3768_v51 = vpop.f32.mrb[49].mxu0  ;;  %v3839_v55 = vpop.f32.mrb[48].mxu1  ;;  %5913 = vmatprep.mubr.bf16.mxu1 %v16151_v22 }
 0x80a   :  { %16167 = vst [vmem:[#allocation70_spill] sm:$0xff] %v14333_v57  ;;  %v3769_v7 = vadd.f32 %v3768_v51, %v13730_v54  ;;  %v3840_v11 = vadd.f32 %v3839_v55, %v13730_v54  ;;  %6099 = vmatpush1.bf16.msra.mxu0 %v13931_v5  ;;  %v3770_v12 = vpop.f32.mrb[50].mxu0  ;;  %v3841_v23 = vpop.f32.mrb[49].mxu1 }
 0x80b   :  { %v3771_v34 = vadd.f32 %v3770_v12, %v13735_v4  ;;  %v3842_v44 = vadd.f32 %v3841_v23, %v13730_v54  ;;  %6172 = vmatpush1.bf16.msra.mxu1 %v13933_v1  ;;  %6394 = vmatprep.subr.bf16.mxu0 %v13915_v56  ;;  %v3772_v46 = vpop.f32.mrb[51].mxu0  ;;  %v3843_v47 = vpop.f32.mrb[50].mxu1  ;;  %v3874_v6 = vmax.f32 %v3767_v36, 0.0 }
 0x80c   :  { %v3773_v62 = vadd.f32 %v3772_v46, %v13735_v4  ;;  %v3844_v43 = vadd.f32 %v3843_v47, %v13735_v4  ;;  %6467 = vmatprep.subr.bf16.mxu1 %v13917_v8  ;;  %v3845_v16 = vpop.f32.mrb[51].mxu1  ;;  %v3875_v54 = vmax.f32 %v3769_v7, 0.0  ;;  %v3876_v51 = vmax.f32 %v3840_v11, 0.0 }
 0x80d   :  { %v3878_v31 = vmax.f32 %v3771_v34, 0.0  ;;  %v3846_v38 = vadd.f32 %v3845_v16, %v13735_v4  ;;  %9522 = vmatmul.mubr.msk.bf16.gmra.mrb[156].mxu0 %vm1031_vm8, %v9997_v28  ;;  %v3877_v46 = vmax.f32 %v3842_v44, 0.0 }
 0x80e   :  { %v3879_v55 = vmax.f32 %v3773_v62, 0.0  ;;  %v3880_v12 = vmax.f32 %v3844_v43, 0.0  ;;  %9526 = vmatmul.mubr.msk.bf16.gmra.mrb[156].mxu1 %vm1031_vm8, %v9997_v28  ;;  %5850 = vmatprep.mubr.bf16.mxu0 %v16151_v22  ;;  %v9998_v28 = vld [vmem:[%s15690_s4 + $0x110] sm:$0xff]  }
 0x80f   :  { %v14358_v23 = vpack.c.bf16 %v3878_v31, %v3874_v6  ;;  %v3881_v47 = vmax.f32 %v3846_v38, 0.0  ;;  %5923 = vmatprep.mubr.bf16.mxu1 %v16151_v22 }
 0x810   :  { %v14361_v36 = vpack.c.bf16 %v3879_v55, %v3875_v54  ;;  %v14363_v34 = vpack.c.bf16 %v3880_v12, %v3876_v51  ;;  %v3776_v4 = vpop.f32.mrb[52].mxu0 }
 0x811   :  { %16168 = vst [vmem:[#allocation11_spill] sm:$0xff] %v14358_v23  ;;  %v14365_v16 = vpack.c.bf16 %v3881_v47, %v3877_v46  ;;  %v3777_v7 = vadd.f32 %v3776_v4, %v13743_v63  ;;  %v3778_v11 = vpop.f32.mrb[53].mxu0  ;;  %v3849_v62 = vpop.f32.mrb[52].mxu1 }
 0x812   :  { %16169 = vst [vmem:[#allocation72_spill] sm:$0xff] %v14363_v34  ;;  %v3779_v44 = vadd.f32 %v3778_v11, %v13743_v63  ;;  %v3850_v43 = vadd.f32 %v3849_v62, %v13743_v63  ;;  %v3780_v6 = vpop.f32.mrb[54].mxu0  ;;  %v3851_v31 = vpop.f32.mrb[53].mxu1 }
 0x813   :  { %16170 = vst [vmem:[#allocation42_spill] sm:$0xff] %v14365_v16  ;;  %v3781_v38 = vadd.f32 %v3780_v6, %v13745_v18  ;;  %v3852_v54 = vadd.f32 %v3851_v31, %v13743_v63  ;;  %v3782_v51 = vpop.f32.mrb[55].mxu0  ;;  %v3853_v55 = vpop.f32.mrb[54].mxu1  ;;  %v3882_v4 = vmax.f32 %v3777_v7, 0.0 }
 0x814   :  { %v3783_v12 = vadd.f32 %v3782_v51, %v13745_v18  ;;  %v3854_v46 = vadd.f32 %v3853_v55, %v13745_v18  ;;  %v3855_v47 = vpop.f32.mrb[55].mxu1  ;;  %v3883_v11 = vmax.f32 %v3779_v44, 0.0  ;;  %v3884_v62 = vmax.f32 %v3850_v43, 0.0 }
 0x815   :  { %v3886_v34 = vmax.f32 %v3781_v38, 0.0  ;;  %v3856_v23 = vadd.f32 %v3855_v47, %v13745_v18  ;;  %9523 = vmatmul.mubr.msk.bf16.gmra.mrb[160].mxu0 %vm1031_vm8, %v9998_v28  ;;  %v3885_v6 = vmax.f32 %v3852_v54, 0.0 }
 0x816   :  { %v3887_v16 = vmax.f32 %v3783_v12, 0.0  ;;  %v3888_v57 = vmax.f32 %v3854_v46, 0.0  ;;  %9527 = vmatmul.mubr.msk.bf16.gmra.mrb[160].mxu1 %vm1031_vm8, %v9998_v28  ;;  %5860 = vmatprep.mubr.bf16.mxu0 %v16151_v22 }
 0x817   :  { %v14381_v63 = vpack.c.bf16 %v3886_v34, %v3882_v4  ;;  %v3889_v31 = vmax.f32 %v3856_v23, 0.0  ;;  %5933 = vmatprep.mubr.bf16.mxu1 %v16151_v22  ;;  %v9999_v34 = vld [vmem:[%s15690_s4 + $0x118] sm:$0xff]  }
 0x818   :  { %v14384_v7 = vpack.c.bf16 %v3887_v16, %v3883_v11  ;;  %v14386_v38 = vpack.c.bf16 %v3888_v57, %v3884_v62  ;;  %v4044_v18 = vpop.f32.mrb[56].mxu0 }
 0x819   :  { %16171 = vst [vmem:[#allocation73_spill] sm:$0xff] %v14381_v63  ;;  %v14388_v51 = vpack.c.bf16 %v3889_v31, %v3885_v6  ;;  %v4045_v44 = vadd.f32 %v4044_v18, %v13756_v33  ;;  %v4046_v43 = vpop.f32.mrb[57].mxu0  ;;  %v4117_v55 = vpop.f32.mrb[56].mxu1 }
 0x81a   :  { %16172 = vst [vmem:[#allocation75_spill] sm:$0xff] %v14386_v38  ;;  %v4047_v28 = vadd.f32 %v4046_v43, %v13756_v33  ;;  %v4118_v23 = vadd.f32 %v4117_v55, %v13756_v33  ;;  %v4048_v54 = vpop.f32.mrb[58].mxu0  ;;  %v4119_v16 = vpop.f32.mrb[57].mxu1 }
 0x81b   :  { %v4049_v57 = vadd.f32 %v4048_v54, %v13761_v3  ;;  %v4120_v12 = vadd.f32 %v4119_v16, %v13756_v33  ;;  %v4050_v46 = vpop.f32.mrb[59].mxu0  ;;  %v4121_v47 = vpop.f32.mrb[58].mxu1  ;;  %v4156_v6 = vmax.f32 %v4045_v44, 0.0 }
 0x81c   :  { %v4051_v4 = vadd.f32 %v4050_v46, %v13761_v3  ;;  %v4122_v11 = vadd.f32 %v4121_v47, %v13761_v3  ;;  %v4123_v62 = vpop.f32.mrb[59].mxu1  ;;  %v4157_v43 = vmax.f32 %v4047_v28, 0.0  ;;  %v4158_v55 = vmax.f32 %v4118_v23, 0.0 }
 0x81d   :  { %v4160_v31 = vmax.f32 %v4049_v57, 0.0  ;;  %v4124_v18 = vadd.f32 %v4123_v62, %v13761_v3  ;;  %9524 = vmatmul.mubr.msk.bf16.gmra.mrb[164].mxu0 %vm1031_vm8, %v9999_v34  ;;  %v4159_v54 = vmax.f32 %v4120_v12, 0.0 }
 0x81e   :  { %v4161_v38 = vmax.f32 %v4051_v4, 0.0  ;;  %v4162_v63 = vmax.f32 %v4122_v11, 0.0  ;;  %9528 = vmatmul.mubr.msk.bf16.gmra.mrb[164].mxu1 %vm1031_vm8, %v9999_v34  ;;  %6128 = vmatprep.mubr.bf16.mxu0 %v16151_v22  ;;  %v10000_v34 = vld [vmem:[%s15690_s4 + $0x120] sm:$0xff]  }
 0x81f   :  { %v14404_v33 = vpack.c.bf16 %v4160_v31, %v4156_v6  ;;  %v4163_v16 = vmax.f32 %v4124_v18, 0.0  ;;  %6201 = vmatprep.mubr.bf16.mxu1 %v16151_v22 }
 0x820   :  { %v14407_v44 = vpack.c.bf16 %v4161_v38, %v4157_v43  ;;  %v14409_v57 = vpack.c.bf16 %v4162_v63, %v4158_v55  ;;  %v4054_v3 = vpop.f32.mrb[60].mxu0 }
 0x821   :  { %16173 = vst [vmem:[#allocation74_spill] sm:$0xff] %v14404_v33  ;;  %v14411_v46 = vpack.c.bf16 %v4163_v16, %v4159_v54  ;;  %v4055_v28 = vadd.f32 %v4054_v3, %v13769_v0  ;;  %v4056_v23 = vpop.f32.mrb[61].mxu0  ;;  %v4127_v47 = vpop.f32.mrb[60].mxu1 }
 0x822   :  { %16174 = vst [vmem:[#allocation12_spill] sm:$0xff] %v14409_v57  ;;  %v4057_v12 = vadd.f32 %v4056_v23, %v13769_v0  ;;  %v4128_v4 = vadd.f32 %v4127_v47, %v13769_v0  ;;  %v4058_v11 = vpop.f32.mrb[62].mxu0  ;;  %v4129_v38 = vpop.f32.mrb[61].mxu1 }
 0x823   :  { %v4059_v63 = vadd.f32 %v4058_v11, %v13771_v49  ;;  %v4130_v62 = vadd.f32 %v4129_v38, %v13769_v0  ;;  %v4060_v6 = vpop.f32.mrb[63].mxu0  ;;  %v4131_v31 = vpop.f32.mrb[62].mxu1  ;;  %v4164_v54 = vmax.f32 %v4055_v28, 0.0 }
 0x824   :  { %v4061_v18 = vadd.f32 %v4060_v6, %v13771_v49  ;;  %v4132_v43 = vadd.f32 %v4131_v31, %v13771_v49  ;;  %v4133_v55 = vpop.f32.mrb[63].mxu1  ;;  %v4165_v23 = vmax.f32 %v4057_v12, 0.0  ;;  %v4166_v47 = vmax.f32 %v4128_v4, 0.0  ;;  %v10001_v6 = vld [vmem:[%s15690_s4 + $0x128] sm:$0xff]  }
 0x825   :  { %v4168_v16 = vmax.f32 %v4059_v63, 0.0  ;;  %v4134_v3 = vadd.f32 %v4133_v55, %v13771_v49  ;;  %9533 = vmatmul.mubr.msk.bf16.vlgmr.msra.gmra.mrb[168].mxu0 %vm1031_vm8, %v10000_v34  ;;  %v4167_v11 = vmax.f32 %v4130_v62, 0.0 }
 0x826   :  { %v4169_v57 = vmax.f32 %v4061_v18, 0.0  ;;  %v4170_v33 = vmax.f32 %v4132_v43, 0.0  ;;  %6395 = vmatpush1.bf16.msra.mxu0 %v13911_v25  ;;  %9537 = vmatmul.mubr.msk.bf16.vlgmr.msra.gmra.mrb[168].mxu1 %vm1031_vm8, %v10000_v34 }
 0x827   :  { %v14427_v0 = vpack.c.bf16 %v4168_v16, %v4164_v54  ;;  %v4171_v38 = vmax.f32 %v4134_v3, 0.0  ;;  %6396 = vmatprep.subr.bf16.mxu0 %v13935_v15  ;;  %6468 = vmatpush1.bf16.msra.mxu1 %v13913_v14 }
 0x828   :  { %v14431_v28 = vpack.c.bf16 %v4169_v57, %v4165_v23  ;;  %v14433_v49 = vpack.c.bf16 %v4170_v33, %v4166_v47  ;;  %6469 = vmatprep.subr.bf16.mxu1 %v13937_v58  ;;  %v4064_v12 = vpop.f32.mrb[64].mxu0  ;;  %6138 = vmatprep.mubr.bf16.mxu0 %v16151_v22 }
 0x829   :  { %v14437_v4 = vpack.c.bf16 %v4171_v38, %v4167_v11  ;;  %v4065_v34 = vadd.f32 %v4064_v12, %v13785_v50  ;;  %v4066_v63 = vpop.f32.mrb[65].mxu0  ;;  %v4137_v62 = vpop.f32.mrb[64].mxu1  ;;  %6211 = vmatprep.mubr.bf16.mxu1 %v16151_v22 }
 0x82a   :  { %16175 = vst [vmem:[#allocation13_spill] sm:$0xff] %v14433_v49  ;;  %v4067_v33 = vadd.f32 %v4066_v63, %v13785_v50  ;;  %v4138_v57 = vadd.f32 %v4137_v62, %v13785_v50  ;;  %6397 = vmatpush1.bf16.msra.mxu0 %v13931_v5  ;;  %v4068_v31 = vpop.f32.mrb[66].mxu0  ;;  %v4139_v18 = vpop.f32.mrb[65].mxu1 }
 0x82b   :  { %v4069_v43 = vadd.f32 %v4068_v31, %v13787_v10  ;;  %v4140_v55 = vadd.f32 %v4139_v18, %v13785_v50  ;;  %6470 = vmatpush1.bf16.msra.mxu1 %v13933_v1  ;;  %6692 = vmatprep.subr.bf16.mxu0 %v13915_v56  ;;  %v4070_v54 = vpop.f32.mrb[67].mxu0  ;;  %v4141_v16 = vpop.f32.mrb[66].mxu1  ;;  %v4172_v11 = vmax.f32 %v4065_v34, 0.0 }
 0x82c   :  { %v4071_v3 = vadd.f32 %v4070_v54, %v13787_v10  ;;  %v4142_v23 = vadd.f32 %v4141_v16, %v13787_v10  ;;  %6765 = vmatprep.subr.bf16.mxu1 %v13917_v8  ;;  %v4143_v47 = vpop.f32.mrb[67].mxu1  ;;  %v4173_v50 = vmax.f32 %v4067_v33, 0.0  ;;  %v4174_v63 = vmax.f32 %v4138_v57, 0.0 }
 0x82d   :  { %v4176_v38 = vmax.f32 %v4069_v43, 0.0  ;;  %v4144_v12 = vadd.f32 %v4143_v47, %v13787_v10  ;;  %9534 = vmatmul.mubr.msk.bf16.gmra.mrb[172].mxu0 %vm1031_vm8, %v10001_v6  ;;  %v4175_v54 = vmax.f32 %v4140_v55, 0.0 }
 0x82e   :  { %v4177_v62 = vmax.f32 %v4071_v3, 0.0  ;;  %v4178_v31 = vmax.f32 %v4142_v23, 0.0  ;;  %9538 = vmatmul.mubr.msk.bf16.gmra.mrb[172].mxu1 %vm1031_vm8, %v10001_v6  ;;  %6148 = vmatprep.mubr.bf16.mxu0 %v16151_v22  ;;  %v10002_v6 = vld [vmem:[%s15690_s4 + $0x130] sm:$0xff]  }
 0x82f   :  { %v14458_v18 = vpack.c.bf16 %v4176_v38, %v4172_v11  ;;  %v4179_v16 = vmax.f32 %v4144_v12, 0.0  ;;  %6221 = vmatprep.mubr.bf16.mxu1 %v16151_v22 }
 0x830   :  { %v14461_v34 = vpack.c.bf16 %v4177_v62, %v4173_v50  ;;  %v14463_v43 = vpack.c.bf16 %v4178_v31, %v4174_v63  ;;  %v4074_v10 = vpop.f32.mrb[68].mxu0 }
 0x831   :  { %16176 = vst [vmem:[#allocation41_spill] sm:$0xff] %v14458_v18  ;;  %v14465_v47 = vpack.c.bf16 %v4179_v16, %v4175_v54  ;;  %v4075_v33 = vadd.f32 %v4074_v10, %v13798_v40  ;;  %v4076_v57 = vpop.f32.mrb[69].mxu0  ;;  %v4147_v3 = vpop.f32.mrb[68].mxu1 }
 0x832   :  { %16177 = vst [vmem:[#allocation76_spill] sm:$0xff] %v14463_v43  ;;  %v4077_v55 = vadd.f32 %v4076_v57, %v13798_v40  ;;  %v4148_v23 = vadd.f32 %v4147_v3, %v13798_v40  ;;  %v4078_v11 = vpop.f32.mrb[70].mxu0  ;;  %v4149_v38 = vpop.f32.mrb[69].mxu1 }
 0x833   :  { %16178 = vst [vmem:[#allocation79_spill] sm:$0xff] %v14465_v47  ;;  %v4079_v12 = vadd.f32 %v4078_v11, %v13800_v26  ;;  %v4150_v50 = vadd.f32 %v4149_v38, %v13798_v40  ;;  %v4080_v63 = vpop.f32.mrb[71].mxu0  ;;  %v4151_v62 = vpop.f32.mrb[70].mxu1  ;;  %v4180_v10 = vmax.f32 %v4075_v33, 0.0 }
 0x834   :  { %v4081_v31 = vadd.f32 %v4080_v63, %v13800_v26  ;;  %v4152_v54 = vadd.f32 %v4151_v62, %v13800_v26  ;;  %v4153_v16 = vpop.f32.mrb[71].mxu1  ;;  %v4181_v57 = vmax.f32 %v4077_v55, 0.0  ;;  %v4182_v3 = vmax.f32 %v4148_v23, 0.0 }
 0x835   :  { %v4184_v43 = vmax.f32 %v4079_v12, 0.0  ;;  %v4154_v18 = vadd.f32 %v4153_v16, %v13800_v26  ;;  %9535 = vmatmul.mubr.msk.bf16.gmra.mrb[176].mxu0 %vm1031_vm8, %v10002_v6  ;;  %v4183_v11 = vmax.f32 %v4150_v50, 0.0 }
 0x836   :  { %v4185_v47 = vmax.f32 %v4081_v31, 0.0  ;;  %v4186_v49 = vmax.f32 %v4152_v54, 0.0  ;;  %9539 = vmatmul.mubr.msk.bf16.gmra.mrb[176].mxu1 %vm1031_vm8, %v10002_v6  ;;  %6158 = vmatprep.mubr.bf16.mxu0 %v16151_v22 }
 0x837   :  { %v14481_v40 = vpack.c.bf16 %v4184_v43, %v4180_v10  ;;  %v4187_v38 = vmax.f32 %v4154_v18, 0.0  ;;  %6231 = vmatprep.mubr.bf16.mxu1 %v16151_v22  ;;  %v10003_v43 = vld [vmem:[%s15690_s4 + $0x138] sm:$0xff]  }
 0x838   :  { %v14484_v33 = vpack.c.bf16 %v4185_v47, %v4181_v57  ;;  %v14486_v12 = vpack.c.bf16 %v4186_v49, %v4182_v3  ;;  %v4342_v26 = vpop.f32.mrb[72].mxu0 }
 0x839   :  { %16179 = vst [vmem:[#allocation77_spill] sm:$0xff] %v14481_v40  ;;  %v14488_v63 = vpack.c.bf16 %v4187_v38, %v4183_v11  ;;  %v4343_v55 = vadd.f32 %v4342_v26, %v13811_v52  ;;  %v4344_v23 = vpop.f32.mrb[73].mxu0  ;;  %v4415_v62 = vpop.f32.mrb[72].mxu1 }
 0x83a   :  { %16180 = vst [vmem:[#allocation78_spill] sm:$0xff] %v14486_v12  ;;  %v4345_v6 = vadd.f32 %v4344_v23, %v13811_v52  ;;  %v4416_v18 = vadd.f32 %v4415_v62, %v13811_v52  ;;  %v4346_v50 = vpop.f32.mrb[74].mxu0  ;;  %v4417_v47 = vpop.f32.mrb[73].mxu1 }
 0x83b   :  { %v4347_v49 = vadd.f32 %v4346_v50, %v13813_v53  ;;  %v4418_v31 = vadd.f32 %v4417_v47, %v13811_v52  ;;  %v4348_v54 = vpop.f32.mrb[75].mxu0  ;;  %v4419_v16 = vpop.f32.mrb[74].mxu1  ;;  %v4454_v11 = vmax.f32 %v4343_v55, 0.0 }
 0x83c   :  { %v4349_v10 = vadd.f32 %v4348_v54, %v13813_v53  ;;  %v4420_v57 = vadd.f32 %v4419_v16, %v13813_v53  ;;  %v4421_v3 = vpop.f32.mrb[75].mxu1  ;;  %v4455_v23 = vmax.f32 %v4345_v6, 0.0  ;;  %v4456_v62 = vmax.f32 %v4416_v18, 0.0 }
 0x83d   :  { %v4458_v38 = vmax.f32 %v4347_v49, 0.0  ;;  %v4422_v26 = vadd.f32 %v4421_v3, %v13813_v53  ;;  %9536 = vmatmul.mubr.msk.bf16.gmra.mrb[180].mxu0 %vm1031_vm8, %v10003_v43  ;;  %v4457_v50 = vmax.f32 %v4418_v31, 0.0 }
 0x83e   :  { %v4459_v12 = vmax.f32 %v4349_v10, 0.0  ;;  %v4460_v40 = vmax.f32 %v4420_v57, 0.0  ;;  %9540 = vmatmul.mubr.msk.bf16.gmra.mrb[180].mxu1 %vm1031_vm8, %v10003_v43  ;;  %6426 = vmatprep.mubr.bf16.mxu0 %v16151_v22  ;;  %v10004_v43 = vld [vmem:[%s15690_s4 + $0x140] sm:$0xff]  }
 0x83f   :  { %v14504_v52 = vpack.c.bf16 %v4458_v38, %v4454_v11  ;;  %v4461_v47 = vmax.f32 %v4422_v26, 0.0  ;;  %6499 = vmatprep.mubr.bf16.mxu1 %v16151_v22 }
 0x840   :  { %v14507_v55 = vpack.c.bf16 %v4459_v12, %v4455_v23  ;;  %v14509_v49 = vpack.c.bf16 %v4460_v40, %v4456_v62  ;;  %v4352_v53 = vpop.f32.mrb[76].mxu0 }
 0x841   :  { %16181 = vst [vmem:[#allocation59_spill] sm:$0xff] %v14504_v52  ;;  %v14511_v54 = vpack.c.bf16 %v4461_v47, %v4457_v50  ;;  %v4353_v6 = vadd.f32 %v4352_v53, %v13824_v32  ;;  %v4354_v18 = vpop.f32.mrb[77].mxu0  ;;  %v4425_v16 = vpop.f32.mrb[76].mxu1 }
 0x842   :  { %16182 = vst [vmem:[#allocation33_spill] sm:$0xff] %v14509_v49  ;;  %v4355_v31 = vadd.f32 %v4354_v18, %v13824_v32  ;;  %v4426_v10 = vadd.f32 %v4425_v16, %v13824_v32  ;;  %v4356_v57 = vpop.f32.mrb[78].mxu0  ;;  %v4427_v12 = vpop.f32.mrb[77].mxu1 }
 0x843   :  { %v4357_v40 = vadd.f32 %v4356_v57, %v13829_v17  ;;  %v4428_v3 = vadd.f32 %v4427_v12, %v13824_v32  ;;  %v4358_v11 = vpop.f32.mrb[79].mxu0  ;;  %v4429_v38 = vpop.f32.mrb[78].mxu1  ;;  %v4462_v50 = vmax.f32 %v4353_v6, 0.0 }
 0x844   :  { %v4359_v26 = vadd.f32 %v4358_v11, %v13829_v17  ;;  %v4430_v23 = vadd.f32 %v4429_v38, %v13829_v17  ;;  %v4431_v62 = vpop.f32.mrb[79].mxu1  ;;  %v4463_v18 = vmax.f32 %v4355_v31, 0.0  ;;  %v4464_v16 = vmax.f32 %v4426_v10, 0.0  ;;  %v10005_v11 = vld [vmem:[%s15690_s4 + $0x148] sm:$0xff]  }
 0x845   :  { %v4466_v47 = vmax.f32 %v4357_v40, 0.0  ;;  %v4432_v53 = vadd.f32 %v4431_v62, %v13829_v17  ;;  %9545 = vmatmul.mubr.msk.bf16.vlgmr.msra.gmra.mrb[184].mxu0 %vm1031_vm8, %v10004_v43  ;;  %v4465_v57 = vmax.f32 %v4428_v3, 0.0 }
 0x846   :  { %v4467_v49 = vmax.f32 %v4359_v26, 0.0  ;;  %v4468_v52 = vmax.f32 %v4430_v23, 0.0  ;;  %6693 = vmatpush1.bf16.msra.mxu0 %v13911_v25  ;;  %9549 = vmatmul.mubr.msk.bf16.vlgmr.msra.gmra.mrb[184].mxu1 %vm1031_vm8, %v10004_v43 }
 0x847   :  { %v14527_v32 = vpack.c.bf16 %v4466_v47, %v4462_v50  ;;  %v4469_v12 = vmax.f32 %v4432_v53, 0.0  ;;  %6694 = vmatprep.subr.bf16.mxu0 %v13935_v15  ;;  %6766 = vmatpush1.bf16.msra.mxu1 %v13913_v14 }
 0x848   :  { %v14531_v6 = vpack.c.bf16 %v4467_v49, %v4463_v18  ;;  %v14533_v17 = vpack.c.bf16 %v4468_v52, %v4464_v16  ;;  %6767 = vmatprep.subr.bf16.mxu1 %v13937_v58  ;;  %v4362_v31 = vpop.f32.mrb[80].mxu0  ;;  %6436 = vmatprep.mubr.bf16.mxu0 %v16151_v22 }
 0x849   :  { %v14537_v10 = vpack.c.bf16 %v4469_v12, %v4465_v57  ;;  %v4363_v43 = vadd.f32 %v4362_v31, %v13837_v19  ;;  %v4364_v40 = vpop.f32.mrb[81].mxu0  ;;  %v4435_v3 = vpop.f32.mrb[80].mxu1  ;;  %6509 = vmatprep.mubr.bf16.mxu1 %v16151_v22 }
 0x84a   :  { %16183 = vst [vmem:[#allocation4_spill] sm:$0xff] %v14533_v17  ;;  %v4365_v52 = vadd.f32 %v4364_v40, %v13837_v19  ;;  %v4436_v49 = vadd.f32 %v4435_v3, %v13837_v19  ;;  %6695 = vmatpush1.bf16.msra.mxu0 %v13931_v5  ;;  %v4366_v38 = vpop.f32.mrb[82].mxu0  ;;  %v4437_v26 = vpop.f32.mrb[81].mxu1 }
 0x84b   :  { %v4367_v23 = vadd.f32 %v4366_v38, %v13839_v42  ;;  %v4438_v62 = vadd.f32 %v4437_v26, %v13837_v19  ;;  %6768 = vmatpush1.bf16.msra.mxu1 %v13933_v1  ;;  %6990 = vmatprep.subr.bf16.mxu0 %v13915_v56  ;;  %v4368_v50 = vpop.f32.mrb[83].mxu0  ;;  %v4439_v47 = vpop.f32.mrb[82].mxu1  ;;  %v4470_v57 = vmax.f32 %v4363_v43, 0.0 }
 0x84c   :  { %v4369_v53 = vadd.f32 %v4368_v50, %v13839_v42  ;;  %v4440_v18 = vadd.f32 %v4439_v47, %v13839_v42  ;;  %7063 = vmatprep.subr.bf16.mxu1 %v13917_v8  ;;  %v4441_v16 = vpop.f32.mrb[83].mxu1  ;;  %v4471_v19 = vmax.f32 %v4365_v52, 0.0  ;;  %v4472_v40 = vmax.f32 %v4436_v49, 0.0 }
 0x84d   :  { %v4474_v12 = vmax.f32 %v4367_v23, 0.0  ;;  %v4442_v31 = vadd.f32 %v4441_v16, %v13839_v42  ;;  %9546 = vmatmul.mubr.msk.bf16.gmra.mrb[188].mxu0 %vm1031_vm8, %v10005_v11  ;;  %v4473_v50 = vmax.f32 %v4438_v62, 0.0 }
 0x84e   :  { %v4475_v3 = vmax.f32 %v4369_v53, 0.0  ;;  %v4476_v38 = vmax.f32 %v4440_v18, 0.0  ;;  %9550 = vmatmul.mubr.msk.bf16.gmra.mrb[188].mxu1 %vm1031_vm8, %v10005_v11  ;;  %6446 = vmatprep.mubr.bf16.mxu0 %v16151_v22  ;;  %v10006_v11 = vld [vmem:[%s15690_s4 + $0x150] sm:$0xff]  }
 0x84f   :  { %v14558_v26 = vpack.c.bf16 %v4474_v12, %v4470_v57  ;;  %v4477_v47 = vmax.f32 %v4442_v31, 0.0  ;;  %6519 = vmatprep.mubr.bf16.mxu1 %v16151_v22 }
 0x850   :  { %v14561_v43 = vpack.c.bf16 %v4475_v3, %v4471_v19  ;;  %v14563_v23 = vpack.c.bf16 %v4476_v38, %v4472_v40  ;;  %v4372_v42 = vpop.f32.mrb[84].mxu0 }
 0x851   :  { %16184 = vst [vmem:[#allocation32_spill] sm:$0xff] %v14558_v26  ;;  %v14565_v16 = vpack.c.bf16 %v4477_v47, %v4473_v50  ;;  %v4373_v52 = vadd.f32 %v4372_v42, %v13850_v24  ;;  %v4374_v49 = vpop.f32.mrb[85].mxu0  ;;  %v4445_v53 = vpop.f32.mrb[84].mxu1 }
 0x852   :  { %16185 = vst [vmem:[#allocation27_spill] sm:$0xff] %v14563_v23  ;;  %v4375_v62 = vadd.f32 %v4374_v49, %v13850_v24  ;;  %v4446_v18 = vadd.f32 %v4445_v53, %v13850_v24  ;;  %v4376_v57 = vpop.f32.mrb[86].mxu0  ;;  %v4447_v12 = vpop.f32.mrb[85].mxu1 }
 0x853   :  { %16186 = vst [vmem:[#allocation61_spill] sm:$0xff] %v14565_v16  ;;  %v4377_v31 = vadd.f32 %v4376_v57, %v13852_v27  ;;  %v4448_v19 = vadd.f32 %v4447_v12, %v13850_v24  ;;  %v4378_v40 = vpop.f32.mrb[87].mxu0  ;;  %v4449_v3 = vpop.f32.mrb[86].mxu1  ;;  %v4478_v42 = vmax.f32 %v4373_v52, 0.0 }
 0x854   :  { %v4379_v38 = vadd.f32 %v4378_v40, %v13852_v27  ;;  %v4450_v50 = vadd.f32 %v4449_v3, %v13852_v27  ;;  %v4451_v47 = vpop.f32.mrb[87].mxu1  ;;  %v4479_v49 = vmax.f32 %v4375_v62, 0.0  ;;  %v4480_v53 = vmax.f32 %v4446_v18, 0.0 }
 0x855   :  { %v4482_v23 = vmax.f32 %v4377_v31, 0.0  ;;  %v4452_v26 = vadd.f32 %v4451_v47, %v13852_v27  ;;  %9547 = vmatmul.mubr.msk.bf16.gmra.mrb[192].mxu0 %vm1031_vm8, %v10006_v11  ;;  %v4481_v57 = vmax.f32 %v4448_v19, 0.0 }
 0x856   :  { %v4483_v16 = vmax.f32 %v4379_v38, 0.0  ;;  %v4484_v17 = vmax.f32 %v4450_v50, 0.0  ;;  %9551 = vmatmul.mubr.msk.bf16.gmra.mrb[192].mxu1 %vm1031_vm8, %v10006_v11  ;;  %6456 = vmatprep.mubr.bf16.mxu0 %v16151_v22 }
 0x857   :  { %v14581_v24 = vpack.c.bf16 %v4482_v23, %v4478_v42  ;;  %v4485_v12 = vmax.f32 %v4452_v26, 0.0  ;;  %6529 = vmatprep.mubr.bf16.mxu1 %v16151_v22  ;;  %v10007_v23 = vld [vmem:[%s15690_s4 + $0x158] sm:$0xff]  }
 0x858   :  { %v14584_v52 = vpack.c.bf16 %v4483_v16, %v4479_v49  ;;  %v14586_v31 = vpack.c.bf16 %v4484_v17, %v4480_v53  ;;  %v4640_v27 = vpop.f32.mrb[88].mxu0 }
 0x859   :  { %16187 = vst [vmem:[#allocation26_spill] sm:$0xff] %v14581_v24  ;;  %v14588_v40 = vpack.c.bf16 %v4485_v12, %v4481_v57  ;;  %v4641_v62 = vadd.f32 %v4640_v27, %v13863_v20  ;;  %v4642_v18 = vpop.f32.mrb[89].mxu0  ;;  %v4713_v3 = vpop.f32.mrb[88].mxu1 }
 0x85a   :  { %16188 = vst [vmem:[#allocation14_spill] sm:$0xff] %v14586_v31  ;;  %v4643_v11 = vadd.f32 %v4642_v18, %v13863_v20  ;;  %v4714_v26 = vadd.f32 %v4713_v3, %v13863_v20  ;;  %v4644_v19 = vpop.f32.mrb[90].mxu0  ;;  %v4715_v16 = vpop.f32.mrb[89].mxu1 }
 0x85b   :  { %16189 = vst [vmem:[#allocation60_spill] sm:$0xff] %v14588_v40  ;;  %v4645_v17 = vadd.f32 %v4644_v19, %v13865_v30  ;;  %v4716_v38 = vadd.f32 %v4715_v16, %v13863_v20  ;;  %v4646_v50 = vpop.f32.mrb[91].mxu0  ;;  %v4717_v47 = vpop.f32.mrb[90].mxu1  ;;  %v4752_v57 = vmax.f32 %v4641_v62, 0.0 }
 0x85c   :  { %v4647_v42 = vadd.f32 %v4646_v50, %v13865_v30  ;;  %v4718_v49 = vadd.f32 %v4717_v47, %v13865_v30  ;;  %v4719_v53 = vpop.f32.mrb[91].mxu1  ;;  %v4753_v18 = vmax.f32 %v4643_v11, 0.0  ;;  %v4754_v3 = vmax.f32 %v4714_v26, 0.0 }
 0x85d   :  { %v4756_v12 = vmax.f32 %v4645_v17, 0.0  ;;  %v4720_v27 = vadd.f32 %v4719_v53, %v13865_v30  ;;  %9548 = vmatmul.mubr.msk.bf16.gmra.mrb[196].mxu0 %vm1031_vm8, %v10007_v23  ;;  %v4755_v19 = vmax.f32 %v4716_v38, 0.0  ;;  %v16194_v53 = vld [vmem:[#allocation8_spill] sm:$0xff] }
 0x85e   :  { %v4757_v31 = vmax.f32 %v4647_v42, 0.0  ;;  %v4758_v24 = vmax.f32 %v4718_v49, 0.0  ;;  %9552 = vmatmul.mubr.msk.bf16.gmra.mrb[196].mxu1 %vm1031_vm8, %v10007_v23  ;;  %6724 = vmatprep.mubr.bf16.mxu0 %v16151_v22  ;;  %v10008_v23 = vld [vmem:[%s15690_s4 + $0x160] sm:$0xff]  }
 0x85f   :  { %v14604_v20 = vpack.c.bf16 %v4756_v12, %v4752_v57  ;;  %v4759_v16 = vmax.f32 %v4720_v27, 0.0  ;;  %6797 = vmatprep.mubr.bf16.mxu1 %v16151_v22 }
 0x860   :  { %v14607_v62 = vpack.c.bf16 %v4757_v31, %v4753_v18  ;;  %v14609_v17 = vpack.c.bf16 %v4758_v24, %v4754_v3  ;;  %v4650_v30 = vpop.f32.mrb[92].mxu0 }
 0x861   :  { %16190 = vst [vmem:[#allocation15_spill] sm:$0xff] %v14604_v20  ;;  %v14611_v50 = vpack.c.bf16 %v4759_v16, %v4755_v19  ;;  %v4651_v11 = vadd.f32 %v4650_v30, %v13873_v59  ;;  %v4652_v26 = vpop.f32.mrb[93].mxu0  ;;  %v4723_v47 = vpop.f32.mrb[92].mxu1 }
 0x862   :  { %16191 = vst [vmem:[#allocation16_spill] sm:$0xff] %v14607_v62  ;;  %16192 = vst [vmem:[#allocation53_spill] sm:$0xff] %v14609_v17  ;;  %v4653_v38 = vadd.f32 %v4652_v26, %v13873_v59  ;;  %v4724_v42 = vadd.f32 %v4723_v47, %v13873_v59  ;;  %v4654_v49 = vpop.f32.mrb[94].mxu0  ;;  %v4725_v31 = vpop.f32.mrb[93].mxu1 }
 0x863   :  { %16193 = vst [vmem:[#allocation63_spill] sm:$0xff] %v14611_v50  ;;  %v4655_v24 = vadd.f32 %v4654_v49, %v16194_v53  ;;  %v4726_v57 = vadd.f32 %v4725_v31, %v13873_v59  ;;  %v4656_v12 = vpop.f32.mrb[95].mxu0  ;;  %v4727_v27 = vpop.f32.mrb[94].mxu1  ;;  %v4760_v16 = vmax.f32 %v4651_v11, 0.0 }
 0x864   :  { %v4657_v18 = vadd.f32 %v4656_v12, %v16194_v53  ;;  %v4728_v3 = vadd.f32 %v4727_v27, %v16194_v53  ;;  %v4729_v19 = vpop.f32.mrb[95].mxu1  ;;  %v4761_v26 = vmax.f32 %v4653_v38, 0.0  ;;  %v4762_v47 = vmax.f32 %v4724_v42, 0.0 }
 0x865   :  { %v4764_v30 = vmax.f32 %v4655_v24, 0.0  ;;  %v4730_v17 = vadd.f32 %v4729_v19, %v16194_v53  ;;  %9557 = vmatmul.mubr.msk.bf16.vlgmr.msra.gmra.mrb[200].mxu0 %vm1031_vm8, %v10008_v23  ;;  %v4763_v49 = vmax.f32 %v4726_v57, 0.0 }
 0x866   :  { %v4765_v20 = vmax.f32 %v4657_v18, 0.0  ;;  %v4766_v50 = vmax.f32 %v4728_v3, 0.0  ;;  %6991 = vmatpush1.bf16.msra.mxu0 %v13911_v25  ;;  %9561 = vmatmul.mubr.msk.bf16.vlgmr.msra.gmra.mrb[200].mxu1 %vm1031_vm8, %v10008_v23  ;;  %v16199_v23 = vld [vmem:[#allocation56_spill] sm:$0xff] }
 0x867   :  { %v14627_v59 = vpack.c.bf16 %v4764_v30, %v4760_v16  ;;  %v4767_v31 = vmax.f32 %v4730_v17, 0.0  ;;  %6992 = vmatprep.subr.bf16.mxu0 %v13935_v15  ;;  %7064 = vmatpush1.bf16.msra.mxu1 %v13913_v14  ;;  %v10009_v17 = vld [vmem:[%s15690_s4 + $0x168] sm:$0xff]   ;;  %v16200_v3 = vld [vmem:[#allocation40_spill] sm:$0xff] }
 0x868   :  { %v14631_v11 = vpack.c.bf16 %v4765_v20, %v4761_v26  ;;  %v14633_v53 = vpack.c.bf16 %v4766_v50, %v4762_v47  ;;  %7065 = vmatprep.subr.bf16.mxu1 %v13937_v58  ;;  %v4660_v38 = vpop.f32.mrb[96].mxu0  ;;  %6734 = vmatprep.mubr.bf16.mxu0 %v16151_v22 }
 0x869   :  { %16195 = vst [vmem:[#allocation45_spill] sm:$0xff] %v14627_v59  ;;  %v14637_v42 = vpack.c.bf16 %v4767_v31, %v4763_v49  ;;  %v4661_v24 = vadd.f32 %v4660_v38, %v16199_v23  ;;  %v4662_v12 = vpop.f32.mrb[97].mxu0  ;;  %v4733_v57 = vpop.f32.mrb[96].mxu1  ;;  %6807 = vmatprep.mubr.bf16.mxu1 %v16151_v22 }
 0x86a   :  { %16196 = vst [vmem:[#allocation17_spill] sm:$0xff] %v14631_v11  ;;  %16197 = vst [vmem:[#allocation37_spill] sm:$0xff] %v14633_v53  ;;  %v4663_v20 = vadd.f32 %v4662_v12, %v16199_v23  ;;  %v4734_v50 = vadd.f32 %v4733_v57, %v16199_v23  ;;  %6993 = vmatpush1.bf16.msra.mxu0 %v13931_v5  ;;  %v4664_v27 = vpop.f32.mrb[98].mxu0  ;;  %v4735_v18 = vpop.f32.mrb[97].mxu1 }
 0x86b   :  { %16198 = vst [vmem:[#allocation62_spill] sm:$0xff] %v14637_v42  ;;  %v4665_v19 = vadd.f32 %v4664_v27, %v16200_v3  ;;  %v4736_v16 = vadd.f32 %v4735_v18, %v16199_v23  ;;  %7066 = vmatpush1.bf16.msra.mxu1 %v13933_v1  ;;  %7288 = vmatprep.subr.bf16.mxu0 %v13915_v56  ;;  %v4666_v30 = vpop.f32.mrb[99].mxu0  ;;  %v4737_v26 = vpop.f32.mrb[98].mxu1  ;;  %v4768_v38 = vmax.f32 %v4661_v24, 0.0 }
 0x86c   :  { %v4667_v47 = vadd.f32 %v4666_v30, %v16200_v3  ;;  %v4738_v49 = vadd.f32 %v4737_v26, %v16200_v3  ;;  %7361 = vmatprep.subr.bf16.mxu1 %v13917_v8  ;;  %v4739_v31 = vpop.f32.mrb[99].mxu1  ;;  %v4769_v23 = vmax.f32 %v4663_v20, 0.0  ;;  %v4770_v27 = vmax.f32 %v4734_v50, 0.0  ;;  %v16205_v20 = vld [vmem:[#allocation5_spill] sm:$0xff] }
 0x86d   :  { %v4772_v12 = vmax.f32 %v4665_v19, 0.0  ;;  %v4740_v57 = vadd.f32 %v4739_v31, %v16200_v3  ;;  %9558 = vmatmul.mubr.msk.bf16.gmra.mrb[204].mxu0 %vm1031_vm8, %v10009_v17  ;;  %v4771_v26 = vmax.f32 %v4736_v16, 0.0 }
 0x86e   :  { %v4773_v18 = vmax.f32 %v4667_v47, 0.0  ;;  %v4774_v53 = vmax.f32 %v4738_v49, 0.0  ;;  %9562 = vmatmul.mubr.msk.bf16.gmra.mrb[204].mxu1 %vm1031_vm8, %v10009_v17  ;;  %6744 = vmatprep.mubr.bf16.mxu0 %v16151_v22  ;;  %v10010_v17 = vld [vmem:[%s15690_s4 + $0x170] sm:$0xff]  }
 0x86f   :  { %v14658_v30 = vpack.c.bf16 %v4772_v12, %v4768_v38  ;;  %v4775_v59 = vmax.f32 %v4740_v57, 0.0  ;;  %6817 = vmatprep.mubr.bf16.mxu1 %v16151_v22 }
 0x870   :  { %v14661_v24 = vpack.c.bf16 %v4773_v18, %v4769_v23  ;;  %v14663_v19 = vpack.c.bf16 %v4774_v53, %v4770_v27  ;;  %v4670_v3 = vpop.f32.mrb[100].mxu0  ;;  %v16206_v23 = vld [vmem:[#allocation6_spill] sm:$0xff] }
 0x871   :  { %16201 = vst [vmem:[#allocation39_spill] sm:$0xff] %v14658_v30  ;;  %v14665_v31 = vpack.c.bf16 %v4775_v59, %v4771_v26  ;;  %v4671_v50 = vadd.f32 %v4670_v3, %v16205_v20  ;;  %v4672_v47 = vpop.f32.mrb[101].mxu0  ;;  %v4743_v49 = vpop.f32.mrb[100].mxu1 }
 0x872   :  { %16202 = vst [vmem:[#allocation44_spill] sm:$0xff] %v14661_v24  ;;  %16203 = vst [vmem:[#allocation51_spill] sm:$0xff] %v14663_v19  ;;  %v4673_v16 = vadd.f32 %v4672_v47, %v16205_v20  ;;  %v4744_v38 = vadd.f32 %v4743_v49, %v16205_v20  ;;  %v4674_v12 = vpop.f32.mrb[102].mxu0  ;;  %v4745_v57 = vpop.f32.mrb[101].mxu1 }
 0x873   :  { %16204 = vst [vmem:[#allocation28_spill] sm:$0xff] %v14665_v31  ;;  %v4675_v53 = vadd.f32 %v4674_v12, %v16206_v23  ;;  %v4746_v27 = vadd.f32 %v4745_v57, %v16205_v20  ;;  %v4676_v59 = vpop.f32.mrb[103].mxu0  ;;  %v4747_v18 = vpop.f32.mrb[102].mxu1  ;;  %v4776_v30 = vmax.f32 %v4671_v50, 0.0 }
 0x874   :  { %v4677_v26 = vadd.f32 %v4676_v59, %v16206_v23  ;;  %v4748_v3 = vadd.f32 %v4747_v18, %v16206_v23  ;;  %v4749_v19 = vpop.f32.mrb[103].mxu1  ;;  %v4777_v47 = vmax.f32 %v4673_v16, 0.0  ;;  %v4778_v49 = vmax.f32 %v4744_v38, 0.0  ;;  %v4835_v20 = vpop.permute.xlu1 %4834 }
 0x875   :  { %v4780_v31 = vmax.f32 %v4675_v53, 0.0  ;;  %v4750_v24 = vadd.f32 %v4749_v19, %v16206_v23  ;;  %9559 = vmatmul.mubr.msk.bf16.gmra.mrb[208].mxu0 %vm1031_vm8, %v10010_v17  ;;  %v4779_v57 = vmax.f32 %v4746_v27, 0.0  ;;  %v4840_v50 = vpop.permute.xlu0 %4839 }
 0x876   :  { %v4781_v42 = vmax.f32 %v4677_v26, 0.0  ;;  %v4782_v11 = vmax.f32 %v4748_v3, 0.0  ;;  %9563 = vmatmul.mubr.msk.bf16.gmra.mrb[208].mxu1 %vm1031_vm8, %v10010_v17  ;;  %6754 = vmatprep.mubr.bf16.mxu0 %v16151_v22 }
 0x877   :  { %v14681_v12 = vpack.c.bf16 %v4780_v31, %v4776_v30  ;;  %v4783_v59 = vmax.f32 %v4750_v24, 0.0  ;;  %6827 = vmatprep.mubr.bf16.mxu1 %v16151_v22  ;;  %v10011_v30 = vld [vmem:[%s15690_s4 + $0x178] sm:$0xff]  }
 0x878   :  { %v14684_v53 = vpack.c.bf16 %v4781_v42, %v4777_v47  ;;  %v14686_v19 = vpack.c.bf16 %v4782_v11, %v4778_v49  ;;  %v4938_v16 = vpop.f32.mrb[104].mxu0 }
 0x879   :  { %16207 = vst [vmem:[#allocation36_spill] sm:$0xff] %v14681_v12  ;;  %v14688_v38 = vpack.c.bf16 %v4783_v59, %v4779_v57  ;;  %v4939_v23 = vadd.f32 %v4938_v16, %v4835_v20  ;;  %v4940_v18 = vpop.f32.mrb[105].mxu0  ;;  %v5011_v17 = vpop.f32.mrb[104].mxu1 }
 0x87a   :  { %16208 = vst [vmem:[#allocation49_spill] sm:$0xff] %v14684_v53  ;;  %16209 = vst [vmem:[#allocation18_spill] sm:$0xff] %v14686_v19  ;;  %v4941_v31 = vadd.f32 %v4940_v18, %v4835_v20  ;;  %v5012_v27 = vadd.f32 %v5011_v17, %v4835_v20  ;;  %v4942_v24 = vpop.f32.mrb[106].mxu0  ;;  %v5013_v26 = vpop.f32.mrb[105].mxu1 }
 0x87b   :  { %16210 = vst [vmem:[#allocation47_spill] sm:$0xff] %v14688_v38  ;;  %v4943_v3 = vadd.f32 %v4942_v24, %v4840_v50  ;;  %v5014_v12 = vadd.f32 %v5013_v26, %v4835_v20  ;;  %v4944_v42 = vpop.f32.mrb[107].mxu0  ;;  %v5015_v47 = vpop.f32.mrb[106].mxu1  ;;  %v5050_v57 = vmax.f32 %v4939_v23, 0.0 }
 0x87c   :  { %v4945_v11 = vadd.f32 %v4944_v42, %v4840_v50  ;;  %v5016_v49 = vadd.f32 %v5015_v47, %v4840_v50  ;;  %v5017_v19 = vpop.f32.mrb[107].mxu1  ;;  %v5051_v38 = vmax.f32 %v4941_v31, 0.0  ;;  %v5052_v53 = vmax.f32 %v5012_v27, 0.0  ;;  %v4845_v18 = vpop.permute.xlu1 %4844  ;;  %v10012_v42 = vld [vmem:[%s15690_s4 + $0x180] sm:$0xff]  }
 0x87d   :  { %v5054_v59 = vmax.f32 %v4943_v3, 0.0  ;;  %v5018_v16 = vadd.f32 %v5017_v19, %v4840_v50  ;;  %9560 = vmatmul.mubr.msk.bf16.gmra.mrb[212].mxu0 %vm1031_vm8, %v10011_v30  ;;  %v5053_v17 = vmax.f32 %v5014_v12, 0.0  ;;  %v4850_v23 = vpop.permute.xlu0 %4849 }
 0x87e   :  { %v5055_v62 = vmax.f32 %v4945_v11, 0.0  ;;  %v5056_v40 = vmax.f32 %v5016_v49, 0.0  ;;  %9564 = vmatmul.mubr.msk.bf16.gmra.mrb[212].mxu1 %vm1031_vm8, %v10011_v30  ;;  %7022 = vmatprep.mubr.bf16.mxu0 %v16151_v22 }
 0x87f   :  { %v14696_v20 = vpack.c.bf16 %v5054_v59, %v5050_v57  ;;  %v5057_v24 = vmax.f32 %v5018_v16, 0.0  ;;  %7095 = vmatprep.mubr.bf16.mxu1 %v16151_v22 }
 0x880   :  { %v14699_v26 = vpack.c.bf16 %v5055_v62, %v5051_v38  ;;  %v14701_v50 = vpack.c.bf16 %v5056_v40, %v5052_v53  ;;  %v4948_v19 = vpop.f32.mrb[108].mxu0 }
 0x881   :  { %16211 = vst [vmem:[#allocation35_spill] sm:$0xff] %v14696_v20  ;;  %v14703_v31 = vpack.c.bf16 %v5057_v24, %v5053_v17  ;;  %v4949_v27 = vadd.f32 %v4948_v19, %v4845_v18  ;;  %v4950_v3 = vpop.f32.mrb[109].mxu0  ;;  %v5021_v30 = vpop.f32.mrb[108].mxu1 }
 0x882   :  { %16212 = vst [vmem:[#allocation19_spill] sm:$0xff] %v14699_v26  ;;  %16213 = vst [vmem:[#allocation82_spill] sm:$0xff] %v14701_v50  ;;  %v4951_v47 = vadd.f32 %v4950_v3, %v4845_v18  ;;  %v5022_v12 = vadd.f32 %v5021_v30, %v4845_v18  ;;  %v4952_v11 = vpop.f32.mrb[110].mxu0  ;;  %v5023_v49 = vpop.f32.mrb[109].mxu1 }
 0x883   :  { %16214 = vst [vmem:[#allocation50_spill] sm:$0xff] %v14703_v31  ;;  %v4953_v57 = vadd.f32 %v4952_v11, %v4850_v23  ;;  %v5024_v59 = vadd.f32 %v5023_v49, %v4845_v18  ;;  %v4954_v62 = vpop.f32.mrb[111].mxu0  ;;  %v5025_v38 = vpop.f32.mrb[110].mxu1  ;;  %v5058_v17 = vmax.f32 %v4949_v27, 0.0 }
 0x884   :  { %v4955_v40 = vadd.f32 %v4954_v62, %v4850_v23  ;;  %v5026_v53 = vadd.f32 %v5025_v38, %v4850_v23  ;;  %v5027_v16 = vpop.f32.mrb[111].mxu1  ;;  %v5059_v50 = vmax.f32 %v4951_v47, 0.0  ;;  %v5060_v20 = vmax.f32 %v5022_v12, 0.0  ;;  %v4855_v3 = vpop.permute.xlu1 %4854  ;;  %v10013_v62 = vld [vmem:[%s15690_s4 + $0x188] sm:$0xff]  }
 0x885   :  { %v5062_v24 = vmax.f32 %v4953_v57, 0.0  ;;  %v5028_v19 = vadd.f32 %v5027_v16, %v4850_v23  ;;  %9569 = vmatmul.mubr.msk.bf16.vlgmr.msra.gmra.mrb[216].mxu0 %vm1031_vm8, %v10012_v42  ;;  %v5061_v30 = vmax.f32 %v5024_v59, 0.0  ;;  %v4860_v23 = vpop.permute.xlu0 %4859 }
 0x886   :  { %v5063_v31 = vmax.f32 %v4955_v40, 0.0  ;;  %v5064_v26 = vmax.f32 %v5026_v53, 0.0  ;;  %7289 = vmatpush1.bf16.msra.mxu0 %v13911_v25  ;;  %9573 = vmatmul.mubr.msk.bf16.vlgmr.msra.gmra.mrb[216].mxu1 %vm1031_vm8, %v10012_v42 }
 0x887   :  { %v14711_v18 = vpack.c.bf16 %v5062_v24, %v5058_v17  ;;  %v5065_v11 = vmax.f32 %v5028_v19, 0.0  ;;  %7290 = vmatprep.subr.bf16.mxu0 %v13935_v15  ;;  %7362 = vmatpush1.bf16.msra.mxu1 %v13913_v14 }
 0x888   :  { %v14715_v27 = vpack.c.bf16 %v5063_v31, %v5059_v50  ;;  %v14717_v47 = vpack.c.bf16 %v5064_v26, %v5060_v20  ;;  %7363 = vmatprep.subr.bf16.mxu1 %v13937_v58  ;;  %v4958_v12 = vpop.f32.mrb[112].mxu0  ;;  %7032 = vmatprep.mubr.bf16.mxu0 %v16151_v22 }
 0x889   :  { %16215 = vst [vmem:[#allocation43_spill] sm:$0xff] %v14711_v18  ;;  %v14721_v42 = vpack.c.bf16 %v5065_v11, %v5061_v30  ;;  %v4959_v49 = vadd.f32 %v4958_v12, %v4855_v3  ;;  %v4960_v57 = vpop.f32.mrb[113].mxu0  ;;  %v5031_v59 = vpop.f32.mrb[112].mxu1  ;;  %7105 = vmatprep.mubr.bf16.mxu1 %v16151_v22 }
 0x88a   :  { %16216 = vst [vmem:[#allocation83_spill] sm:$0xff] %v14715_v27  ;;  %16217 = vst [vmem:[#allocation81_spill] sm:$0xff] %v14717_v47  ;;  %v4961_v50 = vadd.f32 %v4960_v57, %v4855_v3  ;;  %v5032_v31 = vadd.f32 %v5031_v59, %v4855_v3  ;;  %7291 = vmatpush1.bf16.msra.mxu0 %v13931_v5  ;;  %v4962_v20 = vpop.f32.mrb[114].mxu0  ;;  %v5033_v26 = vpop.f32.mrb[113].mxu1 }
 0x88b   :  { %16218 = vst [vmem:[#allocation57_spill] sm:$0xff] %v14721_v42  ;;  %v4963_v38 = vadd.f32 %v4962_v20, %v4860_v23  ;;  %v5034_v40 = vadd.f32 %v5033_v26, %v4855_v3  ;;  %7364 = vmatpush1.bf16.msra.mxu1 %v13933_v1  ;;  %7586 = vmatprep.subr.bf16.mxu0 %v13915_v56  ;;  %v4964_v53 = vpop.f32.mrb[115].mxu0  ;;  %v5035_v16 = vpop.f32.mrb[114].mxu1  ;;  %v5066_v30 = vmax.f32 %v4959_v49, 0.0 }
 0x88c   :  { %v4965_v17 = vadd.f32 %v4964_v53, %v4860_v23  ;;  %v5036_v24 = vadd.f32 %v5035_v16, %v4860_v23  ;;  %7659 = vmatprep.subr.bf16.mxu1 %v13917_v8  ;;  %v5037_v19 = vpop.f32.mrb[115].mxu1  ;;  %v5067_v57 = vmax.f32 %v4961_v50, 0.0  ;;  %v5068_v59 = vmax.f32 %v5032_v31, 0.0  ;;  %v4865_v26 = vpop.permute.xlu1 %4864 }
 0x88d   :  { %v5070_v11 = vmax.f32 %v4963_v38, 0.0  ;;  %v5038_v12 = vadd.f32 %v5037_v19, %v4860_v23  ;;  %9570 = vmatmul.mubr.msk.bf16.gmra.mrb[220].mxu0 %vm1031_vm8, %v10013_v62  ;;  %v5069_v53 = vmax.f32 %v5034_v40, 0.0  ;;  %v4870_v49 = vpop.permute.xlu0 %4869  ;;  %v10014_v19 = vld [vmem:[%s15690_s4 + $0x190] sm:$0xff]  }
 0x88e   :  { %v5071_v20 = vmax.f32 %v4965_v17, 0.0  ;;  %v5072_v3 = vmax.f32 %v5036_v24, 0.0  ;;  %9574 = vmatmul.mubr.msk.bf16.gmra.mrb[220].mxu1 %vm1031_vm8, %v10013_v62  ;;  %7042 = vmatprep.mubr.bf16.mxu0 %v16151_v22 }
 0x88f   :  { %v14734_v47 = vpack.c.bf16 %v5070_v11, %v5066_v30  ;;  %v5073_v16 = vmax.f32 %v5038_v12, 0.0  ;;  %7115 = vmatprep.mubr.bf16.mxu1 %v16151_v22 }
 0x890   :  { %v14737_v38 = vpack.c.bf16 %v5071_v20, %v5067_v57  ;;  %v14739_v23 = vpack.c.bf16 %v5072_v3, %v5068_v59  ;;  %v4968_v50 = vpop.f32.mrb[116].mxu0 }
 0x891   :  { %16219 = vst [vmem:[#allocation58_spill] sm:$0xff] %v14734_v47  ;;  %v14741_v31 = vpack.c.bf16 %v5073_v16, %v5069_v53  ;;  %v4969_v17 = vadd.f32 %v4968_v50, %v4865_v26  ;;  %v4970_v24 = vpop.f32.mrb[117].mxu0  ;;  %v5041_v62 = vpop.f32.mrb[116].mxu1 }
 0x892   :  { %16220 = vst [vmem:[#allocation64_spill] sm:$0xff] %v14737_v38  ;;  %16221 = vst [vmem:[#allocation80_spill] sm:$0xff] %v14739_v23  ;;  %v4971_v30 = vadd.f32 %v4970_v24, %v4865_v26  ;;  %v5042_v40 = vadd.f32 %v5041_v62, %v4865_v26  ;;  %v4972_v11 = vpop.f32.mrb[118].mxu0  ;;  %v5043_v12 = vpop.f32.mrb[117].mxu1 }
 0x893   :  { %16222 = vst [vmem:[#allocation54_spill] sm:$0xff] %v14741_v31  ;;  %v4973_v47 = vadd.f32 %v4972_v11, %v4870_v49  ;;  %v5044_v18 = vadd.f32 %v5043_v12, %v4865_v26  ;;  %v4974_v57 = vpop.f32.mrb[119].mxu0  ;;  %v5045_v20 = vpop.f32.mrb[118].mxu1  ;;  %v5074_v53 = vmax.f32 %v4969_v17, 0.0 }
 0x894   :  { %v4975_v59 = vadd.f32 %v4974_v57, %v4870_v49  ;;  %v5046_v3 = vadd.f32 %v5045_v20, %v4870_v49  ;;  %v5047_v23 = vpop.f32.mrb[119].mxu1  ;;  %v5075_v31 = vmax.f32 %v4971_v30, 0.0  ;;  %v5076_v38 = vmax.f32 %v5042_v40, 0.0  ;;  %v5133_v24 = vpop.permute.xlu1 %5132  ;;  %v10015_v57 = vld [vmem:[%s15690_s4 + $0x198] sm:$0xff]  }
 0x895   :  { %v5078_v16 = vmax.f32 %v4973_v47, 0.0  ;;  %v5048_v50 = vadd.f32 %v5047_v23, %v4870_v49  ;;  %9571 = vmatmul.mubr.msk.bf16.gmra.mrb[224].mxu0 %vm1031_vm8, %v10014_v19  ;;  %v5077_v62 = vmax.f32 %v5044_v18, 0.0  ;;  %v5138_v17 = vpop.permute.xlu0 %5137 }
 0x896   :  { %v5079_v42 = vmax.f32 %v4975_v59, 0.0  ;;  %v5080_v27 = vmax.f32 %v5046_v3, 0.0  ;;  %9575 = vmatmul.mubr.msk.bf16.gmra.mrb[224].mxu1 %vm1031_vm8, %v10014_v19  ;;  %7052 = vmatprep.mubr.bf16.mxu0 %v16151_v22 }
 0x897   :  { %v14749_v26 = vpack.c.bf16 %v5078_v16, %v5074_v53  ;;  %v5081_v11 = vmax.f32 %v5048_v50, 0.0  ;;  %7125 = vmatprep.mubr.bf16.mxu1 %v16151_v22 }
 0x898   :  { %v14752_v47 = vpack.c.bf16 %v5079_v42, %v5075_v31  ;;  %v14754_v49 = vpack.c.bf16 %v5080_v27, %v5076_v38  ;;  %v5236_v23 = vpop.f32.mrb[120].mxu0 }
 0x899   :  { %16223 = vst [vmem:[#allocation52_spill] sm:$0xff] %v14749_v26  ;;  %v14756_v30 = vpack.c.bf16 %v5081_v11, %v5077_v62  ;;  %v5237_v40 = vadd.f32 %v5236_v23, %v5133_v24  ;;  %v5238_v12 = vpop.f32.mrb[121].mxu0  ;;  %v5309_v19 = vpop.f32.mrb[120].mxu1 }
 0x89a   :  { %16224 = vst [vmem:[#allocation65_spill] sm:$0xff] %v14752_v47  ;;  %16225 = vst [vmem:[#allocation31_spill] sm:$0xff] %v14754_v49  ;;  %v5239_v20 = vadd.f32 %v5238_v12, %v5133_v24  ;;  %v5310_v18 = vadd.f32 %v5309_v19, %v5133_v24  ;;  %v5240_v59 = vpop.f32.mrb[122].mxu0  ;;  %v5311_v3 = vpop.f32.mrb[121].mxu1 }
 0x89b   :  { %16226 = vst [vmem:[#allocation30_spill] sm:$0xff] %v14756_v30  ;;  %v5241_v53 = vadd.f32 %v5240_v59, %v5138_v17  ;;  %v5312_v16 = vadd.f32 %v5311_v3, %v5133_v24  ;;  %v5242_v42 = vpop.f32.mrb[123].mxu0  ;;  %v5313_v31 = vpop.f32.mrb[122].mxu1  ;;  %v5348_v62 = vmax.f32 %v5237_v40, 0.0 }
 0x89c   :  { %v5243_v27 = vadd.f32 %v5242_v42, %v5138_v17  ;;  %v5314_v38 = vadd.f32 %v5313_v31, %v5138_v17  ;;  %v5315_v50 = vpop.f32.mrb[123].mxu1  ;;  %v5349_v49 = vmax.f32 %v5239_v20, 0.0  ;;  %v5350_v26 = vmax.f32 %v5310_v18, 0.0  ;;  %v5143_v12 = vpop.permute.xlu1 %5142  ;;  %v10016_v31 = vld [vmem:[%s15690_s4 + $0x1a0] sm:$0xff]  }
 0x89d   :  { %v5352_v11 = vmax.f32 %v5241_v53, 0.0  ;;  %v5316_v23 = vadd.f32 %v5315_v50, %v5138_v17  ;;  %9572 = vmatmul.mubr.msk.bf16.gmra.mrb[228].mxu0 %vm1031_vm8, %v10015_v57  ;;  %v5351_v19 = vmax.f32 %v5312_v16, 0.0  ;;  %v5148_v40 = vpop.permute.xlu0 %5147 }
 0x89e   :  { %v5353_v30 = vmax.f32 %v5243_v27, 0.0  ;;  %v5354_v47 = vmax.f32 %v5314_v38, 0.0  ;;  %9576 = vmatmul.mubr.msk.bf16.gmra.mrb[228].mxu1 %vm1031_vm8, %v10015_v57  ;;  %7320 = vmatprep.mubr.bf16.mxu0 %v16151_v22 }
 0x89f   :  { %v14764_v24 = vpack.c.bf16 %v5352_v11, %v5348_v62  ;;  %v5355_v59 = vmax.f32 %v5316_v23, 0.0  ;;  %7393 = vmatprep.mubr.bf16.mxu1 %v16151_v22 }
 0x8a0   :  { %v14767_v3 = vpack.c.bf16 %v5353_v30, %v5349_v49  ;;  %v14769_v17 = vpack.c.bf16 %v5354_v47, %v5350_v26  ;;  %v5246_v20 = vpop.f32.mrb[124].mxu0 }
 0x8a1   :  { %16227 = vst [vmem:[#allocation20_spill] sm:$0xff] %v14764_v24  ;;  %v14771_v18 = vpack.c.bf16 %v5355_v59, %v5351_v19  ;;  %v5247_v53 = vadd.f32 %v5246_v20, %v5143_v12  ;;  %v5248_v42 = vpop.f32.mrb[125].mxu0  ;;  %v5319_v57 = vpop.f32.mrb[124].mxu1 }
 0x8a2   :  { %16228 = vst [vmem:[#allocation86_spill] sm:$0xff] %v14767_v3  ;;  %16229 = vst [vmem:[#allocation21_spill] sm:$0xff] %v14769_v17  ;;  %v5249_v27 = vadd.f32 %v5248_v42, %v5143_v12  ;;  %v5320_v16 = vadd.f32 %v5319_v57, %v5143_v12  ;;  %v5250_v38 = vpop.f32.mrb[126].mxu0  ;;  %v5321_v50 = vpop.f32.mrb[125].mxu1 }
 0x8a3   :  { %16230 = vst [vmem:[#allocation87_spill] sm:$0xff] %v14771_v18  ;;  %v5251_v62 = vadd.f32 %v5250_v38, %v5148_v40  ;;  %v5322_v11 = vadd.f32 %v5321_v50, %v5143_v12  ;;  %v5252_v49 = vpop.f32.mrb[127].mxu0  ;;  %v5323_v30 = vpop.f32.mrb[126].mxu1  ;;  %v5356_v19 = vmax.f32 %v5247_v53, 0.0 }
 0x8a4   :  { %v5253_v26 = vadd.f32 %v5252_v49, %v5148_v40  ;;  %v5324_v47 = vadd.f32 %v5323_v30, %v5148_v40  ;;  %v5325_v23 = vpop.f32.mrb[127].mxu1  ;;  %v5357_v17 = vmax.f32 %v5249_v27, 0.0  ;;  %v5358_v24 = vmax.f32 %v5320_v16, 0.0  ;;  %v5153_v42 = vpop.permute.xlu1 %5152  ;;  %v10017_v49 = vld [vmem:[%s15690_s4 + $0x1a8] sm:$0xff]  }
 0x8a5   :  { %v5360_v59 = vmax.f32 %v5251_v62, 0.0  ;;  %v5326_v20 = vadd.f32 %v5325_v23, %v5148_v40  ;;  %9581 = vmatmul.mubr.msk.bf16.vlgmr.msra.gmra.mrb[232].mxu0 %vm1031_vm8, %v10016_v31  ;;  %v5359_v57 = vmax.f32 %v5322_v11, 0.0  ;;  %v5158_v40 = vpop.permute.xlu0 %5157 }
 0x8a6   :  { %v5361_v18 = vmax.f32 %v5253_v26, 0.0  ;;  %v5362_v3 = vmax.f32 %v5324_v47, 0.0  ;;  %7587 = vmatpush1.bf16.msra.mxu0 %v13911_v25  ;;  %9585 = vmatmul.mubr.msk.bf16.vlgmr.msra.gmra.mrb[232].mxu1 %vm1031_vm8, %v10016_v31 }
 0x8a7   :  { %v14779_v12 = vpack.c.bf16 %v5360_v59, %v5356_v19  ;;  %v5363_v38 = vmax.f32 %v5326_v20, 0.0  ;;  %7588 = vmatprep.subr.bf16.mxu0 %v13935_v15  ;;  %7660 = vmatpush1.bf16.msra.mxu1 %v13913_v14 }
 0x8a8   :  { %v14783_v53 = vpack.c.bf16 %v5361_v18, %v5357_v17  ;;  %v14785_v27 = vpack.c.bf16 %v5362_v3, %v5358_v24  ;;  %7661 = vmatprep.subr.bf16.mxu1 %v13937_v58  ;;  %v5256_v16 = vpop.f32.mrb[128].mxu0  ;;  %7330 = vmatprep.mubr.bf16.mxu0 %v16151_v22 }
 0x8a9   :  { %16231 = vst [vmem:[#allocation85_spill] sm:$0xff] %v14779_v12  ;;  %v14789_v31 = vpack.c.bf16 %v5363_v38, %v5359_v57  ;;  %v5257_v50 = vadd.f32 %v5256_v16, %v5153_v42  ;;  %v5258_v62 = vpop.f32.mrb[129].mxu0  ;;  %v5329_v11 = vpop.f32.mrb[128].mxu1  ;;  %7403 = vmatprep.mubr.bf16.mxu1 %v16151_v22 }
 0x8aa   :  { %16232 = vst [vmem:[#allocation84_spill] sm:$0xff] %v14785_v27  ;;  %v5259_v17 = vadd.f32 %v5258_v62, %v5153_v42  ;;  %v5330_v18 = vadd.f32 %v5329_v11, %v5153_v42  ;;  %7589 = vmatpush1.bf16.msra.mxu0 %v13931_v5  ;;  %v5260_v24 = vpop.f32.mrb[130].mxu0  ;;  %v5331_v3 = vpop.f32.mrb[129].mxu1 }
 0x8ab   :  { %v5261_v30 = vadd.f32 %v5260_v24, %v5158_v40  ;;  %v5332_v26 = vadd.f32 %v5331_v3, %v5153_v42  ;;  %7662 = vmatpush1.bf16.msra.mxu1 %v13933_v1  ;;  %7884 = vmatprep.subr.bf16.mxu0 %v13915_v56  ;;  %v5262_v47 = vpop.f32.mrb[131].mxu0  ;;  %v5333_v23 = vpop.f32.mrb[130].mxu1  ;;  %v5364_v57 = vmax.f32 %v5257_v50, 0.0 }
 0x8ac   :  { %v5263_v19 = vadd.f32 %v5262_v47, %v5158_v40  ;;  %v5334_v59 = vadd.f32 %v5333_v23, %v5158_v40  ;;  %7957 = vmatprep.subr.bf16.mxu1 %v13917_v8  ;;  %v5335_v20 = vpop.f32.mrb[131].mxu1  ;;  %v5365_v62 = vmax.f32 %v5259_v17, 0.0  ;;  %v5366_v11 = vmax.f32 %v5330_v18, 0.0  ;;  %v5163_v56 = vpop.permute.xlu1 %5162 }
 0x8ad   :  { %v5368_v38 = vmax.f32 %v5261_v30, 0.0  ;;  %v5336_v16 = vadd.f32 %v5335_v20, %v5158_v40  ;;  %9582 = vmatmul.mubr.msk.bf16.gmra.mrb[236].mxu0 %vm1031_vm8, %v10017_v49  ;;  %v5367_v47 = vmax.f32 %v5332_v26, 0.0  ;;  %v5168_v8 = vpop.permute.xlu0 %5167 }
 0x8ae   :  { %v5369_v24 = vmax.f32 %v5263_v19, 0.0  ;;  %v5370_v42 = vmax.f32 %v5334_v59, 0.0  ;;  %9586 = vmatmul.mubr.msk.bf16.gmra.mrb[236].mxu1 %vm1031_vm8, %v10017_v49  ;;  %7340 = vmatprep.mubr.bf16.mxu0 %v16151_v22  ;;  %v10018_v59 = vld [vmem:[%s15690_s4 + $0x1b0] sm:$0xff]  }
 0x8af   :  { %v14802_v3 = vpack.c.bf16 %v5368_v38, %v5364_v57  ;;  %v5371_v23 = vmax.f32 %v5336_v16, 0.0  ;;  %7413 = vmatprep.mubr.bf16.mxu1 %v16151_v22 }
 0x8b0   :  { %v14805_v50 = vpack.c.bf16 %v5369_v24, %v5365_v62  ;;  %v14807_v40 = vpack.c.bf16 %v5370_v42, %v5366_v11  ;;  %v5266_v17 = vpop.f32.mrb[132].mxu0 }
 0x8b1   :  { %16233 = vst [vmem:[#allocation67_spill] sm:$0xff] %v14802_v3  ;;  %v14809_v18 = vpack.c.bf16 %v5371_v23, %v5367_v47  ;;  %v5267_v30 = vadd.f32 %v5266_v17, %v5163_v56  ;;  %v5268_v19 = vpop.f32.mrb[133].mxu0  ;;  %v5339_v49 = vpop.f32.mrb[132].mxu1 }
 0x8b2   :  { %16234 = vst [vmem:[#allocation34_spill] sm:$0xff] %v14805_v50  ;;  %16235 = vst [vmem:[#allocation90_spill] sm:$0xff] %v14807_v40  ;;  %v5269_v20 = vadd.f32 %v5268_v19, %v5163_v56  ;;  %v5340_v26 = vadd.f32 %v5339_v49, %v5163_v56  ;;  %v5270_v57 = vpop.f32.mrb[134].mxu0  ;;  %v5341_v38 = vpop.f32.mrb[133].mxu1 }
 0x8b3   :  { %16236 = vst [vmem:[#allocation66_spill] sm:$0xff] %v14809_v18  ;;  %v5271_v16 = vadd.f32 %v5270_v57, %v5168_v8  ;;  %v5342_v3 = vadd.f32 %v5341_v38, %v5163_v56  ;;  %v5272_v62 = vpop.f32.mrb[135].mxu0  ;;  %v5343_v24 = vpop.f32.mrb[134].mxu1  ;;  %v5372_v47 = vmax.f32 %v5267_v30, 0.0 }
 0x8b4   :  { %v5273_v11 = vadd.f32 %v5272_v62, %v5168_v8  ;;  %v5344_v42 = vadd.f32 %v5343_v24, %v5168_v8  ;;  %v5345_v40 = vpop.f32.mrb[135].mxu1  ;;  %v5373_v18 = vmax.f32 %v5269_v20, 0.0  ;;  %v5374_v27 = vmax.f32 %v5340_v26, 0.0  ;;  %v5431_v19 = vpop.permute.xlu1 %5430  ;;  %v10019_v62 = vld [vmem:[%s15690_s4 + $0x1b8] sm:$0xff]  }
 0x8b5   :  { %v5376_v23 = vmax.f32 %v5271_v16, 0.0  ;;  %v5346_v17 = vadd.f32 %v5345_v40, %v5168_v8  ;;  %9583 = vmatmul.mubr.msk.bf16.gmra.mrb[240].mxu0 %vm1031_vm8, %v10018_v59  ;;  %v5375_v49 = vmax.f32 %v5342_v3, 0.0  ;;  %v5436_v30 = vpop.permute.xlu0 %5435 }
 0x8b6   :  { %v5377_v50 = vmax.f32 %v5273_v11, 0.0  ;;  %v5378_v12 = vmax.f32 %v5344_v42, 0.0  ;;  %9587 = vmatmul.mubr.msk.bf16.gmra.mrb[240].mxu1 %vm1031_vm8, %v10018_v59  ;;  %7350 = vmatprep.mubr.bf16.mxu0 %v16151_v22 }
 0x8b7   :  { %v14817_v56 = vpack.c.bf16 %v5376_v23, %v5372_v47  ;;  %v5379_v57 = vmax.f32 %v5346_v17, 0.0  ;;  %7423 = vmatprep.mubr.bf16.mxu1 %v16151_v22 }
 0x8b8   :  { %v14820_v38 = vpack.c.bf16 %v5377_v50, %v5373_v18  ;;  %v14822_v8 = vpack.c.bf16 %v5378_v12, %v5374_v27  ;;  %v5534_v40 = vpop.f32.mrb[136].mxu0 }
 0x8b9   :  { %16237 = vst [vmem:[#allocation91_spill] sm:$0xff] %v14817_v56  ;;  %v14824_v20 = vpack.c.bf16 %v5379_v57, %v5375_v49  ;;  %v5535_v26 = vadd.f32 %v5534_v40, %v5431_v19  ;;  %v5536_v16 = vpop.f32.mrb[137].mxu0  ;;  %v5607_v59 = vpop.f32.mrb[136].mxu1 }
 0x8ba   :  { %16238 = vst [vmem:[#allocation23_spill] sm:$0xff] %v14820_v38  ;;  %16239 = vst [vmem:[#allocation89_spill] sm:$0xff] %v14822_v8  ;;  %v5537_v24 = vadd.f32 %v5536_v16, %v5431_v19  ;;  %v5608_v3 = vadd.f32 %v5607_v59, %v5431_v19  ;;  %v5538_v11 = vpop.f32.mrb[138].mxu0  ;;  %v5609_v42 = vpop.f32.mrb[137].mxu1 }
 0x8bb   :  { %16240 = vst [vmem:[#allocation88_spill] sm:$0xff] %v14824_v20  ;;  %v5539_v47 = vadd.f32 %v5538_v11, %v5436_v30  ;;  %v5610_v23 = vadd.f32 %v5609_v42, %v5431_v19  ;;  %v5540_v50 = vpop.f32.mrb[139].mxu0  ;;  %v5611_v18 = vpop.f32.mrb[138].mxu1  ;;  %v5646_v49 = vmax.f32 %v5535_v26, 0.0 }
 0x8bc   :  { %v5541_v12 = vadd.f32 %v5540_v50, %v5436_v30  ;;  %v5612_v27 = vadd.f32 %v5611_v18, %v5436_v30  ;;  %v5613_v17 = vpop.f32.mrb[139].mxu1  ;;  %v5647_v8 = vmax.f32 %v5537_v24, 0.0  ;;  %v5648_v56 = vmax.f32 %v5608_v3, 0.0  ;;  %v5441_v16 = vpop.permute.xlu1 %5440  ;;  %v10020_v18 = vld [vmem:[%s15690_s4 + $0x1c0] sm:$0xff]  }
 0x8bd   :  { %v5650_v57 = vmax.f32 %v5539_v47, 0.0  ;;  %v5614_v40 = vadd.f32 %v5613_v17, %v5436_v30  ;;  %9584 = vmatmul.mubr.msk.bf16.gmra.mrb[244].mxu0 %vm1031_vm8, %v10019_v62  ;;  %v5649_v59 = vmax.f32 %v5610_v23, 0.0  ;;  %v5446_v26 = vpop.permute.xlu0 %5445 }
 0x8be   :  { %v5651_v20 = vmax.f32 %v5541_v12, 0.0  ;;  %v5652_v38 = vmax.f32 %v5612_v27, 0.0  ;;  %9588 = vmatmul.mubr.msk.bf16.gmra.mrb[244].mxu1 %vm1031_vm8, %v10019_v62  ;;  %7618 = vmatprep.mubr.bf16.mxu0 %v16151_v22 }
 0x8bf   :  { %v14832_v19 = vpack.c.bf16 %v5650_v57, %v5646_v49  ;;  %v5653_v11 = vmax.f32 %v5614_v40, 0.0  ;;  %7691 = vmatprep.mubr.bf16.mxu1 %v16151_v22 }
 0x8c0   :  { %v14835_v42 = vpack.c.bf16 %v5651_v20, %v5647_v8  ;;  %v14837_v30 = vpack.c.bf16 %v5652_v38, %v5648_v56  ;;  %v5544_v24 = vpop.f32.mrb[140].mxu0 }
 0x8c1   :  { %16241 = vst [vmem:[#allocation29_spill] sm:$0xff] %v14832_v19  ;;  %v14839_v3 = vpack.c.bf16 %v5653_v11, %v5649_v59  ;;  %v5545_v47 = vadd.f32 %v5544_v24, %v5441_v16  ;;  %v5546_v50 = vpop.f32.mrb[141].mxu0  ;;  %v5617_v62 = vpop.f32.mrb[140].mxu1 }
 0x8c2   :  { %16242 = vst [vmem:[#allocation25_spill] sm:$0xff] %v14835_v42  ;;  %16243 = vst [vmem:[#allocation22_spill] sm:$0xff] %v14837_v30  ;;  %v5547_v12 = vadd.f32 %v5546_v50, %v5441_v16  ;;  %v5618_v23 = vadd.f32 %v5617_v62, %v5441_v16  ;;  %v5548_v27 = vpop.f32.mrb[142].mxu0  ;;  %v5619_v17 = vpop.f32.mrb[141].mxu1 }
 0x8c3   :  { %16244 = vst [vmem:[#allocation24_spill] sm:$0xff] %v14839_v3  ;;  %v5549_v49 = vadd.f32 %v5548_v27, %v5446_v26  ;;  %v5620_v57 = vadd.f32 %v5619_v17, %v5441_v16  ;;  %v5550_v8 = vpop.f32.mrb[143].mxu0  ;;  %v5621_v20 = vpop.f32.mrb[142].mxu1  ;;  %v5654_v59 = vmax.f32 %v5545_v47, 0.0 }
 0x8c4   :  { %v5551_v56 = vadd.f32 %v5550_v8, %v5446_v26  ;;  %v5622_v38 = vadd.f32 %v5621_v20, %v5446_v26  ;;  %v5623_v40 = vpop.f32.mrb[143].mxu1  ;;  %v5655_v30 = vmax.f32 %v5547_v12, 0.0  ;;  %v5656_v19 = vmax.f32 %v5618_v23, 0.0  ;;  %v5451_v50 = vpop.permute.xlu1 %5450 }
 0x8c5   :  { %v5658_v11 = vmax.f32 %v5549_v49, 0.0  ;;  %v5624_v24 = vadd.f32 %v5623_v40, %v5446_v26  ;;  %9593 = vmatmul.mubr.msk.bf16.vlgmr.msra.gmra.mrb[248].mxu0 %vm1031_vm8, %v10020_v18  ;;  %v5657_v62 = vmax.f32 %v5620_v57, 0.0  ;;  %v5456_v26 = vpop.permute.xlu0 %5455 }
 0x8c6   :  { %v5659_v3 = vmax.f32 %v5551_v56, 0.0  ;;  %v5660_v42 = vmax.f32 %v5622_v38, 0.0  ;;  %7885 = vmatpush1.bf16.msra.mxu0 %v13911_v25  ;;  %9597 = vmatmul.mubr.msk.bf16.vlgmr.msra.gmra.mrb[248].mxu1 %vm1031_vm8, %v10020_v18 }
 0x8c7   :  { %v14847_v16 = vpack.c.bf16 %v5658_v11, %v5654_v59  ;;  %v5661_v27 = vmax.f32 %v5624_v24, 0.0  ;;  %7886 = vmatprep.subr.bf16.mxu0 %v13935_v15  ;;  %7958 = vmatpush1.bf16.msra.mxu1 %v13913_v14  ;;  %v10021_v15 = vld [vmem:[%s15690_s4 + $0x1c8] sm:$0xff]  }
 0x8c8   :  { %v14851_v47 = vpack.c.bf16 %v5659_v3, %v5655_v30  ;;  %v14853_v12 = vpack.c.bf16 %v5660_v42, %v5656_v19  ;;  %7959 = vmatprep.subr.bf16.mxu1 %v13937_v58  ;;  %v5554_v23 = vpop.f32.mrb[144].mxu0  ;;  %7628 = vmatprep.mubr.bf16.mxu0 %v16151_v22 }
 0x8c9   :  { %v14857_v25 = vpack.c.bf16 %v5661_v27, %v5657_v62  ;;  %v5555_v18 = vadd.f32 %v5554_v23, %v5451_v50  ;;  %v5556_v17 = vpop.f32.mrb[145].mxu0  ;;  %v5627_v49 = vpop.f32.mrb[144].mxu1  ;;  %7701 = vmatprep.mubr.bf16.mxu1 %v16151_v22 }
 0x8ca   :  { %v5557_v14 = vadd.f32 %v5556_v17, %v5451_v50  ;;  %v5628_v30 = vadd.f32 %v5627_v49, %v5451_v50  ;;  %7887 = vmatpush1.bf16.msra.mxu0 %v13931_v5  ;;  %v5558_v19 = vpop.f32.mrb[146].mxu0  ;;  %v5629_v58 = vpop.f32.mrb[145].mxu1 }
 0x8cb   :  { %v5559_v42 = vadd.f32 %v5558_v19, %v5456_v26  ;;  %v5630_v3 = vadd.f32 %v5629_v58, %v5451_v50  ;;  %7960 = vmatpush1.bf16.msra.mxu1 %v13933_v1  ;;  %8650 = vmatprep.subr.bf16.mxu0 %v14207_v41  ;;  %v5560_v57 = vpop.f32.mrb[147].mxu0  ;;  %v5631_v8 = vpop.f32.mrb[146].mxu1  ;;  %v5662_v40 = vmax.f32 %v5555_v18, 0.0  ;;  %v10022_v19 = vld [vmem:[%s15690_s4 + $0x1d0] sm:$0xff]  }
 0x8cc   :  { %v5561_v20 = vadd.f32 %v5560_v57, %v5456_v26  ;;  %v5632_v56 = vadd.f32 %v5631_v8, %v5456_v26  ;;  %8982 = vmatprep.subr.bf16.mxu1 %v14214_v21  ;;  %v5633_v38 = vpop.f32.mrb[147].mxu1  ;;  %v5663_v5 = vmax.f32 %v5557_v14, 0.0  ;;  %v5664_v24 = vmax.f32 %v5628_v30, 0.0  ;;  %v5461_v41 = vpop.permute.xlu1 %5460 }
 0x8cd   :  { %v5666_v59 = vmax.f32 %v5559_v42, 0.0  ;;  %v5634_v11 = vadd.f32 %v5633_v38, %v5456_v26  ;;  %9594 = vmatmul.mubr.msk.bf16.gmra.mrb[252].mxu0 %vm1031_vm8, %v10021_v15  ;;  %v5665_v27 = vmax.f32 %v5630_v3, 0.0  ;;  %v5466_v21 = vpop.permute.xlu0 %5465 }
 0x8ce   :  { %v5667_v62 = vmax.f32 %v5561_v20, 0.0  ;;  %v5668_v50 = vmax.f32 %v5632_v56, 0.0  ;;  %9598 = vmatmul.mubr.msk.bf16.gmra.mrb[252].mxu1 %vm1031_vm8, %v10021_v15  ;;  %7638 = vmatprep.mubr.bf16.mxu0 %v16151_v22 }
 0x8cf   :  { %v14870_v1 = vpack.c.bf16 %v5666_v59, %v5662_v40  ;;  %v5669_v23 = vmax.f32 %v5634_v11, 0.0  ;;  %7711 = vmatprep.mubr.bf16.mxu1 %v16151_v22 }
 0x8d0   :  { %v14873_v18 = vpack.c.bf16 %v5667_v62, %v5663_v5  ;;  %v14875_v26 = vpack.c.bf16 %v5668_v50, %v5664_v24  ;;  %v5564_v17 = vpop.f32.mrb[148].mxu0 }
 0x8d1   :  { %v14877_v49 = vpack.c.bf16 %v5669_v23, %v5665_v27  ;;  %v5565_v14 = vadd.f32 %v5564_v17, %v5461_v41  ;;  %v5566_v30 = vpop.f32.mrb[149].mxu0  ;;  %v5637_v15 = vpop.f32.mrb[148].mxu1 }
 0x8d2   :  { %16245 = vst [vmem:[#allocation8_spill] sm:$0xff] %v14875_v26  ;;  %v5567_v58 = vadd.f32 %v5566_v30, %v5461_v41  ;;  %v5638_v42 = vadd.f32 %v5637_v15, %v5461_v41  ;;  %v5568_v3 = vpop.f32.mrb[150].mxu0  ;;  %v5639_v57 = vpop.f32.mrb[149].mxu1 }
 0x8d3   :  { %v5569_v8 = vadd.f32 %v5568_v3, %v5466_v21  ;;  %v5640_v20 = vadd.f32 %v5639_v57, %v5461_v41  ;;  %v5570_v56 = vpop.f32.mrb[151].mxu0  ;;  %v5641_v38 = vpop.f32.mrb[150].mxu1  ;;  %v5670_v5 = vmax.f32 %v5565_v14, 0.0 }
 0x8d4   :  { %v5571_v40 = vadd.f32 %v5570_v56, %v5466_v21  ;;  %v5642_v59 = vadd.f32 %v5641_v38, %v5466_v21  ;;  %v5643_v11 = vpop.f32.mrb[151].mxu1  ;;  %v5671_v50 = vmax.f32 %v5567_v58, 0.0  ;;  %v5672_v27 = vmax.f32 %v5638_v42, 0.0  ;;  %v5729_v30 = vpop.permute.xlu1 %5728  ;;  %v10023_v38 = vld [vmem:[%s15690_s4 + $0x1d8] sm:$0xff]  }
 0x8d5   :  { %v5674_v24 = vmax.f32 %v5569_v8, 0.0  ;;  %v5644_v62 = vadd.f32 %v5643_v11, %v5466_v21  ;;  %9595 = vmatmul.mubr.msk.bf16.gmra.mrb[0].mxu0 %vm1031_vm8, %v10022_v19  ;;  %v5673_v15 = vmax.f32 %v5640_v20, 0.0  ;;  %v5734_v14 = vpop.permute.xlu0 %5733 }
 0x8d6   :  { %v5675_v23 = vmax.f32 %v5571_v40, 0.0  ;;  %v5676_v17 = vmax.f32 %v5642_v59, 0.0  ;;  %9599 = vmatmul.mubr.msk.bf16.gmra.mrb[0].mxu1 %vm1031_vm8, %v10022_v19  ;;  %7648 = vmatprep.mubr.bf16.mxu0 %v16151_v22 }
 0x8d7   :  { %v14885_v41 = vpack.c.bf16 %v5674_v24, %v5670_v5  ;;  %v5677_v3 = vmax.f32 %v5644_v62, 0.0  ;;  %7721 = vmatprep.mubr.bf16.mxu1 %v16151_v22 }
 0x8d8   :  { %v14888_v57 = vpack.c.bf16 %v5675_v23, %v5671_v50  ;;  %v14890_v21 = vpack.c.bf16 %v5676_v17, %v5672_v27  ;;  %v5832_v58 = vpop.f32.mrb[152].mxu0 }
 0x8d9   :  { %16246 = vst [vmem:[#allocation56_spill] sm:$0xff] %v14885_v41  ;;  %v14892_v42 = vpack.c.bf16 %v5677_v3, %v5673_v15  ;;  %v5833_v8 = vadd.f32 %v5832_v58, %v5729_v30  ;;  %v5834_v56 = vpop.f32.mrb[153].mxu0  ;;  %v5905_v19 = vpop.f32.mrb[152].mxu1 }
 0x8da   :  { %16247 = vst [vmem:[#allocation40_spill] sm:$0xff] %v14890_v21  ;;  %v5835_v40 = vadd.f32 %v5834_v56, %v5729_v30  ;;  %v5906_v20 = vadd.f32 %v5905_v19, %v5729_v30  ;;  %v5836_v59 = vpop.f32.mrb[154].mxu0  ;;  %v5907_v11 = vpop.f32.mrb[153].mxu1 }
 0x8db   :  { %16248 = vst [vmem:[#allocation5_spill] sm:$0xff] %v14892_v42  ;;  %v5837_v5 = vadd.f32 %v5836_v59, %v5734_v14  ;;  %v5908_v24 = vadd.f32 %v5907_v11, %v5729_v30  ;;  %v5838_v62 = vpop.f32.mrb[155].mxu0  ;;  %v5909_v50 = vpop.f32.mrb[154].mxu1  ;;  %v5944_v15 = vmax.f32 %v5833_v8, 0.0 }
 0x8dc   :  { %v5839_v27 = vadd.f32 %v5838_v62, %v5734_v14  ;;  %v5910_v23 = vadd.f32 %v5909_v50, %v5734_v14  ;;  %v5911_v17 = vpop.f32.mrb[155].mxu1  ;;  %v5945_v21 = vmax.f32 %v5835_v40, 0.0  ;;  %v5946_v41 = vmax.f32 %v5906_v20, 0.0  ;;  %v5739_v56 = vpop.permute.xlu1 %5738  ;;  %v10024_v50 = vld [vmem:[%s15690_s4 + $0x1e0] sm:$0xff]  }
 0x8dd   :  { %v5948_v3 = vmax.f32 %v5837_v5, 0.0  ;;  %v5912_v58 = vadd.f32 %v5911_v17, %v5734_v14  ;;  %9596 = vmatmul.mubr.msk.bf16.gmra.mrb[4].mxu0 %vm1031_vm8, %v10023_v38  ;;  %v5947_v19 = vmax.f32 %v5908_v24, 0.0  ;;  %v5744_v8 = vpop.permute.xlu0 %5743 }
 0x8de   :  { %v5949_v42 = vmax.f32 %v5839_v27, 0.0  ;;  %v5950_v26 = vmax.f32 %v5910_v23, 0.0  ;;  %9600 = vmatmul.mubr.msk.bf16.gmra.mrb[4].mxu1 %vm1031_vm8, %v10023_v38  ;;  %7916 = vmatprep.mubr.bf16.mxu0 %v16151_v22 }
 0x8df   :  { %v14900_v30 = vpack.c.bf16 %v5948_v3, %v5944_v15  ;;  %v5951_v59 = vmax.f32 %v5912_v58, 0.0  ;;  %7989 = vmatprep.mubr.bf16.mxu1 %v16151_v22 }
 0x8e0   :  { %v14903_v11 = vpack.c.bf16 %v5949_v42, %v5945_v21  ;;  %v14905_v14 = vpack.c.bf16 %v5950_v26, %v5946_v41  ;;  %v5842_v40 = vpop.f32.mrb[156].mxu0 }
 0x8e1   :  { %16249 = vst [vmem:[#allocation6_spill] sm:$0xff] %v14900_v30  ;;  %v14907_v20 = vpack.c.bf16 %v5951_v59, %v5947_v19  ;;  %v5843_v5 = vadd.f32 %v5842_v40, %v5739_v56  ;;  %v5844_v62 = vpop.f32.mrb[157].mxu0  ;;  %v5915_v38 = vpop.f32.mrb[156].mxu1 }
 0x8e2   :  { %16250 = vst [vmem:[#allocation92_spill] sm:$0xff] %v14903_v11  ;;  %16251 = vst [vmem:[#allocation93_spill] sm:$0xff] %v14905_v14  ;;  %v5845_v27 = vadd.f32 %v5844_v62, %v5739_v56  ;;  %v5916_v24 = vadd.f32 %v5915_v38, %v5739_v56  ;;  %v5846_v23 = vpop.f32.mrb[158].mxu0  ;;  %v5917_v17 = vpop.f32.mrb[157].mxu1 }
 0x8e3   :  { %16252 = vst [vmem:[#allocation94_spill] sm:$0xff] %v14907_v20  ;;  %v5847_v15 = vadd.f32 %v5846_v23, %v5744_v8  ;;  %v5918_v3 = vadd.f32 %v5917_v17, %v5739_v56  ;;  %v5848_v21 = vpop.f32.mrb[159].mxu0  ;;  %v5919_v42 = vpop.f32.mrb[158].mxu1  ;;  %v5952_v19 = vmax.f32 %v5843_v5, 0.0  ;;  %v16253_v5 = vld [vmem:[#allocation7_spill] sm:$0xff] }
 0x8e4   :  { %v5849_v26 = vadd.f32 %v5848_v21, %v5744_v8  ;;  %v5920_v41 = vadd.f32 %v5919_v42, %v5744_v8  ;;  %v5921_v58 = vpop.f32.mrb[159].mxu1  ;;  %v5953_v14 = vmax.f32 %v5845_v27, 0.0  ;;  %v5954_v30 = vmax.f32 %v5916_v24, 0.0  ;;  %v5749_v62 = vpop.permute.xlu1 %5748  ;;  %v16254_v24 = vld [vmem:[#allocation38_spill] sm:$0xff] }
 0x8e5   :  { %v5956_v59 = vmax.f32 %v5847_v15, 0.0  ;;  %v5922_v40 = vadd.f32 %v5921_v58, %v5744_v8  ;;  %9605 = vmatmul.mubr.msk.bf16.vlgmr.msra.gmra.mrb[8].mxu0 %vm1031_vm8, %v10024_v50  ;;  %v5955_v38 = vmax.f32 %v5918_v3, 0.0  ;;  %v5754_v8 = vpop.permute.xlu0 %5753  ;;  %v16256_v58 = vld [vmem:[#allocation68_spill] sm:$0xff] }
 0x8e6   :  { %v5957_v20 = vmax.f32 %v5849_v26, 0.0  ;;  %v5958_v11 = vmax.f32 %v5920_v41, 0.0  ;;  %8651 = vmatpush1.bf16.msra.mxu0 %v14205_v9  ;;  %9609 = vmatmul.mubr.msk.bf16.vlgmr.msra.gmra.mrb[8].mxu1 %vm1031_vm8, %v10024_v50 }
 0x8e7   :  { %v14915_v56 = vpack.c.bf16 %v5956_v59, %v5952_v19  ;;  %v5959_v23 = vmax.f32 %v5922_v40, 0.0  ;;  %8652 = vmatprep.subr.bf16.mxu0 %v14233_v35  ;;  %8983 = vmatpush1.bf16.msra.mxu1 %v16253_v5  ;;  %v10025_v35 = vld [vmem:[%s15690_s4 + $0x1e8] sm:$0xff]  }
 0x8e8   :  { %v14919_v17 = vpack.c.bf16 %v5957_v20, %v5953_v14  ;;  %v14921_v27 = vpack.c.bf16 %v5958_v11, %v5954_v30  ;;  %8984 = vmatprep.subr.bf16.mxu1 %v16254_v24  ;;  %v5852_v15 = vpop.f32.mrb[160].mxu0  ;;  %7926 = vmatprep.mubr.bf16.mxu0 %v16151_v22  ;;  %v16255_v30 = vld [vmem:[#allocation9_spill] sm:$0xff] }
 0x8e9   :  { %v14925_v9 = vpack.c.bf16 %v5959_v23, %v5955_v38  ;;  %v5853_v50 = vadd.f32 %v5852_v15, %v5749_v62  ;;  %v5854_v21 = vpop.f32.mrb[161].mxu0  ;;  %v5925_v3 = vpop.f32.mrb[160].mxu1  ;;  %7999 = vmatprep.mubr.bf16.mxu1 %v16151_v22 }
 0x8ea   :  { %v5855_v14 = vadd.f32 %v5854_v21, %v5749_v62  ;;  %v5926_v20 = vadd.f32 %v5925_v3, %v5749_v62  ;;  %8653 = vmatpush1.bf16.msra.mxu0 %v16255_v30  ;;  %v5856_v11 = vpop.f32.mrb[162].mxu0  ;;  %v5927_v42 = vpop.f32.mrb[161].mxu1 }
 0x8eb   :  { %v5857_v26 = vadd.f32 %v5856_v11, %v5754_v8  ;;  %v5928_v41 = vadd.f32 %v5927_v42, %v5749_v62  ;;  %8654 = vmatprep.subr.bf16.mxu0 %v14261_v13  ;;  %8985 = vmatpush1.bf16.msra.mxu1 %v16256_v58  ;;  %v5858_v19 = vpop.f32.mrb[163].mxu0  ;;  %v5929_v59 = vpop.f32.mrb[162].mxu1  ;;  %v5960_v5 = vmax.f32 %v5853_v50, 0.0  ;;  %v16257_v11 = vld [vmem:[#allocation10_spill] sm:$0xff] }
 0x8ec   :  { %v5859_v40 = vadd.f32 %v5858_v19, %v5754_v8  ;;  %v5930_v38 = vadd.f32 %v5929_v59, %v5754_v8  ;;  %8986 = vmatprep.subr.bf16.mxu1 %v14268_v39  ;;  %v5931_v23 = vpop.f32.mrb[163].mxu1  ;;  %v5961_v21 = vmax.f32 %v5855_v14, 0.0  ;;  %v5962_v3 = vmax.f32 %v5926_v20, 0.0  ;;  %v5759_v13 = vpop.permute.xlu1 %5758  ;;  %v16258_v39 = vld [vmem:[#allocation69_spill] sm:$0xff] }
 0x8ed   :  { %v5964_v24 = vmax.f32 %v5857_v26, 0.0  ;;  %v5932_v15 = vadd.f32 %v5931_v23, %v5754_v8  ;;  %9606 = vmatmul.mubr.msk.bf16.gmra.mrb[12].mxu0 %vm1031_vm8, %v10025_v35  ;;  %v5963_v58 = vmax.f32 %v5928_v41, 0.0  ;;  %v5764_v8 = vpop.permute.xlu0 %5763  ;;  %v16259_v23 = vld [vmem:[#allocation71_spill] sm:$0xff] }
 0x8ee   :  { %v5965_v30 = vmax.f32 %v5859_v40, 0.0  ;;  %v5966_v62 = vmax.f32 %v5930_v38, 0.0  ;;  %8655 = vmatpush1.bf16.msra.mxu0 %v16257_v11  ;;  %9610 = vmatmul.mubr.msk.bf16.gmra.mrb[12].mxu1 %vm1031_vm8, %v10025_v35 }
 0x8ef   :  { %v14938_v42 = vpack.c.bf16 %v5964_v24, %v5960_v5  ;;  %v5967_v19 = vmax.f32 %v5932_v15, 0.0  ;;  %8656 = vmatprep.subr.bf16.mxu0 %v14284_v29  ;;  %8987 = vmatpush1.bf16.msra.mxu1 %v16258_v39  ;;  %v10026_v29 = vld [vmem:[%s15690_s4 + $0x1f0] sm:$0xff]  }
 0x8f0   :  { %v14942_v50 = vpack.c.bf16 %v5965_v30, %v5961_v21  ;;  %v14944_v14 = vpack.c.bf16 %v5966_v62, %v5962_v3  ;;  %8988 = vmatprep.subr.bf16.mxu1 %v14291_v61  ;;  %v5862_v20 = vpop.f32.mrb[164].mxu0  ;;  %7936 = vmatprep.mubr.bf16.mxu0 %v16151_v22  ;;  %v16260_v21 = vld [vmem:[#allocation48_spill] sm:$0xff] }
 0x8f1   :  { %v14948_v35 = vpack.c.bf16 %v5967_v19, %v5963_v58  ;;  %v5863_v26 = vadd.f32 %v5862_v20, %v5759_v13  ;;  %v5864_v59 = vpop.f32.mrb[165].mxu0  ;;  %v5935_v41 = vpop.f32.mrb[164].mxu1  ;;  %8009 = vmatprep.mubr.bf16.mxu1 %v16151_v22 }
 0x8f2   :  { %v5865_v40 = vadd.f32 %v5864_v59, %v5759_v13  ;;  %v5936_v38 = vadd.f32 %v5935_v41, %v5759_v13  ;;  %8657 = vmatpush1.bf16.msra.mxu0 %v16259_v23  ;;  %v5866_v5 = vpop.f32.mrb[166].mxu0  ;;  %v5937_v61 = vpop.f32.mrb[165].mxu1 }
 0x8f3   :  { %v5867_v24 = vadd.f32 %v5866_v5, %v5764_v8  ;;  %v5938_v15 = vadd.f32 %v5937_v61, %v5759_v13  ;;  %8658 = vmatprep.subr.bf16.mxu0 %v14307_v45  ;;  %8989 = vmatpush1.bf16.msra.mxu1 %v16260_v21  ;;  %v5868_v3 = vpop.f32.mrb[167].mxu0  ;;  %v5939_v30 = vpop.f32.mrb[166].mxu1  ;;  %v5968_v19 = vmax.f32 %v5863_v26, 0.0  ;;  %v16261_v5 = vld [vmem:[#allocation55_spill] sm:$0xff] }
 0x8f4   :  { %v5869_v62 = vadd.f32 %v5868_v3, %v5764_v8  ;;  %v5940_v11 = vadd.f32 %v5939_v30, %v5764_v8  ;;  %8990 = vmatprep.subr.bf16.mxu1 %v14315_v48  ;;  %v5941_v58 = vpop.f32.mrb[167].mxu1  ;;  %v5969_v59 = vmax.f32 %v5865_v40, 0.0  ;;  %v5970_v41 = vmax.f32 %v5936_v38, 0.0  ;;  %v6027_v45 = vpop.permute.xlu1 %6026  ;;  %v16262_v48 = vld [vmem:[#allocation46_spill] sm:$0xff] }
 0x8f5   :  { %v5972_v39 = vmax.f32 %v5867_v24, 0.0  ;;  %v5942_v20 = vadd.f32 %v5941_v58, %v5764_v8  ;;  %9607 = vmatmul.mubr.msk.bf16.gmra.mrb[16].mxu0 %vm1031_vm8, %v10026_v29  ;;  %v5971_v21 = vmax.f32 %v5938_v15, 0.0  ;;  %v6032_v8 = vpop.permute.xlu0 %6031 }
 0x8f6   :  { %v5973_v23 = vmax.f32 %v5869_v62, 0.0  ;;  %v5974_v13 = vmax.f32 %v5940_v11, 0.0  ;;  %8659 = vmatpush1.bf16.msra.mxu0 %v16261_v5  ;;  %9611 = vmatmul.mubr.msk.bf16.gmra.mrb[16].mxu1 %vm1031_vm8, %v10026_v29  ;;  %v14980_v62 = vld [vmem:[%s15692_s6] sm:$0xff] }
 0x8f7   :  { %v14961_v61 = vpack.c.bf16 %v5972_v39, %v5968_v19  ;;  %v5975_v3 = vmax.f32 %v5942_v20, 0.0  ;;  %8660 = vmatprep.subr.bf16.mxu0 %v14331_v60  ;;  %8991 = vmatpush1.bf16.msra.mxu1 %v16262_v48  ;;  %v10027_v60 = vld [vmem:[%s15690_s4 + $0x1f8] sm:$0xff]  }
 0x8f8   :  { %v14965_v26 = vpack.c.bf16 %v5973_v23, %v5969_v59  ;;  %v14967_v40 = vpack.c.bf16 %v5974_v13, %v5970_v41  ;;  %8992 = vmatprep.subr.bf16.mxu1 %v14337_v37  ;;  %v6130_v38 = vpop.f32.mrb[168].mxu0  ;;  %7946 = vmatprep.mubr.bf16.mxu0 %v16151_v22  ;;  %v14985_v37 = vld [vmem:[%s15692_s6 + $0x20] sm:$0xff] }
 0x8f9   :  { %v14971_v29 = vpack.c.bf16 %v5975_v3, %v5971_v21  ;;  %v6131_v24 = vadd.f32 %v6130_v38, %v6027_v45  ;;  %v6132_v30 = vpop.f32.mrb[169].mxu0  ;;  %v6203_v15 = vpop.f32.mrb[168].mxu1  ;;  %8019 = vmatprep.mubr.bf16.mxu1 %v16151_v22  ;;  %v16263_v22 = vld [vmem:[#allocation70_spill] sm:$0xff]  ;;  %v9614_v48 = vcombine.high %v14980_v62, %v14985_v37 }
 0x8fa   :  { %v6133_v11 = vadd.f32 %v6132_v30, %v6027_v45  ;;  %v6204_v58 = vadd.f32 %v6203_v15, %v6027_v45  ;;  %8661 = vmatpush1.bf16.msra.mxu0 %v14327_v2  ;;  %v6134_v19 = vpop.f32.mrb[170].mxu0  ;;  %v6205_v39 = vpop.f32.mrb[169].mxu1  ;;  %v16264_v21 = vld [vmem:[#allocation42_spill] sm:$0xff] }
 0x8fb   :  { %v6135_v20 = vadd.f32 %v6134_v19, %v6032_v8  ;;  %v6206_v59 = vadd.f32 %v6205_v39, %v6027_v45  ;;  %8662 = vmatprep.subr.bf16.mxu0 %v14361_v36  ;;  %8993 = vmatpush1.bf16.msra.mxu1 %v16263_v22  ;;  %v6136_v41 = vpop.f32.mrb[171].mxu0  ;;  %v6207_v23 = vpop.f32.mrb[170].mxu1  ;;  %v6242_v38 = vmax.f32 %v6131_v24, 0.0  ;;  %v16265_v39 = vld [vmem:[#allocation11_spill] sm:$0xff]  ;;  %v16266_v24 = vld [vmem:[#allocation72_spill] sm:$0xff] }
 0x8fc   :  { %v6137_v13 = vadd.f32 %v6136_v41, %v6032_v8  ;;  %v6208_v5 = vadd.f32 %v6207_v23, %v6032_v8  ;;  %8994 = vmatprep.subr.bf16.mxu1 %v16264_v21  ;;  %v6209_v3 = vpop.f32.mrb[171].mxu1  ;;  %v6243_v45 = vmax.f32 %v6133_v11, 0.0  ;;  %v6244_v15 = vmax.f32 %v6204_v58, 0.0  ;;  %v6037_v22 = vpop.permute.xlu1 %6036 }
 0x8fd   :  { %v6246_v2 = vmax.f32 %v6135_v20, 0.0  ;;  %v6210_v30 = vadd.f32 %v6209_v3, %v6032_v8  ;;  %9608 = vmatmul.mubr.msk.bf16.gmra.mrb[20].mxu0 %vm1031_vm8, %v10027_v60  ;;  %v6245_v23 = vmax.f32 %v6206_v59, 0.0  ;;  %v6042_v8 = vpop.permute.xlu0 %6041 }
 0x8fe   :  { %v6247_v36 = vmax.f32 %v6137_v13, 0.0  ;;  %v6248_v19 = vmax.f32 %v6208_v5, 0.0  ;;  %8663 = vmatpush1.bf16.msra.mxu0 %v16265_v39  ;;  %9612 = vmatmul.mubr.msk.bf16.gmra.mrb[20].mxu1 %vm1031_vm8, %v10027_v60 }
 0x8ff   :  { %v14996_v41 = vpack.c.bf16 %v6246_v2, %v6242_v38  ;;  %v6249_v21 = vmax.f32 %v6210_v30, 0.0  ;;  %8664 = vmatprep.subr.bf16.mxu0 %v14384_v7  ;;  %8995 = vmatpush1.bf16.msra.mxu1 %v16266_v24  ;;  %v16268_v7 = vld [vmem:[#allocation73_spill] sm:$0xff] }
 0x900   :  { %v15000_v20 = vpack.c.bf16 %v6247_v36, %v6243_v45  ;;  %v15002_v11 = vpack.c.bf16 %v6248_v19, %v6244_v15  ;;  %8996 = vmatprep.subr.bf16.mxu1 %v14388_v51  ;;  %v6140_v58 = vpop.f32.mrb[172].mxu0  ;;  %8682 = vmatprep.mubr.bf16.mxu0 %v9614_v48  ;;  %v16269_v15 = vld [vmem:[#allocation75_spill] sm:$0xff] }
 0x901   :  { %v15005_v13 = vpack.c.bf16 %v6249_v21, %v6245_v23  ;;  %v6141_v60 = vadd.f32 %v6140_v58, %v6037_v22  ;;  %v6142_v5 = vpop.f32.mrb[173].mxu0  ;;  %v6213_v3 = vpop.f32.mrb[172].mxu1  ;;  %9014 = vmatprep.mubr.bf16.mxu1 %v9614_v48 }
 0x902   :  { %16267 = vst [vmem:[#allocation7_spill] sm:$0xff] %v15002_v11  ;;  %v6143_v59 = vadd.f32 %v6142_v5, %v6037_v22  ;;  %v6214_v38 = vadd.f32 %v6213_v3, %v6037_v22  ;;  %8665 = vmatpush1.bf16.msra.mxu0 %v16268_v7  ;;  %v6144_v2 = vpop.f32.mrb[174].mxu0  ;;  %v6215_v30 = vpop.f32.mrb[173].mxu1 }
 0x903   :  { %v6145_v45 = vadd.f32 %v6144_v2, %v6042_v8  ;;  %v6216_v36 = vadd.f32 %v6215_v30, %v6037_v22  ;;  %8666 = vmatprep.subr.bf16.mxu0 %v14407_v44  ;;  %8997 = vmatpush1.bf16.msra.mxu1 %v16269_v15  ;;  %v6146_v51 = vpop.f32.mrb[175].mxu0  ;;  %v6217_v19 = vpop.f32.mrb[174].mxu1  ;;  %v6250_v48 = vmax.f32 %v6141_v60, 0.0  ;;  %v16270_v2 = vld [vmem:[#allocation74_spill] sm:$0xff] }
 0x904   :  { %v6147_v39 = vadd.f32 %v6146_v51, %v6042_v8  ;;  %v6218_v23 = vadd.f32 %v6217_v19, %v6042_v8  ;;  %8998 = vmatprep.subr.bf16.mxu1 %v14411_v46  ;;  %v6219_v21 = vpop.f32.mrb[175].mxu1  ;;  %v6251_v5 = vmax.f32 %v6143_v59, 0.0  ;;  %v6252_v3 = vmax.f32 %v6214_v38, 0.0  ;;  %v6047_v22 = vpop.permute.xlu1 %6046  ;;  %v16271_v51 = vld [vmem:[#allocation12_spill] sm:$0xff] }
 0x905   :  { %v6254_v24 = vmax.f32 %v6145_v45, 0.0  ;;  %v6220_v58 = vadd.f32 %v6219_v21, %v6042_v8  ;;  %v6253_v30 = vmax.f32 %v6216_v36, 0.0  ;;  %v6052_v46 = vpop.permute.xlu0 %6051 }
 0x906   :  { %v6255_v7 = vmax.f32 %v6147_v39, 0.0  ;;  %v6256_v11 = vmax.f32 %v6218_v23, 0.0  ;;  %8667 = vmatpush1.bf16.msra.mxu0 %v16270_v2 }
 0x907   :  { %v15012_v44 = vpack.c.bf16 %v6254_v24, %v6250_v48  ;;  %v6257_v15 = vmax.f32 %v6220_v58, 0.0  ;;  %8668 = vmatprep.subr.bf16.mxu0 %v14431_v28  ;;  %8999 = vmatpush1.bf16.msra.mxu1 %v16271_v51 }
 0x908   :  { %v15016_v19 = vpack.c.bf16 %v6255_v7, %v6251_v5  ;;  %v15018_v60 = vpack.c.bf16 %v6256_v11, %v6252_v3  ;;  %9000 = vmatprep.subr.bf16.mxu1 %v14437_v4  ;;  %v6150_v8 = vpop.f32.mrb[176].mxu0  ;;  %v16272_v11 = vld [vmem:[#allocation13_spill] sm:$0xff]  ;;  %v16273_v7 = vld [vmem:[#allocation79_spill] sm:$0xff] }
 0x909   :  { %v15021_v59 = vpack.c.bf16 %v6257_v15, %v6253_v30  ;;  %v6151_v38 = vadd.f32 %v6150_v8, %v6047_v22  ;;  %v6152_v45 = vpop.f32.mrb[177].mxu0  ;;  %v6223_v39 = vpop.f32.mrb[176].mxu1 }
 0x90a   :  { %v6153_v23 = vadd.f32 %v6152_v45, %v6047_v22  ;;  %v6224_v36 = vadd.f32 %v6223_v39, %v6047_v22  ;;  %8669 = vmatpush1.bf16.msra.mxu0 %v14427_v0  ;;  %v6154_v28 = vpop.f32.mrb[178].mxu0  ;;  %v6225_v21 = vpop.f32.mrb[177].mxu1 }
 0x90b   :  { %v6155_v48 = vadd.f32 %v6154_v28, %v6052_v46  ;;  %v6226_v24 = vadd.f32 %v6225_v21, %v6047_v22  ;;  %8670 = vmatprep.subr.bf16.mxu0 %v14461_v34  ;;  %9001 = vmatpush1.bf16.msra.mxu1 %v16272_v11  ;;  %v6156_v58 = vpop.f32.mrb[179].mxu0  ;;  %v6227_v4 = vpop.f32.mrb[178].mxu1  ;;  %v6258_v30 = vmax.f32 %v6151_v38, 0.0  ;;  %v16274_v28 = vld [vmem:[#allocation41_spill] sm:$0xff] }
 0x90c   :  { %v6157_v5 = vadd.f32 %v6156_v58, %v6052_v46  ;;  %v6228_v3 = vadd.f32 %v6227_v4, %v6052_v46  ;;  %9002 = vmatprep.subr.bf16.mxu1 %v16273_v7  ;;  %v6229_v2 = vpop.f32.mrb[179].mxu1  ;;  %v6259_v8 = vmax.f32 %v6153_v23, 0.0  ;;  %v6260_v0 = vmax.f32 %v6224_v36, 0.0  ;;  %v6057_v22 = vpop.permute.xlu1 %6056  ;;  %v16275_v58 = vld [vmem:[#allocation76_spill] sm:$0xff] }
 0x90d   :  { %v6262_v15 = vmax.f32 %v6155_v48, 0.0  ;;  %v6230_v51 = vadd.f32 %v6229_v2, %v6052_v46  ;;  %v6261_v21 = vmax.f32 %v6226_v24, 0.0  ;;  %v6062_v4 = vpop.permute.xlu0 %6061  ;;  %v16276_v2 = vld [vmem:[#allocation77_spill] sm:$0xff] }
 0x90e   :  { %v6263_v45 = vmax.f32 %v6157_v5, 0.0  ;;  %v6264_v39 = vmax.f32 %v6228_v3, 0.0  ;;  %8671 = vmatpush1.bf16.msra.mxu0 %v16274_v28 }
 0x90f   :  { %v15028_v34 = vpack.c.bf16 %v6262_v15, %v6258_v30  ;;  %v6265_v11 = vmax.f32 %v6230_v51, 0.0  ;;  %8672 = vmatprep.subr.bf16.mxu0 %v14484_v33  ;;  %9003 = vmatpush1.bf16.msra.mxu1 %v16275_v58 }
 0x910   :  { %v15032_v7 = vpack.c.bf16 %v6263_v45, %v6259_v8  ;;  %v15034_v38 = vpack.c.bf16 %v6264_v39, %v6260_v0  ;;  %9004 = vmatprep.subr.bf16.mxu1 %v14488_v63  ;;  %v6160_v46 = vpop.f32.mrb[180].mxu0  ;;  %v16277_v8 = vld [vmem:[#allocation78_spill] sm:$0xff] }
 0x911   :  { %v15037_v23 = vpack.c.bf16 %v6265_v11, %v6261_v21  ;;  %v6161_v36 = vadd.f32 %v6160_v46, %v6057_v22  ;;  %v6162_v48 = vpop.f32.mrb[181].mxu0  ;;  %v6233_v5 = vpop.f32.mrb[180].mxu1 }
 0x912   :  { %v6163_v3 = vadd.f32 %v6162_v48, %v6057_v22  ;;  %v6234_v24 = vadd.f32 %v6233_v5, %v6057_v22  ;;  %8673 = vmatpush1.bf16.msra.mxu0 %v16276_v2  ;;  %v6164_v33 = vpop.f32.mrb[182].mxu0  ;;  %v6235_v30 = vpop.f32.mrb[181].mxu1 }
 0x913   :  { %v6165_v15 = vadd.f32 %v6164_v33, %v6062_v4  ;;  %v6236_v51 = vadd.f32 %v6235_v30, %v6057_v22  ;;  %8674 = vmatprep.subr.bf16.mxu0 %v14507_v55  ;;  %9005 = vmatpush1.bf16.msra.mxu1 %v16277_v8  ;;  %v6166_v0 = vpop.f32.mrb[183].mxu0  ;;  %v6237_v63 = vpop.f32.mrb[182].mxu1  ;;  %v6266_v21 = vmax.f32 %v6161_v36, 0.0  ;;  %v16278_v33 = vld [vmem:[#allocation59_spill] sm:$0xff] }
 0x914   :  { %v6167_v45 = vadd.f32 %v6166_v0, %v6062_v4  ;;  %v6238_v39 = vadd.f32 %v6237_v63, %v6062_v4  ;;  %9006 = vmatprep.subr.bf16.mxu1 %v14511_v54  ;;  %v6239_v28 = vpop.f32.mrb[183].mxu1  ;;  %v6267_v46 = vmax.f32 %v6163_v3, 0.0  ;;  %v6268_v48 = vmax.f32 %v6234_v24, 0.0  ;;  %v6325_v22 = vpop.permute.xlu1 %6324  ;;  %v16279_v0 = vld [vmem:[#allocation33_spill] sm:$0xff] }
 0x915   :  { %v6270_v11 = vmax.f32 %v6165_v15, 0.0  ;;  %v6240_v58 = vadd.f32 %v6239_v28, %v6062_v4  ;;  %v6269_v30 = vmax.f32 %v6236_v51, 0.0  ;;  %v6330_v54 = vpop.permute.xlu0 %6329 }
 0x916   :  { %v6271_v5 = vmax.f32 %v6167_v45, 0.0  ;;  %v6272_v2 = vmax.f32 %v6238_v39, 0.0  ;;  %8675 = vmatpush1.bf16.msra.mxu0 %v16278_v33 }
 0x917   :  { %v15044_v55 = vpack.c.bf16 %v6270_v11, %v6266_v21  ;;  %v6273_v8 = vmax.f32 %v6240_v58, 0.0  ;;  %8676 = vmatprep.subr.bf16.mxu0 %v14531_v6  ;;  %9007 = vmatpush1.bf16.msra.mxu1 %v16279_v0  ;;  %v16281_v58 = vld [vmem:[#allocation4_spill] sm:$0xff] }
 0x918   :  { %v15048_v63 = vpack.c.bf16 %v6271_v5, %v6267_v46  ;;  %v15050_v36 = vpack.c.bf16 %v6272_v2, %v6268_v48  ;;  %9008 = vmatprep.subr.bf16.mxu1 %v14537_v10  ;;  %v6428_v4 = vpop.f32.mrb[184].mxu0  ;;  %v16282_v2 = vld [vmem:[#allocation61_spill] sm:$0xff] }
 0x919   :  { %v15053_v3 = vpack.c.bf16 %v6273_v8, %v6269_v30  ;;  %v6429_v24 = vadd.f32 %v6428_v4, %v6325_v22  ;;  %v6430_v15 = vpop.f32.mrb[185].mxu0  ;;  %v6501_v45 = vpop.f32.mrb[184].mxu1 }
 0x91a   :  { %16280 = vst [vmem:[#allocation38_spill] sm:$0xff] %v15050_v36  ;;  %v6431_v39 = vadd.f32 %v6430_v15, %v6325_v22  ;;  %v6502_v51 = vadd.f32 %v6501_v45, %v6325_v22  ;;  %8677 = vmatpush1.bf16.msra.mxu0 %v14527_v32  ;;  %v6432_v6 = vpop.f32.mrb[186].mxu0  ;;  %v6503_v28 = vpop.f32.mrb[185].mxu1  ;;  %v16295_v36 = vld [vmem:[#allocation17_spill] sm:$0xff] }
 0x91b   :  { %v6433_v21 = vadd.f32 %v6432_v6, %v6330_v54  ;;  %v6504_v11 = vadd.f32 %v6503_v28, %v6325_v22  ;;  %8678 = vmatprep.subr.bf16.mxu0 %v14561_v43  ;;  %9009 = vmatpush1.bf16.msra.mxu1 %v16281_v58  ;;  %v6434_v46 = vpop.f32.mrb[187].mxu0  ;;  %v6505_v10 = vpop.f32.mrb[186].mxu1  ;;  %v6540_v30 = vmax.f32 %v6429_v24, 0.0  ;;  %v16283_v6 = vld [vmem:[#allocation32_spill] sm:$0xff] }
 0x91c   :  { %v6435_v48 = vadd.f32 %v6434_v46, %v6330_v54  ;;  %v6506_v5 = vadd.f32 %v6505_v10, %v6330_v54  ;;  %9010 = vmatprep.subr.bf16.mxu1 %v16282_v2  ;;  %v6507_v33 = vpop.f32.mrb[187].mxu1  ;;  %v6541_v4 = vmax.f32 %v6431_v39, 0.0  ;;  %v6542_v32 = vmax.f32 %v6502_v51, 0.0  ;;  %v6335_v22 = vpop.permute.xlu1 %6334  ;;  %v16285_v46 = vld [vmem:[#allocation27_spill] sm:$0xff] }
 0x91d   :  { %v6544_v8 = vmax.f32 %v6433_v21, 0.0  ;;  %v6508_v0 = vadd.f32 %v6507_v33, %v6330_v54  ;;  %v6543_v28 = vmax.f32 %v6504_v11, 0.0  ;;  %v6340_v10 = vpop.permute.xlu0 %6339  ;;  %v16287_v54 = vld [vmem:[#allocation60_spill] sm:$0xff]  ;;  %v9613_v11 = vcombine.low %v14980_v62, %v14985_v37 }
 0x91e   :  { %v6545_v15 = vmax.f32 %v6435_v48, 0.0  ;;  %v6546_v45 = vmax.f32 %v6506_v5, 0.0  ;;  %8679 = vmatpush1.bf16.msra.mxu0 %v16283_v6  ;;  %v8106_v33 = vld [vmem:[%s15692_s6 + $0x60] sm:$0xff] }
 0x91f   :  { %v15060_v43 = vpack.c.bf16 %v6544_v8, %v6540_v30  ;;  %v6547_v58 = vmax.f32 %v6508_v0, 0.0  ;;  %8680 = vmatprep.subr.bf16.mxu0 %v14584_v52  ;;  %9011 = vmatpush1.bf16.msra.mxu1 %v16285_v46  ;;  %v8102_v52 = vld [vmem:[%s15692_s6 + $0x40] sm:$0xff]  ;;  %v16289_v0 = vld [vmem:[#allocation26_spill] sm:$0xff] }
 0x920   :  { %v15064_v2 = vpack.c.bf16 %v6545_v15, %v6541_v4  ;;  %v15066_v24 = vpack.c.bf16 %v6546_v45, %v6542_v32  ;;  %9012 = vmatprep.subr.bf16.mxu1 %v16287_v54  ;;  %v6438_v39 = vpop.f32.mrb[188].mxu0  ;;  %v16290_v6 = vld [vmem:[#allocation16_spill] sm:$0xff]  ;;  %v16292_v54 = vld [vmem:[#allocation63_spill] sm:$0xff] }
 0x921   :  { %16284 = vst [vmem:[#allocation9_spill] sm:$0xff] %v15060_v43  ;;  %v15069_v51 = vpack.c.bf16 %v6547_v58, %v6543_v28  ;;  %v6439_v21 = vadd.f32 %v6438_v39, %v6335_v22  ;;  %v6440_v48 = vpop.f32.mrb[189].mxu0  ;;  %v6511_v5 = vpop.f32.mrb[188].mxu1  ;;  %v16291_v28 = vld [vmem:[#allocation14_spill] sm:$0xff] }
 0x922   :  { %16286 = vst [vmem:[#allocation68_spill] sm:$0xff] %v15066_v24  ;;  %v6441_v30 = vadd.f32 %v6440_v48, %v6335_v22  ;;  %v6512_v8 = vadd.f32 %v6511_v5, %v6335_v22  ;;  %8681 = vmatpush1.bf16.msra.mxu0 %v16289_v0  ;;  %v6442_v4 = vpop.f32.mrb[190].mxu0  ;;  %v6513_v32 = vpop.f32.mrb[189].mxu1  ;;  %v9622_v24 = vcombine.high %v8102_v52, %v8106_v33 }
 0x923   :  { %16288 = vst [vmem:[#allocation10_spill] sm:$0xff] %v15069_v51  ;;  %v6443_v15 = vadd.f32 %v6442_v4, %v6340_v10  ;;  %v6514_v45 = vadd.f32 %v6513_v32, %v6335_v22  ;;  %8733 = vmatprep.subr.bf16.mxu0 %v16290_v6  ;;  %9013 = vmatpush1.bf16.msra.mxu1 %v16291_v28  ;;  %v6444_v62 = vpop.f32.mrb[191].mxu0  ;;  %v6515_v37 = vpop.f32.mrb[190].mxu1  ;;  %v6548_v48 = vmax.f32 %v6439_v21, 0.0  ;;  %v16293_v32 = vld [vmem:[#allocation15_spill] sm:$0xff] }
 0x924   :  { %v6445_v58 = vadd.f32 %v6444_v62, %v6340_v10  ;;  %v6516_v46 = vadd.f32 %v6515_v37, %v6340_v10  ;;  %9065 = vmatprep.subr.bf16.mxu1 %v16292_v54  ;;  %v6517_v39 = vpop.f32.mrb[191].mxu1  ;;  %v6549_v0 = vmax.f32 %v6441_v30, 0.0  ;;  %v6550_v51 = vmax.f32 %v6512_v8, 0.0  ;;  %v6345_v6 = vpop.permute.xlu1 %6344  ;;  %v16296_v54 = vld [vmem:[#allocation53_spill] sm:$0xff]  ;;  %v16299_v30 = vld [vmem:[#allocation62_spill] sm:$0xff] }
 0x925   :  { %v6552_v5 = vmax.f32 %v6443_v15, 0.0  ;;  %v6518_v43 = vadd.f32 %v6517_v39, %v6340_v10  ;;  %8683 = vmatmul.mubr.bf16.vlgmr.msra.gmra.mrb[24].mxu0 %v9613_v11  ;;  %v6551_v62 = vmax.f32 %v6514_v45, 0.0  ;;  %v6350_v21 = vpop.permute.xlu0 %6349  ;;  %v9621_v45 = vcombine.low %v8102_v52, %v8106_v33  ;;  %v16303_v52 = vld [vmem:[#allocation37_spill] sm:$0xff] }
 0x926   :  { %v6553_v4 = vmax.f32 %v6445_v58, 0.0  ;;  %v6554_v22 = vmax.f32 %v6516_v46, 0.0  ;;  %8734 = vmatpush1.bf16.msra.mxu0 %v16293_v32  ;;  %9015 = vmatmul.mubr.bf16.vlgmr.msra.gmra.mrb[24].mxu1 %v9613_v11 }
 0x927   :  { %v15084_v28 = vpack.c.bf16 %v6552_v5, %v6548_v48  ;;  %v6555_v37 = vmax.f32 %v6518_v43, 0.0  ;;  %8735 = vmatprep.subr.bf16.mxu0 %v16295_v36  ;;  %9066 = vmatpush1.bf16.msra.mxu1 %v16296_v54  ;;  %v8110_v36 = vld [vmem:[%s15692_s6 + $0x80] sm:$0xff]  ;;  %v16301_v5 = vld [vmem:[#allocation45_spill] sm:$0xff] }
 0x928   :  { %v15088_v15 = vpack.c.bf16 %v6553_v4, %v6549_v0  ;;  %v15090_v10 = vpack.c.bf16 %v6554_v22, %v6550_v51  ;;  %9067 = vmatprep.subr.bf16.mxu1 %v16299_v30  ;;  %v6448_v8 = vpop.f32.mrb[192].mxu0  ;;  %8692 = vmatprep.mubr.bf16.mxu0 %v9622_v24  ;;  %v8114_v43 = vld [vmem:[%s15692_s6 + $0xa0] sm:$0xff] }
 0x929   :  { %16294 = vst [vmem:[#allocation69_spill] sm:$0xff] %v15084_v28  ;;  %v15093_v58 = vpack.c.bf16 %v6555_v37, %v6551_v62  ;;  %v6449_v11 = vadd.f32 %v6448_v8, %v6345_v6  ;;  %v6450_v46 = vpop.f32.mrb[193].mxu0  ;;  %v6521_v39 = vpop.f32.mrb[192].mxu1  ;;  %9024 = vmatprep.mubr.bf16.mxu1 %v9622_v24  ;;  %v16302_v62 = vld [vmem:[#allocation44_spill] sm:$0xff] }
 0x92a   :  { %16297 = vst [vmem:[#allocation71_spill] sm:$0xff] %v15088_v15  ;;  %16298 = vst [vmem:[#allocation48_spill] sm:$0xff] %v15090_v10  ;;  %v6451_v51 = vadd.f32 %v6450_v46, %v6345_v6  ;;  %v6522_v48 = vadd.f32 %v6521_v39, %v6345_v6  ;;  %8736 = vmatpush1.bf16.msra.mxu0 %v16301_v5  ;;  %v6452_v0 = vpop.f32.mrb[194].mxu0  ;;  %v6523_v4 = vpop.f32.mrb[193].mxu1  ;;  %v16304_v30 = vld [vmem:[#allocation28_spill] sm:$0xff]  ;;  %v9630_v10 = vcombine.high %v8110_v36, %v8114_v43  ;;  %v16307_v15 = vld [vmem:[#allocation49_spill] sm:$0xff] }
 0x92b   :  { %16300 = vst [vmem:[#allocation55_spill] sm:$0xff] %v15093_v58  ;;  %v6453_v22 = vadd.f32 %v6452_v0, %v6350_v21  ;;  %v6524_v32 = vadd.f32 %v6523_v4, %v6345_v6  ;;  %8737 = vmatprep.subr.bf16.mxu0 %v16302_v62  ;;  %9068 = vmatpush1.bf16.msra.mxu1 %v16303_v52  ;;  %v6454_v24 = vpop.f32.mrb[195].mxu0  ;;  %v6525_v33 = vpop.f32.mrb[194].mxu1  ;;  %v6556_v46 = vmax.f32 %v6449_v11, 0.0  ;;  %v16305_v4 = vld [vmem:[#allocation39_spill] sm:$0xff] }
 0x92c   :  { %v6455_v37 = vadd.f32 %v6454_v24, %v6350_v21  ;;  %v6526_v54 = vadd.f32 %v6525_v33, %v6350_v21  ;;  %9069 = vmatprep.subr.bf16.mxu1 %v16304_v30  ;;  %v6527_v8 = vpop.f32.mrb[195].mxu1  ;;  %v6557_v5 = vmax.f32 %v6451_v51, 0.0  ;;  %v6558_v58 = vmax.f32 %v6522_v48, 0.0  ;;  %v6355_v62 = vpop.permute.xlu1 %6354  ;;  %v16308_v30 = vld [vmem:[#allocation51_spill] sm:$0xff] }
 0x92d   :  { %v6560_v39 = vmax.f32 %v6453_v22, 0.0  ;;  %v6528_v28 = vadd.f32 %v6527_v8, %v6350_v21  ;;  %8693 = vmatmul.mubr.bf16.gmra.mrb[28].mxu0 %v9621_v45  ;;  %v6559_v24 = vmax.f32 %v6524_v32, 0.0  ;;  %v6360_v11 = vpop.permute.xlu0 %6359  ;;  %v16311_v51 = vld [vmem:[#allocation47_spill] sm:$0xff]  ;;  %v9629_v32 = vcombine.low %v8110_v36, %v8114_v43  ;;  %v16315_v36 = vld [vmem:[#allocation18_spill] sm:$0xff] }
 0x92e   :  { %v6561_v0 = vmax.f32 %v6455_v37, 0.0  ;;  %v6562_v6 = vmax.f32 %v6526_v54, 0.0  ;;  %8738 = vmatpush1.bf16.msra.mxu0 %v16305_v4  ;;  %9025 = vmatmul.mubr.bf16.gmra.mrb[28].mxu1 %v9621_v45 }
 0x92f   :  { %v15106_v52 = vpack.c.bf16 %v6560_v39, %v6556_v46  ;;  %v6563_v33 = vmax.f32 %v6528_v28, 0.0  ;;  %8739 = vmatprep.subr.bf16.mxu0 %v16307_v15  ;;  %9070 = vmatpush1.bf16.msra.mxu1 %v16308_v30  ;;  %v8118_v28 = vld [vmem:[%s15692_s6 + $0xc0] sm:$0xff] }
 0x930   :  { %v15110_v22 = vpack.c.bf16 %v6561_v0, %v6557_v5  ;;  %v15112_v21 = vpack.c.bf16 %v6562_v6, %v6558_v58  ;;  %9071 = vmatprep.subr.bf16.mxu1 %v16311_v51  ;;  %v6458_v48 = vpop.f32.mrb[196].mxu0  ;;  %8702 = vmatprep.mubr.bf16.mxu0 %v9630_v10  ;;  %v8122_v15 = vld [vmem:[%s15692_s6 + $0xe0] sm:$0xff]  ;;  %v16316_v51 = vld [vmem:[#allocation50_spill] sm:$0xff] }
 0x931   :  { %16306 = vst [vmem:[#allocation46_spill] sm:$0xff] %v15106_v52  ;;  %v15115_v37 = vpack.c.bf16 %v6563_v33, %v6559_v24  ;;  %v6459_v45 = vadd.f32 %v6458_v48, %v6355_v62  ;;  %v6460_v54 = vpop.f32.mrb[197].mxu0  ;;  %v6531_v8 = vpop.f32.mrb[196].mxu1  ;;  %9034 = vmatprep.mubr.bf16.mxu1 %v9630_v10  ;;  %v16313_v39 = vld [vmem:[#allocation36_spill] sm:$0xff]  ;;  %v16314_v24 = vld [vmem:[#allocation19_spill] sm:$0xff] }
 0x932   :  { %16309 = vst [vmem:[#allocation70_spill] sm:$0xff] %v15110_v22  ;;  %16310 = vst [vmem:[#allocation42_spill] sm:$0xff] %v15112_v21  ;;  %v6461_v58 = vadd.f32 %v6460_v54, %v6355_v62  ;;  %v6532_v46 = vadd.f32 %v6531_v8, %v6355_v62  ;;  %8740 = vmatpush1.bf16.msra.mxu0 %v16313_v39  ;;  %v6462_v5 = vpop.f32.mrb[198].mxu0  ;;  %v6533_v0 = vpop.f32.mrb[197].mxu1  ;;  %v9638_v21 = vcombine.high %v8118_v28, %v8122_v15  ;;  %v16319_v22 = vld [vmem:[#allocation83_spill] sm:$0xff] }
 0x933   :  { %16312 = vst [vmem:[#allocation11_spill] sm:$0xff] %v15115_v37  ;;  %v6463_v6 = vadd.f32 %v6462_v5, %v6360_v11  ;;  %v6534_v4 = vadd.f32 %v6533_v0, %v6355_v62  ;;  %8741 = vmatprep.subr.bf16.mxu0 %v16314_v24  ;;  %9072 = vmatpush1.bf16.msra.mxu1 %v16315_v36  ;;  %v6464_v10 = vpop.f32.mrb[199].mxu0  ;;  %v6535_v43 = vpop.f32.mrb[198].mxu1  ;;  %v6564_v54 = vmax.f32 %v6459_v45, 0.0  ;;  %v16317_v0 = vld [vmem:[#allocation35_spill] sm:$0xff] }
 0x934   :  { %v6465_v33 = vadd.f32 %v6464_v10, %v6360_v11  ;;  %v6536_v30 = vadd.f32 %v6535_v43, %v6360_v11  ;;  %9073 = vmatprep.subr.bf16.mxu1 %v16316_v51  ;;  %v6537_v48 = vpop.f32.mrb[199].mxu1  ;;  %v6565_v39 = vmax.f32 %v6461_v58, 0.0  ;;  %v6566_v37 = vmax.f32 %v6532_v46, 0.0  ;;  %v6623_v24 = vpop.permute.xlu1 %6622  ;;  %v16320_v51 = vld [vmem:[#allocation82_spill] sm:$0xff]  ;;  %v16323_v58 = vld [vmem:[#allocation57_spill] sm:$0xff] }
 0x935   :  { %v6568_v8 = vmax.f32 %v6463_v6, 0.0  ;;  %v6538_v52 = vadd.f32 %v6537_v48, %v6360_v11  ;;  %8703 = vmatmul.mubr.bf16.gmra.mrb[32].mxu0 %v9629_v32  ;;  %v6567_v10 = vmax.f32 %v6534_v4, 0.0  ;;  %v6628_v45 = vpop.permute.xlu0 %6627  ;;  %v9637_v4 = vcombine.low %v8118_v28, %v8122_v15  ;;  %v16327_v28 = vld [vmem:[#allocation81_spill] sm:$0xff] }
 0x936   :  { %v6569_v5 = vmax.f32 %v6465_v33, 0.0  ;;  %v6570_v62 = vmax.f32 %v6536_v30, 0.0  ;;  %8742 = vmatpush1.bf16.msra.mxu0 %v16317_v0  ;;  %9035 = vmatmul.mubr.bf16.gmra.mrb[32].mxu1 %v9629_v32 }
 0x937   :  { %v15128_v36 = vpack.c.bf16 %v6568_v8, %v6564_v54  ;;  %v6571_v43 = vmax.f32 %v6538_v52, 0.0  ;;  %8743 = vmatprep.subr.bf16.mxu0 %v16319_v22  ;;  %9074 = vmatpush1.bf16.msra.mxu1 %v16320_v51  ;;  %v8126_v52 = vld [vmem:[%s15692_s6 + $0x100] sm:$0xff]  ;;  %v16325_v8 = vld [vmem:[#allocation43_spill] sm:$0xff] }
 0x938   :  { %v15132_v6 = vpack.c.bf16 %v6569_v5, %v6565_v39  ;;  %v15134_v11 = vpack.c.bf16 %v6570_v62, %v6566_v37  ;;  %9075 = vmatprep.subr.bf16.mxu1 %v16323_v58  ;;  %v6726_v46 = vpop.f32.mrb[200].mxu0  ;;  %8712 = vmatprep.mubr.bf16.mxu0 %v9638_v21  ;;  %v8130_v22 = vld [vmem:[%s15692_s6 + $0x120] sm:$0xff]  ;;  %v16328_v58 = vld [vmem:[#allocation54_spill] sm:$0xff] }
 0x939   :  { %16318 = vst [vmem:[#allocation72_spill] sm:$0xff] %v15128_v36  ;;  %v15137_v33 = vpack.c.bf16 %v6571_v43, %v6567_v10  ;;  %v6727_v32 = vadd.f32 %v6726_v46, %v6623_v24  ;;  %v6728_v30 = vpop.f32.mrb[201].mxu0  ;;  %v6799_v48 = vpop.f32.mrb[200].mxu1  ;;  %9044 = vmatprep.mubr.bf16.mxu1 %v9638_v21  ;;  %v16326_v10 = vld [vmem:[#allocation64_spill] sm:$0xff] }
 0x93a   :  { %16321 = vst [vmem:[#allocation73_spill] sm:$0xff] %v15132_v6  ;;  %16322 = vst [vmem:[#allocation75_spill] sm:$0xff] %v15134_v11  ;;  %v6729_v37 = vadd.f32 %v6728_v30, %v6623_v24  ;;  %v6800_v54 = vadd.f32 %v6799_v48, %v6623_v24  ;;  %8744 = vmatpush1.bf16.msra.mxu0 %v16325_v8  ;;  %v6730_v39 = vpop.f32.mrb[202].mxu0  ;;  %v6801_v5 = vpop.f32.mrb[201].mxu1  ;;  %v9646_v11 = vcombine.high %v8126_v52, %v8130_v22  ;;  %v16331_v6 = vld [vmem:[#allocation65_spill] sm:$0xff] }
 0x93b   :  { %16324 = vst [vmem:[#allocation74_spill] sm:$0xff] %v15137_v33  ;;  %v6731_v62 = vadd.f32 %v6730_v39, %v6628_v45  ;;  %v6802_v0 = vadd.f32 %v6801_v5, %v6623_v24  ;;  %8745 = vmatprep.subr.bf16.mxu0 %v16326_v10  ;;  %9076 = vmatpush1.bf16.msra.mxu1 %v16327_v28  ;;  %v6732_v21 = vpop.f32.mrb[203].mxu0  ;;  %v6803_v15 = vpop.f32.mrb[202].mxu1  ;;  %v6838_v30 = vmax.f32 %v6727_v32, 0.0  ;;  %v16329_v5 = vld [vmem:[#allocation58_spill] sm:$0xff] }
 0x93c   :  { %v6733_v43 = vadd.f32 %v6732_v21, %v6628_v45  ;;  %v6804_v51 = vadd.f32 %v6803_v15, %v6628_v45  ;;  %9077 = vmatprep.subr.bf16.mxu1 %v16328_v58  ;;  %v6805_v46 = vpop.f32.mrb[203].mxu1  ;;  %v6839_v8 = vmax.f32 %v6729_v37, 0.0  ;;  %v6840_v33 = vmax.f32 %v6800_v54, 0.0  ;;  %v6633_v10 = vpop.permute.xlu1 %6632  ;;  %v16332_v58 = vld [vmem:[#allocation80_spill] sm:$0xff]  ;;  %v16334_v37 = vld [vmem:[#allocation30_spill] sm:$0xff] }
 0x93d   :  { %v6842_v48 = vmax.f32 %v6731_v62, 0.0  ;;  %v6806_v36 = vadd.f32 %v6805_v46, %v6628_v45  ;;  %8713 = vmatmul.mubr.bf16.gmra.mrb[36].mxu0 %v9637_v4  ;;  %v6841_v21 = vmax.f32 %v6802_v0, 0.0  ;;  %v6638_v32 = vpop.permute.xlu0 %6637  ;;  %v9645_v0 = vcombine.low %v8126_v52, %v8130_v22  ;;  %v16337_v52 = vld [vmem:[#allocation86_spill] sm:$0xff] }
 0x93e   :  { %v6843_v39 = vmax.f32 %v6733_v43, 0.0  ;;  %v6844_v24 = vmax.f32 %v6804_v51, 0.0  ;;  %8746 = vmatpush1.bf16.msra.mxu0 %v16329_v5  ;;  %9045 = vmatmul.mubr.bf16.gmra.mrb[36].mxu1 %v9637_v4 }
 0x93f   :  { %v15150_v28 = vpack.c.bf16 %v6842_v48, %v6838_v30  ;;  %v6845_v15 = vmax.f32 %v6806_v36, 0.0  ;;  %8747 = vmatprep.subr.bf16.mxu0 %v16331_v6  ;;  %9078 = vmatpush1.bf16.msra.mxu1 %v16332_v58  ;;  %v15164_v36 = vld [vmem:[%s15692_s6 + $0x8] sm:$0xff]  ;;  %v16336_v48 = vld [vmem:[#allocation52_spill] sm:$0xff] }
 0x940   :  { %v15154_v62 = vpack.c.bf16 %v6843_v39, %v6839_v8  ;;  %v15156_v45 = vpack.c.bf16 %v6844_v24, %v6840_v33  ;;  %9079 = vmatprep.subr.bf16.mxu1 %v16334_v37  ;;  %v6736_v54 = vpop.f32.mrb[204].mxu0  ;;  %8722 = vmatprep.mubr.bf16.mxu0 %v9646_v11  ;;  %v15169_v6 = vld [vmem:[%s15692_s6 + $0x28] sm:$0xff]  ;;  %v16339_v37 = vld [vmem:[#allocation87_spill] sm:$0xff] }
 0x941   :  { %16330 = vst [vmem:[#allocation12_spill] sm:$0xff] %v15150_v28  ;;  %v15159_v43 = vpack.c.bf16 %v6845_v15, %v6841_v21  ;;  %v6737_v4 = vadd.f32 %v6736_v54, %v6633_v10  ;;  %v6738_v51 = vpop.f32.mrb[205].mxu0  ;;  %v6809_v46 = vpop.f32.mrb[204].mxu1  ;;  %9054 = vmatprep.mubr.bf16.mxu1 %v9646_v11  ;;  %v16338_v11 = vld [vmem:[#allocation31_spill] sm:$0xff]  ;;  %v16340_v28 = vld [vmem:[#allocation20_spill] sm:$0xff] }
 0x942   :  { %16333 = vst [vmem:[#allocation13_spill] sm:$0xff] %v15156_v45  ;;  %v6739_v33 = vadd.f32 %v6738_v51, %v6633_v10  ;;  %v6810_v30 = vadd.f32 %v6809_v46, %v6633_v10  ;;  %8748 = vmatpush1.bf16.msra.mxu0 %v16336_v48  ;;  %v6740_v8 = vpop.f32.mrb[206].mxu0  ;;  %v6811_v39 = vpop.f32.mrb[205].mxu1  ;;  %v9616_v51 = vcombine.high %v15164_v36, %v15169_v6 }
 0x943   :  { %16335 = vst [vmem:[#allocation79_spill] sm:$0xff] %v15159_v43  ;;  %v6741_v24 = vadd.f32 %v6740_v8, %v6638_v32  ;;  %v6812_v5 = vadd.f32 %v6811_v39, %v6633_v10  ;;  %8749 = vmatprep.subr.bf16.mxu0 %v16337_v52  ;;  %9080 = vmatpush1.bf16.msra.mxu1 %v16338_v11  ;;  %v6742_v22 = vpop.f32.mrb[207].mxu0  ;;  %v6813_v21 = vpop.f32.mrb[206].mxu1  ;;  %v6846_v46 = vmax.f32 %v6737_v4, 0.0  ;;  %v16342_v43 = vld [vmem:[#allocation21_spill] sm:$0xff] }
 0x944   :  { %v6743_v15 = vadd.f32 %v6742_v22, %v6638_v32  ;;  %v6814_v58 = vadd.f32 %v6813_v21, %v6638_v32  ;;  %9081 = vmatprep.subr.bf16.mxu1 %v16339_v37  ;;  %v6815_v54 = vpop.f32.mrb[207].mxu1  ;;  %v6847_v8 = vmax.f32 %v6739_v33, 0.0  ;;  %v6848_v10 = vmax.f32 %v6810_v30, 0.0  ;;  %v6643_v11 = vpop.permute.xlu1 %6642 }
 0x945   :  { %v6850_v48 = vmax.f32 %v6741_v24, 0.0  ;;  %v6816_v45 = vadd.f32 %v6815_v54, %v6638_v32  ;;  %8723 = vmatmul.mubr.bf16.gmra.mrb[40].mxu0 %v9645_v0  ;;  %v6849_v21 = vmax.f32 %v6812_v5, 0.0  ;;  %v6648_v4 = vpop.permute.xlu0 %6647 }
 0x946   :  { %v6851_v39 = vmax.f32 %v6743_v15, 0.0  ;;  %v6852_v52 = vmax.f32 %v6814_v58, 0.0  ;;  %8750 = vmatpush1.bf16.msra.mxu0 %v16340_v28  ;;  %9055 = vmatmul.mubr.bf16.gmra.mrb[40].mxu1 %v9645_v0 }
 0x947   :  { %v15178_v22 = vpack.c.bf16 %v6850_v48, %v6846_v46  ;;  %v6853_v37 = vmax.f32 %v6816_v45, 0.0  ;;  %8751 = vmatprep.subr.bf16.mxu0 %v14783_v53  ;;  %9082 = vmatpush1.bf16.msra.mxu1 %v16342_v43  ;;  %v16345_v53 = vld [vmem:[#allocation85_spill] sm:$0xff]  ;;  %v16346_v48 = vld [vmem:[#allocation34_spill] sm:$0xff] }
 0x948   :  { %v15182_v24 = vpack.c.bf16 %v6851_v39, %v6847_v8  ;;  %v15184_v32 = vpack.c.bf16 %v6852_v52, %v6848_v10  ;;  %9083 = vmatprep.subr.bf16.mxu1 %v14789_v31  ;;  %v6746_v33 = vpop.f32.mrb[208].mxu0  ;;  %8765 = vmatprep.mubr.bf16.mxu0 %v9616_v51  ;;  %v16347_v8 = vld [vmem:[#allocation84_spill] sm:$0xff] }
 0x949   :  { %16341 = vst [vmem:[#allocation41_spill] sm:$0xff] %v15178_v22  ;;  %v15187_v28 = vpack.c.bf16 %v6853_v37, %v6849_v21  ;;  %v6747_v0 = vadd.f32 %v6746_v33, %v6643_v11  ;;  %v6748_v30 = vpop.f32.mrb[209].mxu0  ;;  %v6819_v15 = vpop.f32.mrb[208].mxu1  ;;  %9097 = vmatprep.mubr.bf16.mxu1 %v9616_v51  ;;  %v16348_v21 = vld [vmem:[#allocation66_spill] sm:$0xff] }
 0x94a   :  { %16343 = vst [vmem:[#allocation76_spill] sm:$0xff] %v15184_v32  ;;  %v6749_v45 = vadd.f32 %v6748_v30, %v6643_v11  ;;  %v6820_v5 = vadd.f32 %v6819_v15, %v6643_v11  ;;  %8752 = vmatpush1.bf16.msra.mxu0 %v16345_v53  ;;  %v6750_v43 = vpop.f32.mrb[210].mxu0  ;;  %v6821_v58 = vpop.f32.mrb[209].mxu1 }
 0x94b   :  { %16344 = vst [vmem:[#allocation77_spill] sm:$0xff] %v15187_v28  ;;  %v6751_v54 = vadd.f32 %v6750_v43, %v6648_v4  ;;  %v6822_v46 = vadd.f32 %v6821_v58, %v6643_v11  ;;  %8753 = vmatprep.subr.bf16.mxu0 %v16346_v48  ;;  %9084 = vmatpush1.bf16.msra.mxu1 %v16347_v8  ;;  %v6752_v31 = vpop.f32.mrb[211].mxu0  ;;  %v6823_v10 = vpop.f32.mrb[210].mxu1  ;;  %v6854_v51 = vmax.f32 %v6747_v0, 0.0  ;;  %v16349_v43 = vld [vmem:[#allocation67_spill] sm:$0xff] }
 0x94c   :  { %v6753_v39 = vadd.f32 %v6752_v31, %v6648_v4  ;;  %v6824_v52 = vadd.f32 %v6823_v10, %v6648_v4  ;;  %9085 = vmatprep.subr.bf16.mxu1 %v16348_v21  ;;  %v6825_v37 = vpop.f32.mrb[211].mxu1  ;;  %v6855_v15 = vmax.f32 %v6749_v45, 0.0  ;;  %v6856_v53 = vmax.f32 %v6820_v5, 0.0  ;;  %v6653_v11 = vpop.permute.xlu1 %6652  ;;  %v16351_v28 = vld [vmem:[#allocation23_spill] sm:$0xff]  ;;  %v16352_v31 = vld [vmem:[#allocation90_spill] sm:$0xff] }
 0x94d   :  { %v6858_v33 = vmax.f32 %v6751_v54, 0.0  ;;  %v6826_v30 = vadd.f32 %v6825_v37, %v6648_v4  ;;  %v6857_v48 = vmax.f32 %v6822_v46, 0.0  ;;  %v6658_v10 = vpop.permute.xlu0 %6657  ;;  %v16354_v4 = vld [vmem:[#allocation88_spill] sm:$0xff] }
 0x94e   :  { %v6859_v32 = vmax.f32 %v6753_v39, 0.0  ;;  %v6860_v22 = vmax.f32 %v6824_v52, 0.0  ;;  %8754 = vmatpush1.bf16.msra.mxu0 %v16349_v43 }
 0x94f   :  { %v15194_v58 = vpack.c.bf16 %v6858_v33, %v6854_v51  ;;  %v6861_v8 = vmax.f32 %v6826_v30, 0.0  ;;  %8755 = vmatprep.subr.bf16.mxu0 %v16351_v28  ;;  %9086 = vmatpush1.bf16.msra.mxu1 %v16352_v31  ;;  %v16356_v51 = vld [vmem:[#allocation91_spill] sm:$0xff] }
 0x950   :  { %v15198_v21 = vpack.c.bf16 %v6859_v32, %v6855_v15  ;;  %v15200_v0 = vpack.c.bf16 %v6860_v22, %v6856_v53  ;;  %9087 = vmatprep.subr.bf16.mxu1 %v16354_v4  ;;  %v6756_v45 = vpop.f32.mrb[212].mxu0  ;;  %v16357_v32 = vld [vmem:[#allocation25_spill] sm:$0xff] }
 0x951   :  { %16350 = vst [vmem:[#allocation78_spill] sm:$0xff] %v15194_v58  ;;  %v15203_v5 = vpack.c.bf16 %v6861_v8, %v6857_v48  ;;  %v6757_v54 = vadd.f32 %v6756_v45, %v6653_v11  ;;  %v6758_v39 = vpop.f32.mrb[213].mxu0  ;;  %v6829_v52 = vpop.f32.mrb[212].mxu1  ;;  %v16358_v22 = vld [vmem:[#allocation89_spill] sm:$0xff]  ;;  %v16359_v8 = vld [vmem:[#allocation24_spill] sm:$0xff] }
 0x952   :  { %16353 = vst [vmem:[#allocation59_spill] sm:$0xff] %v15200_v0  ;;  %v6759_v37 = vadd.f32 %v6758_v39, %v6653_v11  ;;  %v6830_v46 = vadd.f32 %v6829_v52, %v6653_v11  ;;  %8756 = vmatpush1.bf16.msra.mxu0 %v16356_v51  ;;  %v6760_v28 = vpop.f32.mrb[214].mxu0  ;;  %v6831_v33 = vpop.f32.mrb[213].mxu1 }
 0x953   :  { %16355 = vst [vmem:[#allocation33_spill] sm:$0xff] %v15203_v5  ;;  %v6761_v30 = vadd.f32 %v6760_v28, %v6658_v10  ;;  %v6832_v43 = vadd.f32 %v6831_v33, %v6653_v11  ;;  %8757 = vmatprep.subr.bf16.mxu0 %v16357_v32  ;;  %9088 = vmatpush1.bf16.msra.mxu1 %v16358_v22  ;;  %v6762_v15 = vpop.f32.mrb[215].mxu0  ;;  %v6833_v53 = vpop.f32.mrb[214].mxu1  ;;  %v6862_v45 = vmax.f32 %v6757_v54, 0.0  ;;  %v16360_v28 = vld [vmem:[#allocation29_spill] sm:$0xff] }
 0x954   :  { %v6763_v31 = vadd.f32 %v6762_v15, %v6658_v10  ;;  %v6834_v48 = vadd.f32 %v6833_v53, %v6658_v10  ;;  %9089 = vmatprep.subr.bf16.mxu1 %v16359_v8  ;;  %v6835_v4 = vpop.f32.mrb[215].mxu1  ;;  %v6863_v0 = vmax.f32 %v6759_v37, 0.0  ;;  %v6864_v51 = vmax.f32 %v6830_v46, 0.0  ;;  %v6921_v11 = vpop.permute.xlu1 %6920  ;;  %v16361_v15 = vld [vmem:[#allocation22_spill] sm:$0xff] }
 0x955   :  { %v6866_v39 = vmax.f32 %v6761_v30, 0.0  ;;  %v6836_v52 = vadd.f32 %v6835_v4, %v6658_v10  ;;  %v6865_v32 = vmax.f32 %v6832_v43, 0.0  ;;  %v6926_v53 = vpop.permute.xlu0 %6925 }
 0x956   :  { %v6867_v58 = vmax.f32 %v6763_v31, 0.0  ;;  %v6868_v5 = vmax.f32 %v6834_v48, 0.0  ;;  %8758 = vmatpush1.bf16.msra.mxu0 %v16360_v28 }
 0x957   :  { %v15210_v33 = vpack.c.bf16 %v6866_v39, %v6862_v45  ;;  %v6869_v22 = vmax.f32 %v6836_v52, 0.0  ;;  %8759 = vmatprep.subr.bf16.mxu0 %v14851_v47  ;;  %9090 = vmatpush1.bf16.msra.mxu1 %v16361_v15 }
 0x958   :  { %v15214_v8 = vpack.c.bf16 %v6867_v58, %v6863_v0  ;;  %v15216_v54 = vpack.c.bf16 %v6868_v5, %v6864_v51  ;;  %9091 = vmatprep.subr.bf16.mxu1 %v14857_v25  ;;  %v7024_v10 = vpop.f32.mrb[216].mxu0 }
 0x959   :  { %v15219_v37 = vpack.c.bf16 %v6869_v22, %v6865_v32  ;;  %v7025_v46 = vadd.f32 %v7024_v10, %v6921_v11  ;;  %v7026_v30 = vpop.f32.mrb[217].mxu0  ;;  %v7097_v31 = vpop.f32.mrb[216].mxu1 }
 0x95a   :  { %v7027_v48 = vadd.f32 %v7026_v30, %v6921_v11  ;;  %v7098_v43 = vadd.f32 %v7097_v31, %v6921_v11  ;;  %8760 = vmatpush1.bf16.msra.mxu0 %v14847_v16  ;;  %v7028_v47 = vpop.f32.mrb[218].mxu0  ;;  %v7099_v4 = vpop.f32.mrb[217].mxu1  ;;  %v16362_v31 = vld [vmem:[#allocation8_spill] sm:$0xff] }
 0x95b   :  { %v7029_v45 = vadd.f32 %v7028_v47, %v6926_v53  ;;  %v7100_v39 = vadd.f32 %v7099_v4, %v6921_v11  ;;  %8761 = vmatprep.subr.bf16.mxu0 %v14873_v18  ;;  %9092 = vmatpush1.bf16.msra.mxu1 %v14853_v12  ;;  %v7030_v58 = vpop.f32.mrb[219].mxu0  ;;  %v7101_v25 = vpop.f32.mrb[218].mxu1  ;;  %v7136_v51 = vmax.f32 %v7025_v46, 0.0 }
 0x95c   :  { %v7031_v0 = vadd.f32 %v7030_v58, %v6926_v53  ;;  %v7102_v5 = vadd.f32 %v7101_v25, %v6926_v53  ;;  %9093 = vmatprep.subr.bf16.mxu1 %v14877_v49  ;;  %v7103_v52 = vpop.f32.mrb[219].mxu1  ;;  %v7137_v22 = vmax.f32 %v7027_v48, 0.0  ;;  %v7138_v16 = vmax.f32 %v7098_v43, 0.0  ;;  %v6931_v11 = vpop.permute.xlu1 %6930  ;;  %v8107_v58 = vld [vmem:[%s15692_s6 + $0x68] sm:$0xff] }
 0x95d   :  { %v7140_v28 = vmax.f32 %v7029_v45, 0.0  ;;  %v7104_v32 = vadd.f32 %v7103_v52, %v6926_v53  ;;  %v7139_v12 = vmax.f32 %v7100_v39, 0.0  ;;  %v6936_v49 = vpop.permute.xlu0 %6935  ;;  %v16363_v53 = vld [vmem:[#allocation5_spill] sm:$0xff]  ;;  %v9615_v39 = vcombine.low %v15164_v36, %v15169_v6 }
 0x95e   :  { %v7141_v15 = vmax.f32 %v7031_v0, 0.0  ;;  %v7142_v10 = vmax.f32 %v7102_v5, 0.0  ;;  %8762 = vmatpush1.bf16.msra.mxu0 %v14870_v1  ;;  %v16364_v5 = vld [vmem:[#allocation56_spill] sm:$0xff] }
 0x95f   :  { %v15226_v18 = vpack.c.bf16 %v7140_v28, %v7136_v51  ;;  %v7143_v30 = vmax.f32 %v7104_v32, 0.0  ;;  %8763 = vmatprep.subr.bf16.mxu0 %v14888_v57  ;;  %9094 = vmatpush1.bf16.msra.mxu1 %v16362_v31  ;;  %v8103_v57 = vld [vmem:[%s15692_s6 + $0x48] sm:$0xff] }
 0x960   :  { %v15230_v47 = vpack.c.bf16 %v7141_v15, %v7137_v22  ;;  %v15232_v46 = vpack.c.bf16 %v7142_v10, %v7138_v16  ;;  %9095 = vmatprep.subr.bf16.mxu1 %v16363_v53  ;;  %v7034_v48 = vpop.f32.mrb[220].mxu0  ;;  %v16365_v22 = vld [vmem:[#allocation92_spill] sm:$0xff]  ;;  %v9624_v31 = vcombine.high %v8103_v57, %v8107_v58 }
 0x961   :  { %v15235_v43 = vpack.c.bf16 %v7143_v30, %v7139_v12  ;;  %v7035_v1 = vadd.f32 %v7034_v48, %v6931_v11  ;;  %v7036_v4 = vpop.f32.mrb[221].mxu0  ;;  %v7107_v45 = vpop.f32.mrb[220].mxu1  ;;  %v16366_v16 = vld [vmem:[#allocation40_spill] sm:$0xff]  ;;  %v16367_v12 = vld [vmem:[#allocation94_spill] sm:$0xff] }
 0x962   :  { %v7037_v25 = vadd.f32 %v7036_v4, %v6931_v11  ;;  %v7108_v0 = vadd.f32 %v7107_v45, %v6931_v11  ;;  %8764 = vmatpush1.bf16.msra.mxu0 %v16364_v5  ;;  %v7038_v52 = vpop.f32.mrb[222].mxu0  ;;  %v7109_v51 = vpop.f32.mrb[221].mxu1 }
 0x963   :  { %v7039_v28 = vadd.f32 %v7038_v52, %v6936_v49  ;;  %v7110_v32 = vadd.f32 %v7109_v51, %v6931_v11  ;;  %8816 = vmatprep.subr.bf16.mxu0 %v16365_v22  ;;  %9096 = vmatpush1.bf16.msra.mxu1 %v16366_v16  ;;  %v7040_v36 = vpop.f32.mrb[223].mxu0  ;;  %v7111_v6 = vpop.f32.mrb[222].mxu1  ;;  %v7144_v53 = vmax.f32 %v7035_v1, 0.0  ;;  %v16368_v51 = vld [vmem:[#allocation6_spill] sm:$0xff] }
 0x964   :  { %v7041_v15 = vadd.f32 %v7040_v36, %v6936_v49  ;;  %v7112_v10 = vadd.f32 %v7111_v6, %v6936_v49  ;;  %9148 = vmatprep.subr.bf16.mxu1 %v16367_v12  ;;  %v7113_v30 = vpop.f32.mrb[223].mxu1  ;;  %v7145_v45 = vmax.f32 %v7037_v25, 0.0  ;;  %v7146_v5 = vmax.f32 %v7108_v0, 0.0  ;;  %v6941_v22 = vpop.permute.xlu1 %6940  ;;  %v16369_v12 = vld [vmem:[#allocation93_spill] sm:$0xff] }
 0x965   :  { %v7148_v48 = vmax.f32 %v7039_v28, 0.0  ;;  %v7114_v4 = vadd.f32 %v7113_v30, %v6936_v49  ;;  %8766 = vmatmul.mubr.bf16.vlgmr.msra.gmra.mrb[24].mxu0 %v9615_v39  ;;  %v7147_v36 = vmax.f32 %v7110_v32, 0.0  ;;  %v6946_v1 = vpop.permute.xlu0 %6945  ;;  %v9623_v32 = vcombine.low %v8103_v57, %v8107_v58  ;;  %v8115_v30 = vld [vmem:[%s15692_s6 + $0xa8] sm:$0xff] }
 0x966   :  { %v7149_v52 = vmax.f32 %v7041_v15, 0.0  ;;  %v7150_v11 = vmax.f32 %v7112_v10, 0.0  ;;  %8817 = vmatpush1.bf16.msra.mxu0 %v16368_v51  ;;  %9098 = vmatmul.mubr.bf16.vlgmr.msra.gmra.mrb[24].mxu1 %v9615_v39 }
 0x967   :  { %v15250_v16 = vpack.c.bf16 %v7148_v48, %v7144_v53  ;;  %v7151_v6 = vmax.f32 %v7114_v4, 0.0  ;;  %8818 = vmatprep.subr.bf16.mxu0 %v14919_v17  ;;  %9149 = vmatpush1.bf16.msra.mxu1 %v16369_v12  ;;  %v8111_v17 = vld [vmem:[%s15692_s6 + $0x88] sm:$0xff] }
 0x968   :  { %v15254_v28 = vpack.c.bf16 %v7149_v52, %v7145_v45  ;;  %v15256_v49 = vpack.c.bf16 %v7150_v11, %v7146_v5  ;;  %9150 = vmatprep.subr.bf16.mxu1 %v14925_v9  ;;  %v7044_v25 = vpop.f32.mrb[224].mxu0  ;;  %8775 = vmatprep.mubr.bf16.mxu0 %v9624_v31  ;;  %v9632_v51 = vcombine.high %v8111_v17, %v8115_v30 }
 0x969   :  { %v15259_v0 = vpack.c.bf16 %v7151_v6, %v7147_v36  ;;  %v7045_v39 = vadd.f32 %v7044_v25, %v6941_v22  ;;  %v7046_v15 = vpop.f32.mrb[225].mxu0  ;;  %v7117_v10 = vpop.f32.mrb[224].mxu1  ;;  %9107 = vmatprep.mubr.bf16.mxu1 %v9624_v31 }
 0x96a   :  { %v7047_v53 = vadd.f32 %v7046_v15, %v6941_v22  ;;  %v7118_v48 = vadd.f32 %v7117_v10, %v6941_v22  ;;  %8819 = vmatpush1.bf16.msra.mxu0 %v14915_v56  ;;  %v7048_v9 = vpop.f32.mrb[226].mxu0  ;;  %v7119_v4 = vpop.f32.mrb[225].mxu1 }
 0x96b   :  { %v7049_v45 = vadd.f32 %v7048_v9, %v6946_v1  ;;  %v7120_v5 = vadd.f32 %v7119_v4, %v6941_v22  ;;  %8820 = vmatprep.subr.bf16.mxu0 %v14942_v50  ;;  %9151 = vmatpush1.bf16.msra.mxu1 %v14921_v27  ;;  %v7050_v57 = vpop.f32.mrb[227].mxu0  ;;  %v7121_v58 = vpop.f32.mrb[226].mxu1  ;;  %v7152_v36 = vmax.f32 %v7045_v39, 0.0 }
 0x96c   :  { %v7051_v31 = vadd.f32 %v7050_v57, %v6946_v1  ;;  %v7122_v52 = vadd.f32 %v7121_v58, %v6946_v1  ;;  %9152 = vmatprep.subr.bf16.mxu1 %v14948_v35  ;;  %v7123_v11 = vpop.f32.mrb[227].mxu1  ;;  %v7153_v56 = vmax.f32 %v7047_v53, 0.0  ;;  %v7154_v25 = vmax.f32 %v7118_v48, 0.0  ;;  %v6951_v27 = vpop.permute.xlu1 %6950 }
 0x96d   :  { %v7156_v6 = vmax.f32 %v7049_v45, 0.0  ;;  %v7124_v12 = vadd.f32 %v7123_v11, %v6946_v1  ;;  %8776 = vmatmul.mubr.bf16.gmra.mrb[28].mxu0 %v9623_v32  ;;  %v7155_v10 = vmax.f32 %v7120_v5, 0.0  ;;  %v6956_v35 = vpop.permute.xlu0 %6955  ;;  %v9631_v45 = vcombine.low %v8111_v17, %v8115_v30 }
 0x96e   :  { %v7157_v15 = vmax.f32 %v7051_v31, 0.0  ;;  %v7158_v22 = vmax.f32 %v7122_v52, 0.0  ;;  %8821 = vmatpush1.bf16.msra.mxu0 %v14938_v42  ;;  %9108 = vmatmul.mubr.bf16.gmra.mrb[28].mxu1 %v9623_v32 }
 0x96f   :  { %v15272_v50 = vpack.c.bf16 %v7156_v6, %v7152_v36  ;;  %v7159_v9 = vmax.f32 %v7124_v12, 0.0  ;;  %8822 = vmatprep.subr.bf16.mxu0 %v14965_v26  ;;  %9153 = vmatpush1.bf16.msra.mxu1 %v14944_v14  ;;  %v8119_v14 = vld [vmem:[%s15692_s6 + $0xc8] sm:$0xff] }
 0x970   :  { %v15276_v39 = vpack.c.bf16 %v7157_v15, %v7153_v56  ;;  %v15278_v1 = vpack.c.bf16 %v7158_v22, %v7154_v25  ;;  %9154 = vmatprep.subr.bf16.mxu1 %v14971_v29  ;;  %v7054_v53 = vpop.f32.mrb[228].mxu0  ;;  %8785 = vmatprep.mubr.bf16.mxu0 %v9632_v51  ;;  %v8123_v26 = vld [vmem:[%s15692_s6 + $0xe8] sm:$0xff] }
 0x971   :  { %v15281_v42 = vpack.c.bf16 %v7159_v9, %v7155_v10  ;;  %v7055_v32 = vadd.f32 %v7054_v53, %v6951_v27  ;;  %v7056_v48 = vpop.f32.mrb[229].mxu0  ;;  %v7127_v4 = vpop.f32.mrb[228].mxu1  ;;  %9117 = vmatprep.mubr.bf16.mxu1 %v9632_v51  ;;  %v9640_v6 = vcombine.high %v8119_v14, %v8123_v26 }
 0x972   :  { %v7057_v5 = vadd.f32 %v7056_v48, %v6951_v27  ;;  %v7128_v57 = vadd.f32 %v7127_v4, %v6951_v27  ;;  %8823 = vmatpush1.bf16.msra.mxu0 %v14961_v61  ;;  %v7058_v29 = vpop.f32.mrb[230].mxu0  ;;  %v7129_v58 = vpop.f32.mrb[229].mxu1 }
 0x973   :  { %v7059_v31 = vadd.f32 %v7058_v29, %v6956_v35  ;;  %v7130_v52 = vadd.f32 %v7129_v58, %v6951_v27  ;;  %8824 = vmatprep.subr.bf16.mxu0 %v15000_v20  ;;  %9155 = vmatpush1.bf16.msra.mxu1 %v14967_v40  ;;  %v7060_v17 = vpop.f32.mrb[231].mxu0  ;;  %v7131_v30 = vpop.f32.mrb[230].mxu1  ;;  %v7160_v12 = vmax.f32 %v7055_v32, 0.0  ;;  %v8131_v29 = vld [vmem:[%s15692_s6 + $0x128] sm:$0xff] }
 0x974   :  { %v7061_v11 = vadd.f32 %v7060_v17, %v6956_v35  ;;  %v7132_v51 = vadd.f32 %v7131_v30, %v6956_v35  ;;  %9156 = vmatprep.subr.bf16.mxu1 %v15005_v13  ;;  %v7133_v36 = vpop.f32.mrb[231].mxu1  ;;  %v7161_v61 = vmax.f32 %v7057_v5, 0.0  ;;  %v7162_v15 = vmax.f32 %v7128_v57, 0.0  ;;  %v7219_v40 = vpop.permute.xlu1 %7218  ;;  %v16370_v13 = vld [vmem:[#allocation7_spill] sm:$0xff] }
 0x975   :  { %v7164_v56 = vmax.f32 %v7059_v31, 0.0  ;;  %v7134_v25 = vadd.f32 %v7133_v36, %v6956_v35  ;;  %8786 = vmatmul.mubr.bf16.gmra.mrb[32].mxu0 %v9631_v45  ;;  %v7163_v10 = vmax.f32 %v7130_v52, 0.0  ;;  %v7224_v53 = vpop.permute.xlu0 %7223  ;;  %v9639_v57 = vcombine.low %v8119_v14, %v8123_v26 }
 0x976   :  { %v7165_v22 = vmax.f32 %v7061_v11, 0.0  ;;  %v7166_v27 = vmax.f32 %v7132_v51, 0.0  ;;  %8825 = vmatpush1.bf16.msra.mxu0 %v14996_v41  ;;  %9118 = vmatmul.mubr.bf16.gmra.mrb[32].mxu1 %v9631_v45 }
 0x977   :  { %v15294_v20 = vpack.c.bf16 %v7164_v56, %v7160_v12  ;;  %v7167_v9 = vmax.f32 %v7134_v25, 0.0  ;;  %8826 = vmatprep.subr.bf16.mxu0 %v15016_v19  ;;  %9157 = vmatpush1.bf16.msra.mxu1 %v16370_v13  ;;  %v8127_v19 = vld [vmem:[%s15692_s6 + $0x108] sm:$0xff] }
 0x978   :  { %v15298_v32 = vpack.c.bf16 %v7165_v22, %v7161_v61  ;;  %v15300_v35 = vpack.c.bf16 %v7166_v27, %v7162_v15  ;;  %9158 = vmatprep.subr.bf16.mxu1 %v15021_v59  ;;  %v7322_v48 = vpop.f32.mrb[232].mxu0  ;;  %8795 = vmatprep.mubr.bf16.mxu0 %v9640_v6 }
 0x979   :  { %v15303_v41 = vpack.c.bf16 %v7167_v9, %v7163_v10  ;;  %v7323_v4 = vadd.f32 %v7322_v48, %v7219_v40  ;;  %v7324_v45 = vpop.f32.mrb[233].mxu0  ;;  %v7395_v5 = vpop.f32.mrb[232].mxu1  ;;  %9127 = vmatprep.mubr.bf16.mxu1 %v9640_v6  ;;  %v9648_v6 = vcombine.high %v8127_v19, %v8131_v29 }
 0x97a   :  { %v7325_v58 = vadd.f32 %v7324_v45, %v7219_v40  ;;  %v7396_v31 = vadd.f32 %v7395_v5, %v7219_v40  ;;  %8827 = vmatpush1.bf16.msra.mxu0 %v15012_v44  ;;  %v7326_v59 = vpop.f32.mrb[234].mxu0  ;;  %v7397_v52 = vpop.f32.mrb[233].mxu1  ;;  %v9647_v45 = vcombine.low %v8127_v19, %v8131_v29  ;;  %v16371_v19 = vld [vmem:[#allocation38_spill] sm:$0xff] }
 0x97b   :  { %v7327_v17 = vadd.f32 %v7326_v59, %v7224_v53  ;;  %v7398_v30 = vadd.f32 %v7397_v52, %v7219_v40  ;;  %8828 = vmatprep.subr.bf16.mxu0 %v15032_v7  ;;  %9159 = vmatpush1.bf16.msra.mxu1 %v15018_v60  ;;  %v7328_v14 = vpop.f32.mrb[235].mxu0  ;;  %v7399_v26 = vpop.f32.mrb[234].mxu1  ;;  %v7434_v12 = vmax.f32 %v7323_v4, 0.0 }
 0x97c   :  { %v7329_v11 = vadd.f32 %v7328_v14, %v7224_v53  ;;  %v7400_v51 = vadd.f32 %v7399_v26, %v7224_v53  ;;  %9160 = vmatprep.subr.bf16.mxu1 %v15037_v23  ;;  %v7401_v36 = vpop.f32.mrb[235].mxu1  ;;  %v7435_v44 = vmax.f32 %v7325_v58, 0.0  ;;  %v7436_v61 = vmax.f32 %v7396_v31, 0.0  ;;  %v7229_v60 = vpop.permute.xlu1 %7228  ;;  %v16372_v14 = vld [vmem:[#allocation10_spill] sm:$0xff] }
 0x97d   :  { %v7438_v56 = vmax.f32 %v7327_v17, 0.0  ;;  %v7402_v25 = vadd.f32 %v7401_v36, %v7224_v53  ;;  %8796 = vmatmul.mubr.bf16.gmra.mrb[36].mxu0 %v9639_v57  ;;  %v7437_v27 = vmax.f32 %v7398_v30, 0.0  ;;  %v7234_v23 = vpop.permute.xlu0 %7233 }
 0x97e   :  { %v7439_v15 = vmax.f32 %v7329_v11, 0.0  ;;  %v7440_v22 = vmax.f32 %v7400_v51, 0.0  ;;  %8829 = vmatpush1.bf16.msra.mxu0 %v15028_v34  ;;  %9128 = vmatmul.mubr.bf16.gmra.mrb[36].mxu1 %v9639_v57 }
 0x97f   :  { %v15316_v7 = vpack.c.bf16 %v7438_v56, %v7434_v12  ;;  %v7441_v40 = vmax.f32 %v7402_v25, 0.0  ;;  %8830 = vmatprep.subr.bf16.mxu0 %v15048_v63  ;;  %9161 = vmatpush1.bf16.msra.mxu1 %v15034_v38  ;;  %v15330_v38 = vld [vmem:[%s15692_s6 + $0x10] sm:$0xff]  ;;  %v16373_v25 = vld [vmem:[#allocation9_spill] sm:$0xff] }
 0x980   :  { %v15320_v10 = vpack.c.bf16 %v7439_v15, %v7435_v44  ;;  %v15322_v9 = vpack.c.bf16 %v7440_v22, %v7436_v61  ;;  %9162 = vmatprep.subr.bf16.mxu1 %v15053_v3  ;;  %v7332_v13 = vpop.f32.mrb[236].mxu0  ;;  %8805 = vmatprep.mubr.bf16.mxu0 %v9648_v6  ;;  %v15335_v63 = vld [vmem:[%s15692_s6 + $0x30] sm:$0xff]  ;;  %v7239_v44 = vpop.permute.xlu1 %7238 }
 0x981   :  { %v15325_v34 = vpack.c.bf16 %v7441_v40, %v7437_v27  ;;  %v7333_v53 = vadd.f32 %v7332_v13, %v7229_v60  ;;  %v7334_v48 = vpop.f32.mrb[237].mxu0  ;;  %v7405_v4 = vpop.f32.mrb[236].mxu1  ;;  %9137 = vmatprep.mubr.bf16.mxu1 %v9648_v6  ;;  %v9618_v11 = vcombine.high %v15330_v38, %v15335_v63  ;;  %v16375_v27 = vld [vmem:[#allocation68_spill] sm:$0xff] }
 0x982   :  { %v7335_v3 = vadd.f32 %v7334_v48, %v7229_v60  ;;  %v7406_v5 = vadd.f32 %v7405_v4, %v7229_v60  ;;  %8831 = vmatpush1.bf16.msra.mxu0 %v15044_v55  ;;  %v7336_v57 = vpop.f32.mrb[238].mxu0  ;;  %v7407_v58 = vpop.f32.mrb[237].mxu1 }
 0x983   :  { %v7337_v31 = vadd.f32 %v7336_v57, %v7234_v23  ;;  %v7408_v59 = vadd.f32 %v7407_v58, %v7229_v60  ;;  %8832 = vmatprep.subr.bf16.mxu0 %v15064_v2  ;;  %9163 = vmatpush1.bf16.msra.mxu1 %v16371_v19  ;;  %v7338_v29 = vpop.f32.mrb[239].mxu0  ;;  %v7409_v52 = vpop.f32.mrb[238].mxu1  ;;  %v7442_v51 = vmax.f32 %v7333_v53, 0.0  ;;  %v16374_v60 = vld [vmem:[#allocation71_spill] sm:$0xff] }
 0x984   :  { %v7339_v17 = vadd.f32 %v7338_v29, %v7234_v23  ;;  %v7410_v30 = vadd.f32 %v7409_v52, %v7234_v23  ;;  %9164 = vmatprep.subr.bf16.mxu1 %v16372_v14  ;;  %v7411_v26 = vpop.f32.mrb[239].mxu1  ;;  %v7443_v6 = vmax.f32 %v7335_v3, 0.0  ;;  %v7444_v12 = vmax.f32 %v7406_v5, 0.0  ;;  %v7244_v40 = vpop.permute.xlu0 %7243  ;;  %v16376_v53 = vld [vmem:[#allocation55_spill] sm:$0xff] }
 0x985   :  { %v7446_v55 = vmax.f32 %v7337_v31, 0.0  ;;  %v7412_v36 = vadd.f32 %v7411_v26, %v7234_v23  ;;  %8806 = vmatmul.mubr.bf16.gmra.mrb[40].mxu0 %v9647_v45  ;;  %v7445_v15 = vmax.f32 %v7408_v59, 0.0  ;;  %v16377_v31 = vld [vmem:[#allocation69_spill] sm:$0xff] }
 0x986   :  { %v7447_v56 = vmax.f32 %v7339_v17, 0.0  ;;  %v7448_v2 = vmax.f32 %v7410_v30, 0.0  ;;  %8833 = vmatpush1.bf16.msra.mxu0 %v16373_v25  ;;  %9138 = vmatmul.mubr.bf16.gmra.mrb[40].mxu1 %v9647_v45  ;;  %v16378_v17 = vld [vmem:[#allocation70_spill] sm:$0xff]  ;;  %v16379_v30 = vld [vmem:[#allocation48_spill] sm:$0xff] }
 0x987   :  { %v15344_v61 = vpack.c.bf16 %v7446_v55, %v7442_v51  ;;  %v7449_v22 = vmax.f32 %v7412_v36, 0.0  ;;  %8834 = vmatprep.subr.bf16.mxu0 %v16374_v60  ;;  %9165 = vmatpush1.bf16.msra.mxu1 %v16375_v27  ;;  %v16380_v36 = vld [vmem:[#allocation11_spill] sm:$0xff]  ;;  %v16381_v60 = vld [vmem:[#allocation46_spill] sm:$0xff] }
 0x988   :  { %v15348_v13 = vpack.c.bf16 %v7447_v56, %v7443_v6  ;;  %v15350_v23 = vpack.c.bf16 %v7448_v2, %v7444_v12  ;;  %9166 = vmatprep.subr.bf16.mxu1 %v16376_v53  ;;  %v7342_v48 = vpop.f32.mrb[240].mxu0  ;;  %8848 = vmatprep.mubr.bf16.mxu0 %v9618_v11 }
 0x989   :  { %v15353_v4 = vpack.c.bf16 %v7449_v22, %v7445_v15  ;;  %v7343_v45 = vadd.f32 %v7342_v48, %v7239_v44  ;;  %v7344_v3 = vpop.f32.mrb[241].mxu0  ;;  %v7415_v5 = vpop.f32.mrb[240].mxu1  ;;  %9180 = vmatprep.mubr.bf16.mxu1 %v9618_v11 }
 0x98a   :  { %v7345_v57 = vadd.f32 %v7344_v3, %v7239_v44  ;;  %v7416_v58 = vadd.f32 %v7415_v5, %v7239_v44  ;;  %8835 = vmatpush1.bf16.msra.mxu0 %v16377_v31  ;;  %v7346_v59 = vpop.f32.mrb[242].mxu0  ;;  %v7417_v19 = vpop.f32.mrb[241].mxu1  ;;  %v16382_v3 = vld [vmem:[#allocation73_spill] sm:$0xff]  ;;  %v16383_v5 = vld [vmem:[#allocation42_spill] sm:$0xff] }
 0x98b   :  { %v7347_v29 = vadd.f32 %v7346_v59, %v7244_v40  ;;  %v7418_v52 = vadd.f32 %v7417_v19, %v7239_v44  ;;  %8836 = vmatprep.subr.bf16.mxu0 %v16378_v17  ;;  %9167 = vmatpush1.bf16.msra.mxu1 %v16379_v30  ;;  %v7348_v14 = vpop.f32.mrb[243].mxu0  ;;  %v7419_v26 = vpop.f32.mrb[242].mxu1  ;;  %v7450_v11 = vmax.f32 %v7343_v45, 0.0 }
 0x98c   :  { %v7349_v51 = vadd.f32 %v7348_v14, %v7244_v40  ;;  %v7420_v55 = vadd.f32 %v7419_v26, %v7244_v40  ;;  %9168 = vmatprep.subr.bf16.mxu1 %v16380_v36  ;;  %v7421_v6 = vpop.f32.mrb[243].mxu1  ;;  %v7451_v2 = vmax.f32 %v7345_v57, 0.0  ;;  %v7452_v25 = vmax.f32 %v7416_v58, 0.0  ;;  %v7249_v44 = vpop.permute.xlu1 %7248  ;;  %v16385_v14 = vld [vmem:[#allocation72_spill] sm:$0xff] }
 0x98d   :  { %v7454_v12 = vmax.f32 %v7347_v29, 0.0  ;;  %v7422_v56 = vadd.f32 %v7421_v6, %v7244_v40  ;;  %v7453_v53 = vmax.f32 %v7418_v52, 0.0  ;;  %v7254_v31 = vpop.permute.xlu0 %7253  ;;  %v16384_v40 = vld [vmem:[#allocation74_spill] sm:$0xff]  ;;  %v16386_v6 = vld [vmem:[#allocation75_spill] sm:$0xff] }
 0x98e   :  { %v7455_v15 = vmax.f32 %v7349_v51, 0.0  ;;  %v7456_v22 = vmax.f32 %v7420_v55, 0.0  ;;  %8837 = vmatpush1.bf16.msra.mxu0 %v16381_v60 }
 0x98f   :  { %v15360_v27 = vpack.c.bf16 %v7454_v12, %v7450_v11  ;;  %v7457_v48 = vmax.f32 %v7422_v56, 0.0  ;;  %8838 = vmatprep.subr.bf16.mxu0 %v16382_v3  ;;  %9169 = vmatpush1.bf16.msra.mxu1 %v16383_v5 }
 0x990   :  { %v15364_v59 = vpack.c.bf16 %v7455_v15, %v7451_v2  ;;  %v15366_v45 = vpack.c.bf16 %v7456_v22, %v7452_v25  ;;  %9170 = vmatprep.subr.bf16.mxu1 %v16384_v40  ;;  %v7352_v57 = vpop.f32.mrb[244].mxu0  ;;  %v16387_v25 = vld [vmem:[#allocation79_spill] sm:$0xff] }
 0x991   :  { %v15369_v58 = vpack.c.bf16 %v7457_v48, %v7453_v53  ;;  %v7353_v19 = vadd.f32 %v7352_v57, %v7249_v44  ;;  %v7354_v29 = vpop.f32.mrb[245].mxu0  ;;  %v7425_v17 = vpop.f32.mrb[244].mxu1  ;;  %v16388_v57 = vld [vmem:[#allocation12_spill] sm:$0xff] }
 0x992   :  { %v7355_v30 = vadd.f32 %v7354_v29, %v7249_v44  ;;  %v7426_v52 = vadd.f32 %v7425_v17, %v7249_v44  ;;  %8839 = vmatpush1.bf16.msra.mxu0 %v16385_v14  ;;  %v7356_v26 = vpop.f32.mrb[246].mxu0  ;;  %v7427_v51 = vpop.f32.mrb[245].mxu1  ;;  %v16389_v14 = vld [vmem:[#allocation13_spill] sm:$0xff] }
 0x993   :  { %v7357_v55 = vadd.f32 %v7356_v26, %v7254_v31  ;;  %v7428_v36 = vadd.f32 %v7427_v51, %v7249_v44  ;;  %8840 = vmatprep.subr.bf16.mxu0 %v15154_v62  ;;  %9171 = vmatpush1.bf16.msra.mxu1 %v16386_v6  ;;  %v7358_v11 = vpop.f32.mrb[247].mxu0  ;;  %v7429_v12 = vpop.f32.mrb[246].mxu1  ;;  %v7458_v22 = vmax.f32 %v7353_v19, 0.0 }
 0x994   :  { %v7359_v56 = vadd.f32 %v7358_v11, %v7254_v31  ;;  %v7430_v2 = vadd.f32 %v7429_v12, %v7254_v31  ;;  %9172 = vmatprep.subr.bf16.mxu1 %v16387_v25  ;;  %v7431_v15 = vpop.f32.mrb[247].mxu1  ;;  %v7459_v48 = vmax.f32 %v7355_v30, 0.0  ;;  %v7460_v3 = vmax.f32 %v7426_v52, 0.0  ;;  %v7517_v44 = vpop.permute.xlu1 %7516 }
 0x995   :  { %v7462_v60 = vmax.f32 %v7357_v55, 0.0  ;;  %v7432_v53 = vadd.f32 %v7431_v15, %v7254_v31  ;;  %v7461_v29 = vmax.f32 %v7428_v36, 0.0  ;;  %v7522_v26 = vpop.permute.xlu0 %7521  ;;  %v16390_v31 = vld [vmem:[#allocation77_spill] sm:$0xff] }
 0x996   :  { %v7463_v5 = vmax.f32 %v7359_v56, 0.0  ;;  %v7464_v40 = vmax.f32 %v7430_v2, 0.0  ;;  %8841 = vmatpush1.bf16.msra.mxu0 %v16388_v57  ;;  %v16391_v56 = vld [vmem:[#allocation41_spill] sm:$0xff] }
 0x997   :  { %v15376_v62 = vpack.c.bf16 %v7462_v60, %v7458_v22  ;;  %v7465_v17 = vmax.f32 %v7432_v53, 0.0  ;;  %8842 = vmatprep.subr.bf16.mxu0 %v15182_v24  ;;  %9173 = vmatpush1.bf16.msra.mxu1 %v16389_v14  ;;  %v16392_v22 = vld [vmem:[#allocation76_spill] sm:$0xff] }
 0x998   :  { %v15380_v51 = vpack.c.bf16 %v7463_v5, %v7459_v48  ;;  %v15382_v19 = vpack.c.bf16 %v7464_v40, %v7460_v3  ;;  %9174 = vmatprep.subr.bf16.mxu1 %v16390_v31  ;;  %v7620_v30 = vpop.f32.mrb[248].mxu0  ;;  %v16393_v5 = vld [vmem:[#allocation33_spill] sm:$0xff] }
 0x999   :  { %v15385_v52 = vpack.c.bf16 %v7465_v17, %v7461_v29  ;;  %v7621_v55 = vadd.f32 %v7620_v30, %v7517_v44  ;;  %v7622_v6 = vpop.f32.mrb[249].mxu0  ;;  %v7693_v11 = vpop.f32.mrb[248].mxu1 }
 0x99a   :  { %v7623_v12 = vadd.f32 %v7622_v6, %v7517_v44  ;;  %v7694_v36 = vadd.f32 %v7693_v11, %v7517_v44  ;;  %8843 = vmatpush1.bf16.msra.mxu0 %v16391_v56  ;;  %v7624_v24 = vpop.f32.mrb[250].mxu0  ;;  %v7695_v2 = vpop.f32.mrb[249].mxu1  ;;  %v16394_v11 = vld [vmem:[#allocation78_spill] sm:$0xff] }
 0x99b   :  { %v7625_v25 = vadd.f32 %v7624_v24, %v7522_v26  ;;  %v7696_v15 = vadd.f32 %v7695_v2, %v7517_v44  ;;  %8844 = vmatprep.subr.bf16.mxu0 %v15198_v21  ;;  %9175 = vmatpush1.bf16.msra.mxu1 %v16392_v22  ;;  %v7626_v60 = vpop.f32.mrb[251].mxu0  ;;  %v7697_v53 = vpop.f32.mrb[250].mxu1  ;;  %v7732_v57 = vmax.f32 %v7621_v55, 0.0  ;;  %v16395_v2 = vld [vmem:[#allocation59_spill] sm:$0xff] }
 0x99c   :  { %v7627_v48 = vadd.f32 %v7626_v60, %v7522_v26  ;;  %v7698_v3 = vadd.f32 %v7697_v53, %v7522_v26  ;;  %9176 = vmatprep.subr.bf16.mxu1 %v16393_v5  ;;  %v7699_v40 = vpop.f32.mrb[251].mxu1  ;;  %v7733_v14 = vmax.f32 %v7623_v12, 0.0  ;;  %v7734_v31 = vmax.f32 %v7694_v36, 0.0  ;;  %v7527_v44 = vpop.permute.xlu1 %7526 }
 0x99d   :  { %v7736_v29 = vmax.f32 %v7625_v25, 0.0  ;;  %v7700_v17 = vadd.f32 %v7699_v40, %v7522_v26  ;;  %v7735_v56 = vmax.f32 %v7696_v15, 0.0  ;;  %v7532_v22 = vpop.permute.xlu0 %7531  ;;  %v9617_v15 = vcombine.low %v15330_v38, %v15335_v63 }
 0x99e   :  { %v7737_v30 = vmax.f32 %v7627_v48, 0.0  ;;  %v7738_v6 = vmax.f32 %v7698_v3, 0.0  ;;  %8845 = vmatpush1.bf16.msra.mxu0 %v16394_v11  ;;  %v8108_v48 = vld [vmem:[%s15692_s6 + $0x70] sm:$0xff] }
 0x99f   :  { %v15392_v21 = vpack.c.bf16 %v7736_v29, %v7732_v57  ;;  %v7739_v24 = vmax.f32 %v7700_v17, 0.0  ;;  %8846 = vmatprep.subr.bf16.mxu0 %v15214_v8  ;;  %9177 = vmatpush1.bf16.msra.mxu1 %v16395_v2  ;;  %v8104_v8 = vld [vmem:[%s15692_s6 + $0x50] sm:$0xff] }
 0x9a0   :  { %v15396_v60 = vpack.c.bf16 %v7737_v30, %v7733_v14  ;;  %v15398_v55 = vpack.c.bf16 %v7738_v6, %v7734_v31  ;;  %9178 = vmatprep.subr.bf16.mxu1 %v15219_v37  ;;  %v7630_v26 = vpop.f32.mrb[252].mxu0  ;;  %v9626_v30 = vcombine.high %v8104_v8, %v8108_v48 }
 0x9a1   :  { %v15401_v12 = vpack.c.bf16 %v7739_v24, %v7735_v56  ;;  %v7631_v36 = vadd.f32 %v7630_v26, %v7527_v44  ;;  %v7632_v25 = vpop.f32.mrb[253].mxu0  ;;  %v7703_v53 = vpop.f32.mrb[252].mxu1 }
 0x9a2   :  { %v7633_v3 = vadd.f32 %v7632_v25, %v7527_v44  ;;  %v7704_v5 = vadd.f32 %v7703_v53, %v7527_v44  ;;  %8847 = vmatpush1.bf16.msra.mxu0 %v15210_v33  ;;  %v7634_v37 = vpop.f32.mrb[254].mxu0  ;;  %v7705_v40 = vpop.f32.mrb[253].mxu1 }
 0x9a3   :  { %v7635_v57 = vadd.f32 %v7634_v37, %v7532_v22  ;;  %v7706_v29 = vadd.f32 %v7705_v40, %v7527_v44  ;;  %8899 = vmatprep.subr.bf16.mxu0 %v15230_v47  ;;  %9179 = vmatpush1.bf16.msra.mxu1 %v15216_v54  ;;  %v7636_v38 = vpop.f32.mrb[255].mxu0  ;;  %v7707_v63 = vpop.f32.mrb[254].mxu1  ;;  %v7740_v6 = vmax.f32 %v7631_v36, 0.0  ;;  %v9625_v37 = vcombine.low %v8104_v8, %v8108_v48 }
 0x9a4   :  { %v7637_v17 = vadd.f32 %v7636_v38, %v7532_v22  ;;  %v7708_v14 = vadd.f32 %v7707_v63, %v7532_v22  ;;  %9231 = vmatprep.subr.bf16.mxu1 %v15235_v43  ;;  %v7709_v31 = vpop.f32.mrb[255].mxu1  ;;  %v7741_v33 = vmax.f32 %v7633_v3, 0.0  ;;  %v7742_v24 = vmax.f32 %v7704_v5, 0.0  ;;  %v7537_v54 = vpop.permute.xlu1 %7536 }
 0x9a5   :  { %v7744_v11 = vmax.f32 %v7635_v57, 0.0  ;;  %v7710_v56 = vadd.f32 %v7709_v31, %v7532_v22  ;;  %8849 = vmatmul.mubr.bf16.vlgmr.msra.gmra.mrb[24].mxu0 %v9617_v15  ;;  %v7743_v26 = vmax.f32 %v7706_v29, 0.0  ;;  %v7542_v43 = vpop.permute.xlu0 %7541 }
 0x9a6   :  { %v7745_v2 = vmax.f32 %v7637_v17, 0.0  ;;  %v7746_v44 = vmax.f32 %v7708_v14, 0.0  ;;  %8900 = vmatpush1.bf16.msra.mxu0 %v15226_v18  ;;  %9181 = vmatmul.mubr.bf16.vlgmr.msra.gmra.mrb[24].mxu1 %v9617_v15 }
 0x9a7   :  { %v15416_v47 = vpack.c.bf16 %v7744_v11, %v7740_v6  ;;  %v7747_v25 = vmax.f32 %v7710_v56, 0.0  ;;  %8901 = vmatprep.subr.bf16.mxu0 %v15254_v28  ;;  %9232 = vmatpush1.bf16.msra.mxu1 %v15232_v46  ;;  %v8112_v46 = vld [vmem:[%s15692_s6 + $0x90] sm:$0xff] }
 0x9a8   :  { %v15420_v36 = vpack.c.bf16 %v7745_v2, %v7741_v33  ;;  %v15422_v22 = vpack.c.bf16 %v7746_v44, %v7742_v24  ;;  %9233 = vmatprep.subr.bf16.mxu1 %v15259_v0  ;;  %v7640_v53 = vpop.f32.mrb[0].mxu0  ;;  %8858 = vmatprep.mubr.bf16.mxu0 %v9626_v30  ;;  %v8116_v28 = vld [vmem:[%s15692_s6 + $0xb0] sm:$0xff] }
 0x9a9   :  { %v15425_v18 = vpack.c.bf16 %v7747_v25, %v7743_v26  ;;  %v7641_v15 = vadd.f32 %v7640_v53, %v7537_v54  ;;  %v7642_v3 = vpop.f32.mrb[1].mxu0  ;;  %v7713_v5 = vpop.f32.mrb[0].mxu1  ;;  %9190 = vmatprep.mubr.bf16.mxu1 %v9626_v30  ;;  %v9634_v30 = vcombine.high %v8112_v46, %v8116_v28 }
 0x9aa   :  { %v7643_v40 = vadd.f32 %v7642_v3, %v7537_v54  ;;  %v7714_v57 = vadd.f32 %v7713_v5, %v7537_v54  ;;  %8902 = vmatpush1.bf16.msra.mxu0 %v15250_v16  ;;  %v7644_v0 = vpop.f32.mrb[2].mxu0  ;;  %v7715_v29 = vpop.f32.mrb[1].mxu1  ;;  %v9633_v5 = vcombine.low %v8112_v46, %v8116_v28 }
 0x9ab   :  { %v7645_v38 = vadd.f32 %v7644_v0, %v7542_v43  ;;  %v7716_v63 = vadd.f32 %v7715_v29, %v7537_v54  ;;  %8903 = vmatprep.subr.bf16.mxu0 %v15276_v39  ;;  %9234 = vmatpush1.bf16.msra.mxu1 %v15256_v49  ;;  %v7646_v8 = vpop.f32.mrb[3].mxu0  ;;  %v7717_v48 = vpop.f32.mrb[2].mxu1  ;;  %v7748_v6 = vmax.f32 %v7641_v15, 0.0 }
 0x9ac   :  { %v7647_v17 = vadd.f32 %v7646_v8, %v7542_v43  ;;  %v7718_v14 = vadd.f32 %v7717_v48, %v7542_v43  ;;  %9235 = vmatprep.subr.bf16.mxu1 %v15281_v42  ;;  %v7719_v31 = vpop.f32.mrb[3].mxu1  ;;  %v7749_v16 = vmax.f32 %v7643_v40, 0.0  ;;  %v7750_v33 = vmax.f32 %v7714_v57, 0.0  ;;  %v7547_v49 = vpop.permute.xlu1 %7546 }
 0x9ad   :  { %v7752_v11 = vmax.f32 %v7645_v38, 0.0  ;;  %v7720_v56 = vadd.f32 %v7719_v31, %v7542_v43  ;;  %8859 = vmatmul.mubr.bf16.gmra.mrb[28].mxu0 %v9625_v37  ;;  %v7751_v44 = vmax.f32 %v7716_v63, 0.0  ;;  %v7552_v42 = vpop.permute.xlu0 %7551 }
 0x9ae   :  { %v7753_v24 = vmax.f32 %v7647_v17, 0.0  ;;  %v7754_v2 = vmax.f32 %v7718_v14, 0.0  ;;  %8904 = vmatpush1.bf16.msra.mxu0 %v15272_v50  ;;  %9191 = vmatmul.mubr.bf16.gmra.mrb[28].mxu1 %v9625_v37 }
 0x9af   :  { %v15438_v39 = vpack.c.bf16 %v7752_v11, %v7748_v6  ;;  %v7755_v54 = vmax.f32 %v7720_v56, 0.0  ;;  %8905 = vmatprep.subr.bf16.mxu0 %v15298_v32  ;;  %9236 = vmatpush1.bf16.msra.mxu1 %v15278_v1  ;;  %v8120_v1 = vld [vmem:[%s15692_s6 + $0xd0] sm:$0xff] }
 0x9b0   :  { %v15442_v26 = vpack.c.bf16 %v7753_v24, %v7749_v16  ;;  %v15444_v25 = vpack.c.bf16 %v7754_v2, %v7750_v33  ;;  %9237 = vmatprep.subr.bf16.mxu1 %v15303_v41  ;;  %v7650_v43 = vpop.f32.mrb[4].mxu0  ;;  %8868 = vmatprep.mubr.bf16.mxu0 %v9634_v30  ;;  %v8124_v32 = vld [vmem:[%s15692_s6 + $0xf0] sm:$0xff] }
 0x9b1   :  { %v15447_v50 = vpack.c.bf16 %v7755_v54, %v7751_v44  ;;  %v7651_v53 = vadd.f32 %v7650_v43, %v7547_v49  ;;  %v7652_v15 = vpop.f32.mrb[5].mxu0  ;;  %v7723_v3 = vpop.f32.mrb[4].mxu1  ;;  %9200 = vmatprep.mubr.bf16.mxu1 %v9634_v30  ;;  %v9642_v48 = vcombine.high %v8120_v1, %v8124_v32 }
 0x9b2   :  { %v7653_v37 = vadd.f32 %v7652_v15, %v7547_v49  ;;  %v7724_v40 = vadd.f32 %v7723_v3, %v7547_v49  ;;  %8906 = vmatpush1.bf16.msra.mxu0 %v15294_v20  ;;  %v7654_v41 = vpop.f32.mrb[6].mxu0  ;;  %v7725_v57 = vpop.f32.mrb[5].mxu1 }
 0x9b3   :  { %v7655_v0 = vadd.f32 %v7654_v41, %v7552_v42  ;;  %v7726_v29 = vadd.f32 %v7725_v57, %v7547_v49  ;;  %8907 = vmatprep.subr.bf16.mxu0 %v15320_v10  ;;  %9238 = vmatpush1.bf16.msra.mxu1 %v15300_v35  ;;  %v7656_v46 = vpop.f32.mrb[7].mxu0  ;;  %v7727_v28 = vpop.f32.mrb[6].mxu1  ;;  %v7756_v17 = vmax.f32 %v7651_v53, 0.0 }
 0x9b4   :  { %v7657_v38 = vadd.f32 %v7656_v46, %v7552_v42  ;;  %v7728_v63 = vadd.f32 %v7727_v28, %v7552_v42  ;;  %9239 = vmatprep.subr.bf16.mxu1 %v15325_v34  ;;  %v7729_v8 = vpop.f32.mrb[7].mxu1  ;;  %v7757_v20 = vmax.f32 %v7653_v37, 0.0  ;;  %v7758_v30 = vmax.f32 %v7724_v40, 0.0  ;;  %v7815_v35 = vpop.permute.xlu1 %7814 }
 0x9b5   :  { %v7760_v14 = vmax.f32 %v7655_v0, 0.0  ;;  %v7730_v31 = vadd.f32 %v7729_v8, %v7552_v42  ;;  %8869 = vmatmul.mubr.bf16.gmra.mrb[32].mxu0 %v9633_v5  ;;  %v7759_v56 = vmax.f32 %v7726_v29, 0.0  ;;  %v7820_v34 = vpop.permute.xlu0 %7819  ;;  %v9641_v42 = vcombine.low %v8120_v1, %v8124_v32 }
 0x9b6   :  { %v7761_v6 = vmax.f32 %v7657_v38, 0.0  ;;  %v7762_v11 = vmax.f32 %v7728_v63, 0.0  ;;  %8908 = vmatpush1.bf16.msra.mxu0 %v15316_v7  ;;  %9201 = vmatmul.mubr.bf16.gmra.mrb[32].mxu1 %v9633_v5 }
 0x9b7   :  { %v15460_v10 = vpack.c.bf16 %v7760_v14, %v7756_v17  ;;  %v7763_v16 = vmax.f32 %v7730_v31, 0.0  ;;  %8909 = vmatprep.subr.bf16.mxu0 %v15348_v13  ;;  %9240 = vmatpush1.bf16.msra.mxu1 %v15322_v9  ;;  %v8128_v9 = vld [vmem:[%s15692_s6 + $0x110] sm:$0xff] }
 0x9b8   :  { %v15464_v33 = vpack.c.bf16 %v7761_v6, %v7757_v20  ;;  %v15466_v24 = vpack.c.bf16 %v7762_v11, %v7758_v30  ;;  %9241 = vmatprep.subr.bf16.mxu1 %v15353_v4  ;;  %v7918_v2 = vpop.f32.mrb[8].mxu0  ;;  %8878 = vmatprep.mubr.bf16.mxu0 %v9642_v48  ;;  %v8132_v13 = vld [vmem:[%s15692_s6 + $0x130] sm:$0xff] }
 0x9b9   :  { %v15469_v7 = vpack.c.bf16 %v7763_v16, %v7759_v56  ;;  %v7919_v49 = vadd.f32 %v7918_v2, %v7815_v35  ;;  %v7920_v44 = vpop.f32.mrb[9].mxu0  ;;  %v7991_v54 = vpop.f32.mrb[8].mxu1  ;;  %9210 = vmatprep.mubr.bf16.mxu1 %v9642_v48  ;;  %v9650_v57 = vcombine.high %v8128_v9, %v8132_v13  ;;  %v9649_v11 = vcombine.low %v8128_v9, %v8132_v13 }
 0x9ba   :  { %v7921_v43 = vadd.f32 %v7920_v44, %v7815_v35  ;;  %v7992_v53 = vadd.f32 %v7991_v54, %v7815_v35  ;;  %8910 = vmatpush1.bf16.msra.mxu0 %v15344_v61  ;;  %v7922_v4 = vpop.f32.mrb[10].mxu0  ;;  %v7993_v15 = vpop.f32.mrb[9].mxu1 }
 0x9bb   :  { %v7923_v3 = vadd.f32 %v7922_v4, %v7820_v34  ;;  %v7994_v5 = vadd.f32 %v7993_v15, %v7815_v35  ;;  %8911 = vmatprep.subr.bf16.mxu0 %v15364_v59  ;;  %9242 = vmatpush1.bf16.msra.mxu1 %v15350_v23  ;;  %v7924_v1 = vpop.f32.mrb[11].mxu0  ;;  %v7995_v32 = vpop.f32.mrb[10].mxu1  ;;  %v8030_v0 = vmax.f32 %v7919_v49, 0.0 }
 0x9bc   :  { %v7925_v37 = vadd.f32 %v7924_v1, %v7820_v34  ;;  %v7996_v40 = vadd.f32 %v7995_v32, %v7820_v34  ;;  %9243 = vmatprep.subr.bf16.mxu1 %v15369_v58  ;;  %v7997_v41 = vpop.f32.mrb[11].mxu1  ;;  %v8031_v61 = vmax.f32 %v7921_v43, 0.0  ;;  %v8032_v28 = vmax.f32 %v7992_v53, 0.0  ;;  %v7825_v23 = vpop.permute.xlu1 %7824 }
 0x9bd   :  { %v8034_v29 = vmax.f32 %v7923_v3, 0.0  ;;  %v7998_v46 = vadd.f32 %v7997_v41, %v7820_v34  ;;  %8879 = vmatmul.mubr.bf16.gmra.mrb[36].mxu0 %v9641_v42  ;;  %v8033_v8 = vmax.f32 %v7994_v5, 0.0  ;;  %v7830_v58 = vpop.permute.xlu0 %7829 }
 0x9be   :  { %v8035_v38 = vmax.f32 %v7925_v37, 0.0  ;;  %v8036_v63 = vmax.f32 %v7996_v40, 0.0  ;;  %8912 = vmatpush1.bf16.msra.mxu0 %v15360_v27  ;;  %9211 = vmatmul.mubr.bf16.gmra.mrb[36].mxu1 %v9641_v42 }
 0x9bf   :  { %v15482_v59 = vpack.c.bf16 %v8034_v29, %v8030_v0  ;;  %v8037_v48 = vmax.f32 %v7998_v46, 0.0  ;;  %8913 = vmatprep.subr.bf16.mxu0 %v15380_v51  ;;  %9244 = vmatpush1.bf16.msra.mxu1 %v15366_v45  ;;  %v15496_v45 = vld [vmem:[%s15692_s6 + $0x18] sm:$0xff] }
 0x9c0   :  { %v15486_v17 = vpack.c.bf16 %v8035_v38, %v8031_v61  ;;  %v15488_v14 = vpack.c.bf16 %v8036_v63, %v8032_v28  ;;  %9245 = vmatprep.subr.bf16.mxu1 %v15385_v52  ;;  %v7928_v31 = vpop.f32.mrb[12].mxu0  ;;  %8888 = vmatprep.mubr.bf16.mxu0 %v9650_v57  ;;  %v15501_v51 = vld [vmem:[%s15692_s6 + $0x38] sm:$0xff] }
 0x9c1   :  { %v15491_v27 = vpack.c.bf16 %v8037_v48, %v8033_v8  ;;  %v7929_v20 = vadd.f32 %v7928_v31, %v7825_v23  ;;  %v7930_v30 = vpop.f32.mrb[13].mxu0  ;;  %v8001_v6 = vpop.f32.mrb[12].mxu1  ;;  %9220 = vmatprep.mubr.bf16.mxu1 %v9650_v57  ;;  %v9620_v13 = vcombine.high %v15496_v45, %v15501_v51 }
 0x9c2   :  { %v7931_v52 = vadd.f32 %v7930_v30, %v7825_v23  ;;  %v8002_v35 = vadd.f32 %v8001_v6, %v7825_v23  ;;  %8914 = vmatpush1.bf16.msra.mxu0 %v15376_v62  ;;  %v7932_v56 = vpop.f32.mrb[14].mxu0  ;;  %v8003_v16 = vpop.f32.mrb[13].mxu1 }
 0x9c3   :  { %v7933_v34 = vadd.f32 %v7932_v56, %v7830_v58  ;;  %v8004_v2 = vadd.f32 %v8003_v16, %v7825_v23  ;;  %8915 = vmatprep.subr.bf16.mxu0 %v15396_v60  ;;  %9246 = vmatpush1.bf16.msra.mxu1 %v15382_v19  ;;  %v7934_v49 = vpop.f32.mrb[15].mxu0  ;;  %v8005_v44 = vpop.f32.mrb[14].mxu1  ;;  %v8038_v43 = vmax.f32 %v7929_v20, 0.0 }
 0x9c4   :  { %v7935_v54 = vadd.f32 %v7934_v49, %v7830_v58  ;;  %v8006_v42 = vadd.f32 %v8005_v44, %v7830_v58  ;;  %9247 = vmatprep.subr.bf16.mxu1 %v15401_v12  ;;  %v8007_v9 = vpop.f32.mrb[15].mxu1  ;;  %v8039_v4 = vmax.f32 %v7931_v52, 0.0  ;;  %v8040_v15 = vmax.f32 %v8002_v35, 0.0  ;;  %v7835_v19 = vpop.permute.xlu1 %7834 }
 0x9c5   :  { %v8042_v62 = vmax.f32 %v7933_v34, 0.0  ;;  %v8008_v53 = vadd.f32 %v8007_v9, %v7830_v58  ;;  %8889 = vmatmul.mubr.bf16.gmra.mrb[40].mxu0 %v9649_v11  ;;  %v8041_v1 = vmax.f32 %v8004_v2, 0.0  ;;  %v7840_v32 = vpop.permute.xlu0 %7839 }
 0x9c6   :  { %v8043_v3 = vmax.f32 %v7935_v54, 0.0  ;;  %v8044_v60 = vmax.f32 %v8006_v42, 0.0  ;;  %8916 = vmatpush1.bf16.msra.mxu0 %v15392_v21  ;;  %9221 = vmatmul.mubr.bf16.gmra.mrb[40].mxu1 %v9649_v11 }
 0x9c7   :  { %v15510_v5 = vpack.c.bf16 %v8042_v62, %v8038_v43  ;;  %v8045_v12 = vmax.f32 %v8008_v53, 0.0  ;;  %8917 = vmatprep.subr.bf16.mxu0 %v15420_v36  ;;  %9248 = vmatpush1.bf16.msra.mxu1 %v15398_v55 }
 0x9c8   :  { %v15514_v37 = vpack.c.bf16 %v8043_v3, %v8039_v4  ;;  %v15516_v40 = vpack.c.bf16 %v8044_v60, %v8040_v15  ;;  %9249 = vmatprep.subr.bf16.mxu1 %v15425_v18  ;;  %v7938_v41 = vpop.f32.mrb[16].mxu0  ;;  %8931 = vmatprep.mubr.bf16.mxu0 %v9620_v13  ;;  %v7845_v52 = vpop.permute.xlu1 %7844 }
 0x9c9   :  { %v15519_v21 = vpack.c.bf16 %v8045_v12, %v8041_v1  ;;  %v7939_v57 = vadd.f32 %v7938_v41, %v7835_v19  ;;  %v7940_v0 = vpop.f32.mrb[17].mxu0  ;;  %v8011_v29 = vpop.f32.mrb[16].mxu1  ;;  %9263 = vmatprep.mubr.bf16.mxu1 %v9620_v13 }
 0x9ca   :  { %v7941_v46 = vadd.f32 %v7940_v0, %v7835_v19  ;;  %v8012_v61 = vadd.f32 %v8011_v29, %v7835_v19  ;;  %8918 = vmatpush1.bf16.msra.mxu0 %v15416_v47  ;;  %v7942_v55 = vpop.f32.mrb[18].mxu0  ;;  %v8013_v36 = vpop.f32.mrb[17].mxu1 }
 0x9cb   :  { %v7943_v28 = vadd.f32 %v7942_v55, %v7840_v32  ;;  %v8014_v38 = vadd.f32 %v8013_v36, %v7835_v19  ;;  %8919 = vmatprep.subr.bf16.mxu0 %v15442_v26  ;;  %9250 = vmatpush1.bf16.msra.mxu1 %v15422_v22  ;;  %v7944_v18 = vpop.f32.mrb[19].mxu0  ;;  %v8015_v63 = vpop.f32.mrb[18].mxu1  ;;  %v8046_v58 = vmax.f32 %v7939_v57, 0.0  ;;  %v8129_v55 = vld [vmem:[%s15692_s6 + $0x118] sm:$0xff] }
 0x9cc   :  { %v7945_v23 = vadd.f32 %v7944_v18, %v7840_v32  ;;  %v8016_v8 = vadd.f32 %v8015_v63, %v7840_v32  ;;  %9251 = vmatprep.subr.bf16.mxu1 %v15447_v50  ;;  %v8017_v48 = vpop.f32.mrb[19].mxu1  ;;  %v8047_v30 = vmax.f32 %v7941_v46, 0.0  ;;  %v8048_v47 = vmax.f32 %v8012_v61, 0.0  ;;  %v7850_v56 = vpop.permute.xlu0 %7849  ;;  %v8133_v36 = vld [vmem:[%s15692_s6 + $0x138] sm:$0xff] }
 0x9cd   :  { %v8050_v31 = vmax.f32 %v7943_v28, 0.0  ;;  %v8018_v20 = vadd.f32 %v8017_v48, %v7840_v32  ;;  %v8049_v35 = vmax.f32 %v8014_v38, 0.0  ;;  %v9652_v38 = vcombine.high %v8129_v55, %v8133_v36  ;;  %v8403_v63 = vpop.permute.xlu1 %8402 }
 0x9ce   :  { %v8051_v6 = vmax.f32 %v7945_v23, 0.0  ;;  %v8052_v11 = vmax.f32 %v8016_v8, 0.0  ;;  %8920 = vmatpush1.bf16.msra.mxu0 %v15438_v39  ;;  %v9651_v18 = vcombine.low %v8129_v55, %v8133_v36 }
 0x9cf   :  { %v8070_v26 = vpack.c.bf16 %v8050_v31, %v8046_v58  ;;  %v8053_v22 = vmax.f32 %v8018_v20, 0.0  ;;  %8921 = vmatprep.subr.bf16.mxu0 %v15464_v33  ;;  %9252 = vmatpush1.bf16.msra.mxu1 %v15444_v25 }
 0x9d0   :  { %v8071_v50 = vpack.c.bf16 %v8051_v6, %v8047_v30  ;;  %v8072_v16 = vpack.c.bf16 %v8052_v11, %v8048_v47  ;;  %9253 = vmatprep.subr.bf16.mxu1 %v15469_v7  ;;  %v7948_v34 = vpop.f32.mrb[20].mxu0  ;;  %v8408_v23 = vpop.permute.xlu0 %8407 }
 0x9d1   :  { %v8073_v2 = vpack.c.bf16 %v8053_v22, %v8049_v35  ;;  %v7949_v49 = vadd.f32 %v7948_v34, %v7845_v52  ;;  %v7950_v44 = vpop.f32.mrb[21].mxu0  ;;  %v8021_v54 = vpop.f32.mrb[20].mxu1 }
 0x9d2   :  { %v7951_v42 = vadd.f32 %v7950_v44, %v7845_v52  ;;  %v8022_v39 = vadd.f32 %v8021_v54, %v7845_v52  ;;  %8922 = vmatpush1.bf16.msra.mxu0 %v15460_v10  ;;  %v7952_v9 = vpop.f32.mrb[22].mxu0  ;;  %v8023_v13 = vpop.f32.mrb[21].mxu1 }
 0x9d3   :  { %v7953_v43 = vadd.f32 %v7952_v9, %v7850_v56  ;;  %v8024_v33 = vadd.f32 %v8023_v13, %v7845_v52  ;;  %8923 = vmatprep.subr.bf16.mxu0 %v15486_v17  ;;  %9254 = vmatpush1.bf16.msra.mxu1 %v15466_v24  ;;  %v7954_v25 = vpop.f32.mrb[23].mxu0  ;;  %v8025_v62 = vpop.f32.mrb[22].mxu1  ;;  %v8054_v15 = vmax.f32 %v7949_v49, 0.0 }
 0x9d4   :  { %v7955_v7 = vadd.f32 %v7954_v25, %v7850_v56  ;;  %v8026_v53 = vadd.f32 %v8025_v62, %v7850_v56  ;;  %9255 = vmatprep.subr.bf16.mxu1 %v15491_v27  ;;  %v8027_v4 = vpop.f32.mrb[23].mxu1  ;;  %v8055_v19 = vmax.f32 %v7951_v42, 0.0  ;;  %v8056_v10 = vmax.f32 %v8022_v39, 0.0  ;;  %v8413_v34 = vpop.permute.xlu1 %8412 }
 0x9d5   :  { %v8058_v3 = vmax.f32 %v7953_v43, 0.0  ;;  %v8028_v60 = vadd.f32 %v8027_v4, %v7850_v56  ;;  %v8057_v17 = vmax.f32 %v8024_v33, 0.0 }
 0x9d6   :  { %v8059_v1 = vmax.f32 %v7955_v7, 0.0  ;;  %v8060_v12 = vmax.f32 %v8026_v53, 0.0  ;;  %8924 = vmatpush1.bf16.msra.mxu0 %v15482_v59  ;;  %v8105_v59 = vld [vmem:[%s15692_s6 + $0x58] sm:$0xff] }
 0x9d7   :  { %v8074_v32 = vpack.c.bf16 %v8058_v3, %v8054_v15  ;;  %v8061_v41 = vmax.f32 %v8028_v60, 0.0  ;;  %8925 = vmatprep.subr.bf16.mxu0 %v15514_v37  ;;  %9256 = vmatpush1.bf16.msra.mxu1 %v15488_v14  ;;  %v8109_v14 = vld [vmem:[%s15692_s6 + $0x78] sm:$0xff]  ;;  %v9619_v37 = vcombine.low %v15496_v45, %v15501_v51 }
 0x9d8   :  { %v8075_v24 = vpack.c.bf16 %v8059_v1, %v8055_v19  ;;  %v8076_v57 = vpack.c.bf16 %v8060_v12, %v8056_v10  ;;  %9257 = vmatprep.subr.bf16.mxu1 %v15519_v21  ;;  %v8117_v21 = vld [vmem:[%s15692_s6 + $0xb8] sm:$0xff]  ;;  %v9627_v0 = vcombine.low %v8105_v59, %v8109_v14  ;;  %v8423_v60 = vpop.permute.xlu1 %8422 }
 0x9d9   :  { %v8077_v27 = vpack.c.bf16 %v8061_v41, %v8057_v17  ;;  %v8121_v45 = vld [vmem:[%s15692_s6 + $0xd8] sm:$0xff] }
 0x9da   :  { %8926 = vmatpush1.bf16.msra.mxu0 %v15510_v5  ;;  %v9628_v5 = vcombine.high %v8105_v59, %v8109_v14  ;;  %v8125_v51 = vld [vmem:[%s15692_s6 + $0xf8] sm:$0xff] }
 0x9db   :  { %8927 = vmatprep.subr.bf16.mxu0 %v8071_v50  ;;  %9258 = vmatpush1.bf16.msra.mxu1 %v15516_v40  ;;  %v8113_v40 = vld [vmem:[%s15692_s6 + $0x98] sm:$0xff]  ;;  %v9644_v61 = vcombine.high %v8121_v45, %v8125_v51  ;;  %v9643_v28 = vcombine.low %v8121_v45, %v8125_v51 }
 0x9dc   :  { %9259 = vmatprep.subr.bf16.mxu1 %v8073_v2  ;;  %v9636_v29 = vcombine.high %v8113_v40, %v8117_v21  ;;  %v9635_v46 = vcombine.low %v8113_v40, %v8117_v21  ;;  %v8418_v2 = vpop.permute.xlu0 %8417 }
 0x9de   :  { %8928 = vmatpush1.bf16.msra.mxu0 %v8070_v26 }
 0x9df   :  { %8929 = vmatprep.subr.bf16.mxu0 %v8075_v24  ;;  %9260 = vmatpush1.bf16.msra.mxu1 %v8072_v16 }
 0x9e0   :  { %9261 = vmatprep.subr.bf16.mxu1 %v8077_v27  ;;  %v8428_v19 = vpop.permute.xlu0 %8427 }
 0x9e2   :  { %8930 = vmatpush1.bf16.msra.mxu0 %v8074_v32 }
 0x9e3   :  { %9262 = vmatpush1.bf16.msra.mxu1 %v8076_v57 }
 0x9e4   :  { %v8438_v45 = vpop.permute.xlu0 %8437 }
 0x9e5   :  { %8932 = vmatmul.mubr.bf16.vlgmr.msra.gmra.mrb[24].mxu0 %v9619_v37 }
 0x9e6   :  { %9264 = vmatmul.mubr.bf16.vlgmr.msra.gmra.mrb[24].mxu1 %v9619_v37  ;;  %8941 = vmatprep.mubr.bf16.mxu0 %v9628_v5 }
 0x9e7   :  { %9273 = vmatprep.mubr.bf16.mxu1 %v9628_v5 }
 0x9ed   :  { %8942 = vmatmul.mubr.bf16.gmra.mrb[28].mxu0 %v9627_v0 }
 0x9ee   :  { %9274 = vmatmul.mubr.bf16.gmra.mrb[28].mxu1 %v9627_v0  ;;  %8951 = vmatprep.mubr.bf16.mxu0 %v9636_v29 }
 0x9ef   :  { %9283 = vmatprep.mubr.bf16.mxu1 %v9636_v29  ;;  %v8433_v29 = vpop.permute.xlu1 %8432 }
 0x9f5   :  { %8952 = vmatmul.mubr.bf16.gmra.mrb[32].mxu0 %v9635_v46 }
 0x9f6   :  { %9284 = vmatmul.mubr.bf16.gmra.mrb[32].mxu1 %v9635_v46  ;;  %8961 = vmatprep.mubr.bf16.mxu0 %v9644_v61 }
 0x9f7   :  { %9293 = vmatprep.mubr.bf16.mxu1 %v9644_v61 }
 0x9fd   :  { %8962 = vmatmul.mubr.bf16.gmra.mrb[36].mxu0 %v9643_v28 }
 0x9fe   :  { %9294 = vmatmul.mubr.bf16.gmra.mrb[36].mxu1 %v9643_v28  ;;  %8971 = vmatprep.mubr.bf16.mxu0 %v9652_v38 }
 0x9ff   :  { %9303 = vmatprep.mubr.bf16.mxu1 %v9652_v38 }
 0xa05   :  { %8972 = vmatmul.mubr.bf16.gmra.mrb[40].mxu0 %v9651_v18 }
 0xa06   :  { %9304 = vmatmul.mubr.bf16.gmra.mrb[40].mxu1 %v9651_v18 }
 0xab8   :  { %v8933_v8 = vpop.f32.mrb[24].mxu0 }
 0xab9   :  { %v9721_v48 = vadd.f32 %v8933_v8, %v8403_v63  ;;  %v8935_v58 = vpop.f32.mrb[25].mxu0  ;;  %v9265_v31 = vpop.f32.mrb[24].mxu1 }
 0xaba   :  { %v9722_v20 = vadd.f32 %v8935_v58, %v8403_v63  ;;  %v9741_v30 = vadd.f32 %v9265_v31, %v8403_v63  ;;  %v8937_v47 = vpop.f32.mrb[26].mxu0  ;;  %v9267_v6 = vpop.f32.mrb[25].mxu1 }
 0xabb   :  { %9314 = vst [vmem:[%s15693_s8] sm:$0xff] %v9721_v48  ;;  %v9723_v11 = vadd.f32 %v8937_v47, %v8408_v23  ;;  %v9742_v52 = vadd.f32 %v9267_v6, %v8403_v63  ;;  %v8939_v26 = vpop.f32.mrb[27].mxu0  ;;  %v9269_v35 = vpop.f32.mrb[26].mxu1 }
 0xabc   :  { %9315 = vst [vmem:[%s15693_s8 + $0x8] sm:$0xff] %v9722_v20  ;;  %9653 = vst [vmem:[%s15693_s8 + $0xa0] sm:$0xff] %v9741_v30  ;;  %v9724_v22 = vadd.f32 %v8939_v26, %v8408_v23  ;;  %v9743_v56 = vadd.f32 %v9269_v35, %v8408_v23  ;;  %v9271_v50 = vpop.f32.mrb[27].mxu1  ;;  %v8443_v47 = vpop.permute.xlu1 %8442 }
 0xabd   :  { %9316 = vst [vmem:[%s15693_s8 + $0x10] sm:$0xff] %v9723_v11  ;;  %9654 = vst [vmem:[%s15693_s8 + $0xa8] sm:$0xff] %v9742_v52  ;;  %v9744_v16 = vadd.f32 %v9271_v50, %v8408_v23  ;;  %v8448_v6 = vpop.permute.xlu0 %8447 }
 0xabe   :  { %9317 = vst [vmem:[%s15693_s8 + $0x18] sm:$0xff] %v9724_v22  ;;  %9655 = vst [vmem:[%s15693_s8 + $0xb0] sm:$0xff] %v9743_v56 }
 0xabf   :  { %9656 = vst [vmem:[%s15693_s8 + $0xb8] sm:$0xff] %v9744_v16 }
 0xac0   :  { %v8943_v49 = vpop.f32.mrb[28].mxu0 }
 0xac1   :  { %v9725_v44 = vadd.f32 %v8943_v49, %v8413_v34  ;;  %v8945_v54 = vpop.f32.mrb[29].mxu0  ;;  %v9275_v42 = vpop.f32.mrb[28].mxu1 }
 0xac2   :  { %v9726_v39 = vadd.f32 %v8945_v54, %v8413_v34  ;;  %v9745_v9 = vadd.f32 %v9275_v42, %v8413_v34  ;;  %v8947_v13 = vpop.f32.mrb[30].mxu0  ;;  %v9277_v43 = vpop.f32.mrb[29].mxu1 }
 0xac3   :  { %9318 = vst [vmem:[%s15693_s8 + $0x20] sm:$0xff] %v9725_v44  ;;  %v9727_v33 = vadd.f32 %v8947_v13, %v8418_v2  ;;  %v9746_v25 = vadd.f32 %v9277_v43, %v8413_v34  ;;  %v8949_v62 = vpop.f32.mrb[31].mxu0  ;;  %v9279_v7 = vpop.f32.mrb[30].mxu1 }
 0xac4   :  { %9319 = vst [vmem:[%s15693_s8 + $0x28] sm:$0xff] %v9726_v39  ;;  %9657 = vst [vmem:[%s15693_s8 + $0xc0] sm:$0xff] %v9745_v9  ;;  %v9728_v53 = vadd.f32 %v8949_v62, %v8418_v2  ;;  %v9747_v4 = vadd.f32 %v9279_v7, %v8418_v2  ;;  %v9281_v15 = vpop.f32.mrb[31].mxu1 }
 0xac5   :  { %9320 = vst [vmem:[%s15693_s8 + $0x30] sm:$0xff] %v9727_v33  ;;  %9658 = vst [vmem:[%s15693_s8 + $0xc8] sm:$0xff] %v9746_v25  ;;  %v9748_v3 = vadd.f32 %v9281_v15, %v8418_v2 }
 0xac6   :  { %9321 = vst [vmem:[%s15693_s8 + $0x38] sm:$0xff] %v9728_v53  ;;  %9659 = vst [vmem:[%s15693_s8 + $0xd0] sm:$0xff] %v9747_v4 }
 0xac7   :  { %9660 = vst [vmem:[%s15693_s8 + $0xd8] sm:$0xff] %v9748_v3 }
 0xac8   :  { %v8953_v10 = vpop.f32.mrb[32].mxu0 }
 0xac9   :  { %v9729_v1 = vadd.f32 %v8953_v10, %v8423_v60  ;;  %v8955_v12 = vpop.f32.mrb[33].mxu0  ;;  %v9285_v32 = vpop.f32.mrb[32].mxu1 }
 0xaca   :  { %v9730_v17 = vadd.f32 %v8955_v12, %v8423_v60  ;;  %v9749_v41 = vadd.f32 %v9285_v32, %v8423_v60  ;;  %v8957_v24 = vpop.f32.mrb[34].mxu0  ;;  %v9287_v57 = vpop.f32.mrb[33].mxu1 }
 0xacb   :  { %9322 = vst [vmem:[%s15693_s8 + $0x40] sm:$0xff] %v9729_v1  ;;  %v9731_v27 = vadd.f32 %v8957_v24, %v8428_v19  ;;  %v9750_v59 = vadd.f32 %v9287_v57, %v8423_v60  ;;  %v8959_v14 = vpop.f32.mrb[35].mxu0  ;;  %v9289_v37 = vpop.f32.mrb[34].mxu1 }
 0xacc   :  { %9323 = vst [vmem:[%s15693_s8 + $0x48] sm:$0xff] %v9730_v17  ;;  %9661 = vst [vmem:[%s15693_s8 + $0xe0] sm:$0xff] %v9749_v41  ;;  %v9732_v5 = vadd.f32 %v8959_v14, %v8428_v19  ;;  %v9751_v40 = vadd.f32 %v9289_v37, %v8428_v19  ;;  %v9291_v21 = vpop.f32.mrb[35].mxu1 }
 0xacd   :  { %9324 = vst [vmem:[%s15693_s8 + $0x50] sm:$0xff] %v9731_v27  ;;  %9662 = vst [vmem:[%s15693_s8 + $0xe8] sm:$0xff] %v9750_v59  ;;  %v9752_v0 = vadd.f32 %v9291_v21, %v8428_v19 }
 0xace   :  { %9325 = vst [vmem:[%s15693_s8 + $0x58] sm:$0xff] %v9732_v5  ;;  %9663 = vst [vmem:[%s15693_s8 + $0xf0] sm:$0xff] %v9751_v40 }
 0xacf   :  { %9664 = vst [vmem:[%s15693_s8 + $0xf8] sm:$0xff] %v9752_v0 }
 0xad0   :  { %v8963_v51 = vpop.f32.mrb[36].mxu0 }
 0xad1   :  { %v9733_v46 = vadd.f32 %v8963_v51, %v8433_v29  ;;  %v8965_v61 = vpop.f32.mrb[37].mxu0  ;;  %v9295_v55 = vpop.f32.mrb[36].mxu1 }
 0xad2   :  { %v9734_v36 = vadd.f32 %v8965_v61, %v8433_v29  ;;  %v9753_v28 = vadd.f32 %v9295_v55, %v8433_v29  ;;  %v8967_v38 = vpop.f32.mrb[38].mxu0  ;;  %v9297_v18 = vpop.f32.mrb[37].mxu1 }
 0xad3   :  { %9326 = vst [vmem:[%s15693_s8 + $0x60] sm:$0xff] %v9733_v46  ;;  %v9735_v63 = vadd.f32 %v8967_v38, %v8438_v45  ;;  %v9754_v23 = vadd.f32 %v9297_v18, %v8433_v29  ;;  %v8969_v8 = vpop.f32.mrb[39].mxu0  ;;  %v9299_v48 = vpop.f32.mrb[38].mxu1 }
 0xad4   :  { %9327 = vst [vmem:[%s15693_s8 + $0x68] sm:$0xff] %v9734_v36  ;;  %9665 = vst [vmem:[%s15693_s8 + $0x100] sm:$0xff] %v9753_v28  ;;  %v9736_v58 = vadd.f32 %v8969_v8, %v8438_v45  ;;  %v9755_v31 = vadd.f32 %v9299_v48, %v8438_v45  ;;  %v9301_v20 = vpop.f32.mrb[39].mxu1 }
 0xad5   :  { %9328 = vst [vmem:[%s15693_s8 + $0x70] sm:$0xff] %v9735_v63  ;;  %9666 = vst [vmem:[%s15693_s8 + $0x108] sm:$0xff] %v9754_v23  ;;  %v9756_v30 = vadd.f32 %v9301_v20, %v8438_v45 }
 0xad6   :  { %9329 = vst [vmem:[%s15693_s8 + $0x78] sm:$0xff] %v9736_v58  ;;  %9667 = vst [vmem:[%s15693_s8 + $0x110] sm:$0xff] %v9755_v31 }
 0xad7   :  { %9668 = vst [vmem:[%s15693_s8 + $0x118] sm:$0xff] %v9756_v30 }
 0xad8   :  { %v8973_v11 = vpop.f32.mrb[40].mxu0 }
 0xad9   :  { %v9737_v52 = vadd.f32 %v8973_v11, %v8443_v47  ;;  %v8975_v26 = vpop.f32.mrb[41].mxu0  ;;  %v9305_v35 = vpop.f32.mrb[40].mxu1 }
 0xada   :  { %v9738_v22 = vadd.f32 %v8975_v26, %v8443_v47  ;;  %v9757_v56 = vadd.f32 %v9305_v35, %v8443_v47  ;;  %v8977_v50 = vpop.f32.mrb[42].mxu0  ;;  %v9307_v16 = vpop.f32.mrb[41].mxu1 }
 0xadb   :  { %9330 = vst [vmem:[%s15693_s8 + $0x80] sm:$0xff] %v9737_v52  ;;  %v9739_v34 = vadd.f32 %v8977_v50, %v8448_v6  ;;  %v9758_v2 = vadd.f32 %v9307_v16, %v8443_v47  ;;  %v8979_v49 = vpop.f32.mrb[43].mxu0  ;;  %v9309_v44 = vpop.f32.mrb[42].mxu1 }
 0xadc   :  { %9331 = vst [vmem:[%s15693_s8 + $0x88] sm:$0xff] %v9738_v22  ;;  %9669 = vst [vmem:[%s15693_s8 + $0x120] sm:$0xff] %v9757_v56  ;;  %v9740_v54 = vadd.f32 %v8979_v49, %v8448_v6  ;;  %v9759_v42 = vadd.f32 %v9309_v44, %v8448_v6  ;;  %v9311_v39 = vpop.f32.mrb[43].mxu1 }
 0xadd   :  { %9332 = vst [vmem:[%s15693_s8 + $0x90] sm:$0xff] %v9739_v34  ;;  %9670 = vst [vmem:[%s15693_s8 + $0x128] sm:$0xff] %v9758_v2  ;;  %v9760_v9 = vadd.f32 %v9311_v39, %v8448_v6 }
 0xade   :  { %9333 = vst [vmem:[%s15693_s8 + $0x98] sm:$0xff] %v9740_v54  ;;  %9671 = vst [vmem:[%s15693_s8 + $0x130] sm:$0xff] %v9759_v42 }
 0xadf   :  { %9672 = vst [vmem:[%s15693_s8 + $0x138] sm:$0xff] %v9760_v9 }

</bundles_post_ra>
